<compile_context>
chip_gen: v6e
topology: v6e:2x2x1
jax: 0.10.0
libtpu: 0.0.40
codegen_flags: <defaults>
</compile_context>

<pallas_src>
import math
import functools

import jax
import jax.numpy as jnp
from jax.experimental import pallas as pl
from jax.experimental.pallas import tpu as pltpu


# ----------------------------- tiling helpers -----------------------------

def _round_up(v, m):
    return (v + m - 1) // m * m


def _tile_plan(dim, align, target):
    """Return (tile, padded_dim, num_tiles) with tile % align == 0."""
    d = _round_up(dim, align)
    if d <= target:
        return d, d, 1
    n = -(-d // target)
    t = _round_up(-(-d // n), align)
    return t, t * n, n


def _k_plan(K):
    # If K (padded to 8) fits a single block, keep it un-tiled (last dim == full dim is
    # allowed); otherwise tile K in 128-aligned chunks of ~512.
    k8 = _round_up(K, 8)
    if k8 <= 1024:
        return k8, k8, 1
    return _tile_plan(K, 128, 512)


def _pad2(a, rows, cols):
    return jnp.pad(a, ((0, rows - a.shape[0]), (0, cols - a.shape[1])))


# ----------------------------- fused matmul + BN + act (+ residual) kernel -----------------------------

def _mm_kernel(x_ref, w_ref, s_ref, t_ref, *rest, act, has_res):
    if has_res:
        r_ref, o_ref, acc_ref = rest
    else:
        o_ref, acc_ref = rest
        r_ref = None

    @pl.when(pl.program_id(2) == 0)
    def _():
        acc_ref[...] = jnp.zeros_like(acc_ref)

    acc_ref[...] += jnp.dot(x_ref[...], w_ref[...],
                            preferred_element_type=jnp.float32)

    @pl.when(pl.program_id(2) == pl.num_programs(2) - 1)
    def _():
        y = acc_ref[...] * s_ref[...] + t_ref[...]
        if has_res:
            y = y + r_ref[...]
        if act == "relu":
            y = jnp.maximum(y, 0.0)
        elif act == "leaky":
            y = jnp.where(y > 0, y, 0.01 * y)   # nn.LeakyReLU default slope
        o_ref[...] = y


def matmul_affine_act(x, w, scale, shift, act="none", residual=None):
    """act((x @ w) * scale + shift [+ residual]) — folded conv/linear + BN + activation.

    x, w are cast to bf16 for the MXU; accumulation and the epilogue stay f32.
    """
    M, K = x.shape
    N = w.shape[1]
    tm, Mp, nm = _tile_plan(M, 8, 256)
    tn, Np, nn = _tile_plan(N, 128, 256)
    tk, Kp, nk = _k_plan(K)

    xp = _pad2(x.astype(jnp.bfloat16), Mp, Kp)
    wp = _pad2(w.astype(jnp.bfloat16), Kp, Np)
    sp = _pad2(scale.reshape(1, N).astype(jnp.float32), 1, Np)
    tp = _pad2(shift.reshape(1, N).astype(jnp.float32), 1, Np)

    has_res = residual is not None
    ins = [xp, wp, sp, tp]
    in_specs = [
        pl.BlockSpec((tm, tk), lambda i, j, k: (i, k)),
        pl.BlockSpec((tk, tn), lambda i, j, k: (k, j)),
        pl.BlockSpec((1, tn), lambda i, j, k: (0, j)),
        pl.BlockSpec((1, tn), lambda i, j, k: (0, j)),
    ]
    if has_res:
        ins.append(_pad2(residual.astype(jnp.float32), Mp, Np))
        in_specs.append(pl.BlockSpec((tm, tn), lambda i, j, k: (i, j)))

    kernel = functools.partial(_mm_kernel, act=act, has_res=has_res)
    out = pl.pallas_call(
        kernel,
        out_shape=jax.ShapeDtypeStruct((Mp, Np), jnp.float32),
        grid=(nm, nn, nk),
        in_specs=in_specs,
        out_specs=pl.BlockSpec((tm, tn), lambda i, j, k: (i, j)),
        scratch_shapes=[pltpu.VMEM((tm, tn), jnp.float32)],
        compiler_params=pltpu.CompilerParams(
            dimension_semantics=("parallel", "parallel", "arbitrary"),
            vmem_limit_bytes=32 * 1024 * 1024),
    )(*ins)
    return out[:M, :N]


# ----------------------------- fused attention + FC head kernel -----------------------------

def _head_kernel(q1_ref, p1_ref, q2_ref, p2_ref, q3_ref, p3_ref, q4_ref, p4_ref, p0_ref,
                 w0a_ref, w0b_ref, s0_ref, t0_ref,
                 w1_ref, s1_ref, t1_ref,
                 w2_ref, b2_ref,
                 s2_ref, t2_ref,
                 wl_ref, bl_ref,
                 spk_ref, out_ref, *, d1, d2, d3, d4):
    # TODO(synk): nn.Dropout(0.5) inside attention() and the head is eval-mode identity.

    def attn(q, k, dk):
        s = jnp.dot(q, k, preferred_element_type=jnp.float32) * (1.0 / math.sqrt(dk))
        m = jnp.max(s, axis=-1, keepdims=True)
        e = jnp.exp(s - m)
        return e * pl.reciprocal(jnp.sum(e, axis=-1, keepdims=True), approx=True)

    def leaky(y):
        return jnp.where(y > 0, y, 0.01 * y)

    z1a = attn(q1_ref[...], p1_ref[...], d1)
    z2a = attn(q2_ref[...], p2_ref[...], d2)
    z3a = attn(q3_ref[...], p3_ref[...], d3)
    z4a = attn(q4_ref[...], p4_ref[...], d4)

    z1 = jnp.dot(p0_ref[...], z1a, preferred_element_type=jnp.float32)
    z2 = jnp.dot(z1, z2a, preferred_element_type=jnp.float32)
    z3 = jnp.dot(z2, z3a, preferred_element_type=jnp.float32)
    z4 = jnp.dot(z3, z4a, preferred_element_type=jnp.float32)

    # cat((z4, p4), 1) @ W0  ==  z4 @ W0[:c4] + p4 @ W0[c4:]
    h = (jnp.dot(z4, w0a_ref[...], preferred_element_type=jnp.float32)
         + jnp.dot(p4_ref[...], w0b_ref[...], preferred_element_type=jnp.float32))
    h = leaky(h * s0_ref[...] + t0_ref[...])                      # bn0 + LeakyReLU
    h = jnp.dot(h, w1_ref[...], preferred_element_type=jnp.float32)
    h = leaky(h * s1_ref[...] + t1_ref[...])                      # bn1 + LeakyReLU
    h = jnp.dot(h, w2_ref[...], preferred_element_type=jnp.float32) + b2_ref[...]
    spk_ref[...] = h                                              # spk_embedding (pre-bn2)
    h2 = leaky(h * s2_ref[...] + t2_ref[...])                     # bn2 + LeakyReLU
    out_ref[...] = jnp.dot(h2, wl_ref[...], preferred_element_type=jnp.float32) + bl_ref[...]


def _fold_bn(bn):
    gamma, beta, mean, var = bn
    scale = gamma / jnp.sqrt(var + 1e-5)
    shift = beta - mean * scale
    return scale, shift


def attention_head(params, p0, p1, p2, p3, p4):
    """One fused Pallas kernel for the whole tiny head (attention chain + FC stack)."""
    n = p0.shape[0]
    c4 = p4.shape[1]

    w0, b0 = params["fc0"]
    s0, sh0 = _fold_bn(params["bn0"])
    t0 = sh0 + s0 * b0
    w1, b1 = params["fc1"]
    s1, sh1 = _fold_bn(params["bn1_head"])
    t1 = sh1 + s1 * b1
    w2, b2 = params["fc2"]
    s2, t2 = _fold_bn(params["bn2_head"])
    wl, bl = params["last"]
    emb = w0.shape[1]
    nc = wl.shape[1]

    # TODO(synk): tiny (2,C) transposes for q are left to XLA glue rather than done in-kernel.
    args = [
        p0.T, p1, p1.T, p2, p2.T, p3, p3.T, p4, p0,
        w0[:c4], w0[c4:], s0.reshape(1, -1), t0.reshape(1, -1),
        w1, s1.reshape(1, -1), t1.reshape(1, -1),
        w2, b2.reshape(1, -1),
        s2.reshape(1, -1), t2.reshape(1, -1),
        wl, bl.reshape(1, -1),
    ]
    kernel = functools.partial(_head_kernel,
                               d1=p1.shape[1], d2=p2.shape[1],
                               d3=p3.shape[1], d4=p4.shape[1])
    return pl.pallas_call(
        kernel,
        out_shape=(jax.ShapeDtypeStruct((n, emb), jnp.float32),
                   jax.ShapeDtypeStruct((n, nc), jnp.float32)),
        grid=(1,),
        in_specs=[pl.BlockSpec(a.shape, lambda i: (0, 0)) for a in args],
        out_specs=(pl.BlockSpec((n, emb), lambda i: (0, 0)),
                   pl.BlockSpec((n, nc), lambda i: (0, 0))),
        compiler_params=pltpu.CompilerParams(dimension_semantics=("arbitrary",)),
    )(*args)


# ----------------------------- Conv wrappers (glue) -----------------------------

def im2col(x, kh, kw, stride, pad):
    # TODO(synk): im2col is still materialized in HBM (in bf16); an in-kernel halo-tiled
    # patch extraction would remove the 9x/49x activation read amplification entirely.
    x = x.astype(jnp.bfloat16)
    n, h, w, c = x.shape
    xp = jnp.pad(x, ((0, 0), (pad, pad), (pad, pad), (0, 0)))
    ho = (h + 2 * pad - kh) // stride + 1
    wo = (w + 2 * pad - kw) // stride + 1
    cols = []
    for i in range(kh):
        for j in range(kw):
            cols.append(xp[:, i:i + (ho - 1) * stride + 1:stride,
                            j:j + (wo - 1) * stride + 1:stride, :])
    return jnp.concatenate(cols, axis=-1), ho, wo


def conv_bn_act(x, w, bn, stride, pad, act, residual=None):
    """Conv2d(bias=False) + BatchNorm2d(eval) + activation [+ residual add] via Pallas matmul."""
    kh, kw, cin, cout = w.shape
    cols, ho, wo = im2col(x, kh, kw, stride, pad)
    n = x.shape[0]
    cols2 = cols.reshape(n * ho * wo, kh * kw * cin)
    wf = w.reshape(kh * kw * cin, cout)
    scale, shift = _fold_bn(bn)
    res2 = None if residual is None else residual.reshape(n * ho * wo, cout)
    y = matmul_affine_act(cols2, wf, scale, shift, act, residual=res2)
    return y.reshape(n, ho, wo, cout)


def basic_block(x, p):
    out = conv_bn_act(x, p["conv1"], p["bn1"], p["stride"], 1, "relu")
    if "down_conv" in p:
        idn = conv_bn_act(x, p["down_conv"], p["down_bn"], p["stride"], 0, "none")
    else:
        idn = x
    # residual add + ReLU fused into the second conv's matmul epilogue.
    return conv_bn_act(out, p["conv2"], p["bn2"], 1, 1, "relu", residual=idn)


def gap(x):
    """(N,H,W,C) -> (N,C); plain XLA glue (tiny, fused under jit)."""
    # TODO(synk): not fused into the conv epilogue (would conflict with the parallel-M grid).
    return jnp.mean(x, axis=(1, 2))


# ----------------------------- Parameter init (deterministic, synthetic) -----------------------------

def _conv_w(key, kh, kw, cin, cout):
    return 0.05 * jax.random.normal(key, (kh, kw, cin, cout), jnp.float32)


def _bn(key, c):
    k1, k2, k3, k4 = jax.random.split(key, 4)
    gamma = 1.0 + 0.1 * jax.random.normal(k1, (c,), jnp.float32)
    beta = 0.1 * jax.random.normal(k2, (c,), jnp.float32)
    mean = 0.1 * jax.random.normal(k3, (c,), jnp.float32)
    var = jax.random.uniform(k4, (c,), jnp.float32, minval=0.5, maxval=1.5)
    return (gamma, beta, mean, var)


def _linear(key, din, dout):
    k1, k2 = jax.random.split(key)
    bound = 1.0 / math.sqrt(din)
    w = jax.random.uniform(k1, (din, dout), jnp.float32, minval=-bound, maxval=bound)
    b = jax.random.uniform(k2, (dout,), jnp.float32, minval=-bound, maxval=bound)
    return (w, b)


def _make_layer(key, cin, cout, stride):
    keys = jax.random.split(key, 10)
    b0 = {"stride": stride,
          "conv1": _conv_w(keys[0], 3, 3, cin, cout), "bn1": _bn(keys[1], cout),
          "conv2": _conv_w(keys[2], 3, 3, cout, cout), "bn2": _bn(keys[3], cout)}
    if stride != 1 or cin != cout:
        b0["down_conv"] = _conv_w(keys[4], 1, 1, cin, cout)
        b0["down_bn"] = _bn(keys[5], cout)
    b1 = {"stride": 1,
          "conv1": _conv_w(keys[6], 3, 3, cout, cout), "bn1": _bn(keys[7], cout),
          "conv2": _conv_w(keys[8], 3, 3, cout, cout), "bn2": _bn(keys[9], cout)}
    return [b0, b1]


def init_params(key, base=16, num_classes=10):
    # resnet18-style widths scaled down: [base, 2b, 4b, 8b]; embedding_size = 2*8*base
    c = [base, 2 * base, 4 * base, 8 * base]
    emb = 2 * c[3]
    keys = jax.random.split(key, 13)
    return {
        "conv1": _conv_w(keys[0], 7, 7, 3, base),
        "bn1": _bn(keys[1], base),
        "layer1": _make_layer(keys[2], base, c[0], 1),
        "layer2": _make_layer(keys[3], c[0], c[1], 2),
        "layer3": _make_layer(keys[4], c[1], c[2], 2),
        "layer4": _make_layer(keys[5], c[2], c[3], 2),
        "fc0": _linear(keys[6], 2 * c[3], emb),
        "bn0": _bn(keys[7], emb),
        "fc1": _linear(keys[8], emb, emb),
        "bn1_head": _bn(keys[9], emb),
        "fc2": _linear(keys[10], emb, emb),
        "bn2_head": _bn(keys[11], emb),
        "last": _linear(keys[12], emb, num_classes),
    }


# ----------------------------- Forward pass -----------------------------

def custom_model_forward(params, x_nchw):
    # input is NCHW (PyTorch); convert once to NHWC for all kernel compute.
    x = jnp.transpose(x_nchw, (0, 2, 3, 1)).astype(jnp.float32)

    # stem: conv1 -> bn1 -> relu   (note: this forward never calls maxpool)
    x = conv_bn_act(x, params["conv1"], params["bn1"], stride=2, pad=3, act="relu")
    p0 = gap(x)

    for blk in params["layer1"]:
        x = basic_block(x, blk)
    p1 = gap(x)

    for blk in params["layer2"]:
        x = basic_block(x, blk)
    p2 = gap(x)

    for blk in params["layer3"]:
        x = basic_block(x, blk)
    p3 = gap(x)

    for blk in params["layer4"]:
        x = basic_block(x, blk)
    p4 = gap(x)

    # one fused kernel for: 4 attentions, chained matmuls, cat, fc0/bn0, fc1/bn1, fc2,
    # bn2, last.  Returns (spk_embedding, logits).
    return attention_head(params, p0, p1, p2, p3, p4)


# ----------------------------- Main -----------------------------

if __name__ == "__main__":
    key = jax.random.PRNGKey(0)
    kp, kx = jax.random.split(key)
    base = 16
    num_classes = 10
    params = init_params(kp, base=base, num_classes=num_classes)

    x = jax.random.normal(kx, (2, 3, 32, 32), jnp.float32)  # NCHW, like PyTorch

    fwd = jax.jit(functools.partial(custom_model_forward, params))
    spk_embedding, logits = fwd(x)
    jax.block_until_ready((spk_embedding, logits))

    assert spk_embedding.shape == (2, 2 * 8 * base)   # (2, 256)
    assert logits.shape == (2, num_classes)           # (2, 10)
    assert bool(jnp.all(jnp.isfinite(spk_embedding))) and bool(jnp.all(jnp.isfinite(logits)))
    print("KERNEL_OK")
</pallas_src>

<mosaic_0001>
module attributes {stable_mosaic.version = 11 : i64} {
  func.func @_mm_kernel(%arg0: i32, %arg1: i32, %arg2: i32, %arg3: memref<256x152xbf16, #tpu.memory_space<vmem>>, %arg4: memref<152x128xbf16, #tpu.memory_space<vmem>>, %arg5: memref<1x128xf32, #tpu.memory_space<vmem>>, %arg6: memref<1x128xf32, #tpu.memory_space<vmem>>, %arg7: memref<256x128xf32, #tpu.memory_space<vmem>>, %arg8: memref<256x128xf32, #tpu.memory_space<vmem>>) attributes {dimension_semantics = [#tpu.dimension_semantics<parallel>, #tpu.dimension_semantics<parallel>, #tpu.dimension_semantics<arbitrary>], iteration_bounds = array<i64: 2, 1, 1>, scalar_prefetch = 0 : i64, scratch_operands = 1 : i64, tpu.core_type = #tpu.core_type<tc>, window_params = [{transform_indices = @transform_0, window_bounds = array<i64: 256, 152>}, {transform_indices = @transform_1, window_bounds = array<i64: 152, 128>}, {transform_indices = @transform_2, window_bounds = array<i64: 1, 128>}, {transform_indices = @transform_3, window_bounds = array<i64: 1, 128>}, {transform_indices = @transform_4, window_bounds = array<i64: 256, 128>}]} {
    %c0_i32 = arith.constant 0 : i32
    %0 = arith.cmpi eq, %arg2, %c0_i32 : i32
    %1 = arith.extui %0 : i1 to i32
    %c0_i32_0 = arith.constant 0 : i32
    %2 = arith.cmpi ne, %1, %c0_i32_0 : i32
    scf.if %2 {
      %cst_10 = arith.constant 0.000000e+00 : f32
      %12 = vector.broadcast %cst_10 : f32 to vector<256x128xf32>
      %c0_11 = arith.constant 0 : index
      %c0_12 = arith.constant 0 : index
      %13 = vector.load %arg8[%c0_11, %c0_12] : memref<256x128xf32, #tpu.memory_space<vmem>>, vector<256x128xf32>
      tpu.vector_store %arg8[%c0_11, %c0_12], %12 {strides = array<i32>} : memref<256x128xf32, #tpu.memory_space<vmem>>, vector<256x128xf32>,
    } else {
    }
    %c0 = arith.constant 0 : index
    %c0_1 = arith.constant 0 : index
    %3 = vector.load %arg8[%c0, %c0_1] : memref<256x128xf32, #tpu.memory_space<vmem>>, vector<256x128xf32>
    %c0_2 = arith.constant 0 : index
    %c0_3 = arith.constant 0 : index
    %4 = vector.load %arg3[%c0_2, %c0_3] : memref<256x152xbf16, #tpu.memory_space<vmem>>, vector<256x152xbf16>
    %c0_4 = arith.constant 0 : index
    %c0_5 = arith.constant 0 : index
    %5 = vector.load %arg4[%c0_4, %c0_5] : memref<152x128xbf16, #tpu.memory_space<vmem>>, vector<152x128xbf16>
    %cst = arith.constant dense<0.000000e+00> : vector<256x128xf32>
    %6 = tpu.matmul %4, %5, %cst {dimension_numbers = #tpu.dot_dimension_numbers<[1], [0], [0], [1], [0, 0, 1, 1], [], []>} : vector<256x152xbf16>, vector<152x128xbf16>, vector<256x128xf32> -> vector<256x128xf32>
    %7 = arith.addf %3, %6 : vector<256x128xf32>
    %c0_6 = arith.constant 0 : index
    %c0_7 = arith.constant 0 : index
    %8 = vector.load %arg8[%c0_6, %c0_7] : memref<256x128xf32, #tpu.memory_space<vmem>>, vector<256x128xf32>
    tpu.vector_store %arg8[%c0_6, %c0_7], %7 {strides = array<i32>} : memref<256x128xf32, #tpu.memory_space<vmem>>, vector<256x128xf32>,
    %c0_i32_8 = arith.constant 0 : i32
    %9 = arith.cmpi eq, %arg2, %c0_i32_8 : i32
    %10 = arith.extui %9 : i1 to i32
    %c0_i32_9 = arith.constant 0 : i32
    %11 = arith.cmpi ne, %10, %c0_i32_9 : i32
    scf.if %11 {
      %c0_10 = arith.constant 0 : index
      %c0_11 = arith.constant 0 : index
      %12 = vector.load %arg8[%c0_10, %c0_11] : memref<256x128xf32, #tpu.memory_space<vmem>>, vector<256x128xf32>
      %c0_12 = arith.constant 0 : index
      %c0_13 = arith.constant 0 : index
      %13 = vector.load %arg5[%c0_12, %c0_13] : memref<1x128xf32, #tpu.memory_space<vmem>>, vector<1x128xf32>
      %14 = vector.broadcast %13 : vector<1x128xf32> to vector<256x128xf32>
      %15 = arith.mulf %12, %14 : vector<256x128xf32>
      %c0_14 = arith.constant 0 : index
      %c0_15 = arith.constant 0 : index
      %16 = vector.load %arg6[%c0_14, %c0_15] : memref<1x128xf32, #tpu.memory_space<vmem>>, vector<1x128xf32>
      %17 = vector.broadcast %16 : vector<1x128xf32> to vector<256x128xf32>
      %18 = arith.addf %15, %17 : vector<256x128xf32>
      %cst_16 = arith.constant 0.000000e+00 : f32
      %19 = vector.broadcast %cst_16 : f32 to vector<256x128xf32>
      %20 = arith.maximumf %18, %19 : vector<256x128xf32>
      %c0_17 = arith.constant 0 : index
      %c0_18 = arith.constant 0 : index
      %21 = vector.load %arg7[%c0_17, %c0_18] : memref<256x128xf32, #tpu.memory_space<vmem>>, vector<256x128xf32>
      tpu.vector_store %arg7[%c0_17, %c0_18], %20 {strides = array<i32>} : memref<256x128xf32, #tpu.memory_space<vmem>>, vector<256x128xf32>,
    } else {
    }
    return
  }
  func.func @transform_0(%arg0: i32, %arg1: i32, %arg2: i32) -> (i32, i32) {
    %c0_i32 = arith.constant 0 : i32
    return %arg0, %arg2 : i32, i32
  }
  func.func @transform_1(%arg0: i32, %arg1: i32, %arg2: i32) -> (i32, i32) {
    %c0_i32 = arith.constant 0 : i32
    return %arg2, %arg1 : i32, i32
  }
  func.func @transform_2(%arg0: i32, %arg1: i32, %arg2: i32) -> (i32, i32) {
    %c0_i32 = arith.constant 0 : i32
    %c0_i32_0 = arith.constant 0 : i32
    return %c0_i32, %arg1 : i32, i32
  }
  func.func @transform_3(%arg0: i32, %arg1: i32, %arg2: i32) -> (i32, i32) {
    %c0_i32 = arith.constant 0 : i32
    %c0_i32_0 = arith.constant 0 : i32
    return %c0_i32, %arg1 : i32, i32
  }
  func.func @transform_4(%arg0: i32, %arg1: i32, %arg2: i32) -> (i32, i32) {
    %c0_i32 = arith.constant 0 : i32
    return %arg0, %arg1 : i32, i32
  }
}

module attributes {stable_mosaic.version = 11 : i64} {
  func.func @_mm_kernel(%arg0: i32, %arg1: i32, %arg2: i32, %arg3: memref<256x144xbf16, #tpu.memory_space<vmem>>, %arg4: memref<144x128xbf16, #tpu.memory_space<vmem>>, %arg5: memref<1x128xf32, #tpu.memory_space<vmem>>, %arg6: memref<1x128xf32, #tpu.memory_space<vmem>>, %arg7: memref<256x128xf32, #tpu.memory_space<vmem>>, %arg8: memref<256x128xf32, #tpu.memory_space<vmem>>) attributes {dimension_semantics = [#tpu.dimension_semantics<parallel>, #tpu.dimension_semantics<parallel>, #tpu.dimension_semantics<arbitrary>], iteration_bounds = array<i64: 2, 1, 1>, scalar_prefetch = 0 : i64, scratch_operands = 1 : i64, tpu.core_type = #tpu.core_type<tc>, window_params = [{transform_indices = @transform_0, window_bounds = array<i64: 256, 144>}, {transform_indices = @transform_1, window_bounds = array<i64: 144, 128>}, {transform_indices = @transform_2, window_bounds = array<i64: 1, 128>}, {transform_indices = @transform_3, window_bounds = array<i64: 1, 128>}, {transform_indices = @transform_4, window_bounds = array<i64: 256, 128>}]} {
    %c0_i32 = arith.constant 0 : i32
    %0 = arith.cmpi eq, %arg2, %c0_i32 : i32
    %1 = arith.extui %0 : i1 to i32
    %c0_i32_0 = arith.constant 0 : i32
    %2 = arith.cmpi ne, %1, %c0_i32_0 : i32
    scf.if %2 {
      %cst_10 = arith.constant 0.000000e+00 : f32
      %12 = vector.broadcast %cst_10 : f32 to vector<256x128xf32>
      %c0_11 = arith.constant 0 : index
      %c0_12 = arith.constant 0 : index
      %13 = vector.load %arg8[%c0_11, %c0_12] : memref<256x128xf32, #tpu.memory_space<vmem>>, vector<256x128xf32>
      tpu.vector_store %arg8[%c0_11, %c0_12], %12 {strides = array<i32>} : memref<256x128xf32, #tpu.memory_space<vmem>>, vector<256x128xf32>,
    } else {
    }
    %c0 = arith.constant 0 : index
    %c0_1 = arith.constant 0 : index
    %3 = vector.load %arg8[%c0, %c0_1] : memref<256x128xf32, #tpu.memory_space<vmem>>, vector<256x128xf32>
    %c0_2 = arith.constant 0 : index
    %c0_3 = arith.constant 0 : index
    %4 = vector.load %arg3[%c0_2, %c0_3] : memref<256x144xbf16, #tpu.memory_space<vmem>>, vector<256x144xbf16>
    %c0_4 = arith.constant 0 : index
    %c0_5 = arith.constant 0 : index
    %5 = vector.load %arg4[%c0_4, %c0_5] : memref<144x128xbf16, #tpu.memory_space<vmem>>, vector<144x128xbf16>
    %cst = arith.constant dense<0.000000e+00> : vector<256x128xf32>
    %6 = tpu.matmul %4, %5, %cst {dimension_numbers = #tpu.dot_dimension_numbers<[1], [0], [0], [1], [0, 0, 1, 1], [], []>} : vector<256x144xbf16>, vector<144x128xbf16>, vector<256x128xf32> -> vector<256x128xf32>
    %7 = arith.addf %3, %6 : vector<256x128xf32>
    %c0_6 = arith.constant 0 : index
    %c0_7 = arith.constant 0 : index
    %8 = vector.load %arg8[%c0_6, %c0_7] : memref<256x128xf32, #tpu.memory_space<vmem>>, vector<256x128xf32>
    tpu.vector_store %arg8[%c0_6, %c0_7], %7 {strides = array<i32>} : memref<256x128xf32, #tpu.memory_space<vmem>>, vector<256x128xf32>,
    %c0_i32_8 = arith.constant 0 : i32
    %9 = arith.cmpi eq, %arg2, %c0_i32_8 : i32
    %10 = arith.extui %9 : i1 to i32
    %c0_i32_9 = arith.constant 0 : i32
    %11 = arith.cmpi ne, %10, %c0_i32_9 : i32
    scf.if %11 {
      %c0_10 = arith.constant 0 : index
      %c0_11 = arith.constant 0 : index
      %12 = vector.load %arg8[%c0_10, %c0_11] : memref<256x128xf32, #tpu.memory_space<vmem>>, vector<256x128xf32>
      %c0_12 = arith.constant 0 : index
      %c0_13 = arith.constant 0 : index
      %13 = vector.load %arg5[%c0_12, %c0_13] : memref<1x128xf32, #tpu.memory_space<vmem>>, vector<1x128xf32>
      %14 = vector.broadcast %13 : vector<1x128xf32> to vector<256x128xf32>
      %15 = arith.mulf %12, %14 : vector<256x128xf32>
      %c0_14 = arith.constant 0 : index
      %c0_15 = arith.constant 0 : index
      %16 = vector.load %arg6[%c0_14, %c0_15] : memref<1x128xf32, #tpu.memory_space<vmem>>, vector<1x128xf32>
      %17 = vector.broadcast %16 : vector<1x128xf32> to vector<256x128xf32>
      %18 = arith.addf %15, %17 : vector<256x128xf32>
      %cst_16 = arith.constant 0.000000e+00 : f32
      %19 = vector.broadcast %cst_16 : f32 to vector<256x128xf32>
      %20 = arith.maximumf %18, %19 : vector<256x128xf32>
      %c0_17 = arith.constant 0 : index
      %c0_18 = arith.constant 0 : index
      %21 = vector.load %arg7[%c0_17, %c0_18] : memref<256x128xf32, #tpu.memory_space<vmem>>, vector<256x128xf32>
      tpu.vector_store %arg7[%c0_17, %c0_18], %20 {strides = array<i32>} : memref<256x128xf32, #tpu.memory_space<vmem>>, vector<256x128xf32>,
    } else {
    }
    return
  }
  func.func @transform_0(%arg0: i32, %arg1: i32, %arg2: i32) -> (i32, i32) {
    %c0_i32 = arith.constant 0 : i32
    return %arg0, %arg2 : i32, i32
  }
  func.func @transform_1(%arg0: i32, %arg1: i32, %arg2: i32) -> (i32, i32) {
    %c0_i32 = arith.constant 0 : i32
    return %arg2, %arg1 : i32, i32
  }
  func.func @transform_2(%arg0: i32, %arg1: i32, %arg2: i32) -> (i32, i32) {
    %c0_i32 = arith.constant 0 : i32
    %c0_i32_0 = arith.constant 0 : i32
    return %c0_i32, %arg1 : i32, i32
  }
  func.func @transform_3(%arg0: i32, %arg1: i32, %arg2: i32) -> (i32, i32) {
    %c0_i32 = arith.constant 0 : i32
    %c0_i32_0 = arith.constant 0 : i32
    return %c0_i32, %arg1 : i32, i32
  }
  func.func @transform_4(%arg0: i32, %arg1: i32, %arg2: i32) -> (i32, i32) {
    %c0_i32 = arith.constant 0 : i32
    return %arg0, %arg1 : i32, i32
  }
}

module attributes {stable_mosaic.version = 11 : i64} {
  func.func @_mm_kernel(%arg0: i32, %arg1: i32, %arg2: i32, %arg3: memref<256x144xbf16, #tpu.memory_space<vmem>>, %arg4: memref<144x128xbf16, #tpu.memory_space<vmem>>, %arg5: memref<1x128xf32, #tpu.memory_space<vmem>>, %arg6: memref<1x128xf32, #tpu.memory_space<vmem>>, %arg7: memref<256x128xf32, #tpu.memory_space<vmem>>, %arg8: memref<256x128xf32, #tpu.memory_space<vmem>>, %arg9: memref<256x128xf32, #tpu.memory_space<vmem>>) attributes {dimension_semantics = [#tpu.dimension_semantics<parallel>, #tpu.dimension_semantics<parallel>, #tpu.dimension_semantics<arbitrary>], iteration_bounds = array<i64: 2, 1, 1>, scalar_prefetch = 0 : i64, scratch_operands = 1 : i64, tpu.core_type = #tpu.core_type<tc>, window_params = [{transform_indices = @transform_0, window_bounds = array<i64: 256, 144>}, {transform_indices = @transform_1, window_bounds = array<i64: 144, 128>}, {transform_indices = @transform_2, window_bounds = array<i64: 1, 128>}, {transform_indices = @transform_3, window_bounds = array<i64: 1, 128>}, {transform_indices = @transform_4, window_bounds = array<i64: 256, 128>}, {transform_indices = @transform_5, window_bounds = array<i64: 256, 128>}]} {
    %c0_i32 = arith.constant 0 : i32
    %0 = arith.cmpi eq, %arg2, %c0_i32 : i32
    %1 = arith.extui %0 : i1 to i32
    %c0_i32_0 = arith.constant 0 : i32
    %2 = arith.cmpi ne, %1, %c0_i32_0 : i32
    scf.if %2 {
      %cst_10 = arith.constant 0.000000e+00 : f32
      %12 = vector.broadcast %cst_10 : f32 to vector<256x128xf32>
      %c0_11 = arith.constant 0 : index
      %c0_12 = arith.constant 0 : index
      %13 = vector.load %arg9[%c0_11, %c0_12] : memref<256x128xf32, #tpu.memory_space<vmem>>, vector<256x128xf32>
      tpu.vector_store %arg9[%c0_11, %c0_12], %12 {strides = array<i32>} : memref<256x128xf32, #tpu.memory_space<vmem>>, vector<256x128xf32>,
    } else {
    }
    %c0 = arith.constant 0 : index
    %c0_1 = arith.constant 0 : index
    %3 = vector.load %arg9[%c0, %c0_1] : memref<256x128xf32, #tpu.memory_space<vmem>>, vector<256x128xf32>
    %c0_2 = arith.constant 0 : index
    %c0_3 = arith.constant 0 : index
    %4 = vector.load %arg3[%c0_2, %c0_3] : memref<256x144xbf16, #tpu.memory_space<vmem>>, vector<256x144xbf16>
    %c0_4 = arith.constant 0 : index
    %c0_5 = arith.constant 0 : index
    %5 = vector.load %arg4[%c0_4, %c0_5] : memref<144x128xbf16, #tpu.memory_space<vmem>>, vector<144x128xbf16>
    %cst = arith.constant dense<0.000000e+00> : vector<256x128xf32>
    %6 = tpu.matmul %4, %5, %cst {dimension_numbers = #tpu.dot_dimension_numbers<[1], [0], [0], [1], [0, 0, 1, 1], [], []>} : vector<256x144xbf16>, vector<144x128xbf16>, vector<256x128xf32> -> vector<256x128xf32>
    %7 = arith.addf %3, %6 : vector<256x128xf32>
    %c0_6 = arith.constant 0 : index
    %c0_7 = arith.constant 0 : index
    %8 = vector.load %arg9[%c0_6, %c0_7] : memref<256x128xf32, #tpu.memory_space<vmem>>, vector<256x128xf32>
    tpu.vector_store %arg9[%c0_6, %c0_7], %7 {strides = array<i32>} : memref<256x128xf32, #tpu.memory_space<vmem>>, vector<256x128xf32>,
    %c0_i32_8 = arith.constant 0 : i32
    %9 = arith.cmpi eq, %arg2, %c0_i32_8 : i32
    %10 = arith.extui %9 : i1 to i32
    %c0_i32_9 = arith.constant 0 : i32
    %11 = arith.cmpi ne, %10, %c0_i32_9 : i32
    scf.if %11 {
      %c0_10 = arith.constant 0 : index
      %c0_11 = arith.constant 0 : index
      %12 = vector.load %arg9[%c0_10, %c0_11] : memref<256x128xf32, #tpu.memory_space<vmem>>, vector<256x128xf32>
      %c0_12 = arith.constant 0 : index
      %c0_13 = arith.constant 0 : index
      %13 = vector.load %arg5[%c0_12, %c0_13] : memref<1x128xf32, #tpu.memory_space<vmem>>, vector<1x128xf32>
      %14 = vector.broadcast %13 : vector<1x128xf32> to vector<256x128xf32>
      %15 = arith.mulf %12, %14 : vector<256x128xf32>
      %c0_14 = arith.constant 0 : index
      %c0_15 = arith.constant 0 : index
      %16 = vector.load %arg6[%c0_14, %c0_15] : memref<1x128xf32, #tpu.memory_space<vmem>>, vector<1x128xf32>
      %17 = vector.broadcast %16 : vector<1x128xf32> to vector<256x128xf32>
      %18 = arith.addf %15, %17 : vector<256x128xf32>
      %c0_16 = arith.constant 0 : index
      %c0_17 = arith.constant 0 : index
      %19 = vector.load %arg7[%c0_16, %c0_17] : memref<256x128xf32, #tpu.memory_space<vmem>>, vector<256x128xf32>
      %20 = arith.addf %18, %19 : vector<256x128xf32>
      %cst_18 = arith.constant 0.000000e+00 : f32
      %21 = vector.broadcast %cst_18 : f32 to vector<256x128xf32>
      %22 = arith.maximumf %20, %21 : vector<256x128xf32>
      %c0_19 = arith.constant 0 : index
      %c0_20 = arith.constant 0 : index
      %23 = vector.load %arg8[%c0_19, %c0_20] : memref<256x128xf32, #tpu.memory_space<vmem>>, vector<256x128xf32>
      tpu.vector_store %arg8[%c0_19, %c0_20], %22 {strides = array<i32>} : memref<256x128xf32, #tpu.memory_space<vmem>>, vector<256x128xf32>,
    } else {
    }
    return
  }
  func.func @transform_0(%arg0: i32, %arg1: i32, %arg2: i32) -> (i32, i32) {
    %c0_i32 = arith.constant 0 : i32
    return %arg0, %arg2 : i32, i32
  }
  func.func @transform_1(%arg0: i32, %arg1: i32, %arg2: i32) -> (i32, i32) {
    %c0_i32 = arith.constant 0 : i32
    return %arg2, %arg1 : i32, i32
  }
  func.func @transform_2(%arg0: i32, %arg1: i32, %arg2: i32) -> (i32, i32) {
    %c0_i32 = arith.constant 0 : i32
    %c0_i32_0 = arith.constant 0 : i32
    return %c0_i32, %arg1 : i32, i32
  }
  func.func @transform_3(%arg0: i32, %arg1: i32, %arg2: i32) -> (i32, i32) {
    %c0_i32 = arith.constant 0 : i32
    %c0_i32_0 = arith.constant 0 : i32
    return %c0_i32, %arg1 : i32, i32
  }
  func.func @transform_4(%arg0: i32, %arg1: i32, %arg2: i32) -> (i32, i32) {
    %c0_i32 = arith.constant 0 : i32
    return %arg0, %arg1 : i32, i32
  }
  func.func @transform_5(%arg0: i32, %arg1: i32, %arg2: i32) -> (i32, i32) {
    %c0_i32 = arith.constant 0 : i32
    return %arg0, %arg1 : i32, i32
  }
}

module attributes {stable_mosaic.version = 11 : i64} {
  func.func @_mm_kernel(%arg0: i32, %arg1: i32, %arg2: i32, %arg3: memref<128x16xbf16, #tpu.memory_space<vmem>>, %arg4: memref<16x128xbf16, #tpu.memory_space<vmem>>, %arg5: memref<1x128xf32, #tpu.memory_space<vmem>>, %arg6: memref<1x128xf32, #tpu.memory_space<vmem>>, %arg7: memref<128x128xf32, #tpu.memory_space<vmem>>, %arg8: memref<128x128xf32, #tpu.memory_space<vmem>>) attributes {dimension_semantics = [#tpu.dimension_semantics<parallel>, #tpu.dimension_semantics<parallel>, #tpu.dimension_semantics<arbitrary>], iteration_bounds = array<i64: 1, 1, 1>, scalar_prefetch = 0 : i64, scratch_operands = 1 : i64, tpu.core_type = #tpu.core_type<tc>, window_params = [{transform_indices = @transform_0, window_bounds = array<i64: 128, 16>}, {transform_indices = @transform_1, window_bounds = array<i64: 16, 128>}, {transform_indices = @transform_2, window_bounds = array<i64: 1, 128>}, {transform_indices = @transform_3, window_bounds = array<i64: 1, 128>}, {transform_indices = @transform_4, window_bounds = array<i64: 128, 128>}]} {
    %c0_i32 = arith.constant 0 : i32
    %0 = arith.cmpi eq, %arg2, %c0_i32 : i32
    %1 = arith.extui %0 : i1 to i32
    %c0_i32_0 = arith.constant 0 : i32
    %2 = arith.cmpi ne, %1, %c0_i32_0 : i32
    scf.if %2 {
      %cst_10 = arith.constant 0.000000e+00 : f32
      %12 = vector.broadcast %cst_10 : f32 to vector<128x128xf32>
      %c0_11 = arith.constant 0 : index
      %c0_12 = arith.constant 0 : index
      %13 = vector.load %arg8[%c0_11, %c0_12] : memref<128x128xf32, #tpu.memory_space<vmem>>, vector<128x128xf32>
      tpu.vector_store %arg8[%c0_11, %c0_12], %12 {strides = array<i32>} : memref<128x128xf32, #tpu.memory_space<vmem>>, vector<128x128xf32>,
    } else {
    }
    %c0 = arith.constant 0 : index
    %c0_1 = arith.constant 0 : index
    %3 = vector.load %arg8[%c0, %c0_1] : memref<128x128xf32, #tpu.memory_space<vmem>>, vector<128x128xf32>
    %c0_2 = arith.constant 0 : index
    %c0_3 = arith.constant 0 : index
    %4 = vector.load %arg3[%c0_2, %c0_3] : memref<128x16xbf16, #tpu.memory_space<vmem>>, vector<128x16xbf16>
    %c0_4 = arith.constant 0 : index
    %c0_5 = arith.constant 0 : index
    %5 = vector.load %arg4[%c0_4, %c0_5] : memref<16x128xbf16, #tpu.memory_space<vmem>>, vector<16x128xbf16>
    %cst = arith.constant dense<0.000000e+00> : vector<128x128xf32>
    %6 = tpu.matmul %4, %5, %cst {dimension_numbers = #tpu.dot_dimension_numbers<[1], [0], [0], [1], [0, 0, 1, 1], [], []>} : vector<128x16xbf16>, vector<16x128xbf16>, vector<128x128xf32> -> vector<128x128xf32>
    %7 = arith.addf %3, %6 : vector<128x128xf32>
    %c0_6 = arith.constant 0 : index
    %c0_7 = arith.constant 0 : index
    %8 = vector.load %arg8[%c0_6, %c0_7] : memref<128x128xf32, #tpu.memory_space<vmem>>, vector<128x128xf32>
    tpu.vector_store %arg8[%c0_6, %c0_7], %7 {strides = array<i32>} : memref<128x128xf32, #tpu.memory_space<vmem>>, vector<128x128xf32>,
    %c0_i32_8 = arith.constant 0 : i32
    %9 = arith.cmpi eq, %arg2, %c0_i32_8 : i32
    %10 = arith.extui %9 : i1 to i32
    %c0_i32_9 = arith.constant 0 : i32
    %11 = arith.cmpi ne, %10, %c0_i32_9 : i32
    scf.if %11 {
      %c0_10 = arith.constant 0 : index
      %c0_11 = arith.constant 0 : index
      %12 = vector.load %arg8[%c0_10, %c0_11] : memref<128x128xf32, #tpu.memory_space<vmem>>, vector<128x128xf32>
      %c0_12 = arith.constant 0 : index
      %c0_13 = arith.constant 0 : index
      %13 = vector.load %arg5[%c0_12, %c0_13] : memref<1x128xf32, #tpu.memory_space<vmem>>, vector<1x128xf32>
      %14 = vector.broadcast %13 : vector<1x128xf32> to vector<128x128xf32>
      %15 = arith.mulf %12, %14 : vector<128x128xf32>
      %c0_14 = arith.constant 0 : index
      %c0_15 = arith.constant 0 : index
      %16 = vector.load %arg6[%c0_14, %c0_15] : memref<1x128xf32, #tpu.memory_space<vmem>>, vector<1x128xf32>
      %17 = vector.broadcast %16 : vector<1x128xf32> to vector<128x128xf32>
      %18 = arith.addf %15, %17 : vector<128x128xf32>
      %c0_16 = arith.constant 0 : index
      %c0_17 = arith.constant 0 : index
      %19 = vector.load %arg7[%c0_16, %c0_17] : memref<128x128xf32, #tpu.memory_space<vmem>>, vector<128x128xf32>
      tpu.vector_store %arg7[%c0_16, %c0_17], %18 {strides = array<i32>} : memref<128x128xf32, #tpu.memory_space<vmem>>, vector<128x128xf32>,
    } else {
    }
    return
  }
  func.func @transform_0(%arg0: i32, %arg1: i32, %arg2: i32) -> (i32, i32) {
    %c0_i32 = arith.constant 0 : i32
    return %arg0, %arg2 : i32, i32
  }
  func.func @transform_1(%arg0: i32, %arg1: i32, %arg2: i32) -> (i32, i32) {
    %c0_i32 = arith.constant 0 : i32
    return %arg2, %arg1 : i32, i32
  }
  func.func @transform_2(%arg0: i32, %arg1: i32, %arg2: i32) -> (i32, i32) {
    %c0_i32 = arith.constant 0 : i32
    %c0_i32_0 = arith.constant 0 : i32
    return %c0_i32, %arg1 : i32, i32
  }
  func.func @transform_3(%arg0: i32, %arg1: i32, %arg2: i32) -> (i32, i32) {
    %c0_i32 = arith.constant 0 : i32
    %c0_i32_0 = arith.constant 0 : i32
    return %c0_i32, %arg1 : i32, i32
  }
  func.func @transform_4(%arg0: i32, %arg1: i32, %arg2: i32) -> (i32, i32) {
    %c0_i32 = arith.constant 0 : i32
    return %arg0, %arg1 : i32, i32
  }
}

module attributes {stable_mosaic.version = 11 : i64} {
  func.func @_mm_kernel(%arg0: i32, %arg1: i32, %arg2: i32, %arg3: memref<128x144xbf16, #tpu.memory_space<vmem>>, %arg4: memref<144x128xbf16, #tpu.memory_space<vmem>>, %arg5: memref<1x128xf32, #tpu.memory_space<vmem>>, %arg6: memref<1x128xf32, #tpu.memory_space<vmem>>, %arg7: memref<128x128xf32, #tpu.memory_space<vmem>>, %arg8: memref<128x128xf32, #tpu.memory_space<vmem>>) attributes {dimension_semantics = [#tpu.dimension_semantics<parallel>, #tpu.dimension_semantics<parallel>, #tpu.dimension_semantics<arbitrary>], iteration_bounds = array<i64: 1, 1, 1>, scalar_prefetch = 0 : i64, scratch_operands = 1 : i64, tpu.core_type = #tpu.core_type<tc>, window_params = [{transform_indices = @transform_0, window_bounds = array<i64: 128, 144>}, {transform_indices = @transform_1, window_bounds = array<i64: 144, 128>}, {transform_indices = @transform_2, window_bounds = array<i64: 1, 128>}, {transform_indices = @transform_3, window_bounds = array<i64: 1, 128>}, {transform_indices = @transform_4, window_bounds = array<i64: 128, 128>}]} {
    %c0_i32 = arith.constant 0 : i32
    %0 = arith.cmpi eq, %arg2, %c0_i32 : i32
    %1 = arith.extui %0 : i1 to i32
    %c0_i32_0 = arith.constant 0 : i32
    %2 = arith.cmpi ne, %1, %c0_i32_0 : i32
    scf.if %2 {
      %cst_10 = arith.constant 0.000000e+00 : f32
      %12 = vector.broadcast %cst_10 : f32 to vector<128x128xf32>
      %c0_11 = arith.constant 0 : index
      %c0_12 = arith.constant 0 : index
      %13 = vector.load %arg8[%c0_11, %c0_12] : memref<128x128xf32, #tpu.memory_space<vmem>>, vector<128x128xf32>
      tpu.vector_store %arg8[%c0_11, %c0_12], %12 {strides = array<i32>} : memref<128x128xf32, #tpu.memory_space<vmem>>, vector<128x128xf32>,
    } else {
    }
    %c0 = arith.constant 0 : index
    %c0_1 = arith.constant 0 : index
    %3 = vector.load %arg8[%c0, %c0_1] : memref<128x128xf32, #tpu.memory_space<vmem>>, vector<128x128xf32>
    %c0_2 = arith.constant 0 : index
    %c0_3 = arith.constant 0 : index
    %4 = vector.load %arg3[%c0_2, %c0_3] : memref<128x144xbf16, #tpu.memory_space<vmem>>, vector<128x144xbf16>
    %c0_4 = arith.constant 0 : index
    %c0_5 = arith.constant 0 : index
    %5 = vector.load %arg4[%c0_4, %c0_5] : memref<144x128xbf16, #tpu.memory_space<vmem>>, vector<144x128xbf16>
    %cst = arith.constant dense<0.000000e+00> : vector<128x128xf32>
    %6 = tpu.matmul %4, %5, %cst {dimension_numbers = #tpu.dot_dimension_numbers<[1], [0], [0], [1], [0, 0, 1, 1], [], []>} : vector<128x144xbf16>, vector<144x128xbf16>, vector<128x128xf32> -> vector<128x128xf32>
    %7 = arith.addf %3, %6 : vector<128x128xf32>
    %c0_6 = arith.constant 0 : index
    %c0_7 = arith.constant 0 : index
    %8 = vector.load %arg8[%c0_6, %c0_7] : memref<128x128xf32, #tpu.memory_space<vmem>>, vector<128x128xf32>
    tpu.vector_store %arg8[%c0_6, %c0_7], %7 {strides = array<i32>} : memref<128x128xf32, #tpu.memory_space<vmem>>, vector<128x128xf32>,
    %c0_i32_8 = arith.constant 0 : i32
    %9 = arith.cmpi eq, %arg2, %c0_i32_8 : i32
    %10 = arith.extui %9 : i1 to i32
    %c0_i32_9 = arith.constant 0 : i32
    %11 = arith.cmpi ne, %10, %c0_i32_9 : i32
    scf.if %11 {
      %c0_10 = arith.constant 0 : index
      %c0_11 = arith.constant 0 : index
      %12 = vector.load %arg8[%c0_10, %c0_11] : memref<128x128xf32, #tpu.memory_space<vmem>>, vector<128x128xf32>
      %c0_12 = arith.constant 0 : index
      %c0_13 = arith.constant 0 : index
      %13 = vector.load %arg5[%c0_12, %c0_13] : memref<1x128xf32, #tpu.memory_space<vmem>>, vector<1x128xf32>
      %14 = vector.broadcast %13 : vector<1x128xf32> to vector<128x128xf32>
      %15 = arith.mulf %12, %14 : vector<128x128xf32>
      %c0_14 = arith.constant 0 : index
      %c0_15 = arith.constant 0 : index
      %16 = vector.load %arg6[%c0_14, %c0_15] : memref<1x128xf32, #tpu.memory_space<vmem>>, vector<1x128xf32>
      %17 = vector.broadcast %16 : vector<1x128xf32> to vector<128x128xf32>
      %18 = arith.addf %15, %17 : vector<128x128xf32>
      %cst_16 = arith.constant 0.000000e+00 : f32
      %19 = vector.broadcast %cst_16 : f32 to vector<128x128xf32>
      %20 = arith.maximumf %18, %19 : vector<128x128xf32>
      %c0_17 = arith.constant 0 : index
      %c0_18 = arith.constant 0 : index
      %21 = vector.load %arg7[%c0_17, %c0_18] : memref<128x128xf32, #tpu.memory_space<vmem>>, vector<128x128xf32>
      tpu.vector_store %arg7[%c0_17, %c0_18], %20 {strides = array<i32>} : memref<128x128xf32, #tpu.memory_space<vmem>>, vector<128x128xf32>,
    } else {
    }
    return
  }
  func.func @transform_0(%arg0: i32, %arg1: i32, %arg2: i32) -> (i32, i32) {
    %c0_i32 = arith.constant 0 : i32
    return %arg0, %arg2 : i32, i32
  }
  func.func @transform_1(%arg0: i32, %arg1: i32, %arg2: i32) -> (i32, i32) {
    %c0_i32 = arith.constant 0 : i32
    return %arg2, %arg1 : i32, i32
  }
  func.func @transform_2(%arg0: i32, %arg1: i32, %arg2: i32) -> (i32, i32) {
    %c0_i32 = arith.constant 0 : i32
    %c0_i32_0 = arith.constant 0 : i32
    return %c0_i32, %arg1 : i32, i32
  }
  func.func @transform_3(%arg0: i32, %arg1: i32, %arg2: i32) -> (i32, i32) {
    %c0_i32 = arith.constant 0 : i32
    %c0_i32_0 = arith.constant 0 : i32
    return %c0_i32, %arg1 : i32, i32
  }
  func.func @transform_4(%arg0: i32, %arg1: i32, %arg2: i32) -> (i32, i32) {
    %c0_i32 = arith.constant 0 : i32
    return %arg0, %arg1 : i32, i32
  }
}

module attributes {stable_mosaic.version = 11 : i64} {
  func.func @_mm_kernel(%arg0: i32, %arg1: i32, %arg2: i32, %arg3: memref<128x288xbf16, #tpu.memory_space<vmem>>, %arg4: memref<288x128xbf16, #tpu.memory_space<vmem>>, %arg5: memref<1x128xf32, #tpu.memory_space<vmem>>, %arg6: memref<1x128xf32, #tpu.memory_space<vmem>>, %arg7: memref<128x128xf32, #tpu.memory_space<vmem>>, %arg8: memref<128x128xf32, #tpu.memory_space<vmem>>) attributes {dimension_semantics = [#tpu.dimension_semantics<parallel>, #tpu.dimension_semantics<parallel>, #tpu.dimension_semantics<arbitrary>], iteration_bounds = array<i64: 1, 1, 1>, scalar_prefetch = 0 : i64, scratch_operands = 1 : i64, tpu.core_type = #tpu.core_type<tc>, window_params = [{transform_indices = @transform_0, window_bounds = array<i64: 128, 288>}, {transform_indices = @transform_1, window_bounds = array<i64: 288, 128>}, {transform_indices = @transform_2, window_bounds = array<i64: 1, 128>}, {transform_indices = @transform_3, window_bounds = array<i64: 1, 128>}, {transform_indices = @transform_4, window_bounds = array<i64: 128, 128>}]} {
    %c0_i32 = arith.constant 0 : i32
    %0 = arith.cmpi eq, %arg2, %c0_i32 : i32
    %1 = arith.extui %0 : i1 to i32
    %c0_i32_0 = arith.constant 0 : i32
    %2 = arith.cmpi ne, %1, %c0_i32_0 : i32
    scf.if %2 {
      %cst_10 = arith.constant 0.000000e+00 : f32
      %12 = vector.broadcast %cst_10 : f32 to vector<128x128xf32>
      %c0_11 = arith.constant 0 : index
      %c0_12 = arith.constant 0 : index
      %13 = vector.load %arg8[%c0_11, %c0_12] : memref<128x128xf32, #tpu.memory_space<vmem>>, vector<128x128xf32>
      tpu.vector_store %arg8[%c0_11, %c0_12], %12 {strides = array<i32>} : memref<128x128xf32, #tpu.memory_space<vmem>>, vector<128x128xf32>,
    } else {
    }
    %c0 = arith.constant 0 : index
    %c0_1 = arith.constant 0 : index
    %3 = vector.load %arg8[%c0, %c0_1] : memref<128x128xf32, #tpu.memory_space<vmem>>, vector<128x128xf32>
    %c0_2 = arith.constant 0 : index
    %c0_3 = arith.constant 0 : index
    %4 = vector.load %arg3[%c0_2, %c0_3] : memref<128x288xbf16, #tpu.memory_space<vmem>>, vector<128x288xbf16>
    %c0_4 = arith.constant 0 : index
    %c0_5 = arith.constant 0 : index
    %5 = vector.load %arg4[%c0_4, %c0_5] : memref<288x128xbf16, #tpu.memory_space<vmem>>, vector<288x128xbf16>
    %cst = arith.constant dense<0.000000e+00> : vector<128x128xf32>
    %6 = tpu.matmul %4, %5, %cst {dimension_numbers = #tpu.dot_dimension_numbers<[1], [0], [0], [1], [0, 0, 1, 1], [], []>} : vector<128x288xbf16>, vector<288x128xbf16>, vector<128x128xf32> -> vector<128x128xf32>
    %7 = arith.addf %3, %6 : vector<128x128xf32>
    %c0_6 = arith.constant 0 : index
    %c0_7 = arith.constant 0 : index
    %8 = vector.load %arg8[%c0_6, %c0_7] : memref<128x128xf32, #tpu.memory_space<vmem>>, vector<128x128xf32>
    tpu.vector_store %arg8[%c0_6, %c0_7], %7 {strides = array<i32>} : memref<128x128xf32, #tpu.memory_space<vmem>>, vector<128x128xf32>,
    %c0_i32_8 = arith.constant 0 : i32
    %9 = arith.cmpi eq, %arg2, %c0_i32_8 : i32
    %10 = arith.extui %9 : i1 to i32
    %c0_i32_9 = arith.constant 0 : i32
    %11 = arith.cmpi ne, %10, %c0_i32_9 : i32
    scf.if %11 {
      %c0_10 = arith.constant 0 : index
      %c0_11 = arith.constant 0 : index
      %12 = vector.load %arg8[%c0_10, %c0_11] : memref<128x128xf32, #tpu.memory_space<vmem>>, vector<128x128xf32>
      %c0_12 = arith.constant 0 : index
      %c0_13 = arith.constant 0 : index
      %13 = vector.load %arg5[%c0_12, %c0_13] : memref<1x128xf32, #tpu.memory_space<vmem>>, vector<1x128xf32>
      %14 = vector.broadcast %13 : vector<1x128xf32> to vector<128x128xf32>
      %15 = arith.mulf %12, %14 : vector<128x128xf32>
      %c0_14 = arith.constant 0 : index
      %c0_15 = arith.constant 0 : index
      %16 = vector.load %arg6[%c0_14, %c0_15] : memref<1x128xf32, #tpu.memory_space<vmem>>, vector<1x128xf32>
      %17 = vector.broadcast %16 : vector<1x128xf32> to vector<128x128xf32>
      %18 = arith.addf %15, %17 : vector<128x128xf32>
      %cst_16 = arith.constant 0.000000e+00 : f32
      %19 = vector.broadcast %cst_16 : f32 to vector<128x128xf32>
      %20 = arith.maximumf %18, %19 : vector<128x128xf32>
      %c0_17 = arith.constant 0 : index
      %c0_18 = arith.constant 0 : index
      %21 = vector.load %arg7[%c0_17, %c0_18] : memref<128x128xf32, #tpu.memory_space<vmem>>, vector<128x128xf32>
      tpu.vector_store %arg7[%c0_17, %c0_18], %20 {strides = array<i32>} : memref<128x128xf32, #tpu.memory_space<vmem>>, vector<128x128xf32>,
    } else {
    }
    return
  }
  func.func @transform_0(%arg0: i32, %arg1: i32, %arg2: i32) -> (i32, i32) {
    %c0_i32 = arith.constant 0 : i32
    return %arg0, %arg2 : i32, i32
  }
  func.func @transform_1(%arg0: i32, %arg1: i32, %arg2: i32) -> (i32, i32) {
    %c0_i32 = arith.constant 0 : i32
    return %arg2, %arg1 : i32, i32
  }
  func.func @transform_2(%arg0: i32, %arg1: i32, %arg2: i32) -> (i32, i32) {
    %c0_i32 = arith.constant 0 : i32
    %c0_i32_0 = arith.constant 0 : i32
    return %c0_i32, %arg1 : i32, i32
  }
  func.func @transform_3(%arg0: i32, %arg1: i32, %arg2: i32) -> (i32, i32) {
    %c0_i32 = arith.constant 0 : i32
    %c0_i32_0 = arith.constant 0 : i32
    return %c0_i32, %arg1 : i32, i32
  }
  func.func @transform_4(%arg0: i32, %arg1: i32, %arg2: i32) -> (i32, i32) {
    %c0_i32 = arith.constant 0 : i32
    return %arg0, %arg1 : i32, i32
  }
}

module attributes {stable_mosaic.version = 11 : i64} {
  func.func @_mm_kernel(%arg0: i32, %arg1: i32, %arg2: i32, %arg3: memref<128x288xbf16, #tpu.memory_space<vmem>>, %arg4: memref<288x128xbf16, #tpu.memory_space<vmem>>, %arg5: memref<1x128xf32, #tpu.memory_space<vmem>>, %arg6: memref<1x128xf32, #tpu.memory_space<vmem>>, %arg7: memref<128x128xf32, #tpu.memory_space<vmem>>, %arg8: memref<128x128xf32, #tpu.memory_space<vmem>>, %arg9: memref<128x128xf32, #tpu.memory_space<vmem>>) attributes {dimension_semantics = [#tpu.dimension_semantics<parallel>, #tpu.dimension_semantics<parallel>, #tpu.dimension_semantics<arbitrary>], iteration_bounds = array<i64: 1, 1, 1>, scalar_prefetch = 0 : i64, scratch_operands = 1 : i64, tpu.core_type = #tpu.core_type<tc>, window_params = [{transform_indices = @transform_0, window_bounds = array<i64: 128, 288>}, {transform_indices = @transform_1, window_bounds = array<i64: 288, 128>}, {transform_indices = @transform_2, window_bounds = array<i64: 1, 128>}, {transform_indices = @transform_3, window_bounds = array<i64: 1, 128>}, {transform_indices = @transform_4, window_bounds = array<i64: 128, 128>}, {transform_indices = @transform_5, window_bounds = array<i64: 128, 128>}]} {
    %c0_i32 = arith.constant 0 : i32
    %0 = arith.cmpi eq, %arg2, %c0_i32 : i32
    %1 = arith.extui %0 : i1 to i32
    %c0_i32_0 = arith.constant 0 : i32
    %2 = arith.cmpi ne, %1, %c0_i32_0 : i32
    scf.if %2 {
      %cst_10 = arith.constant 0.000000e+00 : f32
      %12 = vector.broadcast %cst_10 : f32 to vector<128x128xf32>
      %c0_11 = arith.constant 0 : index
      %c0_12 = arith.constant 0 : index
      %13 = vector.load %arg9[%c0_11, %c0_12] : memref<128x128xf32, #tpu.memory_space<vmem>>, vector<128x128xf32>
      tpu.vector_store %arg9[%c0_11, %c0_12], %12 {strides = array<i32>} : memref<128x128xf32, #tpu.memory_space<vmem>>, vector<128x128xf32>,
    } else {
    }
    %c0 = arith.constant 0 : index
    %c0_1 = arith.constant 0 : index
    %3 = vector.load %arg9[%c0, %c0_1] : memref<128x128xf32, #tpu.memory_space<vmem>>, vector<128x128xf32>
    %c0_2 = arith.constant 0 : index
    %c0_3 = arith.constant 0 : index
    %4 = vector.load %arg3[%c0_2, %c0_3] : memref<128x288xbf16, #tpu.memory_space<vmem>>, vector<128x288xbf16>
    %c0_4 = arith.constant 0 : index
    %c0_5 = arith.constant 0 : index
    %5 = vector.load %arg4[%c0_4, %c0_5] : memref<288x128xbf16, #tpu.memory_space<vmem>>, vector<288x128xbf16>
    %cst = arith.constant dense<0.000000e+00> : vector<128x128xf32>
    %6 = tpu.matmul %4, %5, %cst {dimension_numbers = #tpu.dot_dimension_numbers<[1], [0], [0], [1], [0, 0, 1, 1], [], []>} : vector<128x288xbf16>, vector<288x128xbf16>, vector<128x128xf32> -> vector<128x128xf32>
    %7 = arith.addf %3, %6 : vector<128x128xf32>
    %c0_6 = arith.constant 0 : index
    %c0_7 = arith.constant 0 : index
    %8 = vector.load %arg9[%c0_6, %c0_7] : memref<128x128xf32, #tpu.memory_space<vmem>>, vector<128x128xf32>
    tpu.vector_store %arg9[%c0_6, %c0_7], %7 {strides = array<i32>} : memref<128x128xf32, #tpu.memory_space<vmem>>, vector<128x128xf32>,
    %c0_i32_8 = arith.constant 0 : i32
    %9 = arith.cmpi eq, %arg2, %c0_i32_8 : i32
    %10 = arith.extui %9 : i1 to i32
    %c0_i32_9 = arith.constant 0 : i32
    %11 = arith.cmpi ne, %10, %c0_i32_9 : i32
    scf.if %11 {
      %c0_10 = arith.constant 0 : index
      %c0_11 = arith.constant 0 : index
      %12 = vector.load %arg9[%c0_10, %c0_11] : memref<128x128xf32, #tpu.memory_space<vmem>>, vector<128x128xf32>
      %c0_12 = arith.constant 0 : index
      %c0_13 = arith.constant 0 : index
      %13 = vector.load %arg5[%c0_12, %c0_13] : memref<1x128xf32, #tpu.memory_space<vmem>>, vector<1x128xf32>
      %14 = vector.broadcast %13 : vector<1x128xf32> to vector<128x128xf32>
      %15 = arith.mulf %12, %14 : vector<128x128xf32>
      %c0_14 = arith.constant 0 : index
      %c0_15 = arith.constant 0 : index
      %16 = vector.load %arg6[%c0_14, %c0_15] : memref<1x128xf32, #tpu.memory_space<vmem>>, vector<1x128xf32>
      %17 = vector.broadcast %16 : vector<1x128xf32> to vector<128x128xf32>
      %18 = arith.addf %15, %17 : vector<128x128xf32>
      %c0_16 = arith.constant 0 : index
      %c0_17 = arith.constant 0 : index
      %19 = vector.load %arg7[%c0_16, %c0_17] : memref<128x128xf32, #tpu.memory_space<vmem>>, vector<128x128xf32>
      %20 = arith.addf %18, %19 : vector<128x128xf32>
      %cst_18 = arith.constant 0.000000e+00 : f32
      %21 = vector.broadcast %cst_18 : f32 to vector<128x128xf32>
      %22 = arith.maximumf %20, %21 : vector<128x128xf32>
      %c0_19 = arith.constant 0 : index
      %c0_20 = arith.constant 0 : index
      %23 = vector.load %arg8[%c0_19, %c0_20] : memref<128x128xf32, #tpu.memory_space<vmem>>, vector<128x128xf32>
      tpu.vector_store %arg8[%c0_19, %c0_20], %22 {strides = array<i32>} : memref<128x128xf32, #tpu.memory_space<vmem>>, vector<128x128xf32>,
    } else {
    }
    return
  }
  func.func @transform_0(%arg0: i32, %arg1: i32, %arg2: i32) -> (i32, i32) {
    %c0_i32 = arith.constant 0 : i32
    return %arg0, %arg2 : i32, i32
  }
  func.func @transform_1(%arg0: i32, %arg1: i32, %arg2: i32) -> (i32, i32) {
    %c0_i32 = arith.constant 0 : i32
    return %arg2, %arg1 : i32, i32
  }
  func.func @transform_2(%arg0: i32, %arg1: i32, %arg2: i32) -> (i32, i32) {
    %c0_i32 = arith.constant 0 : i32
    %c0_i32_0 = arith.constant 0 : i32
    return %c0_i32, %arg1 : i32, i32
  }
  func.func @transform_3(%arg0: i32, %arg1: i32, %arg2: i32) -> (i32, i32) {
    %c0_i32 = arith.constant 0 : i32
    %c0_i32_0 = arith.constant 0 : i32
    return %c0_i32, %arg1 : i32, i32
  }
  func.func @transform_4(%arg0: i32, %arg1: i32, %arg2: i32) -> (i32, i32) {
    %c0_i32 = arith.constant 0 : i32
    return %arg0, %arg1 : i32, i32
  }
  func.func @transform_5(%arg0: i32, %arg1: i32, %arg2: i32) -> (i32, i32) {
    %c0_i32 = arith.constant 0 : i32
    return %arg0, %arg1 : i32, i32
  }
}

module attributes {stable_mosaic.version = 11 : i64} {
  func.func @_mm_kernel(%arg0: i32, %arg1: i32, %arg2: i32, %arg3: memref<32x32xbf16, #tpu.memory_space<vmem>>, %arg4: memref<32x128xbf16, #tpu.memory_space<vmem>>, %arg5: memref<1x128xf32, #tpu.memory_space<vmem>>, %arg6: memref<1x128xf32, #tpu.memory_space<vmem>>, %arg7: memref<32x128xf32, #tpu.memory_space<vmem>>, %arg8: memref<32x128xf32, #tpu.memory_space<vmem>>) attributes {dimension_semantics = [#tpu.dimension_semantics<parallel>, #tpu.dimension_semantics<parallel>, #tpu.dimension_semantics<arbitrary>], iteration_bounds = array<i64: 1, 1, 1>, scalar_prefetch = 0 : i64, scratch_operands = 1 : i64, tpu.core_type = #tpu.core_type<tc>, window_params = [{transform_indices = @transform_0, window_bounds = array<i64: 32, 32>}, {transform_indices = @transform_1, window_bounds = array<i64: 32, 128>}, {transform_indices = @transform_2, window_bounds = array<i64: 1, 128>}, {transform_indices = @transform_3, window_bounds = array<i64: 1, 128>}, {transform_indices = @transform_4, window_bounds = array<i64: 32, 128>}]} {
    %c0_i32 = arith.constant 0 : i32
    %0 = arith.cmpi eq, %arg2, %c0_i32 : i32
    %1 = arith.extui %0 : i1 to i32
    %c0_i32_0 = arith.constant 0 : i32
    %2 = arith.cmpi ne, %1, %c0_i32_0 : i32
    scf.if %2 {
      %cst_10 = arith.constant 0.000000e+00 : f32
      %12 = vector.broadcast %cst_10 : f32 to vector<32x128xf32>
      %c0_11 = arith.constant 0 : index
      %c0_12 = arith.constant 0 : index
      %13 = vector.load %arg8[%c0_11, %c0_12] : memref<32x128xf32, #tpu.memory_space<vmem>>, vector<32x128xf32>
      tpu.vector_store %arg8[%c0_11, %c0_12], %12 {strides = array<i32>} : memref<32x128xf32, #tpu.memory_space<vmem>>, vector<32x128xf32>,
    } else {
    }
    %c0 = arith.constant 0 : index
    %c0_1 = arith.constant 0 : index
    %3 = vector.load %arg8[%c0, %c0_1] : memref<32x128xf32, #tpu.memory_space<vmem>>, vector<32x128xf32>
    %c0_2 = arith.constant 0 : index
    %c0_3 = arith.constant 0 : index
    %4 = vector.load %arg3[%c0_2, %c0_3] : memref<32x32xbf16, #tpu.memory_space<vmem>>, vector<32x32xbf16>
    %c0_4 = arith.constant 0 : index
    %c0_5 = arith.constant 0 : index
    %5 = vector.load %arg4[%c0_4, %c0_5] : memref<32x128xbf16, #tpu.memory_space<vmem>>, vector<32x128xbf16>
    %cst = arith.constant dense<0.000000e+00> : vector<32x128xf32>
    %6 = tpu.matmul %4, %5, %cst {dimension_numbers = #tpu.dot_dimension_numbers<[1], [0], [0], [1], [0, 0, 1, 1], [], []>} : vector<32x32xbf16>, vector<32x128xbf16>, vector<32x128xf32> -> vector<32x128xf32>
    %7 = arith.addf %3, %6 : vector<32x128xf32>
    %c0_6 = arith.constant 0 : index
    %c0_7 = arith.constant 0 : index
    %8 = vector.load %arg8[%c0_6, %c0_7] : memref<32x128xf32, #tpu.memory_space<vmem>>, vector<32x128xf32>
    tpu.vector_store %arg8[%c0_6, %c0_7], %7 {strides = array<i32>} : memref<32x128xf32, #tpu.memory_space<vmem>>, vector<32x128xf32>,
    %c0_i32_8 = arith.constant 0 : i32
    %9 = arith.cmpi eq, %arg2, %c0_i32_8 : i32
    %10 = arith.extui %9 : i1 to i32
    %c0_i32_9 = arith.constant 0 : i32
    %11 = arith.cmpi ne, %10, %c0_i32_9 : i32
    scf.if %11 {
      %c0_10 = arith.constant 0 : index
      %c0_11 = arith.constant 0 : index
      %12 = vector.load %arg8[%c0_10, %c0_11] : memref<32x128xf32, #tpu.memory_space<vmem>>, vector<32x128xf32>
      %c0_12 = arith.constant 0 : index
      %c0_13 = arith.constant 0 : index
      %13 = vector.load %arg5[%c0_12, %c0_13] : memref<1x128xf32, #tpu.memory_space<vmem>>, vector<1x128xf32>
      %14 = vector.broadcast %13 : vector<1x128xf32> to vector<32x128xf32>
      %15 = arith.mulf %12, %14 : vector<32x128xf32>
      %c0_14 = arith.constant 0 : index
      %c0_15 = arith.constant 0 : index
      %16 = vector.load %arg6[%c0_14, %c0_15] : memref<1x128xf32, #tpu.memory_space<vmem>>, vector<1x128xf32>
      %17 = vector.broadcast %16 : vector<1x128xf32> to vector<32x128xf32>
      %18 = arith.addf %15, %17 : vector<32x128xf32>
      %c0_16 = arith.constant 0 : index
      %c0_17 = arith.constant 0 : index
      %19 = vector.load %arg7[%c0_16, %c0_17] : memref<32x128xf32, #tpu.memory_space<vmem>>, vector<32x128xf32>
      tpu.vector_store %arg7[%c0_16, %c0_17], %18 {strides = array<i32>} : memref<32x128xf32, #tpu.memory_space<vmem>>, vector<32x128xf32>,
    } else {
    }
    return
  }
  func.func @transform_0(%arg0: i32, %arg1: i32, %arg2: i32) -> (i32, i32) {
    %c0_i32 = arith.constant 0 : i32
    return %arg0, %arg2 : i32, i32
  }
  func.func @transform_1(%arg0: i32, %arg1: i32, %arg2: i32) -> (i32, i32) {
    %c0_i32 = arith.constant 0 : i32
    return %arg2, %arg1 : i32, i32
  }
  func.func @transform_2(%arg0: i32, %arg1: i32, %arg2: i32) -> (i32, i32) {
    %c0_i32 = arith.constant 0 : i32
    %c0_i32_0 = arith.constant 0 : i32
    return %c0_i32, %arg1 : i32, i32
  }
  func.func @transform_3(%arg0: i32, %arg1: i32, %arg2: i32) -> (i32, i32) {
    %c0_i32 = arith.constant 0 : i32
    %c0_i32_0 = arith.constant 0 : i32
    return %c0_i32, %arg1 : i32, i32
  }
  func.func @transform_4(%arg0: i32, %arg1: i32, %arg2: i32) -> (i32, i32) {
    %c0_i32 = arith.constant 0 : i32
    return %arg0, %arg1 : i32, i32
  }
}

module attributes {stable_mosaic.version = 11 : i64} {
  func.func @_mm_kernel(%arg0: i32, %arg1: i32, %arg2: i32, %arg3: memref<32x288xbf16, #tpu.memory_space<vmem>>, %arg4: memref<288x128xbf16, #tpu.memory_space<vmem>>, %arg5: memref<1x128xf32, #tpu.memory_space<vmem>>, %arg6: memref<1x128xf32, #tpu.memory_space<vmem>>, %arg7: memref<32x128xf32, #tpu.memory_space<vmem>>, %arg8: memref<32x128xf32, #tpu.memory_space<vmem>>) attributes {dimension_semantics = [#tpu.dimension_semantics<parallel>, #tpu.dimension_semantics<parallel>, #tpu.dimension_semantics<arbitrary>], iteration_bounds = array<i64: 1, 1, 1>, scalar_prefetch = 0 : i64, scratch_operands = 1 : i64, tpu.core_type = #tpu.core_type<tc>, window_params = [{transform_indices = @transform_0, window_bounds = array<i64: 32, 288>}, {transform_indices = @transform_1, window_bounds = array<i64: 288, 128>}, {transform_indices = @transform_2, window_bounds = array<i64: 1, 128>}, {transform_indices = @transform_3, window_bounds = array<i64: 1, 128>}, {transform_indices = @transform_4, window_bounds = array<i64: 32, 128>}]} {
    %c0_i32 = arith.constant 0 : i32
    %0 = arith.cmpi eq, %arg2, %c0_i32 : i32
    %1 = arith.extui %0 : i1 to i32
    %c0_i32_0 = arith.constant 0 : i32
    %2 = arith.cmpi ne, %1, %c0_i32_0 : i32
    scf.if %2 {
      %cst_10 = arith.constant 0.000000e+00 : f32
      %12 = vector.broadcast %cst_10 : f32 to vector<32x128xf32>
      %c0_11 = arith.constant 0 : index
      %c0_12 = arith.constant 0 : index
      %13 = vector.load %arg8[%c0_11, %c0_12] : memref<32x128xf32, #tpu.memory_space<vmem>>, vector<32x128xf32>
      tpu.vector_store %arg8[%c0_11, %c0_12], %12 {strides = array<i32>} : memref<32x128xf32, #tpu.memory_space<vmem>>, vector<32x128xf32>,
    } else {
    }
    %c0 = arith.constant 0 : index
    %c0_1 = arith.constant 0 : index
    %3 = vector.load %arg8[%c0, %c0_1] : memref<32x128xf32, #tpu.memory_space<vmem>>, vector<32x128xf32>
    %c0_2 = arith.constant 0 : index
    %c0_3 = arith.constant 0 : index
    %4 = vector.load %arg3[%c0_2, %c0_3] : memref<32x288xbf16, #tpu.memory_space<vmem>>, vector<32x288xbf16>
    %c0_4 = arith.constant 0 : index
    %c0_5 = arith.constant 0 : index
    %5 = vector.load %arg4[%c0_4, %c0_5] : memref<288x128xbf16, #tpu.memory_space<vmem>>, vector<288x128xbf16>
    %cst = arith.constant dense<0.000000e+00> : vector<32x128xf32>
    %6 = tpu.matmul %4, %5, %cst {dimension_numbers = #tpu.dot_dimension_numbers<[1], [0], [0], [1], [0, 0, 1, 1], [], []>} : vector<32x288xbf16>, vector<288x128xbf16>, vector<32x128xf32> -> vector<32x128xf32>
    %7 = arith.addf %3, %6 : vector<32x128xf32>
    %c0_6 = arith.constant 0 : index
    %c0_7 = arith.constant 0 : index
    %8 = vector.load %arg8[%c0_6, %c0_7] : memref<32x128xf32, #tpu.memory_space<vmem>>, vector<32x128xf32>
    tpu.vector_store %arg8[%c0_6, %c0_7], %7 {strides = array<i32>} : memref<32x128xf32, #tpu.memory_space<vmem>>, vector<32x128xf32>,
    %c0_i32_8 = arith.constant 0 : i32
    %9 = arith.cmpi eq, %arg2, %c0_i32_8 : i32
    %10 = arith.extui %9 : i1 to i32
    %c0_i32_9 = arith.constant 0 : i32
    %11 = arith.cmpi ne, %10, %c0_i32_9 : i32
    scf.if %11 {
      %c0_10 = arith.constant 0 : index
      %c0_11 = arith.constant 0 : index
      %12 = vector.load %arg8[%c0_10, %c0_11] : memref<32x128xf32, #tpu.memory_space<vmem>>, vector<32x128xf32>
      %c0_12 = arith.constant 0 : index
      %c0_13 = arith.constant 0 : index
      %13 = vector.load %arg5[%c0_12, %c0_13] : memref<1x128xf32, #tpu.memory_space<vmem>>, vector<1x128xf32>
      %14 = vector.broadcast %13 : vector<1x128xf32> to vector<32x128xf32>
      %15 = arith.mulf %12, %14 : vector<32x128xf32>
      %c0_14 = arith.constant 0 : index
      %c0_15 = arith.constant 0 : index
      %16 = vector.load %arg6[%c0_14, %c0_15] : memref<1x128xf32, #tpu.memory_space<vmem>>, vector<1x128xf32>
      %17 = vector.broadcast %16 : vector<1x128xf32> to vector<32x128xf32>
      %18 = arith.addf %15, %17 : vector<32x128xf32>
      %cst_16 = arith.constant 0.000000e+00 : f32
      %19 = vector.broadcast %cst_16 : f32 to vector<32x128xf32>
      %20 = arith.maximumf %18, %19 : vector<32x128xf32>
      %c0_17 = arith.constant 0 : index
      %c0_18 = arith.constant 0 : index
      %21 = vector.load %arg7[%c0_17, %c0_18] : memref<32x128xf32, #tpu.memory_space<vmem>>, vector<32x128xf32>
      tpu.vector_store %arg7[%c0_17, %c0_18], %20 {strides = array<i32>} : memref<32x128xf32, #tpu.memory_space<vmem>>, vector<32x128xf32>,
    } else {
    }
    return
  }
  func.func @transform_0(%arg0: i32, %arg1: i32, %arg2: i32) -> (i32, i32) {
    %c0_i32 = arith.constant 0 : i32
    return %arg0, %arg2 : i32, i32
  }
  func.func @transform_1(%arg0: i32, %arg1: i32, %arg2: i32) -> (i32, i32) {
    %c0_i32 = arith.constant 0 : i32
    return %arg2, %arg1 : i32, i32
  }
  func.func @transform_2(%arg0: i32, %arg1: i32, %arg2: i32) -> (i32, i32) {
    %c0_i32 = arith.constant 0 : i32
    %c0_i32_0 = arith.constant 0 : i32
    return %c0_i32, %arg1 : i32, i32
  }
  func.func @transform_3(%arg0: i32, %arg1: i32, %arg2: i32) -> (i32, i32) {
    %c0_i32 = arith.constant 0 : i32
    %c0_i32_0 = arith.constant 0 : i32
    return %c0_i32, %arg1 : i32, i32
  }
  func.func @transform_4(%arg0: i32, %arg1: i32, %arg2: i32) -> (i32, i32) {
    %c0_i32 = arith.constant 0 : i32
    return %arg0, %arg1 : i32, i32
  }
}

module attributes {stable_mosaic.version = 11 : i64} {
  func.func @_mm_kernel(%arg0: i32, %arg1: i32, %arg2: i32, %arg3: memref<32x576xbf16, #tpu.memory_space<vmem>>, %arg4: memref<576x128xbf16, #tpu.memory_space<vmem>>, %arg5: memref<1x128xf32, #tpu.memory_space<vmem>>, %arg6: memref<1x128xf32, #tpu.memory_space<vmem>>, %arg7: memref<32x128xf32, #tpu.memory_space<vmem>>, %arg8: memref<32x128xf32, #tpu.memory_space<vmem>>, %arg9: memref<32x128xf32, #tpu.memory_space<vmem>>) attributes {dimension_semantics = [#tpu.dimension_semantics<parallel>, #tpu.dimension_semantics<parallel>, #tpu.dimension_semantics<arbitrary>], iteration_bounds = array<i64: 1, 1, 1>, scalar_prefetch = 0 : i64, scratch_operands = 1 : i64, tpu.core_type = #tpu.core_type<tc>, window_params = [{transform_indices = @transform_0, window_bounds = array<i64: 32, 576>}, {transform_indices = @transform_1, window_bounds = array<i64: 576, 128>}, {transform_indices = @transform_2, window_bounds = array<i64: 1, 128>}, {transform_indices = @transform_3, window_bounds = array<i64: 1, 128>}, {transform_indices = @transform_4, window_bounds = array<i64: 32, 128>}, {transform_indices = @transform_5, window_bounds = array<i64: 32, 128>}]} {
    %c0_i32 = arith.constant 0 : i32
    %0 = arith.cmpi eq, %arg2, %c0_i32 : i32
    %1 = arith.extui %0 : i1 to i32
    %c0_i32_0 = arith.constant 0 : i32
    %2 = arith.cmpi ne, %1, %c0_i32_0 : i32
    scf.if %2 {
      %cst_10 = arith.constant 0.000000e+00 : f32
      %12 = vector.broadcast %cst_10 : f32 to vector<32x128xf32>
      %c0_11 = arith.constant 0 : index
      %c0_12 = arith.constant 0 : index
      %13 = vector.load %arg9[%c0_11, %c0_12] : memref<32x128xf32, #tpu.memory_space<vmem>>, vector<32x128xf32>
      tpu.vector_store %arg9[%c0_11, %c0_12], %12 {strides = array<i32>} : memref<32x128xf32, #tpu.memory_space<vmem>>, vector<32x128xf32>,
    } else {
    }
    %c0 = arith.constant 0 : index
    %c0_1 = arith.constant 0 : index
    %3 = vector.load %arg9[%c0, %c0_1] : memref<32x128xf32, #tpu.memory_space<vmem>>, vector<32x128xf32>
    %c0_2 = arith.constant 0 : index
    %c0_3 = arith.constant 0 : index
    %4 = vector.load %arg3[%c0_2, %c0_3] : memref<32x576xbf16, #tpu.memory_space<vmem>>, vector<32x576xbf16>
    %c0_4 = arith.constant 0 : index
    %c0_5 = arith.constant 0 : index
    %5 = vector.load %arg4[%c0_4, %c0_5] : memref<576x128xbf16, #tpu.memory_space<vmem>>, vector<576x128xbf16>
    %cst = arith.constant dense<0.000000e+00> : vector<32x128xf32>
    %6 = tpu.matmul %4, %5, %cst {dimension_numbers = #tpu.dot_dimension_numbers<[1], [0], [0], [1], [0, 0, 1, 1], [], []>} : vector<32x576xbf16>, vector<576x128xbf16>, vector<32x128xf32> -> vector<32x128xf32>
    %7 = arith.addf %3, %6 : vector<32x128xf32>
    %c0_6 = arith.constant 0 : index
    %c0_7 = arith.constant 0 : index
    %8 = vector.load %arg9[%c0_6, %c0_7] : memref<32x128xf32, #tpu.memory_space<vmem>>, vector<32x128xf32>
    tpu.vector_store %arg9[%c0_6, %c0_7], %7 {strides = array<i32>} : memref<32x128xf32, #tpu.memory_space<vmem>>, vector<32x128xf32>,
    %c0_i32_8 = arith.constant 0 : i32
    %9 = arith.cmpi eq, %arg2, %c0_i32_8 : i32
    %10 = arith.extui %9 : i1 to i32
    %c0_i32_9 = arith.constant 0 : i32
    %11 = arith.cmpi ne, %10, %c0_i32_9 : i32
    scf.if %11 {
      %c0_10 = arith.constant 0 : index
      %c0_11 = arith.constant 0 : index
      %12 = vector.load %arg9[%c0_10, %c0_11] : memref<32x128xf32, #tpu.memory_space<vmem>>, vector<32x128xf32>
      %c0_12 = arith.constant 0 : index
      %c0_13 = arith.constant 0 : index
      %13 = vector.load %arg5[%c0_12, %c0_13] : memref<1x128xf32, #tpu.memory_space<vmem>>, vector<1x128xf32>
      %14 = vector.broadcast %13 : vector<1x128xf32> to vector<32x128xf32>
      %15 = arith.mulf %12, %14 : vector<32x128xf32>
      %c0_14 = arith.constant 0 : index
      %c0_15 = arith.constant 0 : index
      %16 = vector.load %arg6[%c0_14, %c0_15] : memref<1x128xf32, #tpu.memory_space<vmem>>, vector<1x128xf32>
      %17 = vector.broadcast %16 : vector<1x128xf32> to vector<32x128xf32>
      %18 = arith.addf %15, %17 : vector<32x128xf32>
      %c0_16 = arith.constant 0 : index
      %c0_17 = arith.constant 0 : index
      %19 = vector.load %arg7[%c0_16, %c0_17] : memref<32x128xf32, #tpu.memory_space<vmem>>, vector<32x128xf32>
      %20 = arith.addf %18, %19 : vector<32x128xf32>
      %cst_18 = arith.constant 0.000000e+00 : f32
      %21 = vector.broadcast %cst_18 : f32 to vector<32x128xf32>
      %22 = arith.maximumf %20, %21 : vector<32x128xf32>
      %c0_19 = arith.constant 0 : index
      %c0_20 = arith.constant 0 : index
      %23 = vector.load %arg8[%c0_19, %c0_20] : memref<32x128xf32, #tpu.memory_space<vmem>>, vector<32x128xf32>
      tpu.vector_store %arg8[%c0_19, %c0_20], %22 {strides = array<i32>} : memref<32x128xf32, #tpu.memory_space<vmem>>, vector<32x128xf32>,
    } else {
    }
    return
  }
  func.func @transform_0(%arg0: i32, %arg1: i32, %arg2: i32) -> (i32, i32) {
    %c0_i32 = arith.constant 0 : i32
    return %arg0, %arg2 : i32, i32
  }
  func.func @transform_1(%arg0: i32, %arg1: i32, %arg2: i32) -> (i32, i32) {
    %c0_i32 = arith.constant 0 : i32
    return %arg2, %arg1 : i32, i32
  }
  func.func @transform_2(%arg0: i32, %arg1: i32, %arg2: i32) -> (i32, i32) {
    %c0_i32 = arith.constant 0 : i32
    %c0_i32_0 = arith.constant 0 : i32
    return %c0_i32, %arg1 : i32, i32
  }
  func.func @transform_3(%arg0: i32, %arg1: i32, %arg2: i32) -> (i32, i32) {
    %c0_i32 = arith.constant 0 : i32
    %c0_i32_0 = arith.constant 0 : i32
    return %c0_i32, %arg1 : i32, i32
  }
  func.func @transform_4(%arg0: i32, %arg1: i32, %arg2: i32) -> (i32, i32) {
    %c0_i32 = arith.constant 0 : i32
    return %arg0, %arg1 : i32, i32
  }
  func.func @transform_5(%arg0: i32, %arg1: i32, %arg2: i32) -> (i32, i32) {
    %c0_i32 = arith.constant 0 : i32
    return %arg0, %arg1 : i32, i32
  }
}

module attributes {stable_mosaic.version = 11 : i64} {
  func.func @_mm_kernel(%arg0: i32, %arg1: i32, %arg2: i32, %arg3: memref<32x576xbf16, #tpu.memory_space<vmem>>, %arg4: memref<576x128xbf16, #tpu.memory_space<vmem>>, %arg5: memref<1x128xf32, #tpu.memory_space<vmem>>, %arg6: memref<1x128xf32, #tpu.memory_space<vmem>>, %arg7: memref<32x128xf32, #tpu.memory_space<vmem>>, %arg8: memref<32x128xf32, #tpu.memory_space<vmem>>) attributes {dimension_semantics = [#tpu.dimension_semantics<parallel>, #tpu.dimension_semantics<parallel>, #tpu.dimension_semantics<arbitrary>], iteration_bounds = array<i64: 1, 1, 1>, scalar_prefetch = 0 : i64, scratch_operands = 1 : i64, tpu.core_type = #tpu.core_type<tc>, window_params = [{transform_indices = @transform_0, window_bounds = array<i64: 32, 576>}, {transform_indices = @transform_1, window_bounds = array<i64: 576, 128>}, {transform_indices = @transform_2, window_bounds = array<i64: 1, 128>}, {transform_indices = @transform_3, window_bounds = array<i64: 1, 128>}, {transform_indices = @transform_4, window_bounds = array<i64: 32, 128>}]} {
    %c0_i32 = arith.constant 0 : i32
    %0 = arith.cmpi eq, %arg2, %c0_i32 : i32
    %1 = arith.extui %0 : i1 to i32
    %c0_i32_0 = arith.constant 0 : i32
    %2 = arith.cmpi ne, %1, %c0_i32_0 : i32
    scf.if %2 {
      %cst_10 = arith.constant 0.000000e+00 : f32
      %12 = vector.broadcast %cst_10 : f32 to vector<32x128xf32>
      %c0_11 = arith.constant 0 : index
      %c0_12 = arith.constant 0 : index
      %13 = vector.load %arg8[%c0_11, %c0_12] : memref<32x128xf32, #tpu.memory_space<vmem>>, vector<32x128xf32>
      tpu.vector_store %arg8[%c0_11, %c0_12], %12 {strides = array<i32>} : memref<32x128xf32, #tpu.memory_space<vmem>>, vector<32x128xf32>,
    } else {
    }
    %c0 = arith.constant 0 : index
    %c0_1 = arith.constant 0 : index
    %3 = vector.load %arg8[%c0, %c0_1] : memref<32x128xf32, #tpu.memory_space<vmem>>, vector<32x128xf32>
    %c0_2 = arith.constant 0 : index
    %c0_3 = arith.constant 0 : index
    %4 = vector.load %arg3[%c0_2, %c0_3] : memref<32x576xbf16, #tpu.memory_space<vmem>>, vector<32x576xbf16>
    %c0_4 = arith.constant 0 : index
    %c0_5 = arith.constant 0 : index
    %5 = vector.load %arg4[%c0_4, %c0_5] : memref<576x128xbf16, #tpu.memory_space<vmem>>, vector<576x128xbf16>
    %cst = arith.constant dense<0.000000e+00> : vector<32x128xf32>
    %6 = tpu.matmul %4, %5, %cst {dimension_numbers = #tpu.dot_dimension_numbers<[1], [0], [0], [1], [0, 0, 1, 1], [], []>} : vector<32x576xbf16>, vector<576x128xbf16>, vector<32x128xf32> -> vector<32x128xf32>
    %7 = arith.addf %3, %6 : vector<32x128xf32>
    %c0_6 = arith.constant 0 : index
    %c0_7 = arith.constant 0 : index
    %8 = vector.load %arg8[%c0_6, %c0_7] : memref<32x128xf32, #tpu.memory_space<vmem>>, vector<32x128xf32>
    tpu.vector_store %arg8[%c0_6, %c0_7], %7 {strides = array<i32>} : memref<32x128xf32, #tpu.memory_space<vmem>>, vector<32x128xf32>,
    %c0_i32_8 = arith.constant 0 : i32
    %9 = arith.cmpi eq, %arg2, %c0_i32_8 : i32
    %10 = arith.extui %9 : i1 to i32
    %c0_i32_9 = arith.constant 0 : i32
    %11 = arith.cmpi ne, %10, %c0_i32_9 : i32
    scf.if %11 {
      %c0_10 = arith.constant 0 : index
      %c0_11 = arith.constant 0 : index
      %12 = vector.load %arg8[%c0_10, %c0_11] : memref<32x128xf32, #tpu.memory_space<vmem>>, vector<32x128xf32>
      %c0_12 = arith.constant 0 : index
      %c0_13 = arith.constant 0 : index
      %13 = vector.load %arg5[%c0_12, %c0_13] : memref<1x128xf32, #tpu.memory_space<vmem>>, vector<1x128xf32>
      %14 = vector.broadcast %13 : vector<1x128xf32> to vector<32x128xf32>
      %15 = arith.mulf %12, %14 : vector<32x128xf32>
      %c0_14 = arith.constant 0 : index
      %c0_15 = arith.constant 0 : index
      %16 = vector.load %arg6[%c0_14, %c0_15] : memref<1x128xf32, #tpu.memory_space<vmem>>, vector<1x128xf32>
      %17 = vector.broadcast %16 : vector<1x128xf32> to vector<32x128xf32>
      %18 = arith.addf %15, %17 : vector<32x128xf32>
      %cst_16 = arith.constant 0.000000e+00 : f32
      %19 = vector.broadcast %cst_16 : f32 to vector<32x128xf32>
      %20 = arith.maximumf %18, %19 : vector<32x128xf32>
      %c0_17 = arith.constant 0 : index
      %c0_18 = arith.constant 0 : index
      %21 = vector.load %arg7[%c0_17, %c0_18] : memref<32x128xf32, #tpu.memory_space<vmem>>, vector<32x128xf32>
      tpu.vector_store %arg7[%c0_17, %c0_18], %20 {strides = array<i32>} : memref<32x128xf32, #tpu.memory_space<vmem>>, vector<32x128xf32>,
    } else {
    }
    return
  }
  func.func @transform_0(%arg0: i32, %arg1: i32, %arg2: i32) -> (i32, i32) {
    %c0_i32 = arith.constant 0 : i32
    return %arg0, %arg2 : i32, i32
  }
  func.func @transform_1(%arg0: i32, %arg1: i32, %arg2: i32) -> (i32, i32) {
    %c0_i32 = arith.constant 0 : i32
    return %arg2, %arg1 : i32, i32
  }
  func.func @transform_2(%arg0: i32, %arg1: i32, %arg2: i32) -> (i32, i32) {
    %c0_i32 = arith.constant 0 : i32
    %c0_i32_0 = arith.constant 0 : i32
    return %c0_i32, %arg1 : i32, i32
  }
  func.func @transform_3(%arg0: i32, %arg1: i32, %arg2: i32) -> (i32, i32) {
    %c0_i32 = arith.constant 0 : i32
    %c0_i32_0 = arith.constant 0 : i32
    return %c0_i32, %arg1 : i32, i32
  }
  func.func @transform_4(%arg0: i32, %arg1: i32, %arg2: i32) -> (i32, i32) {
    %c0_i32 = arith.constant 0 : i32
    return %arg0, %arg1 : i32, i32
  }
}

module attributes {stable_mosaic.version = 11 : i64} {
  func.func @_mm_kernel(%arg0: i32, %arg1: i32, %arg2: i32, %arg3: memref<8x64xbf16, #tpu.memory_space<vmem>>, %arg4: memref<64x128xbf16, #tpu.memory_space<vmem>>, %arg5: memref<1x128xf32, #tpu.memory_space<vmem>>, %arg6: memref<1x128xf32, #tpu.memory_space<vmem>>, %arg7: memref<8x128xf32, #tpu.memory_space<vmem>>, %arg8: memref<8x128xf32, #tpu.memory_space<vmem>>) attributes {dimension_semantics = [#tpu.dimension_semantics<parallel>, #tpu.dimension_semantics<parallel>, #tpu.dimension_semantics<arbitrary>], iteration_bounds = array<i64: 1, 1, 1>, scalar_prefetch = 0 : i64, scratch_operands = 1 : i64, tpu.core_type = #tpu.core_type<tc>, window_params = [{transform_indices = @transform_0, window_bounds = array<i64: 8, 64>}, {transform_indices = @transform_1, window_bounds = array<i64: 64, 128>}, {transform_indices = @transform_2, window_bounds = array<i64: 1, 128>}, {transform_indices = @transform_3, window_bounds = array<i64: 1, 128>}, {transform_indices = @transform_4, window_bounds = array<i64: 8, 128>}]} {
    %c0_i32 = arith.constant 0 : i32
    %0 = arith.cmpi eq, %arg2, %c0_i32 : i32
    %1 = arith.extui %0 : i1 to i32
    %c0_i32_0 = arith.constant 0 : i32
    %2 = arith.cmpi ne, %1, %c0_i32_0 : i32
    scf.if %2 {
      %cst_10 = arith.constant 0.000000e+00 : f32
      %12 = vector.broadcast %cst_10 : f32 to vector<8x128xf32>
      %c0_11 = arith.constant 0 : index
      %c0_12 = arith.constant 0 : index
      %13 = vector.load %arg8[%c0_11, %c0_12] : memref<8x128xf32, #tpu.memory_space<vmem>>, vector<8x128xf32>
      tpu.vector_store %arg8[%c0_11, %c0_12], %12 {strides = array<i32>} : memref<8x128xf32, #tpu.memory_space<vmem>>, vector<8x128xf32>,
    } else {
    }
    %c0 = arith.constant 0 : index
    %c0_1 = arith.constant 0 : index
    %3 = vector.load %arg8[%c0, %c0_1] : memref<8x128xf32, #tpu.memory_space<vmem>>, vector<8x128xf32>
    %c0_2 = arith.constant 0 : index
    %c0_3 = arith.constant 0 : index
    %4 = vector.load %arg3[%c0_2, %c0_3] : memref<8x64xbf16, #tpu.memory_space<vmem>>, vector<8x64xbf16>
    %c0_4 = arith.constant 0 : index
    %c0_5 = arith.constant 0 : index
    %5 = vector.load %arg4[%c0_4, %c0_5] : memref<64x128xbf16, #tpu.memory_space<vmem>>, vector<64x128xbf16>
    %cst = arith.constant dense<0.000000e+00> : vector<8x128xf32>
    %6 = tpu.matmul %4, %5, %cst {dimension_numbers = #tpu.dot_dimension_numbers<[1], [0], [0], [1], [0, 0, 1, 1], [], []>} : vector<8x64xbf16>, vector<64x128xbf16>, vector<8x128xf32> -> vector<8x128xf32>
    %7 = arith.addf %3, %6 : vector<8x128xf32>
    %c0_6 = arith.constant 0 : index
    %c0_7 = arith.constant 0 : index
    %8 = vector.load %arg8[%c0_6, %c0_7] : memref<8x128xf32, #tpu.memory_space<vmem>>, vector<8x128xf32>
    tpu.vector_store %arg8[%c0_6, %c0_7], %7 {strides = array<i32>} : memref<8x128xf32, #tpu.memory_space<vmem>>, vector<8x128xf32>,
    %c0_i32_8 = arith.constant 0 : i32
    %9 = arith.cmpi eq, %arg2, %c0_i32_8 : i32
    %10 = arith.extui %9 : i1 to i32
    %c0_i32_9 = arith.constant 0 : i32
    %11 = arith.cmpi ne, %10, %c0_i32_9 : i32
    scf.if %11 {
      %c0_10 = arith.constant 0 : index
      %c0_11 = arith.constant 0 : index
      %12 = vector.load %arg8[%c0_10, %c0_11] : memref<8x128xf32, #tpu.memory_space<vmem>>, vector<8x128xf32>
      %c0_12 = arith.constant 0 : index
      %c0_13 = arith.constant 0 : index
      %13 = vector.load %arg5[%c0_12, %c0_13] : memref<1x128xf32, #tpu.memory_space<vmem>>, vector<1x128xf32>
      %14 = vector.broadcast %13 : vector<1x128xf32> to vector<8x128xf32>
      %15 = arith.mulf %12, %14 : vector<8x128xf32>
      %c0_14 = arith.constant 0 : index
      %c0_15 = arith.constant 0 : index
      %16 = vector.load %arg6[%c0_14, %c0_15] : memref<1x128xf32, #tpu.memory_space<vmem>>, vector<1x128xf32>
      %17 = vector.broadcast %16 : vector<1x128xf32> to vector<8x128xf32>
      %18 = arith.addf %15, %17 : vector<8x128xf32>
      %c0_16 = arith.constant 0 : index
      %c0_17 = arith.constant 0 : index
      %19 = vector.load %arg7[%c0_16, %c0_17] : memref<8x128xf32, #tpu.memory_space<vmem>>, vector<8x128xf32>
      tpu.vector_store %arg7[%c0_16, %c0_17], %18 {strides = array<i32>} : memref<8x128xf32, #tpu.memory_space<vmem>>, vector<8x128xf32>,
    } else {
    }
    return
  }
  func.func @transform_0(%arg0: i32, %arg1: i32, %arg2: i32) -> (i32, i32) {
    %c0_i32 = arith.constant 0 : i32
    return %arg0, %arg2 : i32, i32
  }
  func.func @transform_1(%arg0: i32, %arg1: i32, %arg2: i32) -> (i32, i32) {
    %c0_i32 = arith.constant 0 : i32
    return %arg2, %arg1 : i32, i32
  }
  func.func @transform_2(%arg0: i32, %arg1: i32, %arg2: i32) -> (i32, i32) {
    %c0_i32 = arith.constant 0 : i32
    %c0_i32_0 = arith.constant 0 : i32
    return %c0_i32, %arg1 : i32, i32
  }
  func.func @transform_3(%arg0: i32, %arg1: i32, %arg2: i32) -> (i32, i32) {
    %c0_i32 = arith.constant 0 : i32
    %c0_i32_0 = arith.constant 0 : i32
    return %c0_i32, %arg1 : i32, i32
  }
  func.func @transform_4(%arg0: i32, %arg1: i32, %arg2: i32) -> (i32, i32) {
    %c0_i32 = arith.constant 0 : i32
    return %arg0, %arg1 : i32, i32
  }
}

module attributes {stable_mosaic.version = 11 : i64} {
  func.func @_mm_kernel(%arg0: i32, %arg1: i32, %arg2: i32, %arg3: memref<8x576xbf16, #tpu.memory_space<vmem>>, %arg4: memref<576x128xbf16, #tpu.memory_space<vmem>>, %arg5: memref<1x128xf32, #tpu.memory_space<vmem>>, %arg6: memref<1x128xf32, #tpu.memory_space<vmem>>, %arg7: memref<8x128xf32, #tpu.memory_space<vmem>>, %arg8: memref<8x128xf32, #tpu.memory_space<vmem>>) attributes {dimension_semantics = [#tpu.dimension_semantics<parallel>, #tpu.dimension_semantics<parallel>, #tpu.dimension_semantics<arbitrary>], iteration_bounds = array<i64: 1, 1, 1>, scalar_prefetch = 0 : i64, scratch_operands = 1 : i64, tpu.core_type = #tpu.core_type<tc>, window_params = [{transform_indices = @transform_0, window_bounds = array<i64: 8, 576>}, {transform_indices = @transform_1, window_bounds = array<i64: 576, 128>}, {transform_indices = @transform_2, window_bounds = array<i64: 1, 128>}, {transform_indices = @transform_3, window_bounds = array<i64: 1, 128>}, {transform_indices = @transform_4, window_bounds = array<i64: 8, 128>}]} {
    %c0_i32 = arith.constant 0 : i32
    %0 = arith.cmpi eq, %arg2, %c0_i32 : i32
    %1 = arith.extui %0 : i1 to i32
    %c0_i32_0 = arith.constant 0 : i32
    %2 = arith.cmpi ne, %1, %c0_i32_0 : i32
    scf.if %2 {
      %cst_10 = arith.constant 0.000000e+00 : f32
      %12 = vector.broadcast %cst_10 : f32 to vector<8x128xf32>
      %c0_11 = arith.constant 0 : index
      %c0_12 = arith.constant 0 : index
      %13 = vector.load %arg8[%c0_11, %c0_12] : memref<8x128xf32, #tpu.memory_space<vmem>>, vector<8x128xf32>
      tpu.vector_store %arg8[%c0_11, %c0_12], %12 {strides = array<i32>} : memref<8x128xf32, #tpu.memory_space<vmem>>, vector<8x128xf32>,
    } else {
    }
    %c0 = arith.constant 0 : index
    %c0_1 = arith.constant 0 : index
    %3 = vector.load %arg8[%c0, %c0_1] : memref<8x128xf32, #tpu.memory_space<vmem>>, vector<8x128xf32>
    %c0_2 = arith.constant 0 : index
    %c0_3 = arith.constant 0 : index
    %4 = vector.load %arg3[%c0_2, %c0_3] : memref<8x576xbf16, #tpu.memory_space<vmem>>, vector<8x576xbf16>
    %c0_4 = arith.constant 0 : index
    %c0_5 = arith.constant 0 : index
    %5 = vector.load %arg4[%c0_4, %c0_5] : memref<576x128xbf16, #tpu.memory_space<vmem>>, vector<576x128xbf16>
    %cst = arith.constant dense<0.000000e+00> : vector<8x128xf32>
    %6 = tpu.matmul %4, %5, %cst {dimension_numbers = #tpu.dot_dimension_numbers<[1], [0], [0], [1], [0, 0, 1, 1], [], []>} : vector<8x576xbf16>, vector<576x128xbf16>, vector<8x128xf32> -> vector<8x128xf32>
    %7 = arith.addf %3, %6 : vector<8x128xf32>
    %c0_6 = arith.constant 0 : index
    %c0_7 = arith.constant 0 : index
    %8 = vector.load %arg8[%c0_6, %c0_7] : memref<8x128xf32, #tpu.memory_space<vmem>>, vector<8x128xf32>
    tpu.vector_store %arg8[%c0_6, %c0_7], %7 {strides = array<i32>} : memref<8x128xf32, #tpu.memory_space<vmem>>, vector<8x128xf32>,
    %c0_i32_8 = arith.constant 0 : i32
    %9 = arith.cmpi eq, %arg2, %c0_i32_8 : i32
    %10 = arith.extui %9 : i1 to i32
    %c0_i32_9 = arith.constant 0 : i32
    %11 = arith.cmpi ne, %10, %c0_i32_9 : i32
    scf.if %11 {
      %c0_10 = arith.constant 0 : index
      %c0_11 = arith.constant 0 : index
      %12 = vector.load %arg8[%c0_10, %c0_11] : memref<8x128xf32, #tpu.memory_space<vmem>>, vector<8x128xf32>
      %c0_12 = arith.constant 0 : index
      %c0_13 = arith.constant 0 : index
      %13 = vector.load %arg5[%c0_12, %c0_13] : memref<1x128xf32, #tpu.memory_space<vmem>>, vector<1x128xf32>
      %14 = vector.broadcast %13 : vector<1x128xf32> to vector<8x128xf32>
      %15 = arith.mulf %12, %14 : vector<8x128xf32>
      %c0_14 = arith.constant 0 : index
      %c0_15 = arith.constant 0 : index
      %16 = vector.load %arg6[%c0_14, %c0_15] : memref<1x128xf32, #tpu.memory_space<vmem>>, vector<1x128xf32>
      %17 = vector.broadcast %16 : vector<1x128xf32> to vector<8x128xf32>
      %18 = arith.addf %15, %17 : vector<8x128xf32>
      %cst_16 = arith.constant 0.000000e+00 : f32
      %19 = vector.broadcast %cst_16 : f32 to vector<8x128xf32>
      %20 = arith.maximumf %18, %19 : vector<8x128xf32>
      %c0_17 = arith.constant 0 : index
      %c0_18 = arith.constant 0 : index
      %21 = vector.load %arg7[%c0_17, %c0_18] : memref<8x128xf32, #tpu.memory_space<vmem>>, vector<8x128xf32>
      tpu.vector_store %arg7[%c0_17, %c0_18], %20 {strides = array<i32>} : memref<8x128xf32, #tpu.memory_space<vmem>>, vector<8x128xf32>,
    } else {
    }
    return
  }
  func.func @transform_0(%arg0: i32, %arg1: i32, %arg2: i32) -> (i32, i32) {
    %c0_i32 = arith.constant 0 : i32
    return %arg0, %arg2 : i32, i32
  }
  func.func @transform_1(%arg0: i32, %arg1: i32, %arg2: i32) -> (i32, i32) {
    %c0_i32 = arith.constant 0 : i32
    return %arg2, %arg1 : i32, i32
  }
  func.func @transform_2(%arg0: i32, %arg1: i32, %arg2: i32) -> (i32, i32) {
    %c0_i32 = arith.constant 0 : i32
    %c0_i32_0 = arith.constant 0 : i32
    return %c0_i32, %arg1 : i32, i32
  }
  func.func @transform_3(%arg0: i32, %arg1: i32, %arg2: i32) -> (i32, i32) {
    %c0_i32 = arith.constant 0 : i32
    %c0_i32_0 = arith.constant 0 : i32
    return %c0_i32, %arg1 : i32, i32
  }
  func.func @transform_4(%arg0: i32, %arg1: i32, %arg2: i32) -> (i32, i32) {
    %c0_i32 = arith.constant 0 : i32
    return %arg0, %arg1 : i32, i32
  }
}

module attributes {stable_mosaic.version = 11 : i64} {
  func.func @_mm_kernel(%arg0: i32, %arg1: i32, %arg2: i32, %arg3: memref<8x384xbf16, #tpu.memory_space<vmem>>, %arg4: memref<384x128xbf16, #tpu.memory_space<vmem>>, %arg5: memref<1x128xf32, #tpu.memory_space<vmem>>, %arg6: memref<1x128xf32, #tpu.memory_space<vmem>>, %arg7: memref<8x128xf32, #tpu.memory_space<vmem>>, %arg8: memref<8x128xf32, #tpu.memory_space<vmem>>, %arg9: memref<8x128xf32, #tpu.memory_space<vmem>>) attributes {dimension_semantics = [#tpu.dimension_semantics<parallel>, #tpu.dimension_semantics<parallel>, #tpu.dimension_semantics<arbitrary>], iteration_bounds = array<i64: 1, 1, 3>, scalar_prefetch = 0 : i64, scratch_operands = 1 : i64, tpu.core_type = #tpu.core_type<tc>, window_params = [{transform_indices = @transform_0, window_bounds = array<i64: 8, 384>}, {transform_indices = @transform_1, window_bounds = array<i64: 384, 128>}, {transform_indices = @transform_2, window_bounds = array<i64: 1, 128>}, {transform_indices = @transform_3, window_bounds = array<i64: 1, 128>}, {transform_indices = @transform_4, window_bounds = array<i64: 8, 128>}, {transform_indices = @transform_5, window_bounds = array<i64: 8, 128>}]} {
    %c0_i32 = arith.constant 0 : i32
    %0 = arith.cmpi eq, %arg2, %c0_i32 : i32
    %1 = arith.extui %0 : i1 to i32
    %c0_i32_0 = arith.constant 0 : i32
    %2 = arith.cmpi ne, %1, %c0_i32_0 : i32
    scf.if %2 {
      %cst_9 = arith.constant 0.000000e+00 : f32
      %12 = vector.broadcast %cst_9 : f32 to vector<8x128xf32>
      %c0_10 = arith.constant 0 : index
      %c0_11 = arith.constant 0 : index
      %13 = vector.load %arg9[%c0_10, %c0_11] : memref<8x128xf32, #tpu.memory_space<vmem>>, vector<8x128xf32>
      tpu.vector_store %arg9[%c0_10, %c0_11], %12 {strides = array<i32>} : memref<8x128xf32, #tpu.memory_space<vmem>>, vector<8x128xf32>,
    } else {
    }
    %c0 = arith.constant 0 : index
    %c0_1 = arith.constant 0 : index
    %3 = vector.load %arg9[%c0, %c0_1] : memref<8x128xf32, #tpu.memory_space<vmem>>, vector<8x128xf32>
    %c0_2 = arith.constant 0 : index
    %c0_3 = arith.constant 0 : index
    %4 = vector.load %arg3[%c0_2, %c0_3] : memref<8x384xbf16, #tpu.memory_space<vmem>>, vector<8x384xbf16>
    %c0_4 = arith.constant 0 : index
    %c0_5 = arith.constant 0 : index
    %5 = vector.load %arg4[%c0_4, %c0_5] : memref<384x128xbf16, #tpu.memory_space<vmem>>, vector<384x128xbf16>
    %cst = arith.constant dense<0.000000e+00> : vector<8x128xf32>
    %6 = tpu.matmul %4, %5, %cst {dimension_numbers = #tpu.dot_dimension_numbers<[1], [0], [0], [1], [0, 0, 1, 1], [], []>} : vector<8x384xbf16>, vector<384x128xbf16>, vector<8x128xf32> -> vector<8x128xf32>
    %7 = arith.addf %3, %6 : vector<8x128xf32>
    %c0_6 = arith.constant 0 : index
    %c0_7 = arith.constant 0 : index
    %8 = vector.load %arg9[%c0_6, %c0_7] : memref<8x128xf32, #tpu.memory_space<vmem>>, vector<8x128xf32>
    tpu.vector_store %arg9[%c0_6, %c0_7], %7 {strides = array<i32>} : memref<8x128xf32, #tpu.memory_space<vmem>>, vector<8x128xf32>,
    %c2_i32 = arith.constant 2 : i32
    %9 = arith.cmpi eq, %arg2, %c2_i32 : i32
    %10 = arith.extui %9 : i1 to i32
    %c0_i32_8 = arith.constant 0 : i32
    %11 = arith.cmpi ne, %10, %c0_i32_8 : i32
    scf.if %11 {
      %c0_9 = arith.constant 0 : index
      %c0_10 = arith.constant 0 : index
      %12 = vector.load %arg9[%c0_9, %c0_10] : memref<8x128xf32, #tpu.memory_space<vmem>>, vector<8x128xf32>
      %c0_11 = arith.constant 0 : index
      %c0_12 = arith.constant 0 : index
      %13 = vector.load %arg5[%c0_11, %c0_12] : memref<1x128xf32, #tpu.memory_space<vmem>>, vector<1x128xf32>
      %14 = vector.broadcast %13 : vector<1x128xf32> to vector<8x128xf32>
      %15 = arith.mulf %12, %14 : vector<8x128xf32>
      %c0_13 = arith.constant 0 : index
      %c0_14 = arith.constant 0 : index
      %16 = vector.load %arg6[%c0_13, %c0_14] : memref<1x128xf32, #tpu.memory_space<vmem>>, vector<1x128xf32>
      %17 = vector.broadcast %16 : vector<1x128xf32> to vector<8x128xf32>
      %18 = arith.addf %15, %17 : vector<8x128xf32>
      %c0_15 = arith.constant 0 : index
      %c0_16 = arith.constant 0 : index
      %19 = vector.load %arg7[%c0_15, %c0_16] : memref<8x128xf32, #tpu.memory_space<vmem>>, vector<8x128xf32>
      %20 = arith.addf %18, %19 : vector<8x128xf32>
      %cst_17 = arith.constant 0.000000e+00 : f32
      %21 = vector.broadcast %cst_17 : f32 to vector<8x128xf32>
      %22 = arith.maximumf %20, %21 : vector<8x128xf32>
      %c0_18 = arith.constant 0 : index
      %c0_19 = arith.constant 0 : index
      %23 = vector.load %arg8[%c0_18, %c0_19] : memref<8x128xf32, #tpu.memory_space<vmem>>, vector<8x128xf32>
      tpu.vector_store %arg8[%c0_18, %c0_19], %22 {strides = array<i32>} : memref<8x128xf32, #tpu.memory_space<vmem>>, vector<8x128xf32>,
    } else {
    }
    return
  }
  func.func @transform_0(%arg0: i32, %arg1: i32, %arg2: i32) -> (i32, i32) {
    %c0_i32 = arith.constant 0 : i32
    return %arg0, %arg2 : i32, i32
  }
  func.func @transform_1(%arg0: i32, %arg1: i32, %arg2: i32) -> (i32, i32) {
    %c0_i32 = arith.constant 0 : i32
    return %arg2, %arg1 : i32, i32
  }
  func.func @transform_2(%arg0: i32, %arg1: i32, %arg2: i32) -> (i32, i32) {
    %c0_i32 = arith.constant 0 : i32
    %c0_i32_0 = arith.constant 0 : i32
    return %c0_i32, %arg1 : i32, i32
  }
  func.func @transform_3(%arg0: i32, %arg1: i32, %arg2: i32) -> (i32, i32) {
    %c0_i32 = arith.constant 0 : i32
    %c0_i32_0 = arith.constant 0 : i32
    return %c0_i32, %arg1 : i32, i32
  }
  func.func @transform_4(%arg0: i32, %arg1: i32, %arg2: i32) -> (i32, i32) {
    %c0_i32 = arith.constant 0 : i32
    return %arg0, %arg1 : i32, i32
  }
  func.func @transform_5(%arg0: i32, %arg1: i32, %arg2: i32) -> (i32, i32) {
    %c0_i32 = arith.constant 0 : i32
    return %arg0, %arg1 : i32, i32
  }
}

module attributes {stable_mosaic.version = 11 : i64} {
  func.func @_mm_kernel(%arg0: i32, %arg1: i32, %arg2: i32, %arg3: memref<8x384xbf16, #tpu.memory_space<vmem>>, %arg4: memref<384x128xbf16, #tpu.memory_space<vmem>>, %arg5: memref<1x128xf32, #tpu.memory_space<vmem>>, %arg6: memref<1x128xf32, #tpu.memory_space<vmem>>, %arg7: memref<8x128xf32, #tpu.memory_space<vmem>>, %arg8: memref<8x128xf32, #tpu.memory_space<vmem>>) attributes {dimension_semantics = [#tpu.dimension_semantics<parallel>, #tpu.dimension_semantics<parallel>, #tpu.dimension_semantics<arbitrary>], iteration_bounds = array<i64: 1, 1, 3>, scalar_prefetch = 0 : i64, scratch_operands = 1 : i64, tpu.core_type = #tpu.core_type<tc>, window_params = [{transform_indices = @transform_0, window_bounds = array<i64: 8, 384>}, {transform_indices = @transform_1, window_bounds = array<i64: 384, 128>}, {transform_indices = @transform_2, window_bounds = array<i64: 1, 128>}, {transform_indices = @transform_3, window_bounds = array<i64: 1, 128>}, {transform_indices = @transform_4, window_bounds = array<i64: 8, 128>}]} {
    %c0_i32 = arith.constant 0 : i32
    %0 = arith.cmpi eq, %arg2, %c0_i32 : i32
    %1 = arith.extui %0 : i1 to i32
    %c0_i32_0 = arith.constant 0 : i32
    %2 = arith.cmpi ne, %1, %c0_i32_0 : i32
    scf.if %2 {
      %cst_9 = arith.constant 0.000000e+00 : f32
      %12 = vector.broadcast %cst_9 : f32 to vector<8x128xf32>
      %c0_10 = arith.constant 0 : index
      %c0_11 = arith.constant 0 : index
      %13 = vector.load %arg8[%c0_10, %c0_11] : memref<8x128xf32, #tpu.memory_space<vmem>>, vector<8x128xf32>
      tpu.vector_store %arg8[%c0_10, %c0_11], %12 {strides = array<i32>} : memref<8x128xf32, #tpu.memory_space<vmem>>, vector<8x128xf32>,
    } else {
    }
    %c0 = arith.constant 0 : index
    %c0_1 = arith.constant 0 : index
    %3 = vector.load %arg8[%c0, %c0_1] : memref<8x128xf32, #tpu.memory_space<vmem>>, vector<8x128xf32>
    %c0_2 = arith.constant 0 : index
    %c0_3 = arith.constant 0 : index
    %4 = vector.load %arg3[%c0_2, %c0_3] : memref<8x384xbf16, #tpu.memory_space<vmem>>, vector<8x384xbf16>
    %c0_4 = arith.constant 0 : index
    %c0_5 = arith.constant 0 : index
    %5 = vector.load %arg4[%c0_4, %c0_5] : memref<384x128xbf16, #tpu.memory_space<vmem>>, vector<384x128xbf16>
    %cst = arith.constant dense<0.000000e+00> : vector<8x128xf32>
    %6 = tpu.matmul %4, %5, %cst {dimension_numbers = #tpu.dot_dimension_numbers<[1], [0], [0], [1], [0, 0, 1, 1], [], []>} : vector<8x384xbf16>, vector<384x128xbf16>, vector<8x128xf32> -> vector<8x128xf32>
    %7 = arith.addf %3, %6 : vector<8x128xf32>
    %c0_6 = arith.constant 0 : index
    %c0_7 = arith.constant 0 : index
    %8 = vector.load %arg8[%c0_6, %c0_7] : memref<8x128xf32, #tpu.memory_space<vmem>>, vector<8x128xf32>
    tpu.vector_store %arg8[%c0_6, %c0_7], %7 {strides = array<i32>} : memref<8x128xf32, #tpu.memory_space<vmem>>, vector<8x128xf32>,
    %c2_i32 = arith.constant 2 : i32
    %9 = arith.cmpi eq, %arg2, %c2_i32 : i32
    %10 = arith.extui %9 : i1 to i32
    %c0_i32_8 = arith.constant 0 : i32
    %11 = arith.cmpi ne, %10, %c0_i32_8 : i32
    scf.if %11 {
      %c0_9 = arith.constant 0 : index
      %c0_10 = arith.constant 0 : index
      %12 = vector.load %arg8[%c0_9, %c0_10] : memref<8x128xf32, #tpu.memory_space<vmem>>, vector<8x128xf32>
      %c0_11 = arith.constant 0 : index
      %c0_12 = arith.constant 0 : index
      %13 = vector.load %arg5[%c0_11, %c0_12] : memref<1x128xf32, #tpu.memory_space<vmem>>, vector<1x128xf32>
      %14 = vector.broadcast %13 : vector<1x128xf32> to vector<8x128xf32>
      %15 = arith.mulf %12, %14 : vector<8x128xf32>
      %c0_13 = arith.constant 0 : index
      %c0_14 = arith.constant 0 : index
      %16 = vector.load %arg6[%c0_13, %c0_14] : memref<1x128xf32, #tpu.memory_space<vmem>>, vector<1x128xf32>
      %17 = vector.broadcast %16 : vector<1x128xf32> to vector<8x128xf32>
      %18 = arith.addf %15, %17 : vector<8x128xf32>
      %cst_15 = arith.constant 0.000000e+00 : f32
      %19 = vector.broadcast %cst_15 : f32 to vector<8x128xf32>
      %20 = arith.maximumf %18, %19 : vector<8x128xf32>
      %c0_16 = arith.constant 0 : index
      %c0_17 = arith.constant 0 : index
      %21 = vector.load %arg7[%c0_16, %c0_17] : memref<8x128xf32, #tpu.memory_space<vmem>>, vector<8x128xf32>
      tpu.vector_store %arg7[%c0_16, %c0_17], %20 {strides = array<i32>} : memref<8x128xf32, #tpu.memory_space<vmem>>, vector<8x128xf32>,
    } else {
    }
    return
  }
  func.func @transform_0(%arg0: i32, %arg1: i32, %arg2: i32) -> (i32, i32) {
    %c0_i32 = arith.constant 0 : i32
    return %arg0, %arg2 : i32, i32
  }
  func.func @transform_1(%arg0: i32, %arg1: i32, %arg2: i32) -> (i32, i32) {
    %c0_i32 = arith.constant 0 : i32
    return %arg2, %arg1 : i32, i32
  }
  func.func @transform_2(%arg0: i32, %arg1: i32, %arg2: i32) -> (i32, i32) {
    %c0_i32 = arith.constant 0 : i32
    %c0_i32_0 = arith.constant 0 : i32
    return %c0_i32, %arg1 : i32, i32
  }
  func.func @transform_3(%arg0: i32, %arg1: i32, %arg2: i32) -> (i32, i32) {
    %c0_i32 = arith.constant 0 : i32
    %c0_i32_0 = arith.constant 0 : i32
    return %c0_i32, %arg1 : i32, i32
  }
  func.func @transform_4(%arg0: i32, %arg1: i32, %arg2: i32) -> (i32, i32) {
    %c0_i32 = arith.constant 0 : i32
    return %arg0, %arg1 : i32, i32
  }
}

module attributes {stable_mosaic.version = 11 : i64} {
  func.func @_head_kernel(%arg0: i32, %arg1: memref<16x2xf32, #tpu.memory_space<vmem>>, %arg2: memref<2x16xf32, #tpu.memory_space<vmem>>, %arg3: memref<16x2xf32, #tpu.memory_space<vmem>>, %arg4: memref<2x32xf32, #tpu.memory_space<vmem>>, %arg5: memref<32x2xf32, #tpu.memory_space<vmem>>, %arg6: memref<2x64xf32, #tpu.memory_space<vmem>>, %arg7: memref<64x2xf32, #tpu.memory_space<vmem>>, %arg8: memref<2x128xf32, #tpu.memory_space<vmem>>, %arg9: memref<2x16xf32, #tpu.memory_space<vmem>>, %arg10: memref<128x256xf32, #tpu.memory_space<vmem>>, %arg11: memref<128x256xf32, #tpu.memory_space<vmem>>, %arg12: memref<1x256xf32, #tpu.memory_space<vmem>>, %arg13: memref<1x256xf32, #tpu.memory_space<vmem>>, %arg14: memref<256x256xf32, #tpu.memory_space<vmem>>, %arg15: memref<1x256xf32, #tpu.memory_space<vmem>>, %arg16: memref<1x256xf32, #tpu.memory_space<vmem>>, %arg17: memref<256x256xf32, #tpu.memory_space<vmem>>, %arg18: memref<1x256xf32, #tpu.memory_space<vmem>>, %arg19: memref<1x256xf32, #tpu.memory_space<vmem>>, %arg20: memref<1x256xf32, #tpu.memory_space<vmem>>, %arg21: memref<256x10xf32, #tpu.memory_space<vmem>>, %arg22: memref<1x10xf32, #tpu.memory_space<vmem>>, %arg23: memref<2x256xf32, #tpu.memory_space<vmem>>, %arg24: memref<2x10xf32, #tpu.memory_space<vmem>>) attributes {dimension_semantics = [#tpu.dimension_semantics<arbitrary>], iteration_bounds = array<i64: 1>, scalar_prefetch = 0 : i64, scratch_operands = 0 : i64, tpu.core_type = #tpu.core_type<tc>, window_params = [{pipeline_mode = #tpu.pipeline_mode<synchronous>, transform_indices = @transform_0, window_bounds = array<i64: 16, 2>}, {pipeline_mode = #tpu.pipeline_mode<synchronous>, transform_indices = @transform_1, window_bounds = array<i64: 2, 16>}, {pipeline_mode = #tpu.pipeline_mode<synchronous>, transform_indices = @transform_2, window_bounds = array<i64: 16, 2>}, {pipeline_mode = #tpu.pipeline_mode<synchronous>, transform_indices = @transform_3, window_bounds = array<i64: 2, 32>}, {pipeline_mode = #tpu.pipeline_mode<synchronous>, transform_indices = @transform_4, window_bounds = array<i64: 32, 2>}, {pipeline_mode = #tpu.pipeline_mode<synchronous>, transform_indices = @transform_5, window_bounds = array<i64: 2, 64>}, {pipeline_mode = #tpu.pipeline_mode<synchronous>, transform_indices = @transform_6, window_bounds = array<i64: 64, 2>}, {pipeline_mode = #tpu.pipeline_mode<synchronous>, transform_indices = @transform_7, window_bounds = array<i64: 2, 128>}, {pipeline_mode = #tpu.pipeline_mode<synchronous>, transform_indices = @transform_8, window_bounds = array<i64: 2, 16>}, {pipeline_mode = #tpu.pipeline_mode<synchronous>, transform_indices = @transform_9, window_bounds = array<i64: 128, 256>}, {pipeline_mode = #tpu.pipeline_mode<synchronous>, transform_indices = @transform_10, window_bounds = array<i64: 128, 256>}, {pipeline_mode = #tpu.pipeline_mode<synchronous>, transform_indices = @transform_11, window_bounds = array<i64: 1, 256>}, {pipeline_mode = #tpu.pipeline_mode<synchronous>, transform_indices = @transform_12, window_bounds = array<i64: 1, 256>}, {pipeline_mode = #tpu.pipeline_mode<synchronous>, transform_indices = @transform_13, window_bounds = array<i64: 256, 256>}, {pipeline_mode = #tpu.pipeline_mode<synchronous>, transform_indices = @transform_14, window_bounds = array<i64: 1, 256>}, {pipeline_mode = #tpu.pipeline_mode<synchronous>, transform_indices = @transform_15, window_bounds = array<i64: 1, 256>}, {pipeline_mode = #tpu.pipeline_mode<synchronous>, transform_indices = @transform_16, window_bounds = array<i64: 256, 256>}, {pipeline_mode = #tpu.pipeline_mode<synchronous>, transform_indices = @transform_17, window_bounds = array<i64: 1, 256>}, {pipeline_mode = #tpu.pipeline_mode<synchronous>, transform_indices = @transform_18, window_bounds = array<i64: 1, 256>}, {pipeline_mode = #tpu.pipeline_mode<synchronous>, transform_indices = @transform_19, window_bounds = array<i64: 1, 256>}, {pipeline_mode = #tpu.pipeline_mode<synchronous>, transform_indices = @transform_20, window_bounds = array<i64: 256, 10>}, {pipeline_mode = #tpu.pipeline_mode<synchronous>, transform_indices = @transform_21, window_bounds = array<i64: 1, 10>}, {pipeline_mode = #tpu.pipeline_mode<synchronous>, transform_indices = @transform_22, window_bounds = array<i64: 2, 256>}, {pipeline_mode = #tpu.pipeline_mode<synchronous>, transform_indices = @transform_23, window_bounds = array<i64: 2, 10>}]} {
    %c0 = arith.constant 0 : index
    %c0_0 = arith.constant 0 : index
    %0 = vector.load %arg1[%c0, %c0_0] : memref<16x2xf32, #tpu.memory_space<vmem>>, vector<16x2xf32>
    %c0_1 = arith.constant 0 : index
    %c0_2 = arith.constant 0 : index
    %1 = vector.load %arg2[%c0_1, %c0_2] : memref<2x16xf32, #tpu.memory_space<vmem>>, vector<2x16xf32>
    %cst = arith.constant dense<0.000000e+00> : vector<16x16xf32>
    %2 = tpu.matmul %0, %1, %cst {dimension_numbers = #tpu.dot_dimension_numbers<[1], [0], [0], [1], [0, 0, 1, 1], [], []>} : vector<16x2xf32>, vector<2x16xf32>, vector<16x16xf32> -> vector<16x16xf32>
    %cst_3 = arith.constant 2.500000e-01 : f32
    %3 = vector.broadcast %cst_3 : f32 to vector<16x16xf32>
    %4 = arith.mulf %2, %3 : vector<16x16xf32>
    %cst_4 = arith.constant dense<0xFF800000> : vector<16xf32>
    %5 = vector.multi_reduction <maximumf>, %4, %cst_4 [1] : vector<16x16xf32> to vector<16xf32>
    %6 = vector.shape_cast %5 : vector<16xf32> to vector<16x1xf32>
    %7 = vector.broadcast %6 : vector<16x1xf32> to vector<16x16xf32>
    %8 = arith.subf %4, %7 : vector<16x16xf32>
    %9 = math.exp %8 : vector<16x16xf32>
    %cst_5 = arith.constant dense<0.000000e+00> : vector<16xf32>
    %10 = vector.multi_reduction <add>, %9, %cst_5 [1] : vector<16x16xf32> to vector<16xf32>
    %11 = vector.shape_cast %10 : vector<16xf32> to vector<16x1xf32>
    %12 = tpu.reciprocal %11 {approx = true} : vector<16x1xf32> -> vector<16x1xf32>
    %13 = vector.broadcast %12 : vector<16x1xf32> to vector<16x16xf32>
    %14 = arith.mulf %9, %13 : vector<16x16xf32>
    %c0_6 = arith.constant 0 : index
    %c0_7 = arith.constant 0 : index
    %15 = vector.load %arg3[%c0_6, %c0_7] : memref<16x2xf32, #tpu.memory_space<vmem>>, vector<16x2xf32>
    %c0_8 = arith.constant 0 : index
    %c0_9 = arith.constant 0 : index
    %16 = vector.load %arg4[%c0_8, %c0_9] : memref<2x32xf32, #tpu.memory_space<vmem>>, vector<2x32xf32>
    %cst_10 = arith.constant dense<0.000000e+00> : vector<16x32xf32>
    %17 = tpu.matmul %15, %16, %cst_10 {dimension_numbers = #tpu.dot_dimension_numbers<[1], [0], [0], [1], [0, 0, 1, 1], [], []>} : vector<16x2xf32>, vector<2x32xf32>, vector<16x32xf32> -> vector<16x32xf32>
    %cst_11 = arith.constant 0.176776692 : f32
    %18 = vector.broadcast %cst_11 : f32 to vector<16x32xf32>
    %19 = arith.mulf %17, %18 : vector<16x32xf32>
    %cst_12 = arith.constant dense<0xFF800000> : vector<16xf32>
    %20 = vector.multi_reduction <maximumf>, %19, %cst_12 [1] : vector<16x32xf32> to vector<16xf32>
    %21 = vector.shape_cast %20 : vector<16xf32> to vector<16x1xf32>
    %22 = vector.broadcast %21 : vector<16x1xf32> to vector<16x32xf32>
    %23 = arith.subf %19, %22 : vector<16x32xf32>
    %24 = math.exp %23 : vector<16x32xf32>
    %cst_13 = arith.constant dense<0.000000e+00> : vector<16xf32>
    %25 = vector.multi_reduction <add>, %24, %cst_13 [1] : vector<16x32xf32> to vector<16xf32>
    %26 = vector.shape_cast %25 : vector<16xf32> to vector<16x1xf32>
    %27 = tpu.reciprocal %26 {approx = true} : vector<16x1xf32> -> vector<16x1xf32>
    %28 = vector.broadcast %27 : vector<16x1xf32> to vector<16x32xf32>
    %29 = arith.mulf %24, %28 : vector<16x32xf32>
    %c0_14 = arith.constant 0 : index
    %c0_15 = arith.constant 0 : index
    %30 = vector.load %arg5[%c0_14, %c0_15] : memref<32x2xf32, #tpu.memory_space<vmem>>, vector<32x2xf32>
    %c0_16 = arith.constant 0 : index
    %c0_17 = arith.constant 0 : index
    %31 = vector.load %arg6[%c0_16, %c0_17] : memref<2x64xf32, #tpu.memory_space<vmem>>, vector<2x64xf32>
    %cst_18 = arith.constant dense<0.000000e+00> : vector<32x64xf32>
    %32 = tpu.matmul %30, %31, %cst_18 {dimension_numbers = #tpu.dot_dimension_numbers<[1], [0], [0], [1], [0, 0, 1, 1], [], []>} : vector<32x2xf32>, vector<2x64xf32>, vector<32x64xf32> -> vector<32x64xf32>
    %cst_19 = arith.constant 1.250000e-01 : f32
    %33 = vector.broadcast %cst_19 : f32 to vector<32x64xf32>
    %34 = arith.mulf %32, %33 : vector<32x64xf32>
    %cst_20 = arith.constant dense<0xFF800000> : vector<32xf32>
    %35 = vector.multi_reduction <maximumf>, %34, %cst_20 [1] : vector<32x64xf32> to vector<32xf32>
    %36 = vector.shape_cast %35 : vector<32xf32> to vector<32x1xf32>
    %37 = vector.broadcast %36 : vector<32x1xf32> to vector<32x64xf32>
    %38 = arith.subf %34, %37 : vector<32x64xf32>
    %39 = math.exp %38 : vector<32x64xf32>
    %cst_21 = arith.constant dense<0.000000e+00> : vector<32xf32>
    %40 = vector.multi_reduction <add>, %39, %cst_21 [1] : vector<32x64xf32> to vector<32xf32>
    %41 = vector.shape_cast %40 : vector<32xf32> to vector<32x1xf32>
    %42 = tpu.reciprocal %41 {approx = true} : vector<32x1xf32> -> vector<32x1xf32>
    %43 = vector.broadcast %42 : vector<32x1xf32> to vector<32x64xf32>
    %44 = arith.mulf %39, %43 : vector<32x64xf32>
    %c0_22 = arith.constant 0 : index
    %c0_23 = arith.constant 0 : index
    %45 = vector.load %arg7[%c0_22, %c0_23] : memref<64x2xf32, #tpu.memory_space<vmem>>, vector<64x2xf32>
    %c0_24 = arith.constant 0 : index
    %c0_25 = arith.constant 0 : index
    %46 = vector.load %arg8[%c0_24, %c0_25] : memref<2x128xf32, #tpu.memory_space<vmem>>, vector<2x128xf32>
    %cst_26 = arith.constant dense<0.000000e+00> : vector<64x128xf32>
    %47 = tpu.matmul %45, %46, %cst_26 {dimension_numbers = #tpu.dot_dimension_numbers<[1], [0], [0], [1], [0, 0, 1, 1], [], []>} : vector<64x2xf32>, vector<2x128xf32>, vector<64x128xf32> -> vector<64x128xf32>
    %cst_27 = arith.constant 0.0883883461 : f32
    %48 = vector.broadcast %cst_27 : f32 to vector<64x128xf32>
    %49 = arith.mulf %47, %48 : vector<64x128xf32>
    %cst_28 = arith.constant dense<0xFF800000> : vector<64xf32>
    %50 = vector.multi_reduction <maximumf>, %49, %cst_28 [1] : vector<64x128xf32> to vector<64xf32>
    %51 = vector.shape_cast %50 : vector<64xf32> to vector<64x1xf32>
    %52 = vector.broadcast %51 : vector<64x1xf32> to vector<64x128xf32>
    %53 = arith.subf %49, %52 : vector<64x128xf32>
    %54 = math.exp %53 : vector<64x128xf32>
    %cst_29 = arith.constant dense<0.000000e+00> : vector<64xf32>
    %55 = vector.multi_reduction <add>, %54, %cst_29 [1] : vector<64x128xf32> to vector<64xf32>
    %56 = vector.shape_cast %55 : vector<64xf32> to vector<64x1xf32>
    %57 = tpu.reciprocal %56 {approx = true} : vector<64x1xf32> -> vector<64x1xf32>
    %58 = vector.broadcast %57 : vector<64x1xf32> to vector<64x128xf32>
    %59 = arith.mulf %54, %58 : vector<64x128xf32>
    %c0_30 = arith.constant 0 : index
    %c0_31 = arith.constant 0 : index
    %60 = vector.load %arg9[%c0_30, %c0_31] : memref<2x16xf32, #tpu.memory_space<vmem>>, vector<2x16xf32>
    %cst_32 = arith.constant dense<0.000000e+00> : vector<2x16xf32>
    %61 = tpu.matmul %60, %14, %cst_32 {dimension_numbers = #tpu.dot_dimension_numbers<[1], [0], [0], [1], [0, 0, 1, 1], [], []>} : vector<2x16xf32>, vector<16x16xf32>, vector<2x16xf32> -> vector<2x16xf32>
    %cst_33 = arith.constant dense<0.000000e+00> : vector<2x32xf32>
    %62 = tpu.matmul %61, %29, %cst_33 {dimension_numbers = #tpu.dot_dimension_numbers<[1], [0], [0], [1], [0, 0, 1, 1], [], []>} : vector<2x16xf32>, vector<16x32xf32>, vector<2x32xf32> -> vector<2x32xf32>
    %cst_34 = arith.constant dense<0.000000e+00> : vector<2x64xf32>
    %63 = tpu.matmul %62, %44, %cst_34 {dimension_numbers = #tpu.dot_dimension_numbers<[1], [0], [0], [1], [0, 0, 1, 1], [], []>} : vector<2x32xf32>, vector<32x64xf32>, vector<2x64xf32> -> vector<2x64xf32>
    %cst_35 = arith.constant dense<0.000000e+00> : vector<2x128xf32>
    %64 = tpu.matmul %63, %59, %cst_35 {dimension_numbers = #tpu.dot_dimension_numbers<[1], [0], [0], [1], [0, 0, 1, 1], [], []>} : vector<2x64xf32>, vector<64x128xf32>, vector<2x128xf32> -> vector<2x128xf32>
    %c0_36 = arith.constant 0 : index
    %c0_37 = arith.constant 0 : index
    %65 = vector.load %arg10[%c0_36, %c0_37] : memref<128x256xf32, #tpu.memory_space<vmem>>, vector<128x256xf32>
    %cst_38 = arith.constant dense<0.000000e+00> : vector<2x256xf32>
    %66 = tpu.matmul %64, %65, %cst_38 {dimension_numbers = #tpu.dot_dimension_numbers<[1], [0], [0], [1], [0, 0, 1, 1], [], []>} : vector<2x128xf32>, vector<128x256xf32>, vector<2x256xf32> -> vector<2x256xf32>
    %c0_39 = arith.constant 0 : index
    %c0_40 = arith.constant 0 : index
    %67 = vector.load %arg8[%c0_39, %c0_40] : memref<2x128xf32, #tpu.memory_space<vmem>>, vector<2x128xf32>
    %c0_41 = arith.constant 0 : index
    %c0_42 = arith.constant 0 : index
    %68 = vector.load %arg11[%c0_41, %c0_42] : memref<128x256xf32, #tpu.memory_space<vmem>>, vector<128x256xf32>
    %cst_43 = arith.constant dense<0.000000e+00> : vector<2x256xf32>
    %69 = tpu.matmul %67, %68, %cst_43 {dimension_numbers = #tpu.dot_dimension_numbers<[1], [0], [0], [1], [0, 0, 1, 1], [], []>} : vector<2x128xf32>, vector<128x256xf32>, vector<2x256xf32> -> vector<2x256xf32>
    %70 = arith.addf %66, %69 : vector<2x256xf32>
    %c0_44 = arith.constant 0 : index
    %c0_45 = arith.constant 0 : index
    %71 = vector.load %arg12[%c0_44, %c0_45] : memref<1x256xf32, #tpu.memory_space<vmem>>, vector<1x256xf32>
    %72 = vector.broadcast %71 : vector<1x256xf32> to vector<2x256xf32>
    %73 = arith.mulf %70, %72 : vector<2x256xf32>
    %c0_46 = arith.constant 0 : index
    %c0_47 = arith.constant 0 : index
    %74 = vector.load %arg13[%c0_46, %c0_47] : memref<1x256xf32, #tpu.memory_space<vmem>>, vector<1x256xf32>
    %75 = vector.broadcast %74 : vector<1x256xf32> to vector<2x256xf32>
    %76 = arith.addf %73, %75 : vector<2x256xf32>
    %cst_48 = arith.constant 0.000000e+00 : f32
    %77 = vector.broadcast %cst_48 : f32 to vector<2x256xf32>
    %78 = arith.cmpf ogt, %76, %77 : vector<2x256xf32>
    %cst_49 = arith.constant 0.00999999977 : f32
    %79 = vector.broadcast %cst_49 : f32 to vector<2x256xf32>
    %80 = arith.mulf %79, %76 : vector<2x256xf32>
    %81 = arith.select %78, %76, %80 : vector<2x256xi1>, vector<2x256xf32>
    %c0_50 = arith.constant 0 : index
    %c0_51 = arith.constant 0 : index
    %82 = vector.load %arg14[%c0_50, %c0_51] : memref<256x256xf32, #tpu.memory_space<vmem>>, vector<256x256xf32>
    %cst_52 = arith.constant dense<0.000000e+00> : vector<2x256xf32>
    %83 = tpu.matmul %81, %82, %cst_52 {dimension_numbers = #tpu.dot_dimension_numbers<[1], [0], [0], [1], [0, 0, 1, 1], [], []>} : vector<2x256xf32>, vector<256x256xf32>, vector<2x256xf32> -> vector<2x256xf32>
    %c0_53 = arith.constant 0 : index
    %c0_54 = arith.constant 0 : index
    %84 = vector.load %arg15[%c0_53, %c0_54] : memref<1x256xf32, #tpu.memory_space<vmem>>, vector<1x256xf32>
    %85 = vector.broadcast %84 : vector<1x256xf32> to vector<2x256xf32>
    %86 = arith.mulf %83, %85 : vector<2x256xf32>
    %c0_55 = arith.constant 0 : index
    %c0_56 = arith.constant 0 : index
    %87 = vector.load %arg16[%c0_55, %c0_56] : memref<1x256xf32, #tpu.memory_space<vmem>>, vector<1x256xf32>
    %88 = vector.broadcast %87 : vector<1x256xf32> to vector<2x256xf32>
    %89 = arith.addf %86, %88 : vector<2x256xf32>
    %cst_57 = arith.constant 0.000000e+00 : f32
    %90 = vector.broadcast %cst_57 : f32 to vector<2x256xf32>
    %91 = arith.cmpf ogt, %89, %90 : vector<2x256xf32>
    %cst_58 = arith.constant 0.00999999977 : f32
    %92 = vector.broadcast %cst_58 : f32 to vector<2x256xf32>
    %93 = arith.mulf %92, %89 : vector<2x256xf32>
    %94 = arith.select %91, %89, %93 : vector<2x256xi1>, vector<2x256xf32>
    %c0_59 = arith.constant 0 : index
    %c0_60 = arith.constant 0 : index
    %95 = vector.load %arg17[%c0_59, %c0_60] : memref<256x256xf32, #tpu.memory_space<vmem>>, vector<256x256xf32>
    %cst_61 = arith.constant dense<0.000000e+00> : vector<2x256xf32>
    %96 = tpu.matmul %94, %95, %cst_61 {dimension_numbers = #tpu.dot_dimension_numbers<[1], [0], [0], [1], [0, 0, 1, 1], [], []>} : vector<2x256xf32>, vector<256x256xf32>, vector<2x256xf32> -> vector<2x256xf32>
    %c0_62 = arith.constant 0 : index
    %c0_63 = arith.constant 0 : index
    %97 = vector.load %arg18[%c0_62, %c0_63] : memref<1x256xf32, #tpu.memory_space<vmem>>, vector<1x256xf32>
    %98 = vector.broadcast %97 : vector<1x256xf32> to vector<2x256xf32>
    %99 = arith.addf %96, %98 : vector<2x256xf32>
    %c0_64 = arith.constant 0 : index
    %c0_65 = arith.constant 0 : index
    %100 = vector.load %arg23[%c0_64, %c0_65] : memref<2x256xf32, #tpu.memory_space<vmem>>, vector<2x256xf32>
    tpu.vector_store %arg23[%c0_64, %c0_65], %99 {strides = array<i32>} : memref<2x256xf32, #tpu.memory_space<vmem>>, vector<2x256xf32>,
    %c0_66 = arith.constant 0 : index
    %c0_67 = arith.constant 0 : index
    %101 = vector.load %arg19[%c0_66, %c0_67] : memref<1x256xf32, #tpu.memory_space<vmem>>, vector<1x256xf32>
    %102 = vector.broadcast %101 : vector<1x256xf32> to vector<2x256xf32>
    %103 = arith.mulf %99, %102 : vector<2x256xf32>
    %c0_68 = arith.constant 0 : index
    %c0_69 = arith.constant 0 : index
    %104 = vector.load %arg20[%c0_68, %c0_69] : memref<1x256xf32, #tpu.memory_space<vmem>>, vector<1x256xf32>
    %105 = vector.broadcast %104 : vector<1x256xf32> to vector<2x256xf32>
    %106 = arith.addf %103, %105 : vector<2x256xf32>
    %cst_70 = arith.constant 0.000000e+00 : f32
    %107 = vector.broadcast %cst_70 : f32 to vector<2x256xf32>
    %108 = arith.cmpf ogt, %106, %107 : vector<2x256xf32>
    %cst_71 = arith.constant 0.00999999977 : f32
    %109 = vector.broadcast %cst_71 : f32 to vector<2x256xf32>
    %110 = arith.mulf %109, %106 : vector<2x256xf32>
    %111 = arith.select %108, %106, %110 : vector<2x256xi1>, vector<2x256xf32>
    %c0_72 = arith.constant 0 : index
    %c0_73 = arith.constant 0 : index
    %112 = vector.load %arg21[%c0_72, %c0_73] : memref<256x10xf32, #tpu.memory_space<vmem>>, vector<256x10xf32>
    %cst_74 = arith.constant dense<0.000000e+00> : vector<2x10xf32>
    %113 = tpu.matmul %111, %112, %cst_74 {dimension_numbers = #tpu.dot_dimension_numbers<[1], [0], [0], [1], [0, 0, 1, 1], [], []>} : vector<2x256xf32>, vector<256x10xf32>, vector<2x10xf32> -> vector<2x10xf32>
    %c0_75 = arith.constant 0 : index
    %c0_76 = arith.constant 0 : index
    %114 = vector.load %arg22[%c0_75, %c0_76] : memref<1x10xf32, #tpu.memory_space<vmem>>, vector<1x10xf32>
    %115 = vector.broadcast %114 : vector<1x10xf32> to vector<2x10xf32>
    %116 = arith.addf %113, %115 : vector<2x10xf32>
    %c0_77 = arith.constant 0 : index
    %c0_78 = arith.constant 0 : index
    %117 = vector.load %arg24[%c0_77, %c0_78] : memref<2x10xf32, #tpu.memory_space<vmem>>, vector<2x10xf32>
    tpu.vector_store %arg24[%c0_77, %c0_78], %116 {strides = array<i32>} : memref<2x10xf32, #tpu.memory_space<vmem>>, vector<2x10xf32>,
    return
  }
  func.func @transform_0(%arg0: i32) -> (i32, i32) {
    %c0_i32 = arith.constant 0 : i32
    %c0_i32_0 = arith.constant 0 : i32
    %c0_i32_1 = arith.constant 0 : i32
    return %c0_i32, %c0_i32_0 : i32, i32
  }
  func.func @transform_1(%arg0: i32) -> (i32, i32) {
    %c0_i32 = arith.constant 0 : i32
    %c0_i32_0 = arith.constant 0 : i32
    %c0_i32_1 = arith.constant 0 : i32
    return %c0_i32, %c0_i32_0 : i32, i32
  }
  func.func @transform_2(%arg0: i32) -> (i32, i32) {
    %c0_i32 = arith.constant 0 : i32
    %c0_i32_0 = arith.constant 0 : i32
    %c0_i32_1 = arith.constant 0 : i32
    return %c0_i32, %c0_i32_0 : i32, i32
  }
  func.func @transform_3(%arg0: i32) -> (i32, i32) {
    %c0_i32 = arith.constant 0 : i32
    %c0_i32_0 = arith.constant 0 : i32
    %c0_i32_1 = arith.constant 0 : i32
    return %c0_i32, %c0_i32_0 : i32, i32
  }
  func.func @transform_4(%arg0: i32) -> (i32, i32) {
    %c0_i32 = arith.constant 0 : i32
    %c0_i32_0 = arith.constant 0 : i32
    %c0_i32_1 = arith.constant 0 : i32
    return %c0_i32, %c0_i32_0 : i32, i32
  }
  func.func @transform_5(%arg0: i32) -> (i32, i32) {
    %c0_i32 = arith.constant 0 : i32
    %c0_i32_0 = arith.constant 0 : i32
    %c0_i32_1 = arith.constant 0 : i32
    return %c0_i32, %c0_i32_0 : i32, i32
  }
  func.func @transform_6(%arg0: i32) -> (i32, i32) {
    %c0_i32 = arith.constant 0 : i32
    %c0_i32_0 = arith.constant 0 : i32
    %c0_i32_1 = arith.constant 0 : i32
    return %c0_i32, %c0_i32_0 : i32, i32
  }
  func.func @transform_7(%arg0: i32) -> (i32, i32) {
    %c0_i32 = arith.constant 0 : i32
    %c0_i32_0 = arith.constant 0 : i32
    %c0_i32_1 = arith.constant 0 : i32
    return %c0_i32, %c0_i32_0 : i32, i32
  }
  func.func @transform_8(%arg0: i32) -> (i32, i32) {
    %c0_i32 = arith.constant 0 : i32
    %c0_i32_0 = arith.constant 0 : i32
    %c0_i32_1 = arith.constant 0 : i32
    return %c0_i32, %c0_i32_0 : i32, i32
  }
  func.func @transform_9(%arg0: i32) -> (i32, i32) {
    %c0_i32 = arith.constant 0 : i32
    %c0_i32_0 = arith.constant 0 : i32
    %c0_i32_1 = arith.constant 0 : i32
    return %c0_i32, %c0_i32_0 : i32, i32
  }
  func.func @transform_10(%arg0: i32) -> (i32, i32) {
    %c0_i32 = arith.constant 0 : i32
    %c0_i32_0 = arith.constant 0 : i32
    %c0_i32_1 = arith.constant 0 : i32
    return %c0_i32, %c0_i32_0 : i32, i32
  }
  func.func @transform_11(%arg0: i32) -> (i32, i32) {
    %c0_i32 = arith.constant 0 : i32
    %c0_i32_0 = arith.constant 0 : i32
    %c0_i32_1 = arith.constant 0 : i32
    return %c0_i32, %c0_i32_0 : i32, i32
  }
  func.func @transform_12(%arg0: i32) -> (i32, i32) {
    %c0_i32 = arith.constant 0 : i32
    %c0_i32_0 = arith.constant 0 : i32
    %c0_i32_1 = arith.constant 0 : i32
    return %c0_i32, %c0_i32_0 : i32, i32
  }
  func.func @transform_13(%arg0: i32) -> (i32, i32) {
    %c0_i32 = arith.constant 0 : i32
    %c0_i32_0 = arith.constant 0 : i32
    %c0_i32_1 = arith.constant 0 : i32
    return %c0_i32, %c0_i32_0 : i32, i32
  }
  func.func @transform_14(%arg0: i32) -> (i32, i32) {
    %c0_i32 = arith.constant 0 : i32
    %c0_i32_0 = arith.constant 0 : i32
    %c0_i32_1 = arith.constant 0 : i32
    return %c0_i32, %c0_i32_0 : i32, i32
  }
  func.func @transform_15(%arg0: i32) -> (i32, i32) {
    %c0_i32 = arith.constant 0 : i32
    %c0_i32_0 = arith.constant 0 : i32
    %c0_i32_1 = arith.constant 0 : i32
    return %c0_i32, %c0_i32_0 : i32, i32
  }
  func.func @transform_16(%arg0: i32) -> (i32, i32) {
    %c0_i32 = arith.constant 0 : i32
    %c0_i32_0 = arith.constant 0 : i32
    %c0_i32_1 = arith.constant 0 : i32
    return %c0_i32, %c0_i32_0 : i32, i32
  }
  func.func @transform_17(%arg0: i32) -> (i32, i32) {
    %c0_i32 = arith.constant 0 : i32
    %c0_i32_0 = arith.constant 0 : i32
    %c0_i32_1 = arith.constant 0 : i32
    return %c0_i32, %c0_i32_0 : i32, i32
  }
  func.func @transform_18(%arg0: i32) -> (i32, i32) {
    %c0_i32 = arith.constant 0 : i32
    %c0_i32_0 = arith.constant 0 : i32
    %c0_i32_1 = arith.constant 0 : i32
    return %c0_i32, %c0_i32_0 : i32, i32
  }
  func.func @transform_19(%arg0: i32) -> (i32, i32) {
    %c0_i32 = arith.constant 0 : i32
    %c0_i32_0 = arith.constant 0 : i32
    %c0_i32_1 = arith.constant 0 : i32
    return %c0_i32, %c0_i32_0 : i32, i32
  }
  func.func @transform_20(%arg0: i32) -> (i32, i32) {
    %c0_i32 = arith.constant 0 : i32
    %c0_i32_0 = arith.constant 0 : i32
    %c0_i32_1 = arith.constant 0 : i32
    return %c0_i32, %c0_i32_0 : i32, i32
  }
  func.func @transform_21(%arg0: i32) -> (i32, i32) {
    %c0_i32 = arith.constant 0 : i32
    %c0_i32_0 = arith.constant 0 : i32
    %c0_i32_1 = arith.constant 0 : i32
    return %c0_i32, %c0_i32_0 : i32, i32
  }
  func.func @transform_22(%arg0: i32) -> (i32, i32) {
    %c0_i32 = arith.constant 0 : i32
    %c0_i32_0 = arith.constant 0 : i32
    %c0_i32_1 = arith.constant 0 : i32
    return %c0_i32, %c0_i32_0 : i32, i32
  }
  func.func @transform_23(%arg0: i32) -> (i32, i32) {
    %c0_i32 = arith.constant 0 : i32
    %c0_i32_0 = arith.constant 0 : i32
    %c0_i32_1 = arith.constant 0 : i32
    return %c0_i32, %c0_i32_0 : i32, i32
  }
}

</mosaic_0001>

<bundles_post_ra>
// kernel: custom_model_forward.21
= control target key start
LH: loop header
LB: loop body
LE: loop exit
PB: predicated region body
PF: predicated region fallthrough
CT: control target
= control target key end

     0   :  { %s1439_s15 = smov 0   ;;  %s1441_s16 = smov 0   ;;  %s1667_s0 = inlined_call_operand.vmem [shape: bf16[512,152], index: 0, kind: input, shape index: {}]   ;;  %s1668_s1 = inlined_call_operand.vmem [shape: bf16[152,128], index: 1, kind: input, shape index: {}]   ;;  %s1669_s2 = inlined_call_operand.vmem [shape: f32[1,128], index: 2, kind: input, shape index: {}]   ;;  %s1670_s3 = inlined_call_operand.vmem [shape: f32[1,128], index: 3, kind: input, shape index: {}]   ;;  %s1671_s4 = inlined_call_operand.vmem [shape: f32[512,128], index: 4, kind: output, shape index: {}]  }
   0x1   :  { %s1443_s17 = smov 0  }
   0x2 LB: > { %s33_s18 = sadd.s32 1, %s1407_s16  ;;  %p1217_p0 = scmp.ge.s32.totalorder %s1411_s17, 1  ;;  %s1411_s17 = sphi %s1443_s17, %s14_s17   ;;  %s1407_s16 = sphi %s1441_s16, %s1673_s16   ;;  %s1403_s15 = sphi %s1439_s15, %s1672_s15  }
   0x3   : > { %p35_p1 = scmp.ge.s32.totalorder %s33_s18, 2  ;;  %p224_p2 = scmp.lt.s32.totalorder %s1411_s17, 3 }
   0x5   : > { %s1675_s18 = smov (%p35_p1, %s33_s18), 0  ;;  %p225_p3 = pnand %p1217_p0, %p224_p2 }
   0x6   : > { %s1218_s23 = sshll.u32 (!%p225_p3), %s1403_s15, 5 }
   0x7   : > { %228 = sbr.rel (%p225_p3) target bundleno = 313 (0x139), region = 36  ;;  %p274_p4 = scmp.lt.s32.totalorder (!%p225_p3), %s1218_s23, 63 }
   0xc   : > { %v1331_v0 = vld [vmem:[%s1668_s1 + $0x38] sm:$0xff]   ;;  %v1413_v1 = vmov 0   ;;  %v1332_v2 = vld [vmem:[%s1668_s1 + $0x30] sm:$0xff]   ;;  %s1677_s23 = smov (!%p274_p4, %s1218_s23), 63  ;;  %v1333_v3 = vld [vmem:[%s1668_s1 + $0x28] sm:$0xff]   ;;  %vm629_vm0 = vcmask 195584  }
   0xd   : > { %682 = vmatprep.subr.bf16.mxu0 %v1413_v1  ;;  %1286 = vmatprep.subr.bf16.mxu1 %v1413_v1  ;;  %s1285_s26 = sshll.u32 %s1677_s23, 3  ;;  %v1334_v4 = vld [vmem:[%s1668_s1 + $0x20] sm:$0xff]   ;;  %v1335_v7 = vld [vmem:[%s1668_s1 + $0x18] sm:$0xff]   ;;  %v1336_v8 = vld [vmem:[%s1668_s1 + $0x10] sm:$0xff]   ;;  %vm678_vm1 = vcmask 1043456  }
   0xe   : > { %683 = vmatpush1.bf16.msra.mxu0 %v1331_v0  ;;  %1296 = vmatpush1.bf16.msra.mxu1 %v1331_v0  ;;  %s1474_s29 = scalar_lea.vmem %s1667_s0, %s1285_s26  ;;  %v1337_v9 = vld [vmem:[%s1668_s1 + $0x8] sm:$0xff]   ;;  %v1338_v10 = vld [vmem:[%s1668_s1] sm:$0xff]  }
   0xf   : > { %684 = vmatprep.subr.bf16.mxu0 %v1413_v1  ;;  %1287 = vmatprep.subr.bf16.mxu1 %v1413_v1  ;;  %v1343_v5 = vld [vmem:[%s1474_s29 + $0x4] ss:$8 sps:$4 sm:$0xff]   ;;  %v1339_v11 = vld [vmem:[%s1668_s1 + $0x48] ss:$0 sps:$4 sm:$0xff]   ;;  %v1347_v16 = vld [vmem:[%s1474_s29 + $0x14] ss:$8 sps:$4 sm:$0xff]  }
  0x10   : > { %1265 = vmatprep.mubr.msk.bf16.mxu0 %vm629_vm0, %v1343_v5  ;;  %v1346_v6 = vld [vmem:[%s1474_s29 + $0x84] ss:$8 sps:$4 sm:$0xff]   ;;  %v680_v12 = vsel %vm678_vm1, %v1339_v11, 0  ;;  %v1341_v14 = vld [vmem:[%s1474_s29] ss:$8 sps:$4 sm:$0xff]  }
  0x11   : > { %1273 = vmatprep.mubr.msk.bf16.mxu1 %vm629_vm0, %v1346_v6  ;;  %v1340_v13 = vld [vmem:[%s1668_s1 + $0x40] sm:$0xff]   ;;  %v1349_v17 = vld [vmem:[%s1474_s29 + $0x94] ss:$8 sps:$4 sm:$0xff]   ;;  %v1351_v18 = vld [vmem:[%s1474_s29 + $0x10] ss:$8 sps:$4 sm:$0xff]  }
  0x12   : > { %685 = vmatpush1.bf16.msra.mxu0 %v1332_v2  ;;  %1297 = vmatpush1.bf16.msra.mxu1 %v1332_v2  ;;  %v1344_v15 = vld [vmem:[%s1474_s29 + $0x80] ss:$8 sps:$4 sm:$0xff]   ;;  %v1352_v19 = vld [vmem:[%s1474_s29 + $0x90] ss:$8 sps:$4 sm:$0xff]   ;;  %v1353_v20 = vld [vmem:[%s1474_s29 + $0x24] ss:$8 sps:$4 sm:$0xff]  }
  0x13   : > { %686 = vmatprep.subr.bf16.mxu0 %v1413_v1  ;;  %1288 = vmatprep.subr.bf16.mxu1 %v1413_v1  ;;  %v1355_v21 = vld [vmem:[%s1474_s29 + $0xa4] ss:$8 sps:$4 sm:$0xff]   ;;  %v1357_v22 = vld [vmem:[%s1474_s29 + $0x20] ss:$8 sps:$4 sm:$0xff]   ;;  %v1359_v24 = vld [vmem:[%s1474_s29 + $0x34] ss:$8 sps:$4 sm:$0xff]  }
  0x14   : > { %v1358_v23 = vld [vmem:[%s1474_s29 + $0xa0] ss:$8 sps:$4 sm:$0xff]   ;;  %v1361_v25 = vld [vmem:[%s1474_s29 + $0xb4] ss:$8 sps:$4 sm:$0xff]   ;;  %v1363_v26 = vld [vmem:[%s1474_s29 + $0x30] ss:$8 sps:$4 sm:$0xff]  }
  0x15   : > { %v1364_v27 = vld [vmem:[%s1474_s29 + $0xb0] ss:$8 sps:$4 sm:$0xff]   ;;  %v1365_v28 = vld [vmem:[%s1474_s29 + $0x44] ss:$8 sps:$4 sm:$0xff]   ;;  %v1369_v30 = vld [vmem:[%s1474_s29 + $0x40] ss:$8 sps:$4 sm:$0xff]  }
  0x16   : > { %687 = vmatpush1.bf16.msra.mxu0 %v1333_v3  ;;  %1298 = vmatpush1.bf16.msra.mxu1 %v1333_v3  ;;  %v1367_v29 = vld [vmem:[%s1474_s29 + $0xc4] ss:$8 sps:$4 sm:$0xff]   ;;  %v1370_v31 = vld [vmem:[%s1474_s29 + $0xc0] ss:$8 sps:$4 sm:$0xff]   ;;  %v1371_v32 = vld [vmem:[%s1474_s29 + $0x54] ss:$8 sps:$4 sm:$0xff]  }
  0x17   : > { %688 = vmatprep.subr.bf16.mxu0 %v1413_v1  ;;  %1289 = vmatprep.subr.bf16.mxu1 %v1413_v1  ;;  %v1373_v33 = vld [vmem:[%s1474_s29 + $0xd4] ss:$8 sps:$4 sm:$0xff]   ;;  %v1375_v34 = vld [vmem:[%s1474_s29 + $0x50] ss:$8 sps:$4 sm:$0xff]   ;;  %v1377_v36 = vld [vmem:[%s1474_s29 + $0x64] ss:$8 sps:$4 sm:$0xff]  }
  0x18   : > { %v1376_v35 = vld [vmem:[%s1474_s29 + $0xd0] ss:$8 sps:$4 sm:$0xff]   ;;  %v1379_v37 = vld [vmem:[%s1474_s29 + $0xe4] ss:$8 sps:$4 sm:$0xff]   ;;  %v1381_v38 = vld [vmem:[%s1474_s29 + $0x60] ss:$8 sps:$4 sm:$0xff]  }
  0x19   : > { %v1382_v39 = vld [vmem:[%s1474_s29 + $0xe0] ss:$8 sps:$4 sm:$0xff]   ;;  %v1383_v40 = vld [vmem:[%s1474_s29 + $0x74] ss:$8 sps:$4 sm:$0xff]   ;;  %v1387_v42 = vld [vmem:[%s1474_s29 + $0x70] ss:$8 sps:$4 sm:$0xff]  }
  0x1a   : > { %689 = vmatpush1.bf16.msra.mxu0 %v1334_v4  ;;  %1299 = vmatpush1.bf16.msra.mxu1 %v1334_v4  ;;  %v1385_v41 = vld [vmem:[%s1474_s29 + $0xf4] ss:$8 sps:$4 sm:$0xff]   ;;  %v1388_v43 = vld [vmem:[%s1474_s29 + $0xf0] ss:$8 sps:$4 sm:$0xff]   ;;  %v1548_v44 = vld [vmem:[%s1669_s2] ss:$0 sm:$0xff]  ;;  %s1564_s29 = scalar_lea.vmem %s1671_s4, %s1285_s26 }
  0x1b   : > { %690 = vmatprep.subr.bf16.mxu0 %v1413_v1  ;;  %1290 = vmatprep.subr.bf16.mxu1 %v1413_v1  ;;  %v1553_v46 = vld [vmem:[%s1670_s3] ss:$0 sm:$0xff] }
  0x1e   : > { %691 = vmatpush1.bf16.msra.mxu0 %v1335_v7  ;;  %1300 = vmatpush1.bf16.msra.mxu1 %v1335_v7 }
  0x1f   : > { %692 = vmatprep.subr.bf16.mxu0 %v1413_v1  ;;  %1291 = vmatprep.subr.bf16.mxu1 %v1413_v1 }
  0x22   : > { %693 = vmatpush1.bf16.msra.mxu0 %v1336_v8  ;;  %1301 = vmatpush1.bf16.msra.mxu1 %v1336_v8 }
  0x23   : > { %694 = vmatprep.subr.bf16.mxu0 %v1413_v1  ;;  %1292 = vmatprep.subr.bf16.mxu1 %v1413_v1 }
  0x26   : > { %695 = vmatpush1.bf16.msra.mxu0 %v1337_v9  ;;  %1302 = vmatpush1.bf16.msra.mxu1 %v1337_v9 }
  0x27   : > { %696 = vmatprep.subr.bf16.mxu0 %v1413_v1  ;;  %1293 = vmatprep.subr.bf16.mxu1 %v1413_v1 }
  0x2a   : > { %697 = vmatpush1.bf16.msra.mxu0 %v1338_v10  ;;  %1303 = vmatpush1.bf16.msra.mxu1 %v1338_v10 }
  0x2b   : > { %710 = vmatprep.subr.bf16.mxu0 %v1413_v1  ;;  %1294 = vmatprep.subr.bf16.mxu1 %v1413_v1 }
  0x2e   : > { %711 = vmatpush2.bf16.msra.mxu0 %v680_v12  ;;  %1304 = vmatpush2.bf16.msra.mxu1 %v680_v12 }
  0x2f   : > { %712 = vmatprep.subr.bf16.mxu0 %v1413_v1  ;;  %1295 = vmatprep.subr.bf16.mxu1 %v1413_v1 }
  0x32   : > { %713 = vmatpush2.bf16.msra.mxu0 %v1340_v13  ;;  %1305 = vmatpush2.bf16.msra.mxu1 %v1340_v13 }
  0x35   : > { %715 = vmatmul.mubr.bf16.vlgmr.msra.gmra.mxu0 %v1341_v14  ;;  %779 = vmatmul.mubr.bf16.vlgmr.msra.gmra.mxu1 %v1344_v15 }
  0x36   : > { %1266 = vmatprep.mubr.msk.bf16.mxu0 %vm629_vm0, %v1347_v16  ;;  %1274 = vmatprep.mubr.msk.bf16.mxu1 %vm629_vm0, %v1349_v17 }
  0x3d   : > { %723 = vmatmul.mubr.bf16.gmra.mxu0 %v1351_v18  ;;  %787 = vmatmul.mubr.bf16.gmra.mxu1 %v1352_v19 }
  0x3e   : > { %1267 = vmatprep.mubr.msk.bf16.mxu0 %vm629_vm0, %v1353_v20  ;;  %1275 = vmatprep.mubr.msk.bf16.mxu1 %vm629_vm0, %v1355_v21 }
  0x45   : > { %731 = vmatmul.mubr.bf16.gmra.mxu0 %v1357_v22  ;;  %795 = vmatmul.mubr.bf16.gmra.mxu1 %v1358_v23 }
  0x46   : > { %1268 = vmatprep.mubr.msk.bf16.mxu0 %vm629_vm0, %v1359_v24  ;;  %1276 = vmatprep.mubr.msk.bf16.mxu1 %vm629_vm0, %v1361_v25 }
  0x4d   : > { %739 = vmatmul.mubr.bf16.gmra.mxu0 %v1363_v26  ;;  %803 = vmatmul.mubr.bf16.gmra.mxu1 %v1364_v27 }
  0x4e   : > { %1269 = vmatprep.mubr.msk.bf16.mxu0 %vm629_vm0, %v1365_v28  ;;  %1277 = vmatprep.mubr.msk.bf16.mxu1 %vm629_vm0, %v1367_v29 }
  0x55   : > { %747 = vmatmul.mubr.bf16.gmra.mxu0 %v1369_v30  ;;  %811 = vmatmul.mubr.bf16.gmra.mxu1 %v1370_v31 }
  0x56   : > { %1270 = vmatprep.mubr.msk.bf16.mxu0 %vm629_vm0, %v1371_v32  ;;  %1278 = vmatprep.mubr.msk.bf16.mxu1 %vm629_vm0, %v1373_v33 }
  0x5d   : > { %755 = vmatmul.mubr.bf16.gmra.mxu0 %v1375_v34  ;;  %819 = vmatmul.mubr.bf16.gmra.mxu1 %v1376_v35 }
  0x5e   : > { %1271 = vmatprep.mubr.msk.bf16.mxu0 %vm629_vm0, %v1377_v36  ;;  %1279 = vmatprep.mubr.msk.bf16.mxu1 %vm629_vm0, %v1379_v37 }
  0x65   : > { %763 = vmatmul.mubr.bf16.gmra.mxu0 %v1381_v38  ;;  %827 = vmatmul.mubr.bf16.gmra.mxu1 %v1382_v39 }
  0x66   : > { %1272 = vmatprep.mubr.msk.bf16.mxu0 %vm629_vm0, %v1383_v40  ;;  %1280 = vmatprep.mubr.msk.bf16.mxu1 %vm629_vm0, %v1385_v41 }
  0x6d   : > { %771 = vmatmul.mubr.bf16.gmra.mxu0 %v1387_v42  ;;  %835 = vmatmul.mubr.bf16.gmra.mxu1 %v1388_v43 }
  0xf5   : > { %v716_v45 = vpop.f32.mrf.mxu0  ;;  %v780_v47 = vpop.f32.mrf.mxu1 }
  0xf6   : > { %v949_v48 = vmul.f32 %v1548_v44, %v716_v45  ;;  %v965_v49 = vmul.f32 %v1548_v44, %v780_v47 }
  0xf7   : > { %v718_v50 = vpop.f32.mrf.mxu0  ;;  %v782_v51 = vpop.f32.mrf.mxu1 }
  0xf8   : > { %v988_v52 = vadd.f32 %v1553_v46, %v949_v48  ;;  %v1004_v53 = vadd.f32 %v1553_v46, %v965_v49 }
  0xf9   : > { %v719_v54 = vpop.f32.mrf.mxu0  ;;  %v783_v55 = vpop.f32.mrf.mxu1 }
  0xfa   : > { %v1020_v56 = vmax.f32 %v988_v52, 0.0  ;;  %v1036_v57 = vmax.f32 %v1004_v53, 0.0  ;;  %v950_v58 = vmul.f32 %v1548_v44, %v719_v54  ;;  %v966_v59 = vmul.f32 %v1548_v44, %v783_v55 }
  0xfb   : > { %v721_v60 = vpop.f32.mrf.mxu0  ;;  %v785_v61 = vpop.f32.mrf.mxu1 }
  0xfc   : > { %1052 = vst [vmem:[%s1564_s29] sm:$0xff] %v1020_v56  ;;  %1068 = vst [vmem:[%s1564_s29 + $0x80] sm:$0xff] %v1036_v57  ;;  %v989_v62 = vadd.f32 %v1553_v46, %v950_v58  ;;  %v1005_v63 = vadd.f32 %v1553_v46, %v966_v59 }
  0xfd   : > { %v724_v0 = vpop.f32.mrf.mxu0  ;;  %v788_v1 = vpop.f32.mrf.mxu1 }
  0xfe   : > { %v1021_v2 = vmax.f32 %v989_v62, 0.0  ;;  %v1037_v3 = vmax.f32 %v1005_v63, 0.0  ;;  %v951_v4 = vmul.f32 %v1548_v44, %v724_v0  ;;  %v967_v5 = vmul.f32 %v1548_v44, %v788_v1 }
  0xff   : > { %v726_v6 = vpop.f32.mrf.mxu0  ;;  %v790_v7 = vpop.f32.mrf.mxu1 }
 0x100   : > { %1053 = vst [vmem:[%s1564_s29 + $0x8] sm:$0xff] %v1021_v2  ;;  %1069 = vst [vmem:[%s1564_s29 + $0x88] sm:$0xff] %v1037_v3  ;;  %v990_v8 = vadd.f32 %v1553_v46, %v951_v4  ;;  %v1006_v9 = vadd.f32 %v1553_v46, %v967_v5 }
 0x101   : > { %v727_v10 = vpop.f32.mrf.mxu0  ;;  %v791_v11 = vpop.f32.mrf.mxu1 }
 0x102   : > { %v1022_v12 = vmax.f32 %v990_v8, 0.0  ;;  %v1038_v13 = vmax.f32 %v1006_v9, 0.0  ;;  %v952_v14 = vmul.f32 %v1548_v44, %v727_v10  ;;  %v968_v15 = vmul.f32 %v1548_v44, %v791_v11 }
 0x103   : > { %v729_v16 = vpop.f32.mrf.mxu0  ;;  %v793_v17 = vpop.f32.mrf.mxu1 }
 0x104   : > { %1054 = vst [vmem:[%s1564_s29 + $0x10] sm:$0xff] %v1022_v12  ;;  %1070 = vst [vmem:[%s1564_s29 + $0x90] sm:$0xff] %v1038_v13  ;;  %v991_v18 = vadd.f32 %v1553_v46, %v952_v14  ;;  %v1007_v19 = vadd.f32 %v1553_v46, %v968_v15 }
 0x105   : > { %v732_v20 = vpop.f32.mrf.mxu0  ;;  %v796_v21 = vpop.f32.mrf.mxu1 }
 0x106   : > { %v1023_v22 = vmax.f32 %v991_v18, 0.0  ;;  %v1039_v23 = vmax.f32 %v1007_v19, 0.0  ;;  %v953_v24 = vmul.f32 %v1548_v44, %v732_v20  ;;  %v969_v25 = vmul.f32 %v1548_v44, %v796_v21 }
 0x107   : > { %v734_v26 = vpop.f32.mrf.mxu0  ;;  %v798_v27 = vpop.f32.mrf.mxu1 }
 0x108   : > { %1055 = vst [vmem:[%s1564_s29 + $0x18] sm:$0xff] %v1023_v22  ;;  %1071 = vst [vmem:[%s1564_s29 + $0x98] sm:$0xff] %v1039_v23  ;;  %v992_v28 = vadd.f32 %v1553_v46, %v953_v24  ;;  %v1008_v29 = vadd.f32 %v1553_v46, %v969_v25 }
 0x109   : > { %v735_v30 = vpop.f32.mrf.mxu0  ;;  %v799_v31 = vpop.f32.mrf.mxu1 }
 0x10a   : > { %v1024_v32 = vmax.f32 %v992_v28, 0.0  ;;  %v1040_v33 = vmax.f32 %v1008_v29, 0.0  ;;  %v954_v34 = vmul.f32 %v1548_v44, %v735_v30  ;;  %v970_v35 = vmul.f32 %v1548_v44, %v799_v31 }
 0x10b   : > { %v737_v36 = vpop.f32.mrf.mxu0  ;;  %v801_v37 = vpop.f32.mrf.mxu1 }
 0x10c   : > { %1056 = vst [vmem:[%s1564_s29 + $0x20] sm:$0xff] %v1024_v32  ;;  %1072 = vst [vmem:[%s1564_s29 + $0xa0] sm:$0xff] %v1040_v33  ;;  %v993_v38 = vadd.f32 %v1553_v46, %v954_v34  ;;  %v1009_v39 = vadd.f32 %v1553_v46, %v970_v35 }
 0x10d   : > { %v740_v40 = vpop.f32.mrf.mxu0  ;;  %v804_v41 = vpop.f32.mrf.mxu1 }
 0x10e   : > { %v1025_v42 = vmax.f32 %v993_v38, 0.0  ;;  %v1041_v43 = vmax.f32 %v1009_v39, 0.0  ;;  %v955_v45 = vmul.f32 %v1548_v44, %v740_v40  ;;  %v971_v47 = vmul.f32 %v1548_v44, %v804_v41 }
 0x10f   : > { %v742_v48 = vpop.f32.mrf.mxu0  ;;  %v806_v49 = vpop.f32.mrf.mxu1 }
 0x110   : > { %1057 = vst [vmem:[%s1564_s29 + $0x28] sm:$0xff] %v1025_v42  ;;  %1073 = vst [vmem:[%s1564_s29 + $0xa8] sm:$0xff] %v1041_v43  ;;  %v994_v50 = vadd.f32 %v1553_v46, %v955_v45  ;;  %v1010_v51 = vadd.f32 %v1553_v46, %v971_v47 }
 0x111   : > { %v743_v52 = vpop.f32.mrf.mxu0  ;;  %v807_v53 = vpop.f32.mrf.mxu1 }
 0x112   : > { %v1026_v54 = vmax.f32 %v994_v50, 0.0  ;;  %v1042_v55 = vmax.f32 %v1010_v51, 0.0  ;;  %v956_v56 = vmul.f32 %v1548_v44, %v743_v52  ;;  %v972_v57 = vmul.f32 %v1548_v44, %v807_v53 }
 0x113   : > { %v745_v58 = vpop.f32.mrf.mxu0  ;;  %v809_v59 = vpop.f32.mrf.mxu1 }
 0x114   : > { %1058 = vst [vmem:[%s1564_s29 + $0x30] sm:$0xff] %v1026_v54  ;;  %1074 = vst [vmem:[%s1564_s29 + $0xb0] sm:$0xff] %v1042_v55  ;;  %v995_v60 = vadd.f32 %v1553_v46, %v956_v56  ;;  %v1011_v61 = vadd.f32 %v1553_v46, %v972_v57 }
 0x115   : > { %v748_v62 = vpop.f32.mrf.mxu0  ;;  %v812_v63 = vpop.f32.mrf.mxu1 }
 0x116   : > { %v1027_v0 = vmax.f32 %v995_v60, 0.0  ;;  %v1043_v1 = vmax.f32 %v1011_v61, 0.0  ;;  %v957_v2 = vmul.f32 %v1548_v44, %v748_v62  ;;  %v973_v3 = vmul.f32 %v1548_v44, %v812_v63 }
 0x117   : > { %v750_v4 = vpop.f32.mrf.mxu0  ;;  %v814_v5 = vpop.f32.mrf.mxu1 }
 0x118   : > { %1059 = vst [vmem:[%s1564_s29 + $0x38] sm:$0xff] %v1027_v0  ;;  %1075 = vst [vmem:[%s1564_s29 + $0xb8] sm:$0xff] %v1043_v1  ;;  %v996_v6 = vadd.f32 %v1553_v46, %v957_v2  ;;  %v1012_v7 = vadd.f32 %v1553_v46, %v973_v3 }
 0x119   : > { %v751_v8 = vpop.f32.mrf.mxu0  ;;  %v815_v9 = vpop.f32.mrf.mxu1 }
 0x11a   : > { %v1028_v10 = vmax.f32 %v996_v6, 0.0  ;;  %v1044_v11 = vmax.f32 %v1012_v7, 0.0  ;;  %v958_v12 = vmul.f32 %v1548_v44, %v751_v8  ;;  %v974_v13 = vmul.f32 %v1548_v44, %v815_v9 }
 0x11b   : > { %v753_v14 = vpop.f32.mrf.mxu0  ;;  %v817_v15 = vpop.f32.mrf.mxu1 }
 0x11c   : > { %1060 = vst [vmem:[%s1564_s29 + $0x40] sm:$0xff] %v1028_v10  ;;  %1076 = vst [vmem:[%s1564_s29 + $0xc0] sm:$0xff] %v1044_v11  ;;  %v997_v16 = vadd.f32 %v1553_v46, %v958_v12  ;;  %v1013_v17 = vadd.f32 %v1553_v46, %v974_v13 }
 0x11d   : > { %v756_v18 = vpop.f32.mrf.mxu0  ;;  %v820_v19 = vpop.f32.mrf.mxu1 }
 0x11e   : > { %v1029_v20 = vmax.f32 %v997_v16, 0.0  ;;  %v1045_v21 = vmax.f32 %v1013_v17, 0.0  ;;  %v959_v22 = vmul.f32 %v1548_v44, %v756_v18  ;;  %v975_v23 = vmul.f32 %v1548_v44, %v820_v19 }
 0x11f   : > { %v758_v24 = vpop.f32.mrf.mxu0  ;;  %v822_v25 = vpop.f32.mrf.mxu1 }
 0x120   : > { %1061 = vst [vmem:[%s1564_s29 + $0x48] sm:$0xff] %v1029_v20  ;;  %1077 = vst [vmem:[%s1564_s29 + $0xc8] sm:$0xff] %v1045_v21  ;;  %v998_v26 = vadd.f32 %v1553_v46, %v959_v22  ;;  %v1014_v27 = vadd.f32 %v1553_v46, %v975_v23 }
 0x121   : > { %v759_v28 = vpop.f32.mrf.mxu0  ;;  %v823_v29 = vpop.f32.mrf.mxu1 }
 0x122   : > { %v1030_v30 = vmax.f32 %v998_v26, 0.0  ;;  %v1046_v31 = vmax.f32 %v1014_v27, 0.0  ;;  %v960_v32 = vmul.f32 %v1548_v44, %v759_v28  ;;  %v976_v33 = vmul.f32 %v1548_v44, %v823_v29 }
 0x123   : > { %v761_v34 = vpop.f32.mrf.mxu0  ;;  %v825_v35 = vpop.f32.mrf.mxu1 }
 0x124   : > { %1062 = vst [vmem:[%s1564_s29 + $0x50] sm:$0xff] %v1030_v30  ;;  %1078 = vst [vmem:[%s1564_s29 + $0xd0] sm:$0xff] %v1046_v31  ;;  %v999_v36 = vadd.f32 %v1553_v46, %v960_v32  ;;  %v1015_v37 = vadd.f32 %v1553_v46, %v976_v33 }
 0x125   : > { %v764_v38 = vpop.f32.mrf.mxu0  ;;  %v828_v39 = vpop.f32.mrf.mxu1 }
 0x126   : > { %v1031_v40 = vmax.f32 %v999_v36, 0.0  ;;  %v1047_v41 = vmax.f32 %v1015_v37, 0.0  ;;  %v961_v42 = vmul.f32 %v1548_v44, %v764_v38  ;;  %v977_v43 = vmul.f32 %v1548_v44, %v828_v39 }
 0x127   : > { %v766_v45 = vpop.f32.mrf.mxu0  ;;  %v830_v47 = vpop.f32.mrf.mxu1 }
 0x128   : > { %1063 = vst [vmem:[%s1564_s29 + $0x58] sm:$0xff] %v1031_v40  ;;  %1079 = vst [vmem:[%s1564_s29 + $0xd8] sm:$0xff] %v1047_v41  ;;  %v1000_v48 = vadd.f32 %v1553_v46, %v961_v42  ;;  %v1016_v49 = vadd.f32 %v1553_v46, %v977_v43 }
 0x129   : > { %v767_v50 = vpop.f32.mrf.mxu0  ;;  %v831_v51 = vpop.f32.mrf.mxu1 }
 0x12a   : > { %v1032_v52 = vmax.f32 %v1000_v48, 0.0  ;;  %v1048_v53 = vmax.f32 %v1016_v49, 0.0  ;;  %v962_v54 = vmul.f32 %v1548_v44, %v767_v50  ;;  %v978_v55 = vmul.f32 %v1548_v44, %v831_v51 }
 0x12b   : > { %v769_v56 = vpop.f32.mrf.mxu0  ;;  %v833_v57 = vpop.f32.mrf.mxu1 }
 0x12c   : > { %1064 = vst [vmem:[%s1564_s29 + $0x60] sm:$0xff] %v1032_v52  ;;  %1080 = vst [vmem:[%s1564_s29 + $0xe0] sm:$0xff] %v1048_v53  ;;  %v1001_v58 = vadd.f32 %v1553_v46, %v962_v54  ;;  %v1017_v59 = vadd.f32 %v1553_v46, %v978_v55 }
 0x12d   : > { %v772_v60 = vpop.f32.mrf.mxu0  ;;  %v836_v61 = vpop.f32.mrf.mxu1 }
 0x12e   : > { %v1033_v62 = vmax.f32 %v1001_v58, 0.0  ;;  %v1049_v63 = vmax.f32 %v1017_v59, 0.0  ;;  %v963_v0 = vmul.f32 %v1548_v44, %v772_v60  ;;  %v979_v1 = vmul.f32 %v1548_v44, %v836_v61 }
 0x12f   : > { %v774_v2 = vpop.f32.mrf.mxu0  ;;  %v838_v3 = vpop.f32.mrf.mxu1 }
 0x130   : > { %1065 = vst [vmem:[%s1564_s29 + $0x68] sm:$0xff] %v1033_v62  ;;  %1081 = vst [vmem:[%s1564_s29 + $0xe8] sm:$0xff] %v1049_v63  ;;  %v1002_v4 = vadd.f32 %v1553_v46, %v963_v0  ;;  %v1018_v5 = vadd.f32 %v1553_v46, %v979_v1 }
 0x131   : > { %v775_v6 = vpop.f32.mrf.mxu0  ;;  %v839_v7 = vpop.f32.mrf.mxu1 }
 0x132   : > { %v1034_v8 = vmax.f32 %v1002_v4, 0.0  ;;  %v1050_v9 = vmax.f32 %v1018_v5, 0.0  ;;  %v964_v10 = vmul.f32 %v1548_v44, %v775_v6  ;;  %v980_v11 = vmul.f32 %v1548_v44, %v839_v7 }
 0x133   : > { %v777_v12 = vpop.f32.mrf.mxu0  ;;  %v841_v13 = vpop.f32.mrf.mxu1 }
 0x134   : > { %1066 = vst [vmem:[%s1564_s29 + $0x70] sm:$0xff] %v1034_v8  ;;  %1082 = vst [vmem:[%s1564_s29 + $0xf0] sm:$0xff] %v1050_v9  ;;  %v1003_v14 = vadd.f32 %v1553_v46, %v964_v10  ;;  %v1019_v15 = vadd.f32 %v1553_v46, %v980_v11 }
 0x136   : > { %v1035_v16 = vmax.f32 %v1003_v14, 0.0  ;;  %v1051_v17 = vmax.f32 %v1019_v15, 0.0 }
 0x138   : > { %1067 = vst [vmem:[%s1564_s29 + $0x78] sm:$0xff] %v1035_v16  ;;  %1083 = vst [vmem:[%s1564_s29 + $0xf8] sm:$0xff] %v1051_v17 }
 0x139 PF: > { %s14_s17 = sadd.s32 1, %s1411_s17   ;;  %s1672_s15 = smov %s1407_s16 }
 0x13a   : > { %p11_p5 = scmp.ge.s32.totalorder %s14_s17, 4   ;;  %s1673_s16 = smov %s1675_s18 }
 0x13c   :  { %13 = sbr.rel (!%p11_p5) target bundleno = 2 (0x2), region = 83 }

// kernel: custom_model_forward.22
= control target key start
LH: loop header
LB: loop body
LE: loop exit
PB: predicated region body
PF: predicated region fallthrough
CT: control target
= control target key end

     0   :  { %s1427_s15 = smov 0   ;;  %s1429_s16 = smov 0   ;;  %s1652_s0 = inlined_call_operand.vmem [shape: bf16[512,144], index: 0, kind: input, shape index: {}]   ;;  %s1653_s1 = inlined_call_operand.vmem [shape: bf16[144,128], index: 1, kind: input, shape index: {}]   ;;  %s1654_s2 = inlined_call_operand.vmem [shape: f32[1,128], index: 2, kind: input, shape index: {}]   ;;  %s1655_s3 = inlined_call_operand.vmem [shape: f32[1,128], index: 3, kind: input, shape index: {}]   ;;  %s1656_s4 = inlined_call_operand.vmem [shape: f32[512,128], index: 4, kind: output, shape index: {}]  }
   0x1   :  { %s1431_s17 = smov 0  }
   0x2 LB: > { %s33_s18 = sadd.s32 1, %s1395_s16  ;;  %p1209_p0 = scmp.ge.s32.totalorder %s1399_s17, 1  ;;  %s1399_s17 = sphi %s1431_s17, %s14_s17   ;;  %s1395_s16 = sphi %s1429_s16, %s1658_s16   ;;  %s1391_s15 = sphi %s1427_s15, %s1657_s15  }
   0x3   : > { %p35_p1 = scmp.ge.s32.totalorder %s33_s18, 2  ;;  %p224_p2 = scmp.lt.s32.totalorder %s1399_s17, 3 }
   0x5   : > { %s1660_s18 = smov (%p35_p1, %s33_s18), 0  ;;  %p225_p3 = pnand %p1209_p0, %p224_p2 }
   0x6   : > { %s1210_s21 = sshll.u32 (!%p225_p3), %s1391_s15, 5 }
   0x7   : > { %228 = sbr.rel (%p225_p3) target bundleno = 309 (0x135), region = 36  ;;  %p274_p4 = scmp.lt.s32.totalorder (!%p225_p3), %s1210_s21, 63 }
   0xc   : > { %v1320_v0 = vld [vmem:[%s1653_s1 + $0x38] sm:$0xff]   ;;  %v1401_v1 = vmov 0   ;;  %v1321_v2 = vld [vmem:[%s1653_s1 + $0x30] sm:$0xff]   ;;  %s1662_s21 = smov (!%p274_p4, %s1210_s21), 63  ;;  %v1322_v3 = vld [vmem:[%s1653_s1 + $0x28] sm:$0xff]   ;;  %vm625_vm0 = vcmask 130048  }
   0xd   : > { %674 = vmatprep.subr.bf16.mxu0 %v1401_v1  ;;  %1277 = vmatprep.subr.bf16.mxu1 %v1401_v1  ;;  %s1276_s26 = sshll.u32 %s1662_s21, 3  ;;  %v1323_v4 = vld [vmem:[%s1653_s1 + $0x20] sm:$0xff]   ;;  %v1324_v7 = vld [vmem:[%s1653_s1 + $0x18] sm:$0xff]   ;;  %v1325_v8 = vld [vmem:[%s1653_s1 + $0x10] sm:$0xff]  }
   0xe   : > { %675 = vmatpush1.bf16.msra.mxu0 %v1320_v0  ;;  %1286 = vmatpush1.bf16.msra.mxu1 %v1320_v0  ;;  %s1462_s29 = scalar_lea.vmem %s1652_s0, %s1276_s26  ;;  %v1326_v9 = vld [vmem:[%s1653_s1 + $0x8] sm:$0xff]   ;;  %v1327_v10 = vld [vmem:[%s1653_s1] sm:$0xff]   ;;  %s1549_s27 = scalar_lea.vmem %s1656_s4, %s1276_s26 }
   0xf   : > { %676 = vmatprep.subr.bf16.mxu0 %v1401_v1  ;;  %1278 = vmatprep.subr.bf16.mxu1 %v1401_v1  ;;  %v1331_v5 = vld [vmem:[%s1462_s29 + $0x4] ss:$8 sps:$4 sm:$0xff]   ;;  %v1329_v12 = vld [vmem:[%s1462_s29] ss:$8 sps:$4 sm:$0xff]   ;;  %v1335_v14 = vld [vmem:[%s1462_s29 + $0x14] ss:$8 sps:$4 sm:$0xff]  }
  0x10   : > { %v1334_v6 = vld [vmem:[%s1462_s29 + $0x84] ss:$8 sps:$4 sm:$0xff]   ;;  %1256 = vmatprep.mubr.msk.bf16.mxu0 %vm625_vm0, %v1331_v5  ;;  %v1332_v13 = vld [vmem:[%s1462_s29 + $0x80] ss:$8 sps:$4 sm:$0xff]   ;;  %v1337_v15 = vld [vmem:[%s1462_s29 + $0x94] ss:$8 sps:$4 sm:$0xff]  }
  0x11   : > { %1264 = vmatprep.mubr.msk.bf16.mxu1 %vm625_vm0, %v1334_v6  ;;  %v1328_v11 = vld [vmem:[%s1653_s1 + $0x40] sm:$0xff]   ;;  %v1339_v16 = vld [vmem:[%s1462_s29 + $0x10] ss:$8 sps:$4 sm:$0xff]   ;;  %v1347_v22 = vld [vmem:[%s1462_s29 + $0x34] ss:$8 sps:$4 sm:$0xff]  }
  0x12   : > { %677 = vmatpush1.bf16.msra.mxu0 %v1321_v2  ;;  %1287 = vmatpush1.bf16.msra.mxu1 %v1321_v2  ;;  %v1340_v17 = vld [vmem:[%s1462_s29 + $0x90] ss:$8 sps:$4 sm:$0xff]   ;;  %v1341_v18 = vld [vmem:[%s1462_s29 + $0x24] ss:$8 sps:$4 sm:$0xff]   ;;  %v1345_v20 = vld [vmem:[%s1462_s29 + $0x20] ss:$8 sps:$4 sm:$0xff]  }
  0x13   : > { %678 = vmatprep.subr.bf16.mxu0 %v1401_v1  ;;  %1279 = vmatprep.subr.bf16.mxu1 %v1401_v1  ;;  %v1343_v19 = vld [vmem:[%s1462_s29 + $0xa4] ss:$8 sps:$4 sm:$0xff]   ;;  %v1346_v21 = vld [vmem:[%s1462_s29 + $0xa0] ss:$8 sps:$4 sm:$0xff]   ;;  %v1349_v23 = vld [vmem:[%s1462_s29 + $0xb4] ss:$8 sps:$4 sm:$0xff]  }
  0x14   : > { %v1351_v24 = vld [vmem:[%s1462_s29 + $0x30] ss:$8 sps:$4 sm:$0xff]   ;;  %v1353_v26 = vld [vmem:[%s1462_s29 + $0x44] ss:$8 sps:$4 sm:$0xff]   ;;  %v1357_v28 = vld [vmem:[%s1462_s29 + $0x40] ss:$8 sps:$4 sm:$0xff]  }
  0x15   : > { %v1352_v25 = vld [vmem:[%s1462_s29 + $0xb0] ss:$8 sps:$4 sm:$0xff]   ;;  %v1355_v27 = vld [vmem:[%s1462_s29 + $0xc4] ss:$8 sps:$4 sm:$0xff]   ;;  %v1358_v29 = vld [vmem:[%s1462_s29 + $0xc0] ss:$8 sps:$4 sm:$0xff]  }
  0x16   : > { %679 = vmatpush1.bf16.msra.mxu0 %v1322_v3  ;;  %1288 = vmatpush1.bf16.msra.mxu1 %v1322_v3  ;;  %v1359_v30 = vld [vmem:[%s1462_s29 + $0x54] ss:$8 sps:$4 sm:$0xff]   ;;  %v1363_v32 = vld [vmem:[%s1462_s29 + $0x50] ss:$8 sps:$4 sm:$0xff]   ;;  %v1365_v34 = vld [vmem:[%s1462_s29 + $0x64] ss:$8 sps:$4 sm:$0xff]  }
  0x17   : > { %680 = vmatprep.subr.bf16.mxu0 %v1401_v1  ;;  %1280 = vmatprep.subr.bf16.mxu1 %v1401_v1  ;;  %v1361_v31 = vld [vmem:[%s1462_s29 + $0xd4] ss:$8 sps:$4 sm:$0xff]   ;;  %v1364_v33 = vld [vmem:[%s1462_s29 + $0xd0] ss:$8 sps:$4 sm:$0xff]   ;;  %v1367_v35 = vld [vmem:[%s1462_s29 + $0xe4] ss:$8 sps:$4 sm:$0xff]  }
  0x18   : > { %v1369_v36 = vld [vmem:[%s1462_s29 + $0x60] ss:$8 sps:$4 sm:$0xff]   ;;  %v1371_v38 = vld [vmem:[%s1462_s29 + $0x74] ss:$8 sps:$4 sm:$0xff]   ;;  %v1375_v40 = vld [vmem:[%s1462_s29 + $0x70] ss:$8 sps:$4 sm:$0xff]  }
  0x19   : > { %v1370_v37 = vld [vmem:[%s1462_s29 + $0xe0] ss:$8 sps:$4 sm:$0xff]   ;;  %v1373_v39 = vld [vmem:[%s1462_s29 + $0xf4] ss:$8 sps:$4 sm:$0xff]   ;;  %v1376_v41 = vld [vmem:[%s1462_s29 + $0xf0] ss:$8 sps:$4 sm:$0xff]  }
  0x1a   : > { %681 = vmatpush1.bf16.msra.mxu0 %v1323_v4  ;;  %1289 = vmatpush1.bf16.msra.mxu1 %v1323_v4  ;;  %v1533_v42 = vld [vmem:[%s1654_s2] ss:$0 sm:$0xff] }
  0x1b   : > { %682 = vmatprep.subr.bf16.mxu0 %v1401_v1  ;;  %1281 = vmatprep.subr.bf16.mxu1 %v1401_v1  ;;  %v1538_v44 = vld [vmem:[%s1655_s3] ss:$0 sm:$0xff] }
  0x1e   : > { %683 = vmatpush1.bf16.msra.mxu0 %v1324_v7  ;;  %1290 = vmatpush1.bf16.msra.mxu1 %v1324_v7 }
  0x1f   : > { %684 = vmatprep.subr.bf16.mxu0 %v1401_v1  ;;  %1282 = vmatprep.subr.bf16.mxu1 %v1401_v1 }
  0x22   : > { %685 = vmatpush1.bf16.msra.mxu0 %v1325_v8  ;;  %1291 = vmatpush1.bf16.msra.mxu1 %v1325_v8 }
  0x23   : > { %686 = vmatprep.subr.bf16.mxu0 %v1401_v1  ;;  %1283 = vmatprep.subr.bf16.mxu1 %v1401_v1 }
  0x26   : > { %687 = vmatpush1.bf16.msra.mxu0 %v1326_v9  ;;  %1292 = vmatpush1.bf16.msra.mxu1 %v1326_v9 }
  0x27   : > { %688 = vmatprep.subr.bf16.mxu0 %v1401_v1  ;;  %1284 = vmatprep.subr.bf16.mxu1 %v1401_v1 }
  0x2a   : > { %689 = vmatpush1.bf16.msra.mxu0 %v1327_v10  ;;  %1293 = vmatpush1.bf16.msra.mxu1 %v1327_v10 }
  0x2b   : > { %704 = vmatprep.subr.bf16.mxu0 %v1401_v1  ;;  %1285 = vmatprep.subr.bf16.mxu1 %v1401_v1 }
  0x2e   : > { %705 = vmatpush2.bf16.msra.mxu0 %v1328_v11  ;;  %1294 = vmatpush2.bf16.msra.mxu1 %v1328_v11 }
  0x31   : > { %707 = vmatmul.mubr.bf16.vlgmr.msra.gmra.mxu0 %v1329_v12  ;;  %771 = vmatmul.mubr.bf16.vlgmr.msra.gmra.mxu1 %v1332_v13 }
  0x32   : > { %1257 = vmatprep.mubr.msk.bf16.mxu0 %vm625_vm0, %v1335_v14  ;;  %1265 = vmatprep.mubr.msk.bf16.mxu1 %vm625_vm0, %v1337_v15 }
  0x39   : > { %715 = vmatmul.mubr.bf16.gmra.mxu0 %v1339_v16  ;;  %779 = vmatmul.mubr.bf16.gmra.mxu1 %v1340_v17 }
  0x3a   : > { %1258 = vmatprep.mubr.msk.bf16.mxu0 %vm625_vm0, %v1341_v18  ;;  %1266 = vmatprep.mubr.msk.bf16.mxu1 %vm625_vm0, %v1343_v19 }
  0x41   : > { %723 = vmatmul.mubr.bf16.gmra.mxu0 %v1345_v20  ;;  %787 = vmatmul.mubr.bf16.gmra.mxu1 %v1346_v21 }
  0x42   : > { %1259 = vmatprep.mubr.msk.bf16.mxu0 %vm625_vm0, %v1347_v22  ;;  %1267 = vmatprep.mubr.msk.bf16.mxu1 %vm625_vm0, %v1349_v23 }
  0x49   : > { %731 = vmatmul.mubr.bf16.gmra.mxu0 %v1351_v24  ;;  %795 = vmatmul.mubr.bf16.gmra.mxu1 %v1352_v25 }
  0x4a   : > { %1260 = vmatprep.mubr.msk.bf16.mxu0 %vm625_vm0, %v1353_v26  ;;  %1268 = vmatprep.mubr.msk.bf16.mxu1 %vm625_vm0, %v1355_v27 }
  0x51   : > { %739 = vmatmul.mubr.bf16.gmra.mxu0 %v1357_v28  ;;  %803 = vmatmul.mubr.bf16.gmra.mxu1 %v1358_v29 }
  0x52   : > { %1261 = vmatprep.mubr.msk.bf16.mxu0 %vm625_vm0, %v1359_v30  ;;  %1269 = vmatprep.mubr.msk.bf16.mxu1 %vm625_vm0, %v1361_v31 }
  0x59   : > { %747 = vmatmul.mubr.bf16.gmra.mxu0 %v1363_v32  ;;  %811 = vmatmul.mubr.bf16.gmra.mxu1 %v1364_v33 }
  0x5a   : > { %1262 = vmatprep.mubr.msk.bf16.mxu0 %vm625_vm0, %v1365_v34  ;;  %1270 = vmatprep.mubr.msk.bf16.mxu1 %vm625_vm0, %v1367_v35 }
  0x61   : > { %755 = vmatmul.mubr.bf16.gmra.mxu0 %v1369_v36  ;;  %819 = vmatmul.mubr.bf16.gmra.mxu1 %v1370_v37 }
  0x62   : > { %1263 = vmatprep.mubr.msk.bf16.mxu0 %vm625_vm0, %v1371_v38  ;;  %1271 = vmatprep.mubr.msk.bf16.mxu1 %vm625_vm0, %v1373_v39 }
  0x69   : > { %763 = vmatmul.mubr.bf16.gmra.mxu0 %v1375_v40  ;;  %827 = vmatmul.mubr.bf16.gmra.mxu1 %v1376_v41 }
  0xf1   : > { %v708_v43 = vpop.f32.mrf.mxu0  ;;  %v772_v45 = vpop.f32.mrf.mxu1 }
  0xf2   : > { %v941_v46 = vmul.f32 %v1533_v42, %v708_v43  ;;  %v957_v47 = vmul.f32 %v1533_v42, %v772_v45 }
  0xf3   : > { %v710_v48 = vpop.f32.mrf.mxu0  ;;  %v774_v49 = vpop.f32.mrf.mxu1 }
  0xf4   : > { %v980_v50 = vadd.f32 %v1538_v44, %v941_v46  ;;  %v996_v51 = vadd.f32 %v1538_v44, %v957_v47 }
  0xf5   : > { %v711_v52 = vpop.f32.mrf.mxu0  ;;  %v775_v53 = vpop.f32.mrf.mxu1 }
  0xf6   : > { %v1012_v54 = vmax.f32 %v980_v50, 0.0  ;;  %v1028_v55 = vmax.f32 %v996_v51, 0.0  ;;  %v942_v56 = vmul.f32 %v1533_v42, %v711_v52  ;;  %v958_v57 = vmul.f32 %v1533_v42, %v775_v53 }
  0xf7   : > { %v713_v58 = vpop.f32.mrf.mxu0  ;;  %v777_v59 = vpop.f32.mrf.mxu1 }
  0xf8   : > { %1044 = vst [vmem:[%s1549_s27] sm:$0xff] %v1012_v54  ;;  %1060 = vst [vmem:[%s1549_s27 + $0x80] sm:$0xff] %v1028_v55  ;;  %v981_v60 = vadd.f32 %v1538_v44, %v942_v56  ;;  %v997_v61 = vadd.f32 %v1538_v44, %v958_v57 }
  0xf9   : > { %v716_v62 = vpop.f32.mrf.mxu0  ;;  %v780_v63 = vpop.f32.mrf.mxu1 }
  0xfa   : > { %v1013_v0 = vmax.f32 %v981_v60, 0.0  ;;  %v1029_v1 = vmax.f32 %v997_v61, 0.0  ;;  %v943_v2 = vmul.f32 %v1533_v42, %v716_v62  ;;  %v959_v3 = vmul.f32 %v1533_v42, %v780_v63 }
  0xfb   : > { %v718_v4 = vpop.f32.mrf.mxu0  ;;  %v782_v5 = vpop.f32.mrf.mxu1 }
  0xfc   : > { %1045 = vst [vmem:[%s1549_s27 + $0x8] sm:$0xff] %v1013_v0  ;;  %1061 = vst [vmem:[%s1549_s27 + $0x88] sm:$0xff] %v1029_v1  ;;  %v982_v6 = vadd.f32 %v1538_v44, %v943_v2  ;;  %v998_v7 = vadd.f32 %v1538_v44, %v959_v3 }
  0xfd   : > { %v719_v8 = vpop.f32.mrf.mxu0  ;;  %v783_v9 = vpop.f32.mrf.mxu1 }
  0xfe   : > { %v1014_v10 = vmax.f32 %v982_v6, 0.0  ;;  %v1030_v11 = vmax.f32 %v998_v7, 0.0  ;;  %v944_v12 = vmul.f32 %v1533_v42, %v719_v8  ;;  %v960_v13 = vmul.f32 %v1533_v42, %v783_v9 }
  0xff   : > { %v721_v14 = vpop.f32.mrf.mxu0  ;;  %v785_v15 = vpop.f32.mrf.mxu1 }
 0x100   : > { %1046 = vst [vmem:[%s1549_s27 + $0x10] sm:$0xff] %v1014_v10  ;;  %1062 = vst [vmem:[%s1549_s27 + $0x90] sm:$0xff] %v1030_v11  ;;  %v983_v16 = vadd.f32 %v1538_v44, %v944_v12  ;;  %v999_v17 = vadd.f32 %v1538_v44, %v960_v13 }
 0x101   : > { %v724_v18 = vpop.f32.mrf.mxu0  ;;  %v788_v19 = vpop.f32.mrf.mxu1 }
 0x102   : > { %v1015_v20 = vmax.f32 %v983_v16, 0.0  ;;  %v1031_v21 = vmax.f32 %v999_v17, 0.0  ;;  %v945_v22 = vmul.f32 %v1533_v42, %v724_v18  ;;  %v961_v23 = vmul.f32 %v1533_v42, %v788_v19 }
 0x103   : > { %v726_v24 = vpop.f32.mrf.mxu0  ;;  %v790_v25 = vpop.f32.mrf.mxu1 }
 0x104   : > { %1047 = vst [vmem:[%s1549_s27 + $0x18] sm:$0xff] %v1015_v20  ;;  %1063 = vst [vmem:[%s1549_s27 + $0x98] sm:$0xff] %v1031_v21  ;;  %v984_v26 = vadd.f32 %v1538_v44, %v945_v22  ;;  %v1000_v27 = vadd.f32 %v1538_v44, %v961_v23 }
 0x105   : > { %v727_v28 = vpop.f32.mrf.mxu0  ;;  %v791_v29 = vpop.f32.mrf.mxu1 }
 0x106   : > { %v1016_v30 = vmax.f32 %v984_v26, 0.0  ;;  %v1032_v31 = vmax.f32 %v1000_v27, 0.0  ;;  %v946_v32 = vmul.f32 %v1533_v42, %v727_v28  ;;  %v962_v33 = vmul.f32 %v1533_v42, %v791_v29 }
 0x107   : > { %v729_v34 = vpop.f32.mrf.mxu0  ;;  %v793_v35 = vpop.f32.mrf.mxu1 }
 0x108   : > { %1048 = vst [vmem:[%s1549_s27 + $0x20] sm:$0xff] %v1016_v30  ;;  %1064 = vst [vmem:[%s1549_s27 + $0xa0] sm:$0xff] %v1032_v31  ;;  %v985_v36 = vadd.f32 %v1538_v44, %v946_v32  ;;  %v1001_v37 = vadd.f32 %v1538_v44, %v962_v33 }
 0x109   : > { %v732_v38 = vpop.f32.mrf.mxu0  ;;  %v796_v39 = vpop.f32.mrf.mxu1 }
 0x10a   : > { %v1017_v40 = vmax.f32 %v985_v36, 0.0  ;;  %v1033_v41 = vmax.f32 %v1001_v37, 0.0  ;;  %v947_v43 = vmul.f32 %v1533_v42, %v732_v38  ;;  %v963_v45 = vmul.f32 %v1533_v42, %v796_v39 }
 0x10b   : > { %v734_v46 = vpop.f32.mrf.mxu0  ;;  %v798_v47 = vpop.f32.mrf.mxu1 }
 0x10c   : > { %1049 = vst [vmem:[%s1549_s27 + $0x28] sm:$0xff] %v1017_v40  ;;  %1065 = vst [vmem:[%s1549_s27 + $0xa8] sm:$0xff] %v1033_v41  ;;  %v986_v48 = vadd.f32 %v1538_v44, %v947_v43  ;;  %v1002_v49 = vadd.f32 %v1538_v44, %v963_v45 }
 0x10d   : > { %v735_v50 = vpop.f32.mrf.mxu0  ;;  %v799_v51 = vpop.f32.mrf.mxu1 }
 0x10e   : > { %v1018_v52 = vmax.f32 %v986_v48, 0.0  ;;  %v1034_v53 = vmax.f32 %v1002_v49, 0.0  ;;  %v948_v54 = vmul.f32 %v1533_v42, %v735_v50  ;;  %v964_v55 = vmul.f32 %v1533_v42, %v799_v51 }
 0x10f   : > { %v737_v56 = vpop.f32.mrf.mxu0  ;;  %v801_v57 = vpop.f32.mrf.mxu1 }
 0x110   : > { %1050 = vst [vmem:[%s1549_s27 + $0x30] sm:$0xff] %v1018_v52  ;;  %1066 = vst [vmem:[%s1549_s27 + $0xb0] sm:$0xff] %v1034_v53  ;;  %v987_v58 = vadd.f32 %v1538_v44, %v948_v54  ;;  %v1003_v59 = vadd.f32 %v1538_v44, %v964_v55 }
 0x111   : > { %v740_v60 = vpop.f32.mrf.mxu0  ;;  %v804_v61 = vpop.f32.mrf.mxu1 }
 0x112   : > { %v1019_v62 = vmax.f32 %v987_v58, 0.0  ;;  %v1035_v63 = vmax.f32 %v1003_v59, 0.0  ;;  %v949_v0 = vmul.f32 %v1533_v42, %v740_v60  ;;  %v965_v1 = vmul.f32 %v1533_v42, %v804_v61 }
 0x113   : > { %v742_v2 = vpop.f32.mrf.mxu0  ;;  %v806_v3 = vpop.f32.mrf.mxu1 }
 0x114   : > { %1051 = vst [vmem:[%s1549_s27 + $0x38] sm:$0xff] %v1019_v62  ;;  %1067 = vst [vmem:[%s1549_s27 + $0xb8] sm:$0xff] %v1035_v63  ;;  %v988_v4 = vadd.f32 %v1538_v44, %v949_v0  ;;  %v1004_v5 = vadd.f32 %v1538_v44, %v965_v1 }
 0x115   : > { %v743_v6 = vpop.f32.mrf.mxu0  ;;  %v807_v7 = vpop.f32.mrf.mxu1 }
 0x116   : > { %v1020_v8 = vmax.f32 %v988_v4, 0.0  ;;  %v1036_v9 = vmax.f32 %v1004_v5, 0.0  ;;  %v950_v10 = vmul.f32 %v1533_v42, %v743_v6  ;;  %v966_v11 = vmul.f32 %v1533_v42, %v807_v7 }
 0x117   : > { %v745_v12 = vpop.f32.mrf.mxu0  ;;  %v809_v13 = vpop.f32.mrf.mxu1 }
 0x118   : > { %1052 = vst [vmem:[%s1549_s27 + $0x40] sm:$0xff] %v1020_v8  ;;  %1068 = vst [vmem:[%s1549_s27 + $0xc0] sm:$0xff] %v1036_v9  ;;  %v989_v14 = vadd.f32 %v1538_v44, %v950_v10  ;;  %v1005_v15 = vadd.f32 %v1538_v44, %v966_v11 }
 0x119   : > { %v748_v16 = vpop.f32.mrf.mxu0  ;;  %v812_v17 = vpop.f32.mrf.mxu1 }
 0x11a   : > { %v1021_v18 = vmax.f32 %v989_v14, 0.0  ;;  %v1037_v19 = vmax.f32 %v1005_v15, 0.0  ;;  %v951_v20 = vmul.f32 %v1533_v42, %v748_v16  ;;  %v967_v21 = vmul.f32 %v1533_v42, %v812_v17 }
 0x11b   : > { %v750_v22 = vpop.f32.mrf.mxu0  ;;  %v814_v23 = vpop.f32.mrf.mxu1 }
 0x11c   : > { %1053 = vst [vmem:[%s1549_s27 + $0x48] sm:$0xff] %v1021_v18  ;;  %1069 = vst [vmem:[%s1549_s27 + $0xc8] sm:$0xff] %v1037_v19  ;;  %v990_v24 = vadd.f32 %v1538_v44, %v951_v20  ;;  %v1006_v25 = vadd.f32 %v1538_v44, %v967_v21 }
 0x11d   : > { %v751_v26 = vpop.f32.mrf.mxu0  ;;  %v815_v27 = vpop.f32.mrf.mxu1 }
 0x11e   : > { %v1022_v28 = vmax.f32 %v990_v24, 0.0  ;;  %v1038_v29 = vmax.f32 %v1006_v25, 0.0  ;;  %v952_v30 = vmul.f32 %v1533_v42, %v751_v26  ;;  %v968_v31 = vmul.f32 %v1533_v42, %v815_v27 }
 0x11f   : > { %v753_v32 = vpop.f32.mrf.mxu0  ;;  %v817_v33 = vpop.f32.mrf.mxu1 }
 0x120   : > { %1054 = vst [vmem:[%s1549_s27 + $0x50] sm:$0xff] %v1022_v28  ;;  %1070 = vst [vmem:[%s1549_s27 + $0xd0] sm:$0xff] %v1038_v29  ;;  %v991_v34 = vadd.f32 %v1538_v44, %v952_v30  ;;  %v1007_v35 = vadd.f32 %v1538_v44, %v968_v31 }
 0x121   : > { %v756_v36 = vpop.f32.mrf.mxu0  ;;  %v820_v37 = vpop.f32.mrf.mxu1 }
 0x122   : > { %v1023_v38 = vmax.f32 %v991_v34, 0.0  ;;  %v1039_v39 = vmax.f32 %v1007_v35, 0.0  ;;  %v953_v40 = vmul.f32 %v1533_v42, %v756_v36  ;;  %v969_v41 = vmul.f32 %v1533_v42, %v820_v37 }
 0x123   : > { %v758_v43 = vpop.f32.mrf.mxu0  ;;  %v822_v45 = vpop.f32.mrf.mxu1 }
 0x124   : > { %1055 = vst [vmem:[%s1549_s27 + $0x58] sm:$0xff] %v1023_v38  ;;  %1071 = vst [vmem:[%s1549_s27 + $0xd8] sm:$0xff] %v1039_v39  ;;  %v992_v46 = vadd.f32 %v1538_v44, %v953_v40  ;;  %v1008_v47 = vadd.f32 %v1538_v44, %v969_v41 }
 0x125   : > { %v759_v48 = vpop.f32.mrf.mxu0  ;;  %v823_v49 = vpop.f32.mrf.mxu1 }
 0x126   : > { %v1024_v50 = vmax.f32 %v992_v46, 0.0  ;;  %v1040_v51 = vmax.f32 %v1008_v47, 0.0  ;;  %v954_v52 = vmul.f32 %v1533_v42, %v759_v48  ;;  %v970_v53 = vmul.f32 %v1533_v42, %v823_v49 }
 0x127   : > { %v761_v54 = vpop.f32.mrf.mxu0  ;;  %v825_v55 = vpop.f32.mrf.mxu1 }
 0x128   : > { %1056 = vst [vmem:[%s1549_s27 + $0x60] sm:$0xff] %v1024_v50  ;;  %1072 = vst [vmem:[%s1549_s27 + $0xe0] sm:$0xff] %v1040_v51  ;;  %v993_v56 = vadd.f32 %v1538_v44, %v954_v52  ;;  %v1009_v57 = vadd.f32 %v1538_v44, %v970_v53 }
 0x129   : > { %v764_v58 = vpop.f32.mrf.mxu0  ;;  %v828_v59 = vpop.f32.mrf.mxu1 }
 0x12a   : > { %v1025_v60 = vmax.f32 %v993_v56, 0.0  ;;  %v1041_v61 = vmax.f32 %v1009_v57, 0.0  ;;  %v955_v62 = vmul.f32 %v1533_v42, %v764_v58  ;;  %v971_v63 = vmul.f32 %v1533_v42, %v828_v59 }
 0x12b   : > { %v766_v0 = vpop.f32.mrf.mxu0  ;;  %v830_v1 = vpop.f32.mrf.mxu1 }
 0x12c   : > { %1057 = vst [vmem:[%s1549_s27 + $0x68] sm:$0xff] %v1025_v60  ;;  %1073 = vst [vmem:[%s1549_s27 + $0xe8] sm:$0xff] %v1041_v61  ;;  %v994_v2 = vadd.f32 %v1538_v44, %v955_v62  ;;  %v1010_v3 = vadd.f32 %v1538_v44, %v971_v63 }
 0x12d   : > { %v767_v4 = vpop.f32.mrf.mxu0  ;;  %v831_v5 = vpop.f32.mrf.mxu1 }
 0x12e   : > { %v1026_v6 = vmax.f32 %v994_v2, 0.0  ;;  %v1042_v7 = vmax.f32 %v1010_v3, 0.0  ;;  %v956_v8 = vmul.f32 %v1533_v42, %v767_v4  ;;  %v972_v9 = vmul.f32 %v1533_v42, %v831_v5 }
 0x12f   : > { %v769_v10 = vpop.f32.mrf.mxu0  ;;  %v833_v11 = vpop.f32.mrf.mxu1 }
 0x130   : > { %1058 = vst [vmem:[%s1549_s27 + $0x70] sm:$0xff] %v1026_v6  ;;  %1074 = vst [vmem:[%s1549_s27 + $0xf0] sm:$0xff] %v1042_v7  ;;  %v995_v12 = vadd.f32 %v1538_v44, %v956_v8  ;;  %v1011_v13 = vadd.f32 %v1538_v44, %v972_v9 }
 0x132   : > { %v1027_v14 = vmax.f32 %v995_v12, 0.0  ;;  %v1043_v15 = vmax.f32 %v1011_v13, 0.0 }
 0x134   : > { %1059 = vst [vmem:[%s1549_s27 + $0x78] sm:$0xff] %v1027_v14  ;;  %1075 = vst [vmem:[%s1549_s27 + $0xf8] sm:$0xff] %v1043_v15 }
 0x135 PF: > { %s14_s17 = sadd.s32 1, %s1399_s17   ;;  %s1657_s15 = smov %s1395_s16 }
 0x136   : > { %p11_p5 = scmp.ge.s32.totalorder %s14_s17, 4   ;;  %s1658_s16 = smov %s1660_s18 }
 0x138   :  { %13 = sbr.rel (!%p11_p5) target bundleno = 2 (0x2), region = 83 }

// kernel: custom_model_forward.27
= control target key start
LH: loop header
LB: loop body
LE: loop exit
PB: predicated region body
PF: predicated region fallthrough
CT: control target
= control target key end

     0   :  { %vm118_vm0 = vcmask 130048   ;;  %s528_s1 = inlined_call_operand.vmem [shape: bf16[16,128], index: 1, kind: input, shape index: {}]   ;;  %s529_s0 = inlined_call_operand.vmem [shape: bf16[128,16], index: 0, kind: input, shape index: {}]   ;;  %s530_s2 = inlined_call_operand.vmem [shape: f32[1,128], index: 2, kind: input, shape index: {}]   ;;  %s531_s3 = inlined_call_operand.vmem [shape: f32[1,128], index: 3, kind: input, shape index: {}]   ;;  %s532_s4 = inlined_call_operand.vmem [shape: f32[128,128], index: 4, kind: output, shape index: {}]  }
   0x1   :  { %v405_v0 = vld [vmem:[%s528_s1] sm:$0xff]   ;;  %v408_v3 = vld [vmem:[%s529_s0 + $0x8] sm:$0xff]   ;;  %v410_v5 = vld [vmem:[%s529_s0 + $0x10] sm:$0xff]  }
   0x2   :  { %v406_v1 = vld [vmem:[%s529_s0] sm:$0xff]   ;;  %385 = vmatprep.subr.bf16.mxu0 %v405_v0  ;;  %403 = vmatprep.subr.bf16.mxu1 %v405_v0  ;;  %v409_v4 = vld [vmem:[%s529_s0 + $0x28] sm:$0xff]   ;;  %v411_v6 = vld [vmem:[%s529_s0 + $0x30] sm:$0xff]  }
   0x3   :  { %v407_v2 = vld [vmem:[%s529_s0 + $0x20] sm:$0xff]   ;;  %386 = vmatpush3.bf16.msra.mxu0 %v405_v0  ;;  %404 = vmatpush3.bf16.msra.mxu1 %v405_v0  ;;  %v412_v7 = vld [vmem:[%s529_s0 + $0x18] sm:$0xff]  }
   0x4   :  { %387 = vmatprep.mubr.msk.bf16.mxu0 %vm118_vm0, %v406_v1  ;;  %395 = vmatprep.mubr.msk.bf16.mxu1 %vm118_vm0, %v407_v2  ;;  %v413_v8 = vld [vmem:[%s529_s0 + $0x38] sm:$0xff]   ;;  %v374_v9 = vld [vmem:[%s530_s2] ss:$0 sm:$0xff] }
   0x5   :  { %v375_v11 = vld [vmem:[%s531_s3] ss:$0 sm:$0xff] }
   0x6   :  { %388 = vmatmul.mubr.msk.bf16.vlgmr.msra.gmra.mxu0 %vm118_vm0, %v408_v3  ;;  %396 = vmatmul.mubr.msk.bf16.vlgmr.msra.gmra.mxu1 %vm118_vm0, %v409_v4 }
   0x7   :  { %391 = vmatprep.mubr.msk.bf16.mxu0 %vm118_vm0, %v410_v5  ;;  %399 = vmatprep.mubr.msk.bf16.mxu1 %vm118_vm0, %v411_v6 }
   0xe   :  { %392 = vmatmul.mubr.msk.bf16.gmra.mxu0 %vm118_vm0, %v412_v7  ;;  %400 = vmatmul.mubr.msk.bf16.gmra.mxu1 %vm118_vm0, %v413_v8 }
  0xc6   :  { %v389_v10 = vpop.f32.mrf.mxu0  ;;  %v397_v12 = vpop.f32.mrf.mxu1 }
  0xc7   :  { %v300_v13 = vmul.f32 %v389_v10, %v374_v9  ;;  %v308_v14 = vmul.f32 %v397_v12, %v374_v9 }
  0xc8   :  { %v177_v15 = vpop.f32.mrf.mxu0  ;;  %v209_v16 = vpop.f32.mrf.mxu1 }
  0xc9   :  { %v323_v17 = vadd.f32 %v375_v11, %v300_v13  ;;  %v331_v18 = vadd.f32 %v375_v11, %v308_v14  ;;  %v298_v19 = vmul.f32 %v374_v9, %v177_v15  ;;  %v306_v20 = vmul.f32 %v374_v9, %v209_v16 }
  0xca   :  { %v390_v21 = vpop.f32.mrf.mxu0  ;;  %v398_v22 = vpop.f32.mrf.mxu1 }
  0xcb   :  { %339 = vst [vmem:[%s532_s4 + $0x10] sm:$0xff] %v323_v17  ;;  %347 = vst [vmem:[%s532_s4 + $0x50] sm:$0xff] %v331_v18  ;;  %v321_v23 = vadd.f32 %v375_v11, %v298_v19  ;;  %v329_v24 = vadd.f32 %v375_v11, %v306_v20  ;;  %v301_v25 = vmul.f32 %v390_v21, %v374_v9 }
  0xcc   :  { %v309_v26 = vmul.f32 %v398_v22, %v374_v9  ;;  %v180_v27 = vpop.f32.mrf.mxu0  ;;  %v212_v28 = vpop.f32.mrf.mxu1 }
  0xcd   :  { %337 = vst [vmem:[%s532_s4] sm:$0xff] %v321_v23  ;;  %345 = vst [vmem:[%s532_s4 + $0x40] sm:$0xff] %v329_v24  ;;  %v324_v29 = vadd.f32 %v375_v11, %v301_v25  ;;  %v299_v31 = vmul.f32 %v374_v9, %v180_v27  ;;  %v307_v32 = vmul.f32 %v374_v9, %v212_v28 }
  0xce   :  { %v332_v30 = vadd.f32 %v375_v11, %v309_v26  ;;  %v393_v33 = vpop.f32.mrf.mxu0  ;;  %v401_v34 = vpop.f32.mrf.mxu1 }
  0xcf   :  { %340 = vst [vmem:[%s532_s4 + $0x18] sm:$0xff] %v324_v29  ;;  %v322_v35 = vadd.f32 %v375_v11, %v299_v31  ;;  %v330_v36 = vadd.f32 %v375_v11, %v307_v32  ;;  %v304_v37 = vmul.f32 %v393_v33, %v374_v9  ;;  %v312_v38 = vmul.f32 %v401_v34, %v374_v9 }
  0xd0   :  { %348 = vst [vmem:[%s532_s4 + $0x58] sm:$0xff] %v332_v30  ;;  %v193_v39 = vpop.f32.mrf.mxu0  ;;  %v225_v40 = vpop.f32.mrf.mxu1 }
  0xd1   :  { %338 = vst [vmem:[%s532_s4 + $0x8] sm:$0xff] %v322_v35  ;;  %346 = vst [vmem:[%s532_s4 + $0x48] sm:$0xff] %v330_v36  ;;  %v327_v41 = vadd.f32 %v375_v11, %v304_v37  ;;  %v335_v42 = vadd.f32 %v375_v11, %v312_v38  ;;  %v302_v43 = vmul.f32 %v374_v9, %v193_v39 }
  0xd2   :  { %v310_v44 = vmul.f32 %v374_v9, %v225_v40  ;;  %v394_v45 = vpop.f32.mrf.mxu0  ;;  %v402_v46 = vpop.f32.mrf.mxu1 }
  0xd3   :  { %343 = vst [vmem:[%s532_s4 + $0x30] sm:$0xff] %v327_v41  ;;  %351 = vst [vmem:[%s532_s4 + $0x70] sm:$0xff] %v335_v42  ;;  %v325_v47 = vadd.f32 %v375_v11, %v302_v43  ;;  %v305_v49 = vmul.f32 %v394_v45, %v374_v9  ;;  %v313_v50 = vmul.f32 %v402_v46, %v374_v9 }
  0xd4   :  { %v333_v48 = vadd.f32 %v375_v11, %v310_v44  ;;  %v196_v51 = vpop.f32.mrf.mxu0  ;;  %v228_v52 = vpop.f32.mrf.mxu1 }
  0xd5   :  { %341 = vst [vmem:[%s532_s4 + $0x20] sm:$0xff] %v325_v47  ;;  %v328_v53 = vadd.f32 %v375_v11, %v305_v49  ;;  %v336_v54 = vadd.f32 %v375_v11, %v313_v50  ;;  %v303_v55 = vmul.f32 %v374_v9, %v196_v51  ;;  %v311_v56 = vmul.f32 %v374_v9, %v228_v52 }
  0xd6   :  { %349 = vst [vmem:[%s532_s4 + $0x60] sm:$0xff] %v333_v48 }
  0xd7   :  { %344 = vst [vmem:[%s532_s4 + $0x38] sm:$0xff] %v328_v53  ;;  %352 = vst [vmem:[%s532_s4 + $0x78] sm:$0xff] %v336_v54  ;;  %v326_v57 = vadd.f32 %v375_v11, %v303_v55  ;;  %v334_v58 = vadd.f32 %v375_v11, %v311_v56 }
  0xd9   :  { %342 = vst [vmem:[%s532_s4 + $0x28] sm:$0xff] %v326_v57  ;;  %350 = vst [vmem:[%s532_s4 + $0x68] sm:$0xff] %v334_v58 }

// kernel: custom_model_forward.23
= control target key start
LH: loop header
LB: loop body
LE: loop exit
PB: predicated region body
PF: predicated region fallthrough
CT: control target
= control target key end

     0   :  { %s1573_s18 = smov 0   ;;  %s1575_s19 = smov 0   ;;  %s1833_s0 = inlined_call_operand.vmem [shape: bf16[512,144], index: 0, kind: input, shape index: {}]   ;;  %s1834_s1 = inlined_call_operand.vmem [shape: bf16[144,128], index: 1, kind: input, shape index: {}]   ;;  %s1835_s2 = inlined_call_operand.vmem [shape: f32[1,128], index: 2, kind: input, shape index: {}]   ;;  %s1836_s3 = inlined_call_operand.vmem [shape: f32[1,128], index: 3, kind: input, shape index: {}]   ;;  %s1837_s4 = inlined_call_operand.vmem [shape: f32[512,128], index: 4, kind: input, shape index: {}]   ;;  %s1838_s5 = inlined_call_operand.vmem [shape: f32[512,128], index: 5, kind: output, shape index: {}]  }
   0x1   :  { %s1577_s20 = smov 0  }
   0x2 LB: > { %s34_s21 = sadd.s32 1, %s1536_s19  ;;  %p1348_p0 = scmp.ge.s32.totalorder %s1540_s20, 1  ;;  %s1540_s20 = sphi %s1577_s20, %s15_s20   ;;  %s1536_s19 = sphi %s1575_s19, %s1840_s19   ;;  %s1532_s18 = sphi %s1573_s18, %s1839_s18  }
   0x3   : > { %p36_p1 = scmp.ge.s32.totalorder %s34_s21, 2  ;;  %p265_p2 = scmp.lt.s32.totalorder %s1540_s20, 3 }
   0x5   : > { %s1842_s21 = smov (%p36_p1, %s34_s21), 0  ;;  %p266_p3 = pnand %p1348_p0, %p265_p2 }
   0x6   : > { %s1349_s24 = sshll.u32 (!%p266_p3), %s1532_s18, 5 }
   0x7   : > { %269 = sbr.rel (%p266_p3) target bundleno = 311 (0x137), region = 40  ;;  %p325_p4 = scmp.lt.s32.totalorder (!%p266_p3), %s1349_s24, 63 }
   0xc   : > { %v1461_v0 = vld [vmem:[%s1834_s1 + $0x38] sm:$0xff]   ;;  %v1542_v1 = vmov 0   ;;  %v1462_v2 = vld [vmem:[%s1834_s1 + $0x30] sm:$0xff]   ;;  %s1844_s24 = smov (!%p325_p4, %s1349_s24), 63  ;;  %v1463_v3 = vld [vmem:[%s1834_s1 + $0x28] sm:$0xff]   ;;  %vm685_vm0 = vcmask 130048  }
   0xd   : > { %734 = vmatprep.subr.bf16.mxu0 %v1542_v1  ;;  %1418 = vmatprep.subr.bf16.mxu1 %v1542_v1  ;;  %s1600_s29 = sshll.u32 %s1844_s24, 3  ;;  %v1464_v4 = vld [vmem:[%s1834_s1 + $0x20] sm:$0xff]   ;;  %v1465_v7 = vld [vmem:[%s1834_s1 + $0x18] sm:$0xff]   ;;  %v1466_v8 = vld [vmem:[%s1834_s1 + $0x10] sm:$0xff]  }
   0xe   : > { %735 = vmatpush1.bf16.msra.mxu0 %v1461_v0  ;;  %1427 = vmatpush1.bf16.msra.mxu1 %v1461_v0  ;;  %s1606_s7 = scalar_lea.vmem %s1833_s0, %s1600_s29  ;;  %v1467_v9 = vld [vmem:[%s1834_s1 + $0x8] sm:$0xff]   ;;  %v1468_v10 = vld [vmem:[%s1834_s1] sm:$0xff]   ;;  %s1683_s27 = scalar_lea.vmem %s1837_s4, %s1600_s29 }
   0xf   : > { %736 = vmatprep.subr.bf16.mxu0 %v1542_v1  ;;  %1419 = vmatprep.subr.bf16.mxu1 %v1542_v1  ;;  %v1472_v5 = vld [vmem:[%s1606_s7 + $0x4] ss:$8 sps:$4 sm:$0xff]   ;;  %v1470_v12 = vld [vmem:[%s1606_s7] ss:$8 sps:$4 sm:$0xff]   ;;  %v1476_v14 = vld [vmem:[%s1606_s7 + $0x14] ss:$8 sps:$4 sm:$0xff]   ;;  %s1702_s8 = scalar_lea.vmem %s1838_s5, %s1600_s29 }
  0x10   : > { %v1475_v6 = vld [vmem:[%s1606_s7 + $0x84] ss:$8 sps:$4 sm:$0xff]   ;;  %1397 = vmatprep.mubr.msk.bf16.mxu0 %vm685_vm0, %v1472_v5  ;;  %v1473_v13 = vld [vmem:[%s1606_s7 + $0x80] ss:$8 sps:$4 sm:$0xff]   ;;  %v1478_v15 = vld [vmem:[%s1606_s7 + $0x94] ss:$8 sps:$4 sm:$0xff]  }
  0x11   : > { %1405 = vmatprep.mubr.msk.bf16.mxu1 %vm685_vm0, %v1475_v6  ;;  %v1469_v11 = vld [vmem:[%s1834_s1 + $0x40] sm:$0xff]   ;;  %v1480_v16 = vld [vmem:[%s1606_s7 + $0x10] ss:$8 sps:$4 sm:$0xff]   ;;  %v1488_v22 = vld [vmem:[%s1606_s7 + $0x34] ss:$8 sps:$4 sm:$0xff]  }
  0x12   : > { %737 = vmatpush1.bf16.msra.mxu0 %v1462_v2  ;;  %1428 = vmatpush1.bf16.msra.mxu1 %v1462_v2  ;;  %v1481_v17 = vld [vmem:[%s1606_s7 + $0x90] ss:$8 sps:$4 sm:$0xff]   ;;  %v1482_v18 = vld [vmem:[%s1606_s7 + $0x24] ss:$8 sps:$4 sm:$0xff]   ;;  %v1486_v20 = vld [vmem:[%s1606_s7 + $0x20] ss:$8 sps:$4 sm:$0xff]  }
  0x13   : > { %738 = vmatprep.subr.bf16.mxu0 %v1542_v1  ;;  %1420 = vmatprep.subr.bf16.mxu1 %v1542_v1  ;;  %v1484_v19 = vld [vmem:[%s1606_s7 + $0xa4] ss:$8 sps:$4 sm:$0xff]   ;;  %v1487_v21 = vld [vmem:[%s1606_s7 + $0xa0] ss:$8 sps:$4 sm:$0xff]   ;;  %v1490_v23 = vld [vmem:[%s1606_s7 + $0xb4] ss:$8 sps:$4 sm:$0xff]  }
  0x14   : > { %v1492_v24 = vld [vmem:[%s1606_s7 + $0x30] ss:$8 sps:$4 sm:$0xff]   ;;  %v1494_v26 = vld [vmem:[%s1606_s7 + $0x44] ss:$8 sps:$4 sm:$0xff]   ;;  %v1498_v28 = vld [vmem:[%s1606_s7 + $0x40] ss:$8 sps:$4 sm:$0xff]  }
  0x15   : > { %v1493_v25 = vld [vmem:[%s1606_s7 + $0xb0] ss:$8 sps:$4 sm:$0xff]   ;;  %v1496_v27 = vld [vmem:[%s1606_s7 + $0xc4] ss:$8 sps:$4 sm:$0xff]   ;;  %v1499_v29 = vld [vmem:[%s1606_s7 + $0xc0] ss:$8 sps:$4 sm:$0xff]  }
  0x16   : > { %739 = vmatpush1.bf16.msra.mxu0 %v1463_v3  ;;  %1429 = vmatpush1.bf16.msra.mxu1 %v1463_v3  ;;  %v1500_v30 = vld [vmem:[%s1606_s7 + $0x54] ss:$8 sps:$4 sm:$0xff]   ;;  %v1504_v32 = vld [vmem:[%s1606_s7 + $0x50] ss:$8 sps:$4 sm:$0xff]   ;;  %v1506_v34 = vld [vmem:[%s1606_s7 + $0x64] ss:$8 sps:$4 sm:$0xff]  }
  0x17   : > { %740 = vmatprep.subr.bf16.mxu0 %v1542_v1  ;;  %1421 = vmatprep.subr.bf16.mxu1 %v1542_v1  ;;  %v1502_v31 = vld [vmem:[%s1606_s7 + $0xd4] ss:$8 sps:$4 sm:$0xff]   ;;  %v1505_v33 = vld [vmem:[%s1606_s7 + $0xd0] ss:$8 sps:$4 sm:$0xff]   ;;  %v1508_v35 = vld [vmem:[%s1606_s7 + $0xe4] ss:$8 sps:$4 sm:$0xff]  }
  0x18   : > { %v1510_v36 = vld [vmem:[%s1606_s7 + $0x60] ss:$8 sps:$4 sm:$0xff]   ;;  %v1512_v38 = vld [vmem:[%s1606_s7 + $0x74] ss:$8 sps:$4 sm:$0xff]   ;;  %v1516_v40 = vld [vmem:[%s1606_s7 + $0x70] ss:$8 sps:$4 sm:$0xff]  }
  0x19   : > { %v1511_v37 = vld [vmem:[%s1606_s7 + $0xe0] ss:$8 sps:$4 sm:$0xff]   ;;  %v1514_v39 = vld [vmem:[%s1606_s7 + $0xf4] ss:$8 sps:$4 sm:$0xff]   ;;  %v1517_v41 = vld [vmem:[%s1606_s7 + $0xf0] ss:$8 sps:$4 sm:$0xff]  }
  0x1a   : > { %741 = vmatpush1.bf16.msra.mxu0 %v1464_v4  ;;  %1430 = vmatpush1.bf16.msra.mxu1 %v1464_v4  ;;  %v1677_v42 = vld [vmem:[%s1835_s2] ss:$0 sm:$0xff]  ;;  %v1073_v60 = vld [vmem:[%s1683_s27 + $0x8] sm:$0xff] }
  0x1b   : > { %742 = vmatprep.subr.bf16.mxu0 %v1542_v1  ;;  %1422 = vmatprep.subr.bf16.mxu1 %v1542_v1  ;;  %v1688_v44 = vld [vmem:[%s1836_s3] ss:$0 sm:$0xff]  ;;  %v1089_v61 = vld [vmem:[%s1683_s27 + $0x88] sm:$0xff] }
  0x1c   : > { %v1072_v48 = vld [vmem:[%s1683_s27] sm:$0xff] }
  0x1d   : > { %v1088_v49 = vld [vmem:[%s1683_s27 + $0x80] sm:$0xff] }
  0x1e   : > { %743 = vmatpush1.bf16.msra.mxu0 %v1465_v7  ;;  %1431 = vmatpush1.bf16.msra.mxu1 %v1465_v7 }
  0x1f   : > { %744 = vmatprep.subr.bf16.mxu0 %v1542_v1  ;;  %1423 = vmatprep.subr.bf16.mxu1 %v1542_v1 }
  0x22   : > { %745 = vmatpush1.bf16.msra.mxu0 %v1466_v8  ;;  %1432 = vmatpush1.bf16.msra.mxu1 %v1466_v8 }
  0x23   : > { %746 = vmatprep.subr.bf16.mxu0 %v1542_v1  ;;  %1424 = vmatprep.subr.bf16.mxu1 %v1542_v1 }
  0x26   : > { %747 = vmatpush1.bf16.msra.mxu0 %v1467_v9  ;;  %1433 = vmatpush1.bf16.msra.mxu1 %v1467_v9 }
  0x27   : > { %748 = vmatprep.subr.bf16.mxu0 %v1542_v1  ;;  %1425 = vmatprep.subr.bf16.mxu1 %v1542_v1 }
  0x2a   : > { %749 = vmatpush1.bf16.msra.mxu0 %v1468_v10  ;;  %1434 = vmatpush1.bf16.msra.mxu1 %v1468_v10  ;;  %v1074_v10 = vld [vmem:[%s1683_s27 + $0x10] sm:$0xff] }
  0x2b   : > { %764 = vmatprep.subr.bf16.mxu0 %v1542_v1  ;;  %1426 = vmatprep.subr.bf16.mxu1 %v1542_v1 }
  0x2e   : > { %765 = vmatpush2.bf16.msra.mxu0 %v1469_v11  ;;  %1435 = vmatpush2.bf16.msra.mxu1 %v1469_v11  ;;  %v1090_v11 = vld [vmem:[%s1683_s27 + $0x90] sm:$0xff] }
  0x31   : > { %767 = vmatmul.mubr.bf16.vlgmr.msra.gmra.mxu0 %v1470_v12  ;;  %831 = vmatmul.mubr.bf16.vlgmr.msra.gmra.mxu1 %v1473_v13 }
  0x32   : > { %1398 = vmatprep.mubr.msk.bf16.mxu0 %vm685_vm0, %v1476_v14  ;;  %1406 = vmatprep.mubr.msk.bf16.mxu1 %vm685_vm0, %v1478_v15 }
  0x39   : > { %775 = vmatmul.mubr.bf16.gmra.mxu0 %v1480_v16  ;;  %839 = vmatmul.mubr.bf16.gmra.mxu1 %v1481_v17 }
  0x3a   : > { %1399 = vmatprep.mubr.msk.bf16.mxu0 %vm685_vm0, %v1482_v18  ;;  %1407 = vmatprep.mubr.msk.bf16.mxu1 %vm685_vm0, %v1484_v19 }
  0x41   : > { %783 = vmatmul.mubr.bf16.gmra.mxu0 %v1486_v20  ;;  %847 = vmatmul.mubr.bf16.gmra.mxu1 %v1487_v21 }
  0x42   : > { %1400 = vmatprep.mubr.msk.bf16.mxu0 %vm685_vm0, %v1488_v22  ;;  %1408 = vmatprep.mubr.msk.bf16.mxu1 %vm685_vm0, %v1490_v23 }
  0x49   : > { %791 = vmatmul.mubr.bf16.gmra.mxu0 %v1492_v24  ;;  %855 = vmatmul.mubr.bf16.gmra.mxu1 %v1493_v25  ;;  %v1075_v24 = vld [vmem:[%s1683_s27 + $0x18] sm:$0xff] }
  0x4a   : > { %1401 = vmatprep.mubr.msk.bf16.mxu0 %vm685_vm0, %v1494_v26  ;;  %1409 = vmatprep.mubr.msk.bf16.mxu1 %vm685_vm0, %v1496_v27  ;;  %v1091_v25 = vld [vmem:[%s1683_s27 + $0x98] sm:$0xff] }
  0x51   : > { %799 = vmatmul.mubr.bf16.gmra.mxu0 %v1498_v28  ;;  %863 = vmatmul.mubr.bf16.gmra.mxu1 %v1499_v29 }
  0x52   : > { %1402 = vmatprep.mubr.msk.bf16.mxu0 %vm685_vm0, %v1500_v30  ;;  %1410 = vmatprep.mubr.msk.bf16.mxu1 %vm685_vm0, %v1502_v31 }
  0x59   : > { %807 = vmatmul.mubr.bf16.gmra.mxu0 %v1504_v32  ;;  %871 = vmatmul.mubr.bf16.gmra.mxu1 %v1505_v33 }
  0x5a   : > { %1403 = vmatprep.mubr.msk.bf16.mxu0 %vm685_vm0, %v1506_v34  ;;  %1411 = vmatprep.mubr.msk.bf16.mxu1 %vm685_vm0, %v1508_v35 }
  0x61   : > { %815 = vmatmul.mubr.bf16.gmra.mxu0 %v1510_v36  ;;  %879 = vmatmul.mubr.bf16.gmra.mxu1 %v1511_v37 }
  0x62   : > { %1404 = vmatprep.mubr.msk.bf16.mxu0 %vm685_vm0, %v1512_v38  ;;  %1412 = vmatprep.mubr.msk.bf16.mxu1 %vm685_vm0, %v1514_v39  ;;  %v1076_v38 = vld [vmem:[%s1683_s27 + $0x20] sm:$0xff] }
  0x63   : > { %v1092_v39 = vld [vmem:[%s1683_s27 + $0xa0] sm:$0xff] }
  0x69   : > { %823 = vmatmul.mubr.bf16.gmra.mxu0 %v1516_v40  ;;  %887 = vmatmul.mubr.bf16.gmra.mxu1 %v1517_v41 }
  0xf1   : > { %v768_v43 = vpop.f32.mrf.mxu0  ;;  %v832_v45 = vpop.f32.mrf.mxu1 }
  0xf2   : > { %v1001_v46 = vmul.f32 %v1677_v42, %v768_v43  ;;  %v1017_v47 = vmul.f32 %v1677_v42, %v832_v45 }
  0xf3   : > { %v770_v50 = vpop.f32.mrf.mxu0  ;;  %v834_v51 = vpop.f32.mrf.mxu1 }
  0xf4   : > { %v1040_v52 = vadd.f32 %v1688_v44, %v1001_v46  ;;  %v1056_v53 = vadd.f32 %v1688_v44, %v1017_v47 }
  0xf5   : > { %v771_v54 = vpop.f32.mrf.mxu0  ;;  %v835_v55 = vpop.f32.mrf.mxu1 }
  0xf6   : > { %v1104_v56 = vadd.f32 %v1072_v48, %v1040_v52  ;;  %v1120_v57 = vadd.f32 %v1088_v49, %v1056_v53  ;;  %v1002_v58 = vmul.f32 %v1677_v42, %v771_v54  ;;  %v1018_v59 = vmul.f32 %v1677_v42, %v835_v55  ;;  %v1077_v54 = vld [vmem:[%s1683_s27 + $0x28] sm:$0xff] }
  0xf7   : > { %v773_v62 = vpop.f32.mrf.mxu0  ;;  %v837_v63 = vpop.f32.mrf.mxu1  ;;  %v1093_v55 = vld [vmem:[%s1683_s27 + $0xa8] sm:$0xff] }
  0xf8   : > { %v1136_v0 = vmax.f32 %v1104_v56, 0.0  ;;  %v1152_v1 = vmax.f32 %v1120_v57, 0.0  ;;  %v1041_v2 = vadd.f32 %v1688_v44, %v1002_v58  ;;  %v1057_v3 = vadd.f32 %v1688_v44, %v1018_v59 }
  0xf9   : > { %v776_v4 = vpop.f32.mrf.mxu0  ;;  %v840_v5 = vpop.f32.mrf.mxu1 }
  0xfa   : > { %1168 = vst [vmem:[%s1702_s8] sm:$0xff] %v1136_v0  ;;  %1184 = vst [vmem:[%s1702_s8 + $0x80] sm:$0xff] %v1152_v1  ;;  %v1105_v6 = vadd.f32 %v1073_v60, %v1041_v2  ;;  %v1121_v7 = vadd.f32 %v1089_v61, %v1057_v3  ;;  %v1003_v8 = vmul.f32 %v1677_v42, %v776_v4  ;;  %v1078_v4 = vld [vmem:[%s1683_s27 + $0x30] sm:$0xff] }
  0xfb   : > { %v1019_v9 = vmul.f32 %v1677_v42, %v840_v5  ;;  %v778_v12 = vpop.f32.mrf.mxu0  ;;  %v842_v13 = vpop.f32.mrf.mxu1  ;;  %v1094_v5 = vld [vmem:[%s1683_s27 + $0xb0] sm:$0xff] }
  0xfc   : > { %v1137_v14 = vmax.f32 %v1105_v6, 0.0  ;;  %v1153_v15 = vmax.f32 %v1121_v7, 0.0  ;;  %v1042_v16 = vadd.f32 %v1688_v44, %v1003_v8 }
  0xfd   : > { %v1058_v17 = vadd.f32 %v1688_v44, %v1019_v9  ;;  %v779_v18 = vpop.f32.mrf.mxu0  ;;  %v843_v19 = vpop.f32.mrf.mxu1 }
  0xfe   : > { %1169 = vst [vmem:[%s1702_s8 + $0x8] sm:$0xff] %v1137_v14  ;;  %1185 = vst [vmem:[%s1702_s8 + $0x88] sm:$0xff] %v1153_v15  ;;  %v1106_v20 = vadd.f32 %v1074_v10, %v1042_v16  ;;  %v1004_v22 = vmul.f32 %v1677_v42, %v779_v18  ;;  %v1020_v23 = vmul.f32 %v1677_v42, %v843_v19  ;;  %v1079_v18 = vld [vmem:[%s1683_s27 + $0x38] sm:$0xff] }
  0xff   : > { %v1122_v21 = vadd.f32 %v1090_v11, %v1058_v17  ;;  %v781_v26 = vpop.f32.mrf.mxu0  ;;  %v845_v27 = vpop.f32.mrf.mxu1  ;;  %v1095_v19 = vld [vmem:[%s1683_s27 + $0xb8] sm:$0xff] }
 0x100   : > { %v1138_v28 = vmax.f32 %v1106_v20, 0.0  ;;  %v1043_v30 = vadd.f32 %v1688_v44, %v1004_v22  ;;  %v1059_v31 = vadd.f32 %v1688_v44, %v1020_v23 }
 0x101   : > { %v1154_v29 = vmax.f32 %v1122_v21, 0.0  ;;  %v784_v32 = vpop.f32.mrf.mxu0  ;;  %v848_v33 = vpop.f32.mrf.mxu1 }
 0x102   : > { %1170 = vst [vmem:[%s1702_s8 + $0x10] sm:$0xff] %v1138_v28  ;;  %v1107_v34 = vadd.f32 %v1075_v24, %v1043_v30  ;;  %v1123_v35 = vadd.f32 %v1091_v25, %v1059_v31  ;;  %v1005_v36 = vmul.f32 %v1677_v42, %v784_v32  ;;  %v1021_v37 = vmul.f32 %v1677_v42, %v848_v33  ;;  %v1080_v32 = vld [vmem:[%s1683_s27 + $0x40] sm:$0xff] }
 0x103   : > { %1186 = vst [vmem:[%s1702_s8 + $0x90] sm:$0xff] %v1154_v29  ;;  %v786_v40 = vpop.f32.mrf.mxu0  ;;  %v850_v41 = vpop.f32.mrf.mxu1  ;;  %v1096_v33 = vld [vmem:[%s1683_s27 + $0xc0] sm:$0xff] }
 0x104   : > { %v1139_v43 = vmax.f32 %v1107_v34, 0.0  ;;  %v1155_v45 = vmax.f32 %v1123_v35, 0.0  ;;  %v1044_v46 = vadd.f32 %v1688_v44, %v1005_v36  ;;  %v1060_v47 = vadd.f32 %v1688_v44, %v1021_v37 }
 0x105   : > { %v787_v48 = vpop.f32.mrf.mxu0  ;;  %v851_v49 = vpop.f32.mrf.mxu1 }
 0x106   : > { %1171 = vst [vmem:[%s1702_s8 + $0x18] sm:$0xff] %v1139_v43  ;;  %1187 = vst [vmem:[%s1702_s8 + $0x98] sm:$0xff] %v1155_v45  ;;  %v1108_v50 = vadd.f32 %v1076_v38, %v1044_v46  ;;  %v1124_v51 = vadd.f32 %v1092_v39, %v1060_v47  ;;  %v1006_v52 = vmul.f32 %v1677_v42, %v787_v48  ;;  %v1081_v48 = vld [vmem:[%s1683_s27 + $0x48] sm:$0xff] }
 0x107   : > { %v1022_v53 = vmul.f32 %v1677_v42, %v851_v49  ;;  %v789_v56 = vpop.f32.mrf.mxu0  ;;  %v853_v57 = vpop.f32.mrf.mxu1  ;;  %v1097_v49 = vld [vmem:[%s1683_s27 + $0xc8] sm:$0xff] }
 0x108   : > { %v1140_v58 = vmax.f32 %v1108_v50, 0.0  ;;  %v1156_v59 = vmax.f32 %v1124_v51, 0.0  ;;  %v1045_v60 = vadd.f32 %v1688_v44, %v1006_v52 }
 0x109   : > { %v1061_v61 = vadd.f32 %v1688_v44, %v1022_v53  ;;  %v792_v62 = vpop.f32.mrf.mxu0  ;;  %v856_v63 = vpop.f32.mrf.mxu1 }
 0x10a   : > { %1172 = vst [vmem:[%s1702_s8 + $0x20] sm:$0xff] %v1140_v58  ;;  %1188 = vst [vmem:[%s1702_s8 + $0xa0] sm:$0xff] %v1156_v59  ;;  %v1109_v0 = vadd.f32 %v1077_v54, %v1045_v60  ;;  %v1007_v2 = vmul.f32 %v1677_v42, %v792_v62  ;;  %v1023_v3 = vmul.f32 %v1677_v42, %v856_v63  ;;  %v1082_v62 = vld [vmem:[%s1683_s27 + $0x50] sm:$0xff] }
 0x10b   : > { %v1125_v1 = vadd.f32 %v1093_v55, %v1061_v61  ;;  %v794_v6 = vpop.f32.mrf.mxu0  ;;  %v858_v7 = vpop.f32.mrf.mxu1  ;;  %v1098_v63 = vld [vmem:[%s1683_s27 + $0xd0] sm:$0xff] }
 0x10c   : > { %v1141_v8 = vmax.f32 %v1109_v0, 0.0  ;;  %v1046_v10 = vadd.f32 %v1688_v44, %v1007_v2  ;;  %v1062_v11 = vadd.f32 %v1688_v44, %v1023_v3 }
 0x10d   : > { %v1157_v9 = vmax.f32 %v1125_v1, 0.0  ;;  %v795_v12 = vpop.f32.mrf.mxu0  ;;  %v859_v13 = vpop.f32.mrf.mxu1 }
 0x10e   : > { %1173 = vst [vmem:[%s1702_s8 + $0x28] sm:$0xff] %v1141_v8  ;;  %v1110_v14 = vadd.f32 %v1078_v4, %v1046_v10  ;;  %v1126_v15 = vadd.f32 %v1094_v5, %v1062_v11  ;;  %v1008_v16 = vmul.f32 %v1677_v42, %v795_v12  ;;  %v1024_v17 = vmul.f32 %v1677_v42, %v859_v13  ;;  %v1083_v12 = vld [vmem:[%s1683_s27 + $0x58] sm:$0xff] }
 0x10f   : > { %1189 = vst [vmem:[%s1702_s8 + $0xa8] sm:$0xff] %v1157_v9  ;;  %v797_v20 = vpop.f32.mrf.mxu0  ;;  %v861_v21 = vpop.f32.mrf.mxu1  ;;  %v1099_v13 = vld [vmem:[%s1683_s27 + $0xd8] sm:$0xff] }
 0x110   : > { %v1142_v22 = vmax.f32 %v1110_v14, 0.0  ;;  %v1158_v23 = vmax.f32 %v1126_v15, 0.0  ;;  %v1047_v24 = vadd.f32 %v1688_v44, %v1008_v16  ;;  %v1063_v25 = vadd.f32 %v1688_v44, %v1024_v17 }
 0x111   : > { %v800_v26 = vpop.f32.mrf.mxu0  ;;  %v864_v27 = vpop.f32.mrf.mxu1 }
 0x112   : > { %1174 = vst [vmem:[%s1702_s8 + $0x30] sm:$0xff] %v1142_v22  ;;  %1190 = vst [vmem:[%s1702_s8 + $0xb0] sm:$0xff] %v1158_v23  ;;  %v1111_v28 = vadd.f32 %v1079_v18, %v1047_v24  ;;  %v1127_v29 = vadd.f32 %v1095_v19, %v1063_v25  ;;  %v1009_v30 = vmul.f32 %v1677_v42, %v800_v26  ;;  %v1084_v26 = vld [vmem:[%s1683_s27 + $0x60] sm:$0xff] }
 0x113   : > { %v1025_v31 = vmul.f32 %v1677_v42, %v864_v27  ;;  %v802_v34 = vpop.f32.mrf.mxu0  ;;  %v866_v35 = vpop.f32.mrf.mxu1  ;;  %v1100_v27 = vld [vmem:[%s1683_s27 + $0xe0] sm:$0xff] }
 0x114   : > { %v1143_v36 = vmax.f32 %v1111_v28, 0.0  ;;  %v1159_v37 = vmax.f32 %v1127_v29, 0.0  ;;  %v1048_v38 = vadd.f32 %v1688_v44, %v1009_v30 }
 0x115   : > { %v1064_v39 = vadd.f32 %v1688_v44, %v1025_v31  ;;  %v803_v40 = vpop.f32.mrf.mxu0  ;;  %v867_v41 = vpop.f32.mrf.mxu1 }
 0x116   : > { %1175 = vst [vmem:[%s1702_s8 + $0x38] sm:$0xff] %v1143_v36  ;;  %1191 = vst [vmem:[%s1702_s8 + $0xb8] sm:$0xff] %v1159_v37  ;;  %v1112_v43 = vadd.f32 %v1080_v32, %v1048_v38  ;;  %v1010_v46 = vmul.f32 %v1677_v42, %v803_v40  ;;  %v1026_v47 = vmul.f32 %v1677_v42, %v867_v41  ;;  %v1085_v40 = vld [vmem:[%s1683_s27 + $0x68] sm:$0xff] }
 0x117   : > { %v1128_v45 = vadd.f32 %v1096_v33, %v1064_v39  ;;  %v805_v50 = vpop.f32.mrf.mxu0  ;;  %v869_v51 = vpop.f32.mrf.mxu1  ;;  %v1101_v41 = vld [vmem:[%s1683_s27 + $0xe8] sm:$0xff] }
 0x118   : > { %v1144_v52 = vmax.f32 %v1112_v43, 0.0  ;;  %v1049_v54 = vadd.f32 %v1688_v44, %v1010_v46  ;;  %v1065_v55 = vadd.f32 %v1688_v44, %v1026_v47 }
 0x119   : > { %v1160_v53 = vmax.f32 %v1128_v45, 0.0  ;;  %v808_v56 = vpop.f32.mrf.mxu0  ;;  %v872_v57 = vpop.f32.mrf.mxu1 }
 0x11a   : > { %1176 = vst [vmem:[%s1702_s8 + $0x40] sm:$0xff] %v1144_v52  ;;  %v1113_v58 = vadd.f32 %v1081_v48, %v1049_v54  ;;  %v1129_v59 = vadd.f32 %v1097_v49, %v1065_v55  ;;  %v1011_v60 = vmul.f32 %v1677_v42, %v808_v56  ;;  %v1027_v61 = vmul.f32 %v1677_v42, %v872_v57  ;;  %v1086_v56 = vld [vmem:[%s1683_s27 + $0x70] sm:$0xff] }
 0x11b   : > { %1192 = vst [vmem:[%s1702_s8 + $0xc0] sm:$0xff] %v1160_v53  ;;  %v810_v0 = vpop.f32.mrf.mxu0  ;;  %v874_v1 = vpop.f32.mrf.mxu1  ;;  %v1102_v57 = vld [vmem:[%s1683_s27 + $0xf0] sm:$0xff] }
 0x11c   : > { %v1145_v2 = vmax.f32 %v1113_v58, 0.0  ;;  %v1161_v3 = vmax.f32 %v1129_v59, 0.0  ;;  %v1050_v4 = vadd.f32 %v1688_v44, %v1011_v60  ;;  %v1066_v5 = vadd.f32 %v1688_v44, %v1027_v61 }
 0x11d   : > { %v811_v6 = vpop.f32.mrf.mxu0  ;;  %v875_v7 = vpop.f32.mrf.mxu1 }
 0x11e   : > { %1177 = vst [vmem:[%s1702_s8 + $0x48] sm:$0xff] %v1145_v2  ;;  %1193 = vst [vmem:[%s1702_s8 + $0xc8] sm:$0xff] %v1161_v3  ;;  %v1114_v8 = vadd.f32 %v1082_v62, %v1050_v4  ;;  %v1130_v9 = vadd.f32 %v1098_v63, %v1066_v5  ;;  %v1012_v10 = vmul.f32 %v1677_v42, %v811_v6  ;;  %v1087_v6 = vld [vmem:[%s1683_s27 + $0x78] sm:$0xff] }
 0x11f   : > { %v1028_v11 = vmul.f32 %v1677_v42, %v875_v7  ;;  %v813_v14 = vpop.f32.mrf.mxu0  ;;  %v877_v15 = vpop.f32.mrf.mxu1  ;;  %v1103_v7 = vld [vmem:[%s1683_s27 + $0xf8] sm:$0xff] }
 0x120   : > { %v1146_v16 = vmax.f32 %v1114_v8, 0.0  ;;  %v1162_v17 = vmax.f32 %v1130_v9, 0.0  ;;  %v1051_v18 = vadd.f32 %v1688_v44, %v1012_v10 }
 0x121   : > { %v1067_v19 = vadd.f32 %v1688_v44, %v1028_v11  ;;  %v816_v20 = vpop.f32.mrf.mxu0  ;;  %v880_v21 = vpop.f32.mrf.mxu1 }
 0x122   : > { %1178 = vst [vmem:[%s1702_s8 + $0x50] sm:$0xff] %v1146_v16  ;;  %1194 = vst [vmem:[%s1702_s8 + $0xd0] sm:$0xff] %v1162_v17  ;;  %v1115_v22 = vadd.f32 %v1083_v12, %v1051_v18  ;;  %v1013_v24 = vmul.f32 %v1677_v42, %v816_v20  ;;  %v1029_v25 = vmul.f32 %v1677_v42, %v880_v21 }
 0x123   : > { %v1131_v23 = vadd.f32 %v1099_v13, %v1067_v19  ;;  %v818_v28 = vpop.f32.mrf.mxu0  ;;  %v882_v29 = vpop.f32.mrf.mxu1 }
 0x124   : > { %v1147_v30 = vmax.f32 %v1115_v22, 0.0  ;;  %v1052_v32 = vadd.f32 %v1688_v44, %v1013_v24  ;;  %v1068_v33 = vadd.f32 %v1688_v44, %v1029_v25 }
 0x125   : > { %v1163_v31 = vmax.f32 %v1131_v23, 0.0  ;;  %v819_v34 = vpop.f32.mrf.mxu0  ;;  %v883_v35 = vpop.f32.mrf.mxu1 }
 0x126   : > { %1179 = vst [vmem:[%s1702_s8 + $0x58] sm:$0xff] %v1147_v30  ;;  %v1116_v36 = vadd.f32 %v1084_v26, %v1052_v32  ;;  %v1132_v37 = vadd.f32 %v1100_v27, %v1068_v33  ;;  %v1014_v38 = vmul.f32 %v1677_v42, %v819_v34  ;;  %v1030_v39 = vmul.f32 %v1677_v42, %v883_v35 }
 0x127   : > { %1195 = vst [vmem:[%s1702_s8 + $0xd8] sm:$0xff] %v1163_v31  ;;  %v821_v43 = vpop.f32.mrf.mxu0  ;;  %v885_v45 = vpop.f32.mrf.mxu1 }
 0x128   : > { %v1148_v46 = vmax.f32 %v1116_v36, 0.0  ;;  %v1164_v47 = vmax.f32 %v1132_v37, 0.0  ;;  %v1053_v48 = vadd.f32 %v1688_v44, %v1014_v38  ;;  %v1069_v49 = vadd.f32 %v1688_v44, %v1030_v39 }
 0x129   : > { %v824_v50 = vpop.f32.mrf.mxu0  ;;  %v888_v51 = vpop.f32.mrf.mxu1 }
 0x12a   : > { %1180 = vst [vmem:[%s1702_s8 + $0x60] sm:$0xff] %v1148_v46  ;;  %1196 = vst [vmem:[%s1702_s8 + $0xe0] sm:$0xff] %v1164_v47  ;;  %v1117_v52 = vadd.f32 %v1085_v40, %v1053_v48  ;;  %v1133_v53 = vadd.f32 %v1101_v41, %v1069_v49  ;;  %v1015_v54 = vmul.f32 %v1677_v42, %v824_v50 }
 0x12b   : > { %v1031_v55 = vmul.f32 %v1677_v42, %v888_v51  ;;  %v826_v58 = vpop.f32.mrf.mxu0  ;;  %v890_v59 = vpop.f32.mrf.mxu1 }
 0x12c   : > { %v1149_v60 = vmax.f32 %v1117_v52, 0.0  ;;  %v1165_v61 = vmax.f32 %v1133_v53, 0.0  ;;  %v1054_v62 = vadd.f32 %v1688_v44, %v1015_v54 }
 0x12d   : > { %v1070_v63 = vadd.f32 %v1688_v44, %v1031_v55  ;;  %v827_v0 = vpop.f32.mrf.mxu0  ;;  %v891_v1 = vpop.f32.mrf.mxu1 }
 0x12e   : > { %1181 = vst [vmem:[%s1702_s8 + $0x68] sm:$0xff] %v1149_v60  ;;  %1197 = vst [vmem:[%s1702_s8 + $0xe8] sm:$0xff] %v1165_v61  ;;  %v1118_v2 = vadd.f32 %v1086_v56, %v1054_v62  ;;  %v1016_v4 = vmul.f32 %v1677_v42, %v827_v0  ;;  %v1032_v5 = vmul.f32 %v1677_v42, %v891_v1 }
 0x12f   : > { %v1134_v3 = vadd.f32 %v1102_v57, %v1070_v63  ;;  %v829_v8 = vpop.f32.mrf.mxu0  ;;  %v893_v9 = vpop.f32.mrf.mxu1 }
 0x130   : > { %v1150_v10 = vmax.f32 %v1118_v2, 0.0  ;;  %v1055_v12 = vadd.f32 %v1688_v44, %v1016_v4  ;;  %v1071_v13 = vadd.f32 %v1688_v44, %v1032_v5 }
 0x131   : > { %v1166_v11 = vmax.f32 %v1134_v3, 0.0 }
 0x132   : > { %1182 = vst [vmem:[%s1702_s8 + $0x70] sm:$0xff] %v1150_v10  ;;  %v1119_v14 = vadd.f32 %v1087_v6, %v1055_v12  ;;  %v1135_v15 = vadd.f32 %v1103_v7, %v1071_v13 }
 0x133   : > { %1198 = vst [vmem:[%s1702_s8 + $0xf0] sm:$0xff] %v1166_v11 }
 0x134   : > { %v1151_v16 = vmax.f32 %v1119_v14, 0.0  ;;  %v1167_v17 = vmax.f32 %v1135_v15, 0.0 }
 0x136   : > { %1183 = vst [vmem:[%s1702_s8 + $0x78] sm:$0xff] %v1151_v16  ;;  %1199 = vst [vmem:[%s1702_s8 + $0xf8] sm:$0xff] %v1167_v17 }
 0x137 PF: > { %s15_s20 = sadd.s32 1, %s1540_s20   ;;  %s1839_s18 = smov %s1536_s19 }
 0x138   : > { %p12_p5 = scmp.ge.s32.totalorder %s15_s20, 4   ;;  %s1840_s19 = smov %s1842_s21 }
 0x13a   :  { %14 = sbr.rel (!%p12_p5) target bundleno = 2 (0x2), region = 90 }

// kernel: custom_model_forward.26
= control target key start
LH: loop header
LB: loop body
LE: loop exit
PB: predicated region body
PF: predicated region fallthrough
CT: control target
= control target key end

     0   :  { %v556_v0 = vmov 0   ;;  %vm214_vm0 = vcmask 130048   ;;  %s755_s1 = inlined_call_operand.vmem [shape: bf16[144,128], index: 1, kind: input, shape index: {}]   ;;  %s756_s0 = inlined_call_operand.vmem [shape: bf16[128,144], index: 0, kind: input, shape index: {}]   ;;  %s757_s2 = inlined_call_operand.vmem [shape: f32[1,128], index: 2, kind: input, shape index: {}]   ;;  %s758_s3 = inlined_call_operand.vmem [shape: f32[1,128], index: 3, kind: input, shape index: {}]   ;;  %s759_s4 = inlined_call_operand.vmem [shape: f32[128,128], index: 4, kind: output, shape index: {}]  }
   0x1   :  { %239 = vmatprep.subr.bf16.mxu0 %v556_v0  ;;  %504 = vmatprep.subr.bf16.mxu1 %v556_v0  ;;  %v523_v1 = vld [vmem:[%s755_s1 + $0x38] sm:$0xff]   ;;  %v524_v2 = vld [vmem:[%s755_s1 + $0x30] sm:$0xff]   ;;  %v525_v3 = vld [vmem:[%s755_s1 + $0x28] sm:$0xff]  }
   0x2   :  { %240 = vmatpush1.bf16.msra.mxu0 %v523_v1  ;;  %513 = vmatpush1.bf16.msra.mxu1 %v523_v1  ;;  %v526_v4 = vld [vmem:[%s755_s1 + $0x20] sm:$0xff]   ;;  %v527_v7 = vld [vmem:[%s755_s1 + $0x18] sm:$0xff]   ;;  %v528_v8 = vld [vmem:[%s755_s1 + $0x10] sm:$0xff]  }
   0x3   :  { %241 = vmatprep.subr.bf16.mxu0 %v556_v0  ;;  %505 = vmatprep.subr.bf16.mxu1 %v556_v0  ;;  %v534_v5 = vld [vmem:[%s756_s0 + $0x4] ss:$8 sps:$4 sm:$0xff]   ;;  %v532_v12 = vld [vmem:[%s756_s0] ss:$8 sps:$4 sm:$0xff]   ;;  %v538_v14 = vld [vmem:[%s756_s0 + $0x14] ss:$8 sps:$4 sm:$0xff]  }
   0x4   :  { %v537_v6 = vld [vmem:[%s756_s0 + $0x44] ss:$8 sps:$4 sm:$0xff]   ;;  %494 = vmatprep.mubr.msk.bf16.mxu0 %vm214_vm0, %v534_v5  ;;  %v535_v13 = vld [vmem:[%s756_s0 + $0x40] ss:$8 sps:$4 sm:$0xff]   ;;  %v540_v15 = vld [vmem:[%s756_s0 + $0x54] ss:$8 sps:$4 sm:$0xff]  }
   0x5   :  { %498 = vmatprep.mubr.msk.bf16.mxu1 %vm214_vm0, %v537_v6  ;;  %v529_v9 = vld [vmem:[%s755_s1 + $0x8] sm:$0xff]   ;;  %v530_v10 = vld [vmem:[%s755_s1] sm:$0xff]   ;;  %v542_v16 = vld [vmem:[%s756_s0 + $0x10] ss:$8 sps:$4 sm:$0xff]  }
   0x6   :  { %242 = vmatpush1.bf16.msra.mxu0 %v524_v2  ;;  %514 = vmatpush1.bf16.msra.mxu1 %v524_v2  ;;  %v531_v11 = vld [vmem:[%s755_s1 + $0x40] sm:$0xff]   ;;  %v543_v17 = vld [vmem:[%s756_s0 + $0x50] ss:$8 sps:$4 sm:$0xff]   ;;  %v550_v22 = vld [vmem:[%s756_s0 + $0x34] ss:$8 sps:$4 sm:$0xff]  }
   0x7   :  { %243 = vmatprep.subr.bf16.mxu0 %v556_v0  ;;  %506 = vmatprep.subr.bf16.mxu1 %v556_v0  ;;  %v544_v18 = vld [vmem:[%s756_s0 + $0x24] ss:$8 sps:$4 sm:$0xff]   ;;  %v548_v20 = vld [vmem:[%s756_s0 + $0x20] ss:$8 sps:$4 sm:$0xff]   ;;  %v552_v23 = vld [vmem:[%s756_s0 + $0x74] ss:$8 sps:$4 sm:$0xff]  }
   0x8   :  { %v546_v19 = vld [vmem:[%s756_s0 + $0x64] ss:$8 sps:$4 sm:$0xff]   ;;  %v549_v21 = vld [vmem:[%s756_s0 + $0x60] ss:$8 sps:$4 sm:$0xff]   ;;  %v554_v24 = vld [vmem:[%s756_s0 + $0x30] ss:$8 sps:$4 sm:$0xff]  }
   0x9   :  { %v555_v25 = vld [vmem:[%s756_s0 + $0x70] ss:$8 sps:$4 sm:$0xff]   ;;  %v668_v26 = vld [vmem:[%s757_s2] ss:$0 sm:$0xff] }
   0xa   :  { %244 = vmatpush1.bf16.msra.mxu0 %v525_v3  ;;  %515 = vmatpush1.bf16.msra.mxu1 %v525_v3  ;;  %v673_v28 = vld [vmem:[%s758_s3] ss:$0 sm:$0xff] }
   0xb   :  { %245 = vmatprep.subr.bf16.mxu0 %v556_v0  ;;  %507 = vmatprep.subr.bf16.mxu1 %v556_v0 }
   0xe   :  { %246 = vmatpush1.bf16.msra.mxu0 %v526_v4  ;;  %516 = vmatpush1.bf16.msra.mxu1 %v526_v4 }
   0xf   :  { %247 = vmatprep.subr.bf16.mxu0 %v556_v0  ;;  %508 = vmatprep.subr.bf16.mxu1 %v556_v0 }
  0x12   :  { %248 = vmatpush1.bf16.msra.mxu0 %v527_v7  ;;  %517 = vmatpush1.bf16.msra.mxu1 %v527_v7 }
  0x13   :  { %249 = vmatprep.subr.bf16.mxu0 %v556_v0  ;;  %509 = vmatprep.subr.bf16.mxu1 %v556_v0 }
  0x16   :  { %250 = vmatpush1.bf16.msra.mxu0 %v528_v8  ;;  %518 = vmatpush1.bf16.msra.mxu1 %v528_v8 }
  0x17   :  { %251 = vmatprep.subr.bf16.mxu0 %v556_v0  ;;  %510 = vmatprep.subr.bf16.mxu1 %v556_v0 }
  0x1a   :  { %252 = vmatpush1.bf16.msra.mxu0 %v529_v9  ;;  %519 = vmatpush1.bf16.msra.mxu1 %v529_v9 }
  0x1b   :  { %253 = vmatprep.subr.bf16.mxu0 %v556_v0  ;;  %511 = vmatprep.subr.bf16.mxu1 %v556_v0 }
  0x1e   :  { %254 = vmatpush1.bf16.msra.mxu0 %v530_v10  ;;  %520 = vmatpush1.bf16.msra.mxu1 %v530_v10 }
  0x1f   :  { %269 = vmatprep.subr.bf16.mxu0 %v556_v0  ;;  %512 = vmatprep.subr.bf16.mxu1 %v556_v0 }
  0x22   :  { %270 = vmatpush2.bf16.msra.mxu0 %v531_v11  ;;  %521 = vmatpush2.bf16.msra.mxu1 %v531_v11 }
  0x25   :  { %272 = vmatmul.mubr.bf16.vlgmr.msra.gmra.mxu0 %v532_v12  ;;  %304 = vmatmul.mubr.bf16.vlgmr.msra.gmra.mxu1 %v535_v13 }
  0x26   :  { %495 = vmatprep.mubr.msk.bf16.mxu0 %vm214_vm0, %v538_v14  ;;  %499 = vmatprep.mubr.msk.bf16.mxu1 %vm214_vm0, %v540_v15 }
  0x2d   :  { %280 = vmatmul.mubr.bf16.gmra.mxu0 %v542_v16  ;;  %312 = vmatmul.mubr.bf16.gmra.mxu1 %v543_v17 }
  0x2e   :  { %496 = vmatprep.mubr.msk.bf16.mxu0 %vm214_vm0, %v544_v18  ;;  %500 = vmatprep.mubr.msk.bf16.mxu1 %vm214_vm0, %v546_v19 }
  0x35   :  { %288 = vmatmul.mubr.bf16.gmra.mxu0 %v548_v20  ;;  %320 = vmatmul.mubr.bf16.gmra.mxu1 %v549_v21 }
  0x36   :  { %497 = vmatprep.mubr.msk.bf16.mxu0 %vm214_vm0, %v550_v22  ;;  %501 = vmatprep.mubr.msk.bf16.mxu1 %vm214_vm0, %v552_v23 }
  0x3d   :  { %296 = vmatmul.mubr.bf16.gmra.mxu0 %v554_v24  ;;  %328 = vmatmul.mubr.bf16.gmra.mxu1 %v555_v25 }
  0xe5   :  { %v273_v27 = vpop.f32.mrf.mxu0  ;;  %v305_v29 = vpop.f32.mrf.mxu1 }
  0xe6   :  { %v394_v30 = vmul.f32 %v668_v26, %v273_v27  ;;  %v402_v31 = vmul.f32 %v668_v26, %v305_v29 }
  0xe7   :  { %v275_v32 = vpop.f32.mrf.mxu0  ;;  %v307_v33 = vpop.f32.mrf.mxu1 }
  0xe8   :  { %v417_v34 = vadd.f32 %v673_v28, %v394_v30  ;;  %v425_v35 = vadd.f32 %v673_v28, %v402_v31 }
  0xe9   :  { %v276_v36 = vpop.f32.mrf.mxu0  ;;  %v308_v37 = vpop.f32.mrf.mxu1 }
  0xea   :  { %v433_v38 = vmax.f32 %v417_v34, 0.0  ;;  %v441_v39 = vmax.f32 %v425_v35, 0.0  ;;  %v395_v40 = vmul.f32 %v668_v26, %v276_v36  ;;  %v403_v41 = vmul.f32 %v668_v26, %v308_v37 }
  0xeb   :  { %v278_v42 = vpop.f32.mrf.mxu0  ;;  %v310_v43 = vpop.f32.mrf.mxu1 }
  0xec   :  { %449 = vst [vmem:[%s759_s4] sm:$0xff] %v433_v38  ;;  %457 = vst [vmem:[%s759_s4 + $0x40] sm:$0xff] %v441_v39  ;;  %v418_v44 = vadd.f32 %v673_v28, %v395_v40  ;;  %v426_v45 = vadd.f32 %v673_v28, %v403_v41 }
  0xed   :  { %v281_v46 = vpop.f32.mrf.mxu0  ;;  %v313_v47 = vpop.f32.mrf.mxu1 }
  0xee   :  { %v434_v48 = vmax.f32 %v418_v44, 0.0  ;;  %v442_v49 = vmax.f32 %v426_v45, 0.0  ;;  %v396_v50 = vmul.f32 %v668_v26, %v281_v46  ;;  %v404_v51 = vmul.f32 %v668_v26, %v313_v47 }
  0xef   :  { %v283_v52 = vpop.f32.mrf.mxu0  ;;  %v315_v53 = vpop.f32.mrf.mxu1 }
  0xf0   :  { %450 = vst [vmem:[%s759_s4 + $0x8] sm:$0xff] %v434_v48  ;;  %458 = vst [vmem:[%s759_s4 + $0x48] sm:$0xff] %v442_v49  ;;  %v419_v54 = vadd.f32 %v673_v28, %v396_v50  ;;  %v427_v55 = vadd.f32 %v673_v28, %v404_v51 }
  0xf1   :  { %v284_v56 = vpop.f32.mrf.mxu0  ;;  %v316_v57 = vpop.f32.mrf.mxu1 }
  0xf2   :  { %v435_v58 = vmax.f32 %v419_v54, 0.0  ;;  %v443_v59 = vmax.f32 %v427_v55, 0.0  ;;  %v397_v60 = vmul.f32 %v668_v26, %v284_v56  ;;  %v405_v61 = vmul.f32 %v668_v26, %v316_v57 }
  0xf3   :  { %v286_v62 = vpop.f32.mrf.mxu0  ;;  %v318_v63 = vpop.f32.mrf.mxu1 }
  0xf4   :  { %451 = vst [vmem:[%s759_s4 + $0x10] sm:$0xff] %v435_v58  ;;  %459 = vst [vmem:[%s759_s4 + $0x50] sm:$0xff] %v443_v59  ;;  %v420_v0 = vadd.f32 %v673_v28, %v397_v60  ;;  %v428_v1 = vadd.f32 %v673_v28, %v405_v61 }
  0xf5   :  { %v289_v2 = vpop.f32.mrf.mxu0  ;;  %v321_v3 = vpop.f32.mrf.mxu1 }
  0xf6   :  { %v436_v4 = vmax.f32 %v420_v0, 0.0  ;;  %v444_v5 = vmax.f32 %v428_v1, 0.0  ;;  %v398_v6 = vmul.f32 %v668_v26, %v289_v2  ;;  %v406_v7 = vmul.f32 %v668_v26, %v321_v3 }
  0xf7   :  { %v291_v8 = vpop.f32.mrf.mxu0  ;;  %v323_v9 = vpop.f32.mrf.mxu1 }
  0xf8   :  { %452 = vst [vmem:[%s759_s4 + $0x18] sm:$0xff] %v436_v4  ;;  %460 = vst [vmem:[%s759_s4 + $0x58] sm:$0xff] %v444_v5  ;;  %v421_v10 = vadd.f32 %v673_v28, %v398_v6  ;;  %v429_v11 = vadd.f32 %v673_v28, %v406_v7 }
  0xf9   :  { %v292_v12 = vpop.f32.mrf.mxu0  ;;  %v324_v13 = vpop.f32.mrf.mxu1 }
  0xfa   :  { %v437_v14 = vmax.f32 %v421_v10, 0.0  ;;  %v445_v15 = vmax.f32 %v429_v11, 0.0  ;;  %v399_v16 = vmul.f32 %v668_v26, %v292_v12  ;;  %v407_v17 = vmul.f32 %v668_v26, %v324_v13 }
  0xfb   :  { %v294_v18 = vpop.f32.mrf.mxu0  ;;  %v326_v19 = vpop.f32.mrf.mxu1 }
  0xfc   :  { %453 = vst [vmem:[%s759_s4 + $0x20] sm:$0xff] %v437_v14  ;;  %461 = vst [vmem:[%s759_s4 + $0x60] sm:$0xff] %v445_v15  ;;  %v422_v20 = vadd.f32 %v673_v28, %v399_v16  ;;  %v430_v21 = vadd.f32 %v673_v28, %v407_v17 }
  0xfd   :  { %v297_v22 = vpop.f32.mrf.mxu0  ;;  %v329_v23 = vpop.f32.mrf.mxu1 }
  0xfe   :  { %v438_v24 = vmax.f32 %v422_v20, 0.0  ;;  %v446_v25 = vmax.f32 %v430_v21, 0.0  ;;  %v400_v27 = vmul.f32 %v668_v26, %v297_v22  ;;  %v408_v29 = vmul.f32 %v668_v26, %v329_v23 }
  0xff   :  { %v299_v30 = vpop.f32.mrf.mxu0  ;;  %v331_v31 = vpop.f32.mrf.mxu1 }
 0x100   :  { %454 = vst [vmem:[%s759_s4 + $0x28] sm:$0xff] %v438_v24  ;;  %462 = vst [vmem:[%s759_s4 + $0x68] sm:$0xff] %v446_v25  ;;  %v423_v32 = vadd.f32 %v673_v28, %v400_v27  ;;  %v431_v33 = vadd.f32 %v673_v28, %v408_v29 }
 0x101   :  { %v300_v34 = vpop.f32.mrf.mxu0  ;;  %v332_v35 = vpop.f32.mrf.mxu1 }
 0x102   :  { %v439_v36 = vmax.f32 %v423_v32, 0.0  ;;  %v447_v37 = vmax.f32 %v431_v33, 0.0  ;;  %v401_v38 = vmul.f32 %v668_v26, %v300_v34  ;;  %v409_v39 = vmul.f32 %v668_v26, %v332_v35 }
 0x103   :  { %v302_v40 = vpop.f32.mrf.mxu0  ;;  %v334_v41 = vpop.f32.mrf.mxu1 }
 0x104   :  { %455 = vst [vmem:[%s759_s4 + $0x30] sm:$0xff] %v439_v36  ;;  %463 = vst [vmem:[%s759_s4 + $0x70] sm:$0xff] %v447_v37  ;;  %v424_v42 = vadd.f32 %v673_v28, %v401_v38  ;;  %v432_v43 = vadd.f32 %v673_v28, %v409_v39 }
 0x106   :  { %v440_v44 = vmax.f32 %v424_v42, 0.0  ;;  %v448_v45 = vmax.f32 %v432_v43, 0.0 }
 0x108   :  { %456 = vst [vmem:[%s759_s4 + $0x38] sm:$0xff] %v440_v44  ;;  %464 = vst [vmem:[%s759_s4 + $0x78] sm:$0xff] %v448_v45 }

// kernel: custom_model_forward.29
= control target key start
LH: loop header
LB: loop body
LE: loop exit
PB: predicated region body
PF: predicated region fallthrough
CT: control target
= control target key end

     0   :  { %vm350_vm0 = vcmask 261120   ;;  %s1187_s1 = inlined_call_operand.vmem [shape: bf16[288,128], index: 1, kind: input, shape index: {}]   ;;  %s1188_s0 = inlined_call_operand.vmem [shape: bf16[128,288], index: 0, kind: input, shape index: {}]   ;;  %s1189_s2 = inlined_call_operand.vmem [shape: f32[1,128], index: 2, kind: input, shape index: {}]   ;;  %s1190_s3 = inlined_call_operand.vmem [shape: f32[1,128], index: 3, kind: input, shape index: {}]   ;;  %s1191_s4 = inlined_call_operand.vmem [shape: f32[128,128], index: 4, kind: output, shape index: {}]  }
   0x1   :  { %v864_v0 = vld [vmem:[%s1187_s1 + $0x78] sm:$0xff]   ;;  %v866_v2 = vld [vmem:[%s1187_s1 + $0x70] sm:$0xff]   ;;  %v868_v4 = vld [vmem:[%s1187_s1 + $0x68] sm:$0xff]  }
   0x2   :  { %v865_v1 = vld [vmem:[%s1187_s1 + $0x38] sm:$0xff]   ;;  %754 = vmatprep.subr.bf16.mxu0 %v864_v0  ;;  %848 = vmatprep.subr.bf16.mxu1 %v864_v0  ;;  %v867_v3 = vld [vmem:[%s1187_s1 + $0x30] sm:$0xff]   ;;  %v869_v5 = vld [vmem:[%s1187_s1 + $0x28] sm:$0xff]  }
   0x3   :  { %755 = vmatpush3.bf16.msra.mxu0 %v865_v1  ;;  %856 = vmatpush3.bf16.msra.mxu1 %v865_v1  ;;  %v870_v6 = vld [vmem:[%s1187_s1 + $0x60] sm:$0xff]   ;;  %v872_v8 = vld [vmem:[%s1187_s1 + $0x58] sm:$0xff]   ;;  %v874_v10 = vld [vmem:[%s1187_s1 + $0x50] sm:$0xff]  }
   0x4   :  { %756 = vmatprep.subr.bf16.mxu0 %v866_v2  ;;  %849 = vmatprep.subr.bf16.mxu1 %v866_v2  ;;  %v871_v7 = vld [vmem:[%s1187_s1 + $0x20] sm:$0xff]   ;;  %v873_v9 = vld [vmem:[%s1187_s1 + $0x18] sm:$0xff]   ;;  %v875_v13 = vld [vmem:[%s1187_s1 + $0x10] sm:$0xff]  }
   0x5   :  { %v882_v11 = vld [vmem:[%s1188_s0 + $0x4] ss:$12 sps:$4 sm:$0xff]   ;;  %v885_v12 = vld [vmem:[%s1188_s0 + $0x94] ss:$12 sps:$4 sm:$0xff]   ;;  %v876_v14 = vld [vmem:[%s1187_s1 + $0x48] sm:$0xff]  }
   0x6   :  { %407 = vmatprep.mubr.bf16.mxu0 %v882_v11  ;;  %455 = vmatprep.mubr.bf16.mxu1 %v885_v12  ;;  %v877_v15 = vld [vmem:[%s1187_s1 + $0x8] sm:$0xff]   ;;  %v878_v16 = vld [vmem:[%s1187_s1 + $0x40] sm:$0xff]   ;;  %v883_v20 = vld [vmem:[%s1188_s0 + $0x90] ss:$12 sps:$4 sm:$0xff]  }
   0x7   :  { %757 = vmatpush3.bf16.msra.mxu0 %v867_v3  ;;  %857 = vmatpush3.bf16.msra.mxu1 %v867_v3  ;;  %v879_v17 = vld [vmem:[%s1187_s1] sm:$0xff]   ;;  %v886_v19 = vld [vmem:[%s1187_s1 + $0x88] sm:$0xff]   ;;  %v897_v28 = vld [vmem:[%s1188_s0 + $0x30] ss:$12 sps:$4 sm:$0xff]  }
   0x8   :  { %758 = vmatprep.subr.bf16.mxu0 %v868_v4  ;;  %850 = vmatprep.subr.bf16.mxu1 %v868_v4  ;;  %v880_v18 = vld [vmem:[%s1188_s0] ss:$12 sps:$4 sm:$0xff]   ;;  %v887_v21 = vld [vmem:[%s1188_s0 + $0x1c] ss:$12 sps:$4 sm:$0xff]   ;;  %v891_v24 = vld [vmem:[%s1188_s0 + $0x18] ss:$12 sps:$4 sm:$0xff]  }
   0x9   :  { %v889_v22 = vld [vmem:[%s1188_s0 + $0xac] ss:$12 sps:$4 sm:$0xff]   ;;  %v893_v23 = vld [vmem:[%s1187_s1 + $0x80] sm:$0xff]   ;;  %v892_v25 = vld [vmem:[%s1188_s0 + $0xa8] ss:$12 sps:$4 sm:$0xff]  }
   0xa   :  { %v894_v26 = vld [vmem:[%s1188_s0 + $0x34] ss:$12 sps:$4 sm:$0xff]   ;;  %v899_v30 = vld [vmem:[%s1188_s0 + $0x4c] ss:$12 sps:$4 sm:$0xff]   ;;  %v903_v33 = vld [vmem:[%s1188_s0 + $0x50] ss:$12 sps:$4 sm:$0xff]  }
   0xb   :  { %759 = vmatpush3.bf16.msra.mxu0 %v869_v5  ;;  %858 = vmatpush3.bf16.msra.mxu1 %v869_v5  ;;  %v896_v27 = vld [vmem:[%s1188_s0 + $0x8] ss:$12 sps:$4 sm:$0xff]   ;;  %v898_v29 = vld [vmem:[%s1188_s0 + $0x20] ss:$12 sps:$4 sm:$0xff]   ;;  %v901_v31 = vld [vmem:[%s1188_s0 + $0x38] ss:$12 sps:$4 sm:$0xff]  }
   0xc   :  { %760 = vmatprep.subr.bf16.mxu0 %v870_v6  ;;  %851 = vmatprep.subr.bf16.mxu1 %v870_v6  ;;  %v902_v32 = vld [vmem:[%s1188_s0 + $0x48] ss:$12 sps:$4 sm:$0xff]   ;;  %v904_v34 = vld [vmem:[%s1188_s0 + $0x64] ss:$12 sps:$4 sm:$0xff]   ;;  %v907_v36 = vld [vmem:[%s1188_s0 + $0x60] ss:$12 sps:$4 sm:$0xff]  }
   0xd   :  { %v906_v35 = vld [vmem:[%s1188_s0 + $0x68] ss:$12 sps:$4 sm:$0xff]   ;;  %v908_v37 = vld [vmem:[%s1188_s0 + $0x80] ss:$12 sps:$4 sm:$0xff]   ;;  %v911_v39 = vld [vmem:[%s1188_s0 + $0x98] ss:$12 sps:$4 sm:$0xff]  }
   0xe   :  { %v909_v38 = vld [vmem:[%s1188_s0 + $0x7c] ss:$12 sps:$4 sm:$0xff]   ;;  %v912_v40 = vld [vmem:[%s1188_s0 + $0x78] ss:$12 sps:$4 sm:$0xff]   ;;  %v1092_v61 = vld [vmem:[%s1189_s2] ss:$0 sm:$0xff] }
   0xf   :  { %761 = vmatpush3.bf16.msra.mxu0 %v871_v7  ;;  %859 = vmatpush3.bf16.msra.mxu1 %v871_v7  ;;  %v913_v41 = vld [vmem:[%s1188_s0 + $0xb0] ss:$12 sps:$4 sm:$0xff]   ;;  %v1097_v0 = vld [vmem:[%s1190_s3] ss:$0 sm:$0xff] }
  0x10   :  { %762 = vmatprep.subr.bf16.mxu0 %v872_v8  ;;  %852 = vmatprep.subr.bf16.mxu1 %v872_v8 }
  0x13   :  { %763 = vmatpush3.bf16.msra.mxu0 %v873_v9  ;;  %860 = vmatpush3.bf16.msra.mxu1 %v873_v9 }
  0x14   :  { %764 = vmatprep.subr.bf16.mxu0 %v874_v10  ;;  %853 = vmatprep.subr.bf16.mxu1 %v874_v10 }
  0x17   :  { %765 = vmatpush3.bf16.msra.mxu0 %v875_v13  ;;  %861 = vmatpush3.bf16.msra.mxu1 %v875_v13 }
  0x18   :  { %766 = vmatprep.subr.bf16.mxu0 %v876_v14  ;;  %854 = vmatprep.subr.bf16.mxu1 %v876_v14 }
  0x1b   :  { %767 = vmatpush3.bf16.msra.mxu0 %v877_v15  ;;  %862 = vmatpush3.bf16.msra.mxu1 %v877_v15 }
  0x1c   :  { %768 = vmatprep.subr.bf16.mxu0 %v878_v16  ;;  %855 = vmatprep.subr.bf16.mxu1 %v878_v16 }
  0x1f   :  { %769 = vmatpush3.bf16.msra.mxu0 %v879_v17  ;;  %863 = vmatpush3.bf16.msra.mxu1 %v879_v17 }
  0x20   :  { %828 = vmatprep.subr.bf16.mxu1 %v886_v19 }
  0x22   :  { %408 = vmatmul.mubr.bf16.vlgmr.msra.gmra.mxu0 %v880_v18  ;;  %456 = vmatmul.mubr.bf16.vlgmr.msra.gmra.mxu1 %v883_v20 }
  0x23   :  { %829 = vmatpush3.bf16.msra.mxu1 %v886_v19  ;;  %415 = vmatprep.mubr.bf16.mxu0 %v887_v21 }
  0x24   :  { %463 = vmatprep.mubr.bf16.mxu1 %v889_v22  ;;  %830 = vmatprep.subr.bf16.mxu1 %v893_v23 }
  0x27   :  { %831 = vmatpush3.bf16.msra.mxu1 %v893_v23 }
  0x2a   :  { %416 = vmatmul.mubr.bf16.gmra.mxu0 %v891_v24  ;;  %464 = vmatmul.mubr.bf16.gmra.mxu1 %v892_v25 }
  0x2b   :  { %423 = vmatprep.mubr.bf16.mxu0 %v894_v26  ;;  %832 = vmatprep.mubr.msk.bf16.mxu1 %vm350_vm0, %v896_v27 }
  0x32   :  { %424 = vmatmul.mubr.bf16.gmra.mxu0 %v897_v28  ;;  %833 = vmatmul.mubr.msk.bf16.vlgmr.msra.gmra.mxu1 %vm350_vm0, %v898_v29 }
  0x33   :  { %431 = vmatprep.mubr.bf16.mxu0 %v899_v30  ;;  %836 = vmatprep.mubr.msk.bf16.mxu1 %vm350_vm0, %v901_v31 }
  0x3a   :  { %432 = vmatmul.mubr.bf16.gmra.mxu0 %v902_v32  ;;  %837 = vmatmul.mubr.msk.bf16.gmra.mxu1 %vm350_vm0, %v903_v33 }
  0x3b   :  { %439 = vmatprep.mubr.bf16.mxu0 %v904_v34  ;;  %840 = vmatprep.mubr.msk.bf16.mxu1 %vm350_vm0, %v906_v35 }
  0x42   :  { %440 = vmatmul.mubr.bf16.gmra.mxu0 %v907_v36  ;;  %841 = vmatmul.mubr.msk.bf16.gmra.mxu1 %vm350_vm0, %v908_v37 }
  0x43   :  { %447 = vmatprep.mubr.bf16.mxu0 %v909_v38  ;;  %844 = vmatprep.mubr.msk.bf16.mxu1 %vm350_vm0, %v911_v39 }
  0x4a   :  { %448 = vmatmul.mubr.bf16.gmra.mxu0 %v912_v40  ;;  %845 = vmatmul.mubr.msk.bf16.gmra.mxu1 %vm350_vm0, %v913_v41 }
  0xe2   :  { %v770_v42 = vpop.f32.mrf.mxu0  ;;  %v1073_v43 = vpop.f32.mrf.mxu1 }
  0xe4   :  { %v771_v44 = vpop.f32.mrf.mxu0  ;;  %v1075_v45 = vpop.f32.mrf.mxu1 }
  0xe5   :  { %v772_v62 = vadd.f32 %v771_v44, %v770_v42 }
  0xe6   :  { %v773_v46 = vpop.f32.mrf.mxu0  ;;  %v1077_v47 = vpop.f32.mrf.mxu1 }
  0xe8   :  { %v774_v48 = vpop.f32.mrf.mxu0  ;;  %v1079_v49 = vpop.f32.mrf.mxu1 }
  0xe9   :  { %v775_v11 = vadd.f32 %v774_v48, %v773_v46 }
  0xea   :  { %v776_v50 = vpop.f32.mrf.mxu0  ;;  %v1081_v51 = vpop.f32.mrf.mxu1 }
  0xec   :  { %v777_v52 = vpop.f32.mrf.mxu0  ;;  %v1083_v53 = vpop.f32.mrf.mxu1 }
  0xed   :  { %v778_v58 = vadd.f32 %v777_v52, %v776_v50 }
  0xee   :  { %v779_v54 = vpop.f32.mrf.mxu0  ;;  %v1085_v55 = vpop.f32.mrf.mxu1 }
  0xf0   :  { %v780_v56 = vpop.f32.mrf.mxu0  ;;  %v1087_v57 = vpop.f32.mrf.mxu1 }
  0xf1   :  { %v781_v3 = vadd.f32 %v780_v56, %v779_v54 }
  0xf2   :  { %v782_v59 = vpop.f32.mrf.mxu0  ;;  %v834_v60 = vpop.f32.mrf.mxu1 }
  0xf3   :  { %v515_v63 = vadd.f32 %v834_v60, %v778_v58 }
  0xf4   :  { %v783_v1 = vpop.f32.mrf.mxu0  ;;  %v506_v2 = vpop.f32.mrf.mxu1 }
  0xf5   :  { %v629_v4 = vmul.f32 %v1092_v61, %v515_v63  ;;  %v507_v5 = vadd.f32 %v772_v62, %v506_v2  ;;  %v784_v20 = vadd.f32 %v783_v1, %v782_v59 }
  0xf6   :  { %v785_v6 = vpop.f32.mrf.mxu0  ;;  %v835_v7 = vpop.f32.mrf.mxu1 }
  0xf7   :  { %v652_v8 = vadd.f32 %v1097_v0, %v629_v4  ;;  %v627_v9 = vmul.f32 %v1092_v61, %v507_v5  ;;  %v518_v10 = vadd.f32 %v835_v7, %v781_v3  ;;  %v814_v7 = vadd.f32 %v1083_v53, %v1081_v51 }
  0xf8   :  { %v786_v12 = vpop.f32.mrf.mxu0  ;;  %v509_v13 = vpop.f32.mrf.mxu1  ;;  %v808_v51 = vadd.f32 %v1075_v45, %v1073_v43  ;;  %v817_v53 = vadd.f32 %v1087_v57, %v1085_v55 }
  0xf9   :  { %v668_v14 = vmax.f32 %v652_v8, 0.0  ;;  %v650_v15 = vadd.f32 %v1097_v0, %v627_v9  ;;  %v630_v16 = vmul.f32 %v1092_v61, %v518_v10  ;;  %v510_v17 = vadd.f32 %v775_v11, %v509_v13 }
  0xfa   :  { %v788_v18 = vpop.f32.mrf.mxu0  ;;  %v838_v19 = vpop.f32.mrf.mxu1  ;;  %v787_v32 = vadd.f32 %v786_v12, %v785_v6 }
  0xfb   :  { %684 = vst [vmem:[%s1191_s4 + $0x10] sm:$0xff] %v668_v14  ;;  %v666_v21 = vmax.f32 %v650_v15, 0.0  ;;  %v653_v22 = vadd.f32 %v1097_v0, %v630_v16  ;;  %v628_v23 = vmul.f32 %v1092_v61, %v510_v17 }
  0xfc   :  { %v789_v24 = vpop.f32.mrf.mxu0  ;;  %v522_v25 = vpop.f32.mrf.mxu1 }
  0xfd   :  { %682 = vst [vmem:[%s1191_s4] sm:$0xff] %v666_v21  ;;  %v669_v26 = vmax.f32 %v653_v22, 0.0  ;;  %v790_v27 = vadd.f32 %v789_v24, %v788_v18  ;;  %v523_v28 = vadd.f32 %v784_v20, %v522_v25  ;;  %v651_v29 = vadd.f32 %v1097_v0, %v628_v23 }
  0xfe   :  { %v791_v30 = vpop.f32.mrf.mxu0  ;;  %v839_v31 = vpop.f32.mrf.mxu1  ;;  %v811_v25 = vadd.f32 %v1079_v49, %v1077_v47 }
  0xff   :  { %685 = vst [vmem:[%s1191_s4 + $0x18] sm:$0xff] %v669_v26  ;;  %v531_v33 = vadd.f32 %v838_v19, %v790_v27  ;;  %v631_v34 = vmul.f32 %v1092_v61, %v523_v28  ;;  %v667_v35 = vmax.f32 %v651_v29, 0.0 }
 0x100   :  { %v792_v36 = vpop.f32.mrf.mxu0  ;;  %v525_v37 = vpop.f32.mrf.mxu1 }
 0x101   :  { %v633_v38 = vmul.f32 %v1092_v61, %v531_v33  ;;  %v654_v39 = vadd.f32 %v1097_v0, %v631_v34  ;;  %v793_v40 = vadd.f32 %v792_v36, %v791_v30  ;;  %v526_v41 = vadd.f32 %v787_v32, %v525_v37  ;;  %683 = vst [vmem:[%s1191_s4 + $0x8] sm:$0xff] %v667_v35 }
 0x102   :  { %v794_v42 = vpop.f32.mrf.mxu0  ;;  %v842_v44 = vpop.f32.mrf.mxu1 }
 0x103   :  { %v656_v46 = vadd.f32 %v1097_v0, %v633_v38  ;;  %v670_v48 = vmax.f32 %v654_v39, 0.0  ;;  %v534_v50 = vadd.f32 %v839_v31, %v793_v40  ;;  %v632_v52 = vmul.f32 %v1092_v61, %v526_v41 }
 0x104   :  { %v795_v54 = vpop.f32.mrf.mxu0  ;;  %v538_v56 = vpop.f32.mrf.mxu1 }
 0x105   :  { %v672_v58 = vmax.f32 %v656_v46, 0.0  ;;  %686 = vst [vmem:[%s1191_s4 + $0x20] sm:$0xff] %v670_v48  ;;  %v634_v59 = vmul.f32 %v1092_v61, %v534_v50  ;;  %v655_v60 = vadd.f32 %v1097_v0, %v632_v52  ;;  %v796_v62 = vadd.f32 %v795_v54, %v794_v42 }
 0x106   :  { %v797_v63 = vpop.f32.mrf.mxu0  ;;  %v843_v1 = vpop.f32.mrf.mxu1 }
 0x107   :  { %688 = vst [vmem:[%s1191_s4 + $0x30] sm:$0xff] %v672_v58  ;;  %v657_v2 = vadd.f32 %v1097_v0, %v634_v59  ;;  %v671_v3 = vmax.f32 %v655_v60, 0.0  ;;  %v539_v4 = vadd.f32 %v796_v62, %v538_v56 }
 0x108   :  { %v798_v5 = vpop.f32.mrf.mxu0  ;;  %v541_v6 = vpop.f32.mrf.mxu1 }
 0x109   :  { %v673_v8 = vmax.f32 %v657_v2, 0.0  ;;  %687 = vst [vmem:[%s1191_s4 + $0x28] sm:$0xff] %v671_v3  ;;  %v635_v9 = vmul.f32 %v1092_v61, %v539_v4  ;;  %v799_v10 = vadd.f32 %v798_v5, %v797_v63 }
 0x10a   :  { %v800_v11 = vpop.f32.mrf.mxu0  ;;  %v846_v12 = vpop.f32.mrf.mxu1 }
 0x10b   :  { %689 = vst [vmem:[%s1191_s4 + $0x38] sm:$0xff] %v673_v8  ;;  %v658_v13 = vadd.f32 %v1097_v0, %v635_v9  ;;  %v542_v14 = vadd.f32 %v799_v10, %v541_v6  ;;  %v563_v15 = vadd.f32 %v846_v12, %v814_v7 }
 0x10c   :  { %v801_v16 = vpop.f32.mrf.mxu0  ;;  %v554_v17 = vpop.f32.mrf.mxu1 }
 0x10d   :  { %v674_v18 = vmax.f32 %v658_v13, 0.0  ;;  %v636_v19 = vmul.f32 %v1092_v61, %v542_v14  ;;  %v641_v20 = vmul.f32 %v1092_v61, %v563_v15  ;;  %v802_v21 = vadd.f32 %v801_v16, %v800_v11 }
 0x10e   :  { %v555_v22 = vadd.f32 %v808_v51, %v554_v17  ;;  %v803_v23 = vpop.f32.mrf.mxu0  ;;  %v847_v24 = vpop.f32.mrf.mxu1 }
 0x10f   :  { %690 = vst [vmem:[%s1191_s4 + $0x40] sm:$0xff] %v674_v18  ;;  %v659_v43 = vadd.f32 %v1097_v0, %v636_v19  ;;  %v664_v45 = vadd.f32 %v1097_v0, %v641_v20  ;;  %v547_v55 = vadd.f32 %v842_v44, %v802_v21  ;;  %v566_v57 = vadd.f32 %v847_v24, %v817_v53 }
 0x110   :  { %v639_v26 = vmul.f32 %v1092_v61, %v555_v22  ;;  %v804_v27 = vpop.f32.mrf.mxu0  ;;  %v557_v28 = vpop.f32.mrf.mxu1 }
 0x111   :  { %v675_v29 = vmax.f32 %v659_v43, 0.0  ;;  %v680_v30 = vmax.f32 %v664_v45, 0.0  ;;  %v637_v31 = vmul.f32 %v1092_v61, %v547_v55  ;;  %v642_v32 = vmul.f32 %v1092_v61, %v566_v57 }
 0x112   :  { %v662_v33 = vadd.f32 %v1097_v0, %v639_v26  ;;  %v805_v34 = vadd.f32 %v804_v27, %v803_v23  ;;  %v558_v35 = vadd.f32 %v811_v25, %v557_v28 }
 0x113   :  { %691 = vst [vmem:[%s1191_s4 + $0x48] sm:$0xff] %v675_v29  ;;  %696 = vst [vmem:[%s1191_s4 + $0x70] sm:$0xff] %v680_v30  ;;  %v660_v47 = vadd.f32 %v1097_v0, %v637_v31  ;;  %v665_v49 = vadd.f32 %v1097_v0, %v642_v32 }
 0x114   :  { %v678_v36 = vmax.f32 %v662_v33, 0.0  ;;  %v550_v37 = vadd.f32 %v843_v1, %v805_v34  ;;  %v640_v38 = vmul.f32 %v1092_v61, %v558_v35 }
 0x115   :  { %v676_v39 = vmax.f32 %v660_v47, 0.0  ;;  %v681_v40 = vmax.f32 %v665_v49, 0.0 }
 0x116   :  { %694 = vst [vmem:[%s1191_s4 + $0x60] sm:$0xff] %v678_v36  ;;  %v638_v41 = vmul.f32 %v1092_v61, %v550_v37  ;;  %v663_v42 = vadd.f32 %v1097_v0, %v640_v38 }
 0x117   :  { %692 = vst [vmem:[%s1191_s4 + $0x50] sm:$0xff] %v676_v39  ;;  %697 = vst [vmem:[%s1191_s4 + $0x78] sm:$0xff] %v681_v40 }
 0x118   :  { %v661_v44 = vadd.f32 %v1097_v0, %v638_v41  ;;  %v679_v46 = vmax.f32 %v663_v42, 0.0 }
 0x11a   :  { %v677_v48 = vmax.f32 %v661_v44, 0.0  ;;  %695 = vst [vmem:[%s1191_s4 + $0x68] sm:$0xff] %v679_v46 }
 0x11c   :  { %693 = vst [vmem:[%s1191_s4 + $0x58] sm:$0xff] %v677_v48 }

// kernel: custom_model_forward.32
= control target key start
LH: loop header
LB: loop body
LE: loop exit
PB: predicated region body
PF: predicated region fallthrough
CT: control target
= control target key end

     0   :  { %vm60_vm0 = vcmask 261120   ;;  %s240_s1 = inlined_call_operand.vmem [shape: bf16[32,128], index: 1, kind: input, shape index: {}]   ;;  %s241_s0 = inlined_call_operand.vmem [shape: bf16[32,32], index: 0, kind: input, shape index: {}]   ;;  %s242_s2 = inlined_call_operand.vmem [shape: f32[1,128], index: 2, kind: input, shape index: {}]   ;;  %s243_s3 = inlined_call_operand.vmem [shape: f32[1,128], index: 3, kind: input, shape index: {}]   ;;  %s244_s4 = inlined_call_operand.vmem [shape: f32[32,128], index: 4, kind: output, shape index: {}]  }
   0x1   :  { %v181_v0 = vld [vmem:[%s240_s1 + $0x8] sm:$0xff]   ;;  %v182_v1 = vld [vmem:[%s240_s1] sm:$0xff]  }
   0x2   :  { %173 = vmatprep.subr.bf16.mxu0 %v181_v0  ;;  %v183_v2 = vld [vmem:[%s241_s0] sm:$0xff]   ;;  %v184_v3 = vld [vmem:[%s241_s0 + $0x8] sm:$0xff]  }
   0x3   :  { %174 = vmatpush3.bf16.msra.mxu0 %v181_v0  ;;  %177 = vmatprep.mubr.msk.bf16.mxu0 %vm60_vm0, %v183_v2  ;;  %v167_v4 = vld [vmem:[%s242_s2] ss:$0 sm:$0xff] }
   0x4   :  { %175 = vmatprep.subr.bf16.mxu0 %v182_v1  ;;  %v168_v6 = vld [vmem:[%s243_s3] ss:$0 sm:$0xff] }
   0x7   :  { %176 = vmatpush3.bf16.msra.mxu0 %v182_v1 }
   0xa   :  { %178 = vmatmul.mubr.msk.bf16.vlgmr.msra.gmra.mxu0 %vm60_vm0, %v184_v3 }
  0xca   :  { %v179_v5 = vpop.f32.mrf.mxu0 }
  0xcb   :  { %v140_v7 = vmul.f32 %v179_v5, %v167_v4 }
  0xcc   :  { %v101_v8 = vpop.f32.mrf.mxu0 }
  0xcd   :  { %v151_v9 = vadd.f32 %v168_v6, %v140_v7  ;;  %v138_v10 = vmul.f32 %v167_v4, %v101_v8 }
  0xce   :  { %v180_v11 = vpop.f32.mrf.mxu0 }
  0xcf   :  { %155 = vst [vmem:[%s244_s4 + $0x10] sm:$0xff] %v151_v9  ;;  %v149_v12 = vadd.f32 %v168_v6, %v138_v10  ;;  %v141_v13 = vmul.f32 %v180_v11, %v167_v4 }
  0xd0   :  { %v104_v14 = vpop.f32.mrf.mxu0 }
  0xd1   :  { %153 = vst [vmem:[%s244_s4] sm:$0xff] %v149_v12  ;;  %v152_v15 = vadd.f32 %v168_v6, %v141_v13  ;;  %v139_v16 = vmul.f32 %v167_v4, %v104_v14 }
  0xd3   :  { %156 = vst [vmem:[%s244_s4 + $0x18] sm:$0xff] %v152_v15  ;;  %v150_v17 = vadd.f32 %v168_v6, %v139_v16 }
  0xd5   :  { %154 = vst [vmem:[%s244_s4 + $0x8] sm:$0xff] %v150_v17 }

// kernel: custom_model_forward.28
= control target key start
LH: loop header
LB: loop body
LE: loop exit
PB: predicated region body
PF: predicated region fallthrough
CT: control target
= control target key end

     0   :  { %vm353_vm0 = vcmask 261120   ;;  %s1275_s1 = inlined_call_operand.vmem [shape: bf16[288,128], index: 1, kind: input, shape index: {}]   ;;  %s1276_s0 = inlined_call_operand.vmem [shape: bf16[128,288], index: 0, kind: input, shape index: {}]   ;;  %s1277_s2 = inlined_call_operand.vmem [shape: f32[1,128], index: 2, kind: input, shape index: {}]   ;;  %s1278_s3 = inlined_call_operand.vmem [shape: f32[1,128], index: 3, kind: input, shape index: {}]   ;;  %s1279_s4 = inlined_call_operand.vmem [shape: f32[128,128], index: 4, kind: input, shape index: {}]   ;;  %s1280_s5 = inlined_call_operand.vmem [shape: f32[128,128], index: 5, kind: output, shape index: {}]  }
   0x1   :  { %v899_v0 = vld [vmem:[%s1275_s1 + $0x78] sm:$0xff]   ;;  %v901_v2 = vld [vmem:[%s1275_s1 + $0x70] sm:$0xff]   ;;  %v903_v4 = vld [vmem:[%s1275_s1 + $0x68] sm:$0xff]  }
   0x2   :  { %v900_v1 = vld [vmem:[%s1275_s1 + $0x38] sm:$0xff]   ;;  %789 = vmatprep.subr.bf16.mxu0 %v899_v0  ;;  %883 = vmatprep.subr.bf16.mxu1 %v899_v0  ;;  %v902_v3 = vld [vmem:[%s1275_s1 + $0x30] sm:$0xff]   ;;  %v904_v5 = vld [vmem:[%s1275_s1 + $0x28] sm:$0xff]  }
   0x3   :  { %790 = vmatpush3.bf16.msra.mxu0 %v900_v1  ;;  %891 = vmatpush3.bf16.msra.mxu1 %v900_v1  ;;  %v905_v6 = vld [vmem:[%s1275_s1 + $0x60] sm:$0xff]   ;;  %v907_v8 = vld [vmem:[%s1275_s1 + $0x58] sm:$0xff]   ;;  %v909_v10 = vld [vmem:[%s1275_s1 + $0x50] sm:$0xff]  }
   0x4   :  { %791 = vmatprep.subr.bf16.mxu0 %v901_v2  ;;  %884 = vmatprep.subr.bf16.mxu1 %v901_v2  ;;  %v906_v7 = vld [vmem:[%s1275_s1 + $0x20] sm:$0xff]   ;;  %v908_v9 = vld [vmem:[%s1275_s1 + $0x18] sm:$0xff]   ;;  %v910_v13 = vld [vmem:[%s1275_s1 + $0x10] sm:$0xff]  }
   0x5   :  { %v917_v11 = vld [vmem:[%s1276_s0 + $0x4] ss:$12 sps:$4 sm:$0xff]   ;;  %v920_v12 = vld [vmem:[%s1276_s0 + $0x94] ss:$12 sps:$4 sm:$0xff]   ;;  %v911_v14 = vld [vmem:[%s1275_s1 + $0x48] sm:$0xff]  }
   0x6   :  { %410 = vmatprep.mubr.bf16.mxu0 %v917_v11  ;;  %458 = vmatprep.mubr.bf16.mxu1 %v920_v12  ;;  %v912_v15 = vld [vmem:[%s1275_s1 + $0x8] sm:$0xff]   ;;  %v913_v16 = vld [vmem:[%s1275_s1 + $0x40] sm:$0xff]   ;;  %v918_v20 = vld [vmem:[%s1276_s0 + $0x90] ss:$12 sps:$4 sm:$0xff]  }
   0x7   :  { %792 = vmatpush3.bf16.msra.mxu0 %v902_v3  ;;  %892 = vmatpush3.bf16.msra.mxu1 %v902_v3  ;;  %v914_v17 = vld [vmem:[%s1275_s1] sm:$0xff]   ;;  %v921_v19 = vld [vmem:[%s1275_s1 + $0x88] sm:$0xff]   ;;  %v932_v28 = vld [vmem:[%s1276_s0 + $0x30] ss:$12 sps:$4 sm:$0xff]  }
   0x8   :  { %793 = vmatprep.subr.bf16.mxu0 %v903_v4  ;;  %885 = vmatprep.subr.bf16.mxu1 %v903_v4  ;;  %v915_v18 = vld [vmem:[%s1276_s0] ss:$12 sps:$4 sm:$0xff]   ;;  %v922_v21 = vld [vmem:[%s1276_s0 + $0x1c] ss:$12 sps:$4 sm:$0xff]   ;;  %v926_v24 = vld [vmem:[%s1276_s0 + $0x18] ss:$12 sps:$4 sm:$0xff]  }
   0x9   :  { %v924_v22 = vld [vmem:[%s1276_s0 + $0xac] ss:$12 sps:$4 sm:$0xff]   ;;  %v928_v23 = vld [vmem:[%s1275_s1 + $0x80] sm:$0xff]   ;;  %v927_v25 = vld [vmem:[%s1276_s0 + $0xa8] ss:$12 sps:$4 sm:$0xff]  }
   0xa   :  { %v929_v26 = vld [vmem:[%s1276_s0 + $0x34] ss:$12 sps:$4 sm:$0xff]   ;;  %v934_v30 = vld [vmem:[%s1276_s0 + $0x4c] ss:$12 sps:$4 sm:$0xff]   ;;  %v938_v33 = vld [vmem:[%s1276_s0 + $0x50] ss:$12 sps:$4 sm:$0xff]  }
   0xb   :  { %794 = vmatpush3.bf16.msra.mxu0 %v904_v5  ;;  %893 = vmatpush3.bf16.msra.mxu1 %v904_v5  ;;  %v931_v27 = vld [vmem:[%s1276_s0 + $0x8] ss:$12 sps:$4 sm:$0xff]   ;;  %v933_v29 = vld [vmem:[%s1276_s0 + $0x20] ss:$12 sps:$4 sm:$0xff]   ;;  %v936_v31 = vld [vmem:[%s1276_s0 + $0x38] ss:$12 sps:$4 sm:$0xff]  }
   0xc   :  { %795 = vmatprep.subr.bf16.mxu0 %v905_v6  ;;  %886 = vmatprep.subr.bf16.mxu1 %v905_v6  ;;  %v937_v32 = vld [vmem:[%s1276_s0 + $0x48] ss:$12 sps:$4 sm:$0xff]   ;;  %v939_v34 = vld [vmem:[%s1276_s0 + $0x64] ss:$12 sps:$4 sm:$0xff]   ;;  %v942_v36 = vld [vmem:[%s1276_s0 + $0x60] ss:$12 sps:$4 sm:$0xff]  }
   0xd   :  { %v941_v35 = vld [vmem:[%s1276_s0 + $0x68] ss:$12 sps:$4 sm:$0xff]   ;;  %v943_v37 = vld [vmem:[%s1276_s0 + $0x80] ss:$12 sps:$4 sm:$0xff]   ;;  %v946_v39 = vld [vmem:[%s1276_s0 + $0x98] ss:$12 sps:$4 sm:$0xff]  }
   0xe   :  { %v944_v38 = vld [vmem:[%s1276_s0 + $0x7c] ss:$12 sps:$4 sm:$0xff]   ;;  %v947_v40 = vld [vmem:[%s1276_s0 + $0x78] ss:$12 sps:$4 sm:$0xff]   ;;  %v1132_v61 = vld [vmem:[%s1277_s2] ss:$0 sm:$0xff] }
   0xf   :  { %796 = vmatpush3.bf16.msra.mxu0 %v906_v7  ;;  %894 = vmatpush3.bf16.msra.mxu1 %v906_v7  ;;  %v948_v41 = vld [vmem:[%s1276_s0 + $0xb0] ss:$12 sps:$4 sm:$0xff]   ;;  %v1137_v0 = vld [vmem:[%s1278_s3] ss:$0 sm:$0xff] }
  0x10   :  { %797 = vmatprep.subr.bf16.mxu0 %v907_v8  ;;  %887 = vmatprep.subr.bf16.mxu1 %v907_v8  ;;  %v671_v6 = vld [vmem:[%s1279_s4 + $0x10] sm:$0xff] }
  0x13   :  { %798 = vmatpush3.bf16.msra.mxu0 %v908_v9  ;;  %895 = vmatpush3.bf16.msra.mxu1 %v908_v9 }
  0x14   :  { %799 = vmatprep.subr.bf16.mxu0 %v909_v10  ;;  %888 = vmatprep.subr.bf16.mxu1 %v909_v10 }
  0x17   :  { %800 = vmatpush3.bf16.msra.mxu0 %v910_v13  ;;  %896 = vmatpush3.bf16.msra.mxu1 %v910_v13  ;;  %v669_v13 = vld [vmem:[%s1279_s4] sm:$0xff] }
  0x18   :  { %801 = vmatprep.subr.bf16.mxu0 %v911_v14  ;;  %889 = vmatprep.subr.bf16.mxu1 %v911_v14 }
  0x1b   :  { %802 = vmatpush3.bf16.msra.mxu0 %v912_v15  ;;  %897 = vmatpush3.bf16.msra.mxu1 %v912_v15 }
  0x1c   :  { %803 = vmatprep.subr.bf16.mxu0 %v913_v16  ;;  %890 = vmatprep.subr.bf16.mxu1 %v913_v16 }
  0x1f   :  { %804 = vmatpush3.bf16.msra.mxu0 %v914_v17  ;;  %898 = vmatpush3.bf16.msra.mxu1 %v914_v17 }
  0x20   :  { %863 = vmatprep.subr.bf16.mxu1 %v921_v19 }
  0x22   :  { %411 = vmatmul.mubr.bf16.vlgmr.msra.gmra.mxu0 %v915_v18  ;;  %459 = vmatmul.mubr.bf16.vlgmr.msra.gmra.mxu1 %v918_v20 }
  0x23   :  { %864 = vmatpush3.bf16.msra.mxu1 %v921_v19  ;;  %418 = vmatprep.mubr.bf16.mxu0 %v922_v21  ;;  %v672_v19 = vld [vmem:[%s1279_s4 + $0x18] sm:$0xff] }
  0x24   :  { %466 = vmatprep.mubr.bf16.mxu1 %v924_v22  ;;  %865 = vmatprep.subr.bf16.mxu1 %v928_v23 }
  0x27   :  { %866 = vmatpush3.bf16.msra.mxu1 %v928_v23 }
  0x2a   :  { %419 = vmatmul.mubr.bf16.gmra.mxu0 %v926_v24  ;;  %467 = vmatmul.mubr.bf16.gmra.mxu1 %v927_v25 }
  0x2b   :  { %426 = vmatprep.mubr.bf16.mxu0 %v929_v26  ;;  %867 = vmatprep.mubr.msk.bf16.mxu1 %vm353_vm0, %v931_v27 }
  0x32   :  { %427 = vmatmul.mubr.bf16.gmra.mxu0 %v932_v28  ;;  %868 = vmatmul.mubr.msk.bf16.vlgmr.msra.gmra.mxu1 %vm353_vm0, %v933_v29 }
  0x33   :  { %434 = vmatprep.mubr.bf16.mxu0 %v934_v30  ;;  %871 = vmatprep.mubr.msk.bf16.mxu1 %vm353_vm0, %v936_v31 }
  0x3a   :  { %435 = vmatmul.mubr.bf16.gmra.mxu0 %v937_v32  ;;  %872 = vmatmul.mubr.msk.bf16.gmra.mxu1 %vm353_vm0, %v938_v33  ;;  %v670_v32 = vld [vmem:[%s1279_s4 + $0x8] sm:$0xff] }
  0x3b   :  { %442 = vmatprep.mubr.bf16.mxu0 %v939_v34  ;;  %875 = vmatprep.mubr.msk.bf16.mxu1 %vm353_vm0, %v941_v35 }
  0x42   :  { %443 = vmatmul.mubr.bf16.gmra.mxu0 %v942_v36  ;;  %876 = vmatmul.mubr.msk.bf16.gmra.mxu1 %vm353_vm0, %v943_v37 }
  0x43   :  { %450 = vmatprep.mubr.bf16.mxu0 %v944_v38  ;;  %879 = vmatprep.mubr.msk.bf16.mxu1 %vm353_vm0, %v946_v39 }
  0x4a   :  { %451 = vmatmul.mubr.bf16.gmra.mxu0 %v947_v40  ;;  %880 = vmatmul.mubr.msk.bf16.gmra.mxu1 %vm353_vm0, %v948_v41 }
  0xe2   :  { %v805_v42 = vpop.f32.mrf.mxu0  ;;  %v1113_v43 = vpop.f32.mrf.mxu1 }
  0xe4   :  { %v806_v44 = vpop.f32.mrf.mxu0  ;;  %v1115_v45 = vpop.f32.mrf.mxu1 }
  0xe5   :  { %v807_v62 = vadd.f32 %v806_v44, %v805_v42  ;;  %v673_v44 = vld [vmem:[%s1279_s4 + $0x20] sm:$0xff] }
  0xe6   :  { %v808_v46 = vpop.f32.mrf.mxu0  ;;  %v1117_v47 = vpop.f32.mrf.mxu1 }
  0xe8   :  { %v809_v48 = vpop.f32.mrf.mxu0  ;;  %v1119_v49 = vpop.f32.mrf.mxu1 }
  0xe9   :  { %v810_v12 = vadd.f32 %v809_v48, %v808_v46 }
  0xea   :  { %v811_v50 = vpop.f32.mrf.mxu0  ;;  %v1121_v51 = vpop.f32.mrf.mxu1 }
  0xec   :  { %v812_v52 = vpop.f32.mrf.mxu0  ;;  %v1123_v53 = vpop.f32.mrf.mxu1 }
  0xed   :  { %v813_v58 = vadd.f32 %v812_v52, %v811_v50 }
  0xee   :  { %v814_v54 = vpop.f32.mrf.mxu0  ;;  %v1125_v55 = vpop.f32.mrf.mxu1 }
  0xf0   :  { %v815_v56 = vpop.f32.mrf.mxu0  ;;  %v1127_v57 = vpop.f32.mrf.mxu1 }
  0xf1   :  { %v816_v3 = vadd.f32 %v815_v56, %v814_v54 }
  0xf2   :  { %v817_v59 = vpop.f32.mrf.mxu0  ;;  %v869_v60 = vpop.f32.mrf.mxu1 }
  0xf3   :  { %v518_v63 = vadd.f32 %v869_v60, %v813_v58 }
  0xf4   :  { %v818_v1 = vpop.f32.mrf.mxu0  ;;  %v509_v2 = vpop.f32.mrf.mxu1 }
  0xf5   :  { %v632_v4 = vmul.f32 %v1132_v61, %v518_v63  ;;  %v510_v5 = vadd.f32 %v807_v62, %v509_v2  ;;  %v819_v24 = vadd.f32 %v818_v1, %v817_v59  ;;  %v675_v59 = vld [vmem:[%s1279_s4 + $0x30] sm:$0xff] }
  0xf6   :  { %v820_v7 = vpop.f32.mrf.mxu0  ;;  %v870_v8 = vpop.f32.mrf.mxu1 }
  0xf7   :  { %v655_v9 = vadd.f32 %v1137_v0, %v632_v4  ;;  %v630_v10 = vmul.f32 %v1132_v61, %v510_v5  ;;  %v521_v11 = vadd.f32 %v870_v8, %v816_v3  ;;  %v674_v4 = vld [vmem:[%s1279_s4 + $0x28] sm:$0xff] }
  0xf8   :  { %v821_v14 = vpop.f32.mrf.mxu0  ;;  %v512_v15 = vpop.f32.mrf.mxu1 }
  0xf9   :  { %v687_v16 = vadd.f32 %v671_v6, %v655_v9  ;;  %v653_v17 = vadd.f32 %v1137_v0, %v630_v10  ;;  %v633_v18 = vmul.f32 %v1132_v61, %v521_v11  ;;  %v513_v20 = vadd.f32 %v810_v12, %v512_v15  ;;  %v676_v11 = vld [vmem:[%s1279_s4 + $0x38] sm:$0xff] }
  0xfa   :  { %v823_v21 = vpop.f32.mrf.mxu0  ;;  %v873_v22 = vpop.f32.mrf.mxu1  ;;  %v822_v39 = vadd.f32 %v821_v14, %v820_v7 }
  0xfb   :  { %v703_v23 = vmax.f32 %v687_v16, 0.0  ;;  %v685_v25 = vadd.f32 %v669_v13, %v653_v17  ;;  %v656_v26 = vadd.f32 %v1137_v0, %v633_v18  ;;  %v631_v27 = vmul.f32 %v1132_v61, %v513_v20 }
  0xfc   :  { %v824_v28 = vpop.f32.mrf.mxu0  ;;  %v525_v29 = vpop.f32.mrf.mxu1 }
  0xfd   :  { %719 = vst [vmem:[%s1280_s5 + $0x10] sm:$0xff] %v703_v23  ;;  %v701_v30 = vmax.f32 %v685_v25, 0.0  ;;  %v688_v31 = vadd.f32 %v672_v19, %v656_v26  ;;  %v825_v33 = vadd.f32 %v824_v28, %v823_v21  ;;  %v526_v34 = vadd.f32 %v819_v24, %v525_v29 }
  0xfe   :  { %v654_v35 = vadd.f32 %v1137_v0, %v631_v27  ;;  %v826_v36 = vpop.f32.mrf.mxu0  ;;  %v874_v37 = vpop.f32.mrf.mxu1  ;;  %v849_v21 = vadd.f32 %v1123_v53, %v1121_v51  ;;  %v843_v28 = vadd.f32 %v1115_v45, %v1113_v43  ;;  %v677_v51 = vld [vmem:[%s1279_s4 + $0x40] sm:$0xff] }
  0xff   :  { %717 = vst [vmem:[%s1280_s5] sm:$0xff] %v701_v30  ;;  %v704_v38 = vmax.f32 %v688_v31, 0.0  ;;  %v534_v40 = vadd.f32 %v873_v22, %v825_v33  ;;  %v634_v41 = vmul.f32 %v1132_v61, %v526_v34 }
 0x100   :  { %v686_v42 = vadd.f32 %v670_v32, %v654_v35  ;;  %v827_v46 = vpop.f32.mrf.mxu0  ;;  %v528_v48 = vpop.f32.mrf.mxu1 }
 0x101   :  { %720 = vst [vmem:[%s1280_s5 + $0x18] sm:$0xff] %v704_v38  ;;  %v636_v50 = vmul.f32 %v1132_v61, %v534_v40  ;;  %v657_v52 = vadd.f32 %v1137_v0, %v634_v41  ;;  %v828_v54 = vadd.f32 %v827_v46, %v826_v36  ;;  %v529_v56 = vadd.f32 %v822_v39, %v528_v48  ;;  %v678_v38 = vld [vmem:[%s1279_s4 + $0x48] sm:$0xff]  ;;  %v683_v39 = vld [vmem:[%s1279_s4 + $0x70] sm:$0xff] }
 0x102   :  { %v702_v58 = vmax.f32 %v686_v42, 0.0  ;;  %v829_v60 = vpop.f32.mrf.mxu0  ;;  %v877_v62 = vpop.f32.mrf.mxu1  ;;  %v852_v36 = vadd.f32 %v1127_v57, %v1125_v55  ;;  %v846_v55 = vadd.f32 %v1119_v49, %v1117_v47  ;;  %v679_v47 = vld [vmem:[%s1279_s4 + $0x50] sm:$0xff] }
 0x103   :  { %v659_v63 = vadd.f32 %v1137_v0, %v636_v50  ;;  %v689_v1 = vadd.f32 %v673_v44, %v657_v52  ;;  %v537_v2 = vadd.f32 %v874_v37, %v828_v54  ;;  %v635_v3 = vmul.f32 %v1132_v61, %v529_v56  ;;  %v681_v50 = vld [vmem:[%s1279_s4 + $0x60] sm:$0xff] }
 0x104   :  { %718 = vst [vmem:[%s1280_s5 + $0x8] sm:$0xff] %v702_v58  ;;  %v830_v5 = vpop.f32.mrf.mxu0  ;;  %v541_v6 = vpop.f32.mrf.mxu1 }
 0x105   :  { %v691_v7 = vadd.f32 %v675_v59, %v659_v63  ;;  %v705_v8 = vmax.f32 %v689_v1, 0.0  ;;  %v637_v9 = vmul.f32 %v1132_v61, %v537_v2  ;;  %v658_v10 = vadd.f32 %v1137_v0, %v635_v3 }
 0x106   :  { %v831_v12 = vadd.f32 %v830_v5, %v829_v60  ;;  %v832_v13 = vpop.f32.mrf.mxu0  ;;  %v878_v14 = vpop.f32.mrf.mxu1 }
 0x107   :  { %v707_v15 = vmax.f32 %v691_v7, 0.0  ;;  %721 = vst [vmem:[%s1280_s5 + $0x20] sm:$0xff] %v705_v8  ;;  %v660_v16 = vadd.f32 %v1137_v0, %v637_v9  ;;  %v690_v17 = vadd.f32 %v674_v4, %v658_v10 }
 0x108   :  { %v542_v18 = vadd.f32 %v831_v12, %v541_v6  ;;  %v833_v19 = vpop.f32.mrf.mxu0  ;;  %v544_v20 = vpop.f32.mrf.mxu1  ;;  %v684_v6 = vld [vmem:[%s1279_s4 + $0x78] sm:$0xff]  ;;  %v682_v12 = vld [vmem:[%s1279_s4 + $0x68] sm:$0xff] }
 0x109   :  { %723 = vst [vmem:[%s1280_s5 + $0x30] sm:$0xff] %v707_v15  ;;  %v692_v22 = vadd.f32 %v676_v11, %v660_v16  ;;  %v706_v23 = vmax.f32 %v690_v17, 0.0  ;;  %v834_v24 = vadd.f32 %v833_v19, %v832_v13  ;;  %v680_v17 = vld [vmem:[%s1279_s4 + $0x58] sm:$0xff] }
 0x10a   :  { %v638_v25 = vmul.f32 %v1132_v61, %v542_v18  ;;  %v835_v26 = vpop.f32.mrf.mxu0  ;;  %v881_v27 = vpop.f32.mrf.mxu1 }
 0x10b   :  { %v708_v29 = vmax.f32 %v692_v22, 0.0  ;;  %722 = vst [vmem:[%s1280_s5 + $0x28] sm:$0xff] %v706_v23  ;;  %v545_v53 = vadd.f32 %v834_v24, %v544_v20  ;;  %v566_v30 = vadd.f32 %v881_v27, %v849_v21 }
 0x10c   :  { %v661_v31 = vadd.f32 %v1137_v0, %v638_v25  ;;  %v836_v32 = vpop.f32.mrf.mxu0  ;;  %v557_v33 = vpop.f32.mrf.mxu1 }
 0x10d   :  { %724 = vst [vmem:[%s1280_s5 + $0x38] sm:$0xff] %v708_v29  ;;  %v639_v43 = vmul.f32 %v1132_v61, %v545_v53  ;;  %v644_v45 = vmul.f32 %v1132_v61, %v566_v30  ;;  %v837_v34 = vadd.f32 %v836_v32, %v835_v26  ;;  %v558_v35 = vadd.f32 %v843_v28, %v557_v33 }
 0x10e   :  { %v693_v37 = vadd.f32 %v677_v51, %v661_v31  ;;  %v838_v40 = vpop.f32.mrf.mxu0  ;;  %v882_v41 = vpop.f32.mrf.mxu1 }
 0x10f   :  { %v662_v42 = vadd.f32 %v1137_v0, %v639_v43  ;;  %v667_v44 = vadd.f32 %v1137_v0, %v644_v45  ;;  %v550_v46 = vadd.f32 %v877_v62, %v837_v34  ;;  %v642_v48 = vmul.f32 %v1132_v61, %v558_v35 }
 0x110   :  { %v709_v57 = vmax.f32 %v693_v37, 0.0  ;;  %v569_v52 = vadd.f32 %v882_v41, %v852_v36  ;;  %v839_v54 = vpop.f32.mrf.mxu0  ;;  %v560_v56 = vpop.f32.mrf.mxu1 }
 0x111   :  { %v694_v58 = vadd.f32 %v678_v38, %v662_v42  ;;  %v699_v59 = vadd.f32 %v683_v39, %v667_v44  ;;  %v640_v60 = vmul.f32 %v1132_v61, %v550_v46  ;;  %v665_v63 = vadd.f32 %v1137_v0, %v642_v48 }
 0x112   :  { %725 = vst [vmem:[%s1280_s5 + $0x40] sm:$0xff] %v709_v57  ;;  %v645_v49 = vmul.f32 %v1132_v61, %v569_v52  ;;  %v840_v62 = vadd.f32 %v839_v54, %v838_v40  ;;  %v561_v1 = vadd.f32 %v846_v55, %v560_v56 }
 0x113   :  { %v710_v2 = vmax.f32 %v694_v58, 0.0  ;;  %v715_v3 = vmax.f32 %v699_v59, 0.0  ;;  %v663_v4 = vadd.f32 %v1137_v0, %v640_v60  ;;  %v697_v5 = vadd.f32 %v681_v50, %v665_v63 }
 0x114   :  { %v668_v7 = vadd.f32 %v1137_v0, %v645_v49  ;;  %v553_v8 = vadd.f32 %v878_v14, %v840_v62  ;;  %v643_v9 = vmul.f32 %v1132_v61, %v561_v1 }
 0x115   :  { %726 = vst [vmem:[%s1280_s5 + $0x48] sm:$0xff] %v710_v2  ;;  %731 = vst [vmem:[%s1280_s5 + $0x70] sm:$0xff] %v715_v3  ;;  %v695_v10 = vadd.f32 %v679_v47, %v663_v4  ;;  %v713_v11 = vmax.f32 %v697_v5, 0.0 }
 0x116   :  { %v700_v13 = vadd.f32 %v684_v6, %v668_v7  ;;  %v641_v15 = vmul.f32 %v1132_v61, %v553_v8  ;;  %v666_v14 = vadd.f32 %v1137_v0, %v643_v9 }
 0x117   :  { %v711_v16 = vmax.f32 %v695_v10, 0.0  ;;  %729 = vst [vmem:[%s1280_s5 + $0x60] sm:$0xff] %v713_v11 }
 0x118   :  { %v716_v18 = vmax.f32 %v700_v13, 0.0  ;;  %v664_v19 = vadd.f32 %v1137_v0, %v641_v15  ;;  %v698_v20 = vadd.f32 %v682_v12, %v666_v14 }
 0x119   :  { %727 = vst [vmem:[%s1280_s5 + $0x50] sm:$0xff] %v711_v16 }
 0x11a   :  { %732 = vst [vmem:[%s1280_s5 + $0x78] sm:$0xff] %v716_v18  ;;  %v696_v61 = vadd.f32 %v680_v17, %v664_v19  ;;  %v714_v21 = vmax.f32 %v698_v20, 0.0 }
 0x11c   :  { %v712_v22 = vmax.f32 %v696_v61, 0.0  ;;  %730 = vst [vmem:[%s1280_s5 + $0x68] sm:$0xff] %v714_v21 }
 0x11e   :  { %728 = vst [vmem:[%s1280_s5 + $0x58] sm:$0xff] %v712_v22 }

// kernel: custom_model_forward.31
= control target key start
LH: loop header
LB: loop body
LE: loop exit
PB: predicated region body
PF: predicated region fallthrough
CT: control target
= control target key end

     0   :  { %vm212_vm0 = vcmask 261120   ;;  %s575_s1 = inlined_call_operand.vmem [shape: bf16[288,128], index: 1, kind: input, shape index: {}]   ;;  %s576_s0 = inlined_call_operand.vmem [shape: bf16[32,288], index: 0, kind: input, shape index: {}]   ;;  %s577_s2 = inlined_call_operand.vmem [shape: f32[1,128], index: 2, kind: input, shape index: {}]   ;;  %s578_s3 = inlined_call_operand.vmem [shape: f32[1,128], index: 3, kind: input, shape index: {}]   ;;  %s579_s4 = inlined_call_operand.vmem [shape: f32[32,128], index: 4, kind: output, shape index: {}]  }
   0x1   :  { %v434_v0 = vld [vmem:[%s575_s1 + $0x78] sm:$0xff]   ;;  %v436_v2 = vld [vmem:[%s575_s1 + $0x70] sm:$0xff]   ;;  %v438_v4 = vld [vmem:[%s575_s1 + $0x68] sm:$0xff]  }
   0x2   :  { %v435_v1 = vld [vmem:[%s575_s1 + $0x38] sm:$0xff]   ;;  %394 = vmatprep.subr.bf16.mxu0 %v434_v0  ;;  %v437_v3 = vld [vmem:[%s575_s1 + $0x30] sm:$0xff]   ;;  %v439_v5 = vld [vmem:[%s575_s1 + $0x28] sm:$0xff]  }
   0x3   :  { %395 = vmatpush3.bf16.msra.mxu0 %v435_v1  ;;  %v440_v6 = vld [vmem:[%s575_s1 + $0x60] sm:$0xff]   ;;  %v442_v8 = vld [vmem:[%s575_s1 + $0x58] sm:$0xff]   ;;  %v448_v9 = vld [vmem:[%s575_s1 + $0x88] sm:$0xff]  }
   0x4   :  { %396 = vmatprep.subr.bf16.mxu0 %v436_v2  ;;  %v441_v7 = vld [vmem:[%s575_s1 + $0x20] sm:$0xff]   ;;  %v443_v10 = vld [vmem:[%s575_s1 + $0x18] sm:$0xff]   ;;  %v444_v11 = vld [vmem:[%s575_s1 + $0x50] sm:$0xff]   ;;  %426 = vmatprep.subr.bf16.mxu1 %v448_v9 }
   0x5   :  { %v445_v12 = vld [vmem:[%s575_s1 + $0x10] sm:$0xff]   ;;  %427 = vmatpush3.bf16.msra.mxu1 %v448_v9  ;;  %v451_v13 = vld [vmem:[%s575_s1 + $0x80] sm:$0xff]   ;;  %v446_v14 = vld [vmem:[%s575_s1 + $0x48] sm:$0xff]  }
   0x6   :  { %428 = vmatprep.subr.bf16.mxu1 %v451_v13  ;;  %v454_v15 = vld [vmem:[%s576_s0 + $0x4] ss:$12 sps:$4 sm:$0xff]   ;;  %v455_v16 = vld [vmem:[%s576_s0 + $0x8] ss:$12 sps:$4 sm:$0xff]   ;;  %v456_v17 = vld [vmem:[%s576_s0 + $0x20] ss:$12 sps:$4 sm:$0xff]  }
   0x7   :  { %397 = vmatpush3.bf16.msra.mxu0 %v437_v3  ;;  %251 = vmatprep.mubr.bf16.mxu0 %v454_v15  ;;  %v447_v18 = vld [vmem:[%s575_s1 + $0x8] sm:$0xff]   ;;  %v449_v19 = vld [vmem:[%s575_s1 + $0x40] sm:$0xff]  }
   0x8   :  { %398 = vmatprep.subr.bf16.mxu0 %v438_v4  ;;  %430 = vmatprep.mubr.msk.bf16.mxu1 %vm212_vm0, %v455_v16  ;;  %v450_v20 = vld [vmem:[%s575_s1] sm:$0xff]   ;;  %v457_v22 = vld [vmem:[%s576_s0 + $0x1c] ss:$12 sps:$4 sm:$0xff]  }
   0x9   :  { %429 = vmatpush3.bf16.msra.mxu1 %v451_v13  ;;  %v452_v21 = vld [vmem:[%s576_s0] ss:$12 sps:$4 sm:$0xff]   ;;  %v459_v23 = vld [vmem:[%s576_s0 + $0x18] ss:$12 sps:$4 sm:$0xff]  }
   0xa   :  { %v392_v31 = vld [vmem:[%s577_s2] ss:$0 sm:$0xff] }
   0xb   :  { %399 = vmatpush3.bf16.msra.mxu0 %v439_v5  ;;  %v393_v33 = vld [vmem:[%s578_s3] ss:$0 sm:$0xff] }
   0xc   :  { %400 = vmatprep.subr.bf16.mxu0 %v440_v6  ;;  %431 = vmatmul.mubr.msk.bf16.vlgmr.msra.gmra.mxu1 %vm212_vm0, %v456_v17 }
   0xf   :  { %401 = vmatpush3.bf16.msra.mxu0 %v441_v7 }
  0x10   :  { %402 = vmatprep.subr.bf16.mxu0 %v442_v8 }
  0x13   :  { %403 = vmatpush3.bf16.msra.mxu0 %v443_v10 }
  0x14   :  { %404 = vmatprep.subr.bf16.mxu0 %v444_v11 }
  0x17   :  { %405 = vmatpush3.bf16.msra.mxu0 %v445_v12 }
  0x18   :  { %406 = vmatprep.subr.bf16.mxu0 %v446_v14 }
  0x1b   :  { %407 = vmatpush3.bf16.msra.mxu0 %v447_v18 }
  0x1c   :  { %408 = vmatprep.subr.bf16.mxu0 %v449_v19 }
  0x1f   :  { %409 = vmatpush3.bf16.msra.mxu0 %v450_v20 }
  0x22   :  { %252 = vmatmul.mubr.bf16.vlgmr.msra.gmra.mxu0 %v452_v21 }
  0x23   :  { %259 = vmatprep.mubr.bf16.mxu0 %v457_v22 }
  0x2a   :  { %260 = vmatmul.mubr.bf16.gmra.mxu0 %v459_v23 }
  0xcc   :  { %v432_v24 = vpop.f32.mrf.mxu1 }
  0xce   :  { %v302_v25 = vpop.f32.mrf.mxu1 }
  0xd0   :  { %v433_v28 = vpop.f32.mrf.mxu1 }
  0xd2   :  { %v305_v35 = vpop.f32.mrf.mxu1 }
  0xe2   :  { %v410_v26 = vpop.f32.mrf.mxu0 }
  0xe4   :  { %v411_v27 = vpop.f32.mrf.mxu0 }
  0xe5   :  { %v412_v29 = vadd.f32 %v411_v27, %v410_v26 }
  0xe6   :  { %v413_v30 = vpop.f32.mrf.mxu0 }
  0xe7   :  { %v303_v32 = vadd.f32 %v412_v29, %v302_v25 }
  0xe8   :  { %v414_v34 = vpop.f32.mrf.mxu0 }
  0xe9   :  { %v339_v36 = vmul.f32 %v392_v31, %v303_v32  ;;  %v415_v37 = vadd.f32 %v414_v34, %v413_v30 }
  0xea   :  { %v416_v38 = vpop.f32.mrf.mxu0 }
  0xeb   :  { %v350_v39 = vadd.f32 %v393_v33, %v339_v36  ;;  %v306_v40 = vadd.f32 %v415_v37, %v305_v35 }
  0xec   :  { %v417_v41 = vpop.f32.mrf.mxu0 }
  0xed   :  { %v354_v42 = vmax.f32 %v350_v39, 0.0  ;;  %v340_v43 = vmul.f32 %v392_v31, %v306_v40  ;;  %v418_v44 = vadd.f32 %v417_v41, %v416_v38 }
  0xee   :  { %v419_v45 = vpop.f32.mrf.mxu0 }
  0xef   :  { %358 = vst [vmem:[%s579_s4] sm:$0xff] %v354_v42  ;;  %v351_v46 = vadd.f32 %v393_v33, %v340_v43  ;;  %v311_v47 = vadd.f32 %v432_v24, %v418_v44 }
  0xf0   :  { %v420_v48 = vpop.f32.mrf.mxu0 }
  0xf1   :  { %v355_v49 = vmax.f32 %v351_v46, 0.0  ;;  %v341_v50 = vmul.f32 %v392_v31, %v311_v47  ;;  %v421_v51 = vadd.f32 %v420_v48, %v419_v45 }
  0xf3   :  { %359 = vst [vmem:[%s579_s4 + $0x8] sm:$0xff] %v355_v49  ;;  %v352_v52 = vadd.f32 %v393_v33, %v341_v50  ;;  %v314_v53 = vadd.f32 %v433_v28, %v421_v51 }
  0xf5   :  { %v356_v54 = vmax.f32 %v352_v52, 0.0  ;;  %v342_v55 = vmul.f32 %v392_v31, %v314_v53 }
  0xf7   :  { %360 = vst [vmem:[%s579_s4 + $0x10] sm:$0xff] %v356_v54  ;;  %v353_v56 = vadd.f32 %v393_v33, %v342_v55 }
  0xf9   :  { %v357_v57 = vmax.f32 %v353_v56, 0.0 }
  0xfb   :  { %361 = vst [vmem:[%s579_s4 + $0x18] sm:$0xff] %v357_v57 }

// kernel: custom_model_forward.33
= control target key start
LH: loop header
LB: loop body
LE: loop exit
PB: predicated region body
PF: predicated region fallthrough
CT: control target
= control target key end

     0   :  { %vm383_vm0 = vcmask 523264   ;;  %s966_s1 = inlined_call_operand.vmem [shape: bf16[576,128], index: 1, kind: input, shape index: {}]   ;;  %s967_s0 = inlined_call_operand.vmem [shape: bf16[32,576], index: 0, kind: input, shape index: {}]   ;;  %s968_s2 = inlined_call_operand.vmem [shape: f32[1,128], index: 2, kind: input, shape index: {}]   ;;  %s969_s3 = inlined_call_operand.vmem [shape: f32[1,128], index: 3, kind: input, shape index: {}]   ;;  %s970_s4 = inlined_call_operand.vmem [shape: f32[32,128], index: 4, kind: input, shape index: {}]   ;;  %s971_s5 = inlined_call_operand.vmem [shape: f32[32,128], index: 5, kind: output, shape index: {}]  }
   0x1   :  { %v718_v0 = vld [vmem:[%s966_s1 + $0x78] sm:$0xff]   ;;  %v722_v4 = vld [vmem:[%s966_s1 + $0x70] sm:$0xff]   ;;  %v726_v8 = vld [vmem:[%s966_s1 + $0x68] sm:$0xff]  }
   0x2   :  { %v719_v1 = vld [vmem:[%s966_s1 + $0xf8] sm:$0xff]   ;;  %644 = vmatprep.subr.bf16.mxu0 %v718_v0  ;;  %v723_v5 = vld [vmem:[%s966_s1 + $0xf0] sm:$0xff]   ;;  %v727_v9 = vld [vmem:[%s966_s1 + $0xe8] sm:$0xff]  }
   0x3   :  { %v720_v2 = vld [vmem:[%s966_s1 + $0x38] sm:$0xff]   ;;  %672 = vmatprep.subr.bf16.mxu1 %v719_v1  ;;  %v724_v6 = vld [vmem:[%s966_s1 + $0x30] sm:$0xff]   ;;  %v728_v10 = vld [vmem:[%s966_s1 + $0x28] sm:$0xff]  }
   0x4   :  { %v721_v3 = vld [vmem:[%s966_s1 + $0xb8] sm:$0xff]   ;;  %645 = vmatpush3.bf16.msra.mxu0 %v720_v2  ;;  %v725_v7 = vld [vmem:[%s966_s1 + $0xb0] sm:$0xff]   ;;  %v729_v11 = vld [vmem:[%s966_s1 + $0xa8] sm:$0xff]  }
   0x5   :  { %673 = vmatpush3.bf16.msra.mxu1 %v721_v3  ;;  %646 = vmatprep.subr.bf16.mxu0 %v722_v4  ;;  %v730_v12 = vld [vmem:[%s966_s1 + $0x60] sm:$0xff]   ;;  %v734_v16 = vld [vmem:[%s966_s1 + $0x58] sm:$0xff]   ;;  %v738_v20 = vld [vmem:[%s966_s1 + $0x50] sm:$0xff]  }
   0x6   :  { %674 = vmatprep.subr.bf16.mxu1 %v723_v5  ;;  %v731_v13 = vld [vmem:[%s966_s1 + $0xe0] sm:$0xff]   ;;  %v735_v17 = vld [vmem:[%s966_s1 + $0xd8] sm:$0xff]   ;;  %v739_v21 = vld [vmem:[%s966_s1 + $0xd0] sm:$0xff]  }
   0x7   :  { %v732_v14 = vld [vmem:[%s966_s1 + $0x20] sm:$0xff]   ;;  %v736_v18 = vld [vmem:[%s966_s1 + $0x18] sm:$0xff]   ;;  %v740_v22 = vld [vmem:[%s966_s1 + $0x10] sm:$0xff]  }
   0x8   :  { %647 = vmatpush3.bf16.msra.mxu0 %v724_v6  ;;  %v733_v15 = vld [vmem:[%s966_s1 + $0xa0] sm:$0xff]   ;;  %v737_v19 = vld [vmem:[%s966_s1 + $0x98] sm:$0xff]   ;;  %v741_v23 = vld [vmem:[%s966_s1 + $0x90] sm:$0xff]  }
   0x9   :  { %675 = vmatpush3.bf16.msra.mxu1 %v725_v7  ;;  %648 = vmatprep.subr.bf16.mxu0 %v726_v8  ;;  %v742_v24 = vld [vmem:[%s966_s1 + $0x48] sm:$0xff]   ;;  %v746_v28 = vld [vmem:[%s966_s1 + $0x40] sm:$0xff]   ;;  %v756_v36 = vld [vmem:[%s966_s1 + $0x118] sm:$0xff]  }
   0xa   :  { %676 = vmatprep.subr.bf16.mxu1 %v727_v9  ;;  %v743_v25 = vld [vmem:[%s966_s1 + $0xc8] sm:$0xff]   ;;  %v747_v29 = vld [vmem:[%s966_s1 + $0xc0] sm:$0xff]   ;;  %v757_v37 = vld [vmem:[%s966_s1 + $0x110] sm:$0xff]  }
   0xb   :  { %v744_v26 = vld [vmem:[%s966_s1 + $0x8] sm:$0xff]   ;;  %v748_v30 = vld [vmem:[%s966_s1] sm:$0xff]  }
   0xc   :  { %649 = vmatpush3.bf16.msra.mxu0 %v728_v10  ;;  %v745_v27 = vld [vmem:[%s966_s1 + $0x88] sm:$0xff]   ;;  %v749_v31 = vld [vmem:[%s966_s1 + $0x80] sm:$0xff]  }
   0xd   :  { %677 = vmatpush3.bf16.msra.mxu1 %v729_v11  ;;  %650 = vmatprep.subr.bf16.mxu0 %v730_v12  ;;  %v750_v32 = vld [vmem:[%s967_s0] ss:$20 sps:$4 sm:$0xff]   ;;  %v752_v33 = vld [vmem:[%s967_s0 + $0x4] ss:$20 sps:$4 sm:$0xff]   ;;  %v753_v34 = vld [vmem:[%s967_s0 + $0x8] ss:$20 sps:$4 sm:$0xff]  }
   0xe   :  { %678 = vmatprep.subr.bf16.mxu1 %v731_v13  ;;  %v755_v35 = vld [vmem:[%s967_s0 + $0xc] ss:$20 sps:$4 sm:$0xff]   ;;  %422 = vmatprep.mubr.bf16.mxu0 %v752_v33  ;;  %v760_v39 = vld [vmem:[%s967_s0 + $0x34] ss:$20 sps:$4 sm:$0xff]   ;;  %v763_v42 = vld [vmem:[%s967_s0 + $0x30] ss:$20 sps:$4 sm:$0xff]  }
   0xf   :  { %471 = vmatprep.mubr.bf16.mxu1 %v755_v35  ;;  %v758_v38 = vld [vmem:[%s967_s0 + $0x2c] ss:$20 sps:$4 sm:$0xff]   ;;  %v762_v40 = vld [vmem:[%s967_s0 + $0x28] ss:$20 sps:$4 sm:$0xff]   ;;  %v766_v43 = vld [vmem:[%s967_s0 + $0x10] ss:$20 sps:$4 sm:$0xff]  }
  0x10   :  { %651 = vmatpush3.bf16.msra.mxu0 %v732_v14  ;;  %v764_v41 = vld [vmem:[%s966_s1 + $0x108] sm:$0xff]   ;;  %v765_v44 = vld [vmem:[%s966_s1 + $0x100] sm:$0xff]  }
  0x11   :  { %679 = vmatpush3.bf16.msra.mxu1 %v733_v15  ;;  %652 = vmatprep.subr.bf16.mxu0 %v734_v16  ;;  %v767_v45 = vld [vmem:[%s967_s0 + $0x38] ss:$20 sps:$4 sm:$0xff]   ;;  %v642_v6 = vld [vmem:[%s968_s2] ss:$0 sm:$0xff]  ;;  %v576_v16 = vld [vmem:[%s970_s4 + $0x10] sm:$0xff] }
  0x12   :  { %680 = vmatprep.subr.bf16.mxu1 %v735_v17  ;;  %v643_v11 = vld [vmem:[%s969_s3] ss:$0 sm:$0xff]  ;;  %v575_v33 = vld [vmem:[%s970_s4 + $0x8] sm:$0xff] }
  0x14   :  { %653 = vmatpush3.bf16.msra.mxu0 %v736_v18 }
  0x15   :  { %681 = vmatpush3.bf16.msra.mxu1 %v737_v19  ;;  %654 = vmatprep.subr.bf16.mxu0 %v738_v20 }
  0x16   :  { %682 = vmatprep.subr.bf16.mxu1 %v739_v21 }
  0x18   :  { %655 = vmatpush3.bf16.msra.mxu0 %v740_v22  ;;  %v574_v22 = vld [vmem:[%s970_s4] sm:$0xff] }
  0x19   :  { %683 = vmatpush3.bf16.msra.mxu1 %v741_v23  ;;  %656 = vmatprep.subr.bf16.mxu0 %v742_v24 }
  0x1a   :  { %684 = vmatprep.subr.bf16.mxu1 %v743_v25 }
  0x1c   :  { %657 = vmatpush3.bf16.msra.mxu0 %v744_v26 }
  0x1d   :  { %685 = vmatpush3.bf16.msra.mxu1 %v745_v27  ;;  %658 = vmatprep.subr.bf16.mxu0 %v746_v28  ;;  %v577_v28 = vld [vmem:[%s970_s4 + $0x18] sm:$0xff] }
  0x1e   :  { %686 = vmatprep.subr.bf16.mxu1 %v747_v29 }
  0x20   :  { %659 = vmatpush3.bf16.msra.mxu0 %v748_v30 }
  0x21   :  { %687 = vmatpush3.bf16.msra.mxu1 %v749_v31  ;;  %706 = vmatprep.subr.bf16.mxu0 %v756_v36 }
  0x23   :  { %423 = vmatmul.mubr.bf16.vlgmr.msra.gmra.mxu0 %v750_v32 }
  0x24   :  { %472 = vmatmul.mubr.bf16.vlgmr.msra.gmra.mxu1 %v753_v34  ;;  %707 = vmatpush3.bf16.msra.mxu0 %v756_v36 }
  0x25   :  { %708 = vmatprep.subr.bf16.mxu0 %v757_v37  ;;  %430 = vmatprep.mubr.bf16.mxu0 %v758_v38 }
  0x26   :  { %479 = vmatprep.mubr.bf16.mxu1 %v760_v39 }
  0x28   :  { %709 = vmatpush3.bf16.msra.mxu0 %v757_v37 }
  0x29   :  { %710 = vmatprep.subr.bf16.mxu0 %v764_v41 }
  0x2b   :  { %431 = vmatmul.mubr.bf16.gmra.mxu0 %v762_v40 }
  0x2c   :  { %480 = vmatmul.mubr.bf16.gmra.mxu1 %v763_v42  ;;  %714 = vmatprep.mubr.msk.bf16.mxu0 %vm383_vm0, %v766_v43 }
  0x2d   :  { %711 = vmatpush3.bf16.msra.mxu0 %v764_v41 }
  0x2e   :  { %712 = vmatprep.subr.bf16.mxu0 %v765_v44 }
  0x31   :  { %713 = vmatpush3.bf16.msra.mxu0 %v765_v44 }
  0x34   :  { %715 = vmatmul.mubr.msk.bf16.vlgmr.msra.gmra.mxu0 %vm383_vm0, %v767_v45 }
  0xe3   :  { %v660_v46 = vpop.f32.mrf.mxu0 }
  0xe4   :  { %v688_v47 = vpop.f32.mrf.mxu1 }
  0xe5   :  { %v661_v48 = vpop.f32.mrf.mxu0 }
  0xe6   :  { %v689_v49 = vpop.f32.mrf.mxu1  ;;  %v662_v62 = vadd.f32 %v661_v48, %v660_v46 }
  0xe7   :  { %v663_v50 = vpop.f32.mrf.mxu0  ;;  %v690_v63 = vadd.f32 %v689_v49, %v688_v47 }
  0xe8   :  { %v691_v51 = vpop.f32.mrf.mxu1 }
  0xe9   :  { %v664_v52 = vpop.f32.mrf.mxu0  ;;  %v474_v10 = vadd.f32 %v690_v63, %v662_v62 }
  0xea   :  { %v692_v53 = vpop.f32.mrf.mxu1  ;;  %v665_v7 = vadd.f32 %v664_v52, %v663_v50 }
  0xeb   :  { %v666_v54 = vpop.f32.mrf.mxu0  ;;  %v693_v8 = vadd.f32 %v692_v53, %v691_v51 }
  0xec   :  { %v694_v55 = vpop.f32.mrf.mxu1 }
  0xed   :  { %v667_v56 = vpop.f32.mrf.mxu0  ;;  %v477_v21 = vadd.f32 %v693_v8, %v665_v7 }
  0xee   :  { %v695_v57 = vpop.f32.mrf.mxu1  ;;  %v668_v58 = vadd.f32 %v667_v56, %v666_v54 }
  0xef   :  { %v696_v59 = vadd.f32 %v695_v57, %v694_v55  ;;  %v669_v60 = vpop.f32.mrf.mxu0 }
  0xf0   :  { %v697_v61 = vpop.f32.mrf.mxu1 }
  0xf1   :  { %v670_v0 = vpop.f32.mrf.mxu0  ;;  %v482_v4 = vadd.f32 %v696_v59, %v668_v58 }
  0xf2   :  { %v698_v1 = vpop.f32.mrf.mxu1  ;;  %v671_v2 = vadd.f32 %v670_v0, %v669_v60 }
  0xf3   :  { %v699_v3 = vadd.f32 %v698_v1, %v697_v61 }
  0xf4   :  { %v716_v5 = vpop.f32.mrf.mxu0 }
  0xf5   :  { %v531_v9 = vadd.f32 %v716_v5, %v482_v4  ;;  %v485_v15 = vadd.f32 %v699_v3, %v671_v2 }
  0xf6   :  { %v522_v12 = vpop.f32.mrf.mxu0 }
  0xf7   :  { %v561_v13 = vmul.f32 %v642_v6, %v531_v9  ;;  %v523_v14 = vadd.f32 %v522_v12, %v474_v10 }
  0xf8   :  { %v717_v17 = vpop.f32.mrf.mxu0 }
  0xf9   :  { %v572_v18 = vadd.f32 %v643_v11, %v561_v13  ;;  %v559_v19 = vmul.f32 %v642_v6, %v523_v14  ;;  %v534_v20 = vadd.f32 %v717_v17, %v485_v15 }
  0xfa   :  { %v525_v23 = vpop.f32.mrf.mxu0 }
  0xfb   :  { %v580_v24 = vadd.f32 %v576_v16, %v572_v18  ;;  %v570_v25 = vadd.f32 %v643_v11, %v559_v19  ;;  %v562_v26 = vmul.f32 %v642_v6, %v534_v20  ;;  %v526_v27 = vadd.f32 %v525_v23, %v477_v21 }
  0xfd   :  { %v584_v29 = vmax.f32 %v580_v24, 0.0  ;;  %v578_v30 = vadd.f32 %v574_v22, %v570_v25  ;;  %v573_v31 = vadd.f32 %v643_v11, %v562_v26  ;;  %v560_v32 = vmul.f32 %v642_v6, %v526_v27 }
  0xff   :  { %588 = vst [vmem:[%s971_s5 + $0x10] sm:$0xff] %v584_v29  ;;  %v582_v34 = vmax.f32 %v578_v30, 0.0  ;;  %v581_v35 = vadd.f32 %v577_v28, %v573_v31  ;;  %v571_v36 = vadd.f32 %v643_v11, %v560_v32 }
 0x101   :  { %586 = vst [vmem:[%s971_s5] sm:$0xff] %v582_v34  ;;  %v585_v37 = vmax.f32 %v581_v35, 0.0  ;;  %v579_v38 = vadd.f32 %v575_v33, %v571_v36 }
 0x103   :  { %589 = vst [vmem:[%s971_s5 + $0x18] sm:$0xff] %v585_v37  ;;  %v583_v39 = vmax.f32 %v579_v38, 0.0 }
 0x105   :  { %587 = vst [vmem:[%s971_s5 + $0x8] sm:$0xff] %v583_v39 }

// kernel: custom_model_forward.37
= control target key start
LH: loop header
LB: loop body
LE: loop exit
PB: predicated region body
PF: predicated region fallthrough
CT: control target
= control target key end

     0   :  { %v158_v0 = vmov 0.0   ;;  %vm159_vm0 = vmmov 0   ;;  %vm57_vm1 = vcmask 523264   ;;  %s209_s1 = inlined_call_operand.vmem [shape: bf16[64,128], index: 1, kind: input, shape index: {}]   ;;  %s210_s0 = inlined_call_operand.vmem [shape: bf16[8,64], index: 0, kind: input, shape index: {}]   ;;  %s211_s2 = inlined_call_operand.vmem [shape: f32[1,128], index: 2, kind: input, shape index: {}]   ;;  %s212_s3 = inlined_call_operand.vmem [shape: f32[1,128], index: 3, kind: input, shape index: {}]   ;;  %s213_s4 = inlined_call_operand.vmem [shape: f32[8,128], index: 4, kind: output, shape index: {}]  }
   0x1   :  { %140 = vmatprep.subr.bf16.mxu0 %v158_v0  ;;  %v154_v1 = vld [vmem:[%s209_s1 + $0x18] sm:$0xff]   ;;  %148 = vmatprep.mubr.msk.bf16.mxu0 %vm159_vm0, %v158_v0  ;;  %v155_v2 = vld [vmem:[%s209_s1 + $0x10] sm:$0xff]   ;;  %v156_v3 = vld [vmem:[%s209_s1 + $0x8] sm:$0xff]  }
   0x2   :  { %141 = vmatpush3.bf16.msra.mxu0 %v154_v1  ;;  %v157_v4 = vld [vmem:[%s209_s1] sm:$0xff]  }
   0x3   :  { %142 = vmatprep.subr.bf16.mxu0 %v158_v0  ;;  %v24_v5 = vld [vmem:[%s210_s0] sm:$0xf] }
   0x4   :  { %v133_v6 = vld [vmem:[%s211_s2] ss:$0 sm:$0xff] }
   0x5   :  { %v134_v8 = vld [vmem:[%s212_s3] ss:$0 sm:$0xff] }
   0x6   :  { %143 = vmatpush3.bf16.msra.mxu0 %v155_v2 }
   0x7   :  { %144 = vmatprep.subr.bf16.mxu0 %v158_v0 }
   0xa   :  { %145 = vmatpush3.bf16.msra.mxu0 %v156_v3 }
   0xb   :  { %146 = vmatprep.subr.bf16.mxu0 %v158_v0 }
   0xe   :  { %147 = vmatpush3.bf16.msra.mxu0 %v157_v4 }
  0x11   :  { %149 = vmatmul.mubr.msk.bf16.vlgmr.msra.gmra.mxu0 %vm57_vm1, %v24_v5 }
  0xd1   :  { %v95_v7 = vpop.f32.mrf.mxu0 }
  0xd2   :  { %v114_v9 = vmul.f32 %v133_v6, %v95_v7 }
  0xd3   :  { %v150_v10 = vpop.f32.mrf.mxu0 }
  0xd4   :  { %v122_v11 = vadd.f32 %v134_v8, %v114_v9 }
  0xd5   :  { %v98_v12 = vpop.f32.mrf.mxu0 }
  0xd6   :  { %123 = vst [vmem:[%s213_s4] sm:$0xff] %v122_v11 }
  0xd7   :  { %v151_v13 = vpop.f32.mrf.mxu0 }

// kernel: custom_model_forward.34
= control target key start
LH: loop header
LB: loop body
LE: loop exit
PB: predicated region body
PF: predicated region fallthrough
CT: control target
= control target key end

     0   :  { %vm380_vm0 = vcmask 523264   ;;  %s938_s1 = inlined_call_operand.vmem [shape: bf16[576,128], index: 1, kind: input, shape index: {}]   ;;  %s939_s0 = inlined_call_operand.vmem [shape: bf16[32,576], index: 0, kind: input, shape index: {}]   ;;  %s940_s2 = inlined_call_operand.vmem [shape: f32[1,128], index: 2, kind: input, shape index: {}]   ;;  %s941_s3 = inlined_call_operand.vmem [shape: f32[1,128], index: 3, kind: input, shape index: {}]   ;;  %s942_s4 = inlined_call_operand.vmem [shape: f32[32,128], index: 4, kind: output, shape index: {}]  }
   0x1   :  { %v707_v0 = vld [vmem:[%s938_s1 + $0x78] sm:$0xff]   ;;  %v711_v4 = vld [vmem:[%s938_s1 + $0x70] sm:$0xff]   ;;  %v715_v8 = vld [vmem:[%s938_s1 + $0x68] sm:$0xff]  }
   0x2   :  { %v708_v1 = vld [vmem:[%s938_s1 + $0xf8] sm:$0xff]   ;;  %633 = vmatprep.subr.bf16.mxu0 %v707_v0  ;;  %v712_v5 = vld [vmem:[%s938_s1 + $0xf0] sm:$0xff]   ;;  %v716_v9 = vld [vmem:[%s938_s1 + $0xe8] sm:$0xff]  }
   0x3   :  { %v709_v2 = vld [vmem:[%s938_s1 + $0x38] sm:$0xff]   ;;  %661 = vmatprep.subr.bf16.mxu1 %v708_v1  ;;  %v713_v6 = vld [vmem:[%s938_s1 + $0x30] sm:$0xff]   ;;  %v717_v10 = vld [vmem:[%s938_s1 + $0x28] sm:$0xff]  }
   0x4   :  { %v710_v3 = vld [vmem:[%s938_s1 + $0xb8] sm:$0xff]   ;;  %634 = vmatpush3.bf16.msra.mxu0 %v709_v2  ;;  %v714_v7 = vld [vmem:[%s938_s1 + $0xb0] sm:$0xff]   ;;  %v718_v11 = vld [vmem:[%s938_s1 + $0xa8] sm:$0xff]  }
   0x5   :  { %662 = vmatpush3.bf16.msra.mxu1 %v710_v3  ;;  %635 = vmatprep.subr.bf16.mxu0 %v711_v4  ;;  %v719_v12 = vld [vmem:[%s938_s1 + $0x60] sm:$0xff]   ;;  %v723_v16 = vld [vmem:[%s938_s1 + $0x58] sm:$0xff]   ;;  %v727_v20 = vld [vmem:[%s938_s1 + $0x50] sm:$0xff]  }
   0x6   :  { %663 = vmatprep.subr.bf16.mxu1 %v712_v5  ;;  %v720_v13 = vld [vmem:[%s938_s1 + $0xe0] sm:$0xff]   ;;  %v724_v17 = vld [vmem:[%s938_s1 + $0xd8] sm:$0xff]   ;;  %v728_v21 = vld [vmem:[%s938_s1 + $0xd0] sm:$0xff]  }
   0x7   :  { %v721_v14 = vld [vmem:[%s938_s1 + $0x20] sm:$0xff]   ;;  %v725_v18 = vld [vmem:[%s938_s1 + $0x18] sm:$0xff]   ;;  %v729_v22 = vld [vmem:[%s938_s1 + $0x10] sm:$0xff]  }
   0x8   :  { %636 = vmatpush3.bf16.msra.mxu0 %v713_v6  ;;  %v722_v15 = vld [vmem:[%s938_s1 + $0xa0] sm:$0xff]   ;;  %v726_v19 = vld [vmem:[%s938_s1 + $0x98] sm:$0xff]   ;;  %v730_v23 = vld [vmem:[%s938_s1 + $0x90] sm:$0xff]  }
   0x9   :  { %664 = vmatpush3.bf16.msra.mxu1 %v714_v7  ;;  %637 = vmatprep.subr.bf16.mxu0 %v715_v8  ;;  %v731_v24 = vld [vmem:[%s938_s1 + $0x48] sm:$0xff]   ;;  %v735_v28 = vld [vmem:[%s938_s1 + $0x40] sm:$0xff]   ;;  %v745_v36 = vld [vmem:[%s938_s1 + $0x118] sm:$0xff]  }
   0xa   :  { %665 = vmatprep.subr.bf16.mxu1 %v716_v9  ;;  %v732_v25 = vld [vmem:[%s938_s1 + $0xc8] sm:$0xff]   ;;  %v736_v29 = vld [vmem:[%s938_s1 + $0xc0] sm:$0xff]   ;;  %v746_v37 = vld [vmem:[%s938_s1 + $0x110] sm:$0xff]  }
   0xb   :  { %v733_v26 = vld [vmem:[%s938_s1 + $0x8] sm:$0xff]   ;;  %v737_v30 = vld [vmem:[%s938_s1] sm:$0xff]  }
   0xc   :  { %638 = vmatpush3.bf16.msra.mxu0 %v717_v10  ;;  %v734_v27 = vld [vmem:[%s938_s1 + $0x88] sm:$0xff]   ;;  %v738_v31 = vld [vmem:[%s938_s1 + $0x80] sm:$0xff]  }
   0xd   :  { %666 = vmatpush3.bf16.msra.mxu1 %v718_v11  ;;  %639 = vmatprep.subr.bf16.mxu0 %v719_v12  ;;  %v739_v32 = vld [vmem:[%s939_s0] ss:$20 sps:$4 sm:$0xff]   ;;  %v741_v33 = vld [vmem:[%s939_s0 + $0x4] ss:$20 sps:$4 sm:$0xff]   ;;  %v742_v34 = vld [vmem:[%s939_s0 + $0x8] ss:$20 sps:$4 sm:$0xff]  }
   0xe   :  { %667 = vmatprep.subr.bf16.mxu1 %v720_v13  ;;  %v744_v35 = vld [vmem:[%s939_s0 + $0xc] ss:$20 sps:$4 sm:$0xff]   ;;  %419 = vmatprep.mubr.bf16.mxu0 %v741_v33  ;;  %v749_v39 = vld [vmem:[%s939_s0 + $0x34] ss:$20 sps:$4 sm:$0xff]   ;;  %v752_v42 = vld [vmem:[%s939_s0 + $0x30] ss:$20 sps:$4 sm:$0xff]  }
   0xf   :  { %468 = vmatprep.mubr.bf16.mxu1 %v744_v35  ;;  %v747_v38 = vld [vmem:[%s939_s0 + $0x2c] ss:$20 sps:$4 sm:$0xff]   ;;  %v751_v40 = vld [vmem:[%s939_s0 + $0x28] ss:$20 sps:$4 sm:$0xff]   ;;  %v755_v43 = vld [vmem:[%s939_s0 + $0x10] ss:$20 sps:$4 sm:$0xff]  }
  0x10   :  { %640 = vmatpush3.bf16.msra.mxu0 %v721_v14  ;;  %v753_v41 = vld [vmem:[%s938_s1 + $0x108] sm:$0xff]   ;;  %v754_v44 = vld [vmem:[%s938_s1 + $0x100] sm:$0xff]  }
  0x11   :  { %668 = vmatpush3.bf16.msra.mxu1 %v722_v15  ;;  %641 = vmatprep.subr.bf16.mxu0 %v723_v16  ;;  %v756_v45 = vld [vmem:[%s939_s0 + $0x38] ss:$20 sps:$4 sm:$0xff]   ;;  %v631_v6 = vld [vmem:[%s940_s2] ss:$0 sm:$0xff] }
  0x12   :  { %669 = vmatprep.subr.bf16.mxu1 %v724_v17  ;;  %v632_v11 = vld [vmem:[%s941_s3] ss:$0 sm:$0xff] }
  0x14   :  { %642 = vmatpush3.bf16.msra.mxu0 %v725_v18 }
  0x15   :  { %670 = vmatpush3.bf16.msra.mxu1 %v726_v19  ;;  %643 = vmatprep.subr.bf16.mxu0 %v727_v20 }
  0x16   :  { %671 = vmatprep.subr.bf16.mxu1 %v728_v21 }
  0x18   :  { %644 = vmatpush3.bf16.msra.mxu0 %v729_v22 }
  0x19   :  { %672 = vmatpush3.bf16.msra.mxu1 %v730_v23  ;;  %645 = vmatprep.subr.bf16.mxu0 %v731_v24 }
  0x1a   :  { %673 = vmatprep.subr.bf16.mxu1 %v732_v25 }
  0x1c   :  { %646 = vmatpush3.bf16.msra.mxu0 %v733_v26 }
  0x1d   :  { %674 = vmatpush3.bf16.msra.mxu1 %v734_v27  ;;  %647 = vmatprep.subr.bf16.mxu0 %v735_v28 }
  0x1e   :  { %675 = vmatprep.subr.bf16.mxu1 %v736_v29 }
  0x20   :  { %648 = vmatpush3.bf16.msra.mxu0 %v737_v30 }
  0x21   :  { %676 = vmatpush3.bf16.msra.mxu1 %v738_v31  ;;  %695 = vmatprep.subr.bf16.mxu0 %v745_v36 }
  0x23   :  { %420 = vmatmul.mubr.bf16.vlgmr.msra.gmra.mxu0 %v739_v32 }
  0x24   :  { %469 = vmatmul.mubr.bf16.vlgmr.msra.gmra.mxu1 %v742_v34  ;;  %696 = vmatpush3.bf16.msra.mxu0 %v745_v36 }
  0x25   :  { %697 = vmatprep.subr.bf16.mxu0 %v746_v37  ;;  %427 = vmatprep.mubr.bf16.mxu0 %v747_v38 }
  0x26   :  { %476 = vmatprep.mubr.bf16.mxu1 %v749_v39 }
  0x28   :  { %698 = vmatpush3.bf16.msra.mxu0 %v746_v37 }
  0x29   :  { %699 = vmatprep.subr.bf16.mxu0 %v753_v41 }
  0x2b   :  { %428 = vmatmul.mubr.bf16.gmra.mxu0 %v751_v40 }
  0x2c   :  { %477 = vmatmul.mubr.bf16.gmra.mxu1 %v752_v42  ;;  %703 = vmatprep.mubr.msk.bf16.mxu0 %vm380_vm0, %v755_v43 }
  0x2d   :  { %700 = vmatpush3.bf16.msra.mxu0 %v753_v41 }
  0x2e   :  { %701 = vmatprep.subr.bf16.mxu0 %v754_v44 }
  0x31   :  { %702 = vmatpush3.bf16.msra.mxu0 %v754_v44 }
  0x34   :  { %704 = vmatmul.mubr.msk.bf16.vlgmr.msra.gmra.mxu0 %vm380_vm0, %v756_v45 }
  0xe3   :  { %v649_v46 = vpop.f32.mrf.mxu0 }
  0xe4   :  { %v677_v47 = vpop.f32.mrf.mxu1 }
  0xe5   :  { %v650_v48 = vpop.f32.mrf.mxu0 }
  0xe6   :  { %v678_v49 = vpop.f32.mrf.mxu1  ;;  %v651_v62 = vadd.f32 %v650_v48, %v649_v46 }
  0xe7   :  { %v652_v50 = vpop.f32.mrf.mxu0  ;;  %v679_v63 = vadd.f32 %v678_v49, %v677_v47 }
  0xe8   :  { %v680_v51 = vpop.f32.mrf.mxu1 }
  0xe9   :  { %v653_v52 = vpop.f32.mrf.mxu0  ;;  %v471_v10 = vadd.f32 %v679_v63, %v651_v62 }
  0xea   :  { %v681_v53 = vpop.f32.mrf.mxu1  ;;  %v654_v7 = vadd.f32 %v653_v52, %v652_v50 }
  0xeb   :  { %v655_v54 = vpop.f32.mrf.mxu0  ;;  %v682_v8 = vadd.f32 %v681_v53, %v680_v51 }
  0xec   :  { %v683_v55 = vpop.f32.mrf.mxu1 }
  0xed   :  { %v656_v56 = vpop.f32.mrf.mxu0  ;;  %v474_v20 = vadd.f32 %v682_v8, %v654_v7 }
  0xee   :  { %v684_v57 = vpop.f32.mrf.mxu1  ;;  %v657_v58 = vadd.f32 %v656_v56, %v655_v54 }
  0xef   :  { %v685_v59 = vadd.f32 %v684_v57, %v683_v55  ;;  %v658_v60 = vpop.f32.mrf.mxu0 }
  0xf0   :  { %v686_v61 = vpop.f32.mrf.mxu1 }
  0xf1   :  { %v659_v0 = vpop.f32.mrf.mxu0  ;;  %v479_v4 = vadd.f32 %v685_v59, %v657_v58 }
  0xf2   :  { %v687_v1 = vpop.f32.mrf.mxu1  ;;  %v660_v2 = vadd.f32 %v659_v0, %v658_v60 }
  0xf3   :  { %v688_v3 = vadd.f32 %v687_v1, %v686_v61 }
  0xf4   :  { %v705_v5 = vpop.f32.mrf.mxu0 }
  0xf5   :  { %v528_v9 = vadd.f32 %v705_v5, %v479_v4  ;;  %v482_v15 = vadd.f32 %v688_v3, %v660_v2 }
  0xf6   :  { %v519_v12 = vpop.f32.mrf.mxu0 }
  0xf7   :  { %v558_v13 = vmul.f32 %v631_v6, %v528_v9  ;;  %v520_v14 = vadd.f32 %v519_v12, %v471_v10 }
  0xf8   :  { %v706_v16 = vpop.f32.mrf.mxu0 }
  0xf9   :  { %v569_v17 = vadd.f32 %v632_v11, %v558_v13  ;;  %v556_v18 = vmul.f32 %v631_v6, %v520_v14  ;;  %v531_v19 = vadd.f32 %v706_v16, %v482_v15 }
  0xfa   :  { %v522_v21 = vpop.f32.mrf.mxu0 }
  0xfb   :  { %v573_v22 = vmax.f32 %v569_v17, 0.0  ;;  %v567_v23 = vadd.f32 %v632_v11, %v556_v18  ;;  %v559_v24 = vmul.f32 %v631_v6, %v531_v19  ;;  %v523_v25 = vadd.f32 %v522_v21, %v474_v20 }
  0xfd   :  { %577 = vst [vmem:[%s942_s4 + $0x10] sm:$0xff] %v573_v22  ;;  %v571_v26 = vmax.f32 %v567_v23, 0.0  ;;  %v570_v27 = vadd.f32 %v632_v11, %v559_v24  ;;  %v557_v28 = vmul.f32 %v631_v6, %v523_v25 }
  0xff   :  { %575 = vst [vmem:[%s942_s4] sm:$0xff] %v571_v26  ;;  %v574_v29 = vmax.f32 %v570_v27, 0.0  ;;  %v568_v30 = vadd.f32 %v632_v11, %v557_v28 }
 0x101   :  { %578 = vst [vmem:[%s942_s4 + $0x18] sm:$0xff] %v574_v29  ;;  %v572_v31 = vmax.f32 %v568_v30, 0.0 }
 0x103   :  { %576 = vst [vmem:[%s942_s4 + $0x8] sm:$0xff] %v572_v31 }

// kernel: custom_model_forward.36
= control target key start
LH: loop header
LB: loop body
LE: loop exit
PB: predicated region body
PF: predicated region fallthrough
CT: control target
= control target key end

     0   :  { %v632_v36 = vmov 0.0   ;;  %vm633_vm0 = vmmov 0   ;;  %vm332_vm1 = vcmask 523264   ;;  %s785_s1 = inlined_call_operand.vmem [shape: bf16[576,128], index: 1, kind: input, shape index: {}]   ;;  %s786_s0 = inlined_call_operand.vmem [shape: bf16[8,576], index: 0, kind: input, shape index: {}]   ;;  %s787_s2 = inlined_call_operand.vmem [shape: f32[1,128], index: 2, kind: input, shape index: {}]   ;;  %s788_s3 = inlined_call_operand.vmem [shape: f32[1,128], index: 3, kind: input, shape index: {}]   ;;  %s789_s4 = inlined_call_operand.vmem [shape: f32[8,128], index: 4, kind: output, shape index: {}]  }
   0x1   :  { %v591_v0 = vld [vmem:[%s785_s1 + $0x78] sm:$0xff]   ;;  %v595_v4 = vld [vmem:[%s785_s1 + $0x70] sm:$0xff]   ;;  %v599_v8 = vld [vmem:[%s785_s1 + $0x68] sm:$0xff]  }
   0x2   :  { %v592_v1 = vld [vmem:[%s785_s1 + $0xf8] sm:$0xff]   ;;  %528 = vmatprep.subr.bf16.mxu0 %v591_v0  ;;  %v596_v5 = vld [vmem:[%s785_s1 + $0xf0] sm:$0xff]   ;;  %v600_v9 = vld [vmem:[%s785_s1 + $0xe8] sm:$0xff]  }
   0x3   :  { %v593_v2 = vld [vmem:[%s785_s1 + $0x38] sm:$0xff]   ;;  %550 = vmatprep.subr.bf16.mxu1 %v592_v1  ;;  %v597_v6 = vld [vmem:[%s785_s1 + $0x30] sm:$0xff]   ;;  %v601_v10 = vld [vmem:[%s785_s1 + $0x28] sm:$0xff]  }
   0x4   :  { %v594_v3 = vld [vmem:[%s785_s1 + $0xb8] sm:$0xff]   ;;  %529 = vmatpush3.bf16.msra.mxu0 %v593_v2  ;;  %v598_v7 = vld [vmem:[%s785_s1 + $0xb0] sm:$0xff]   ;;  %v602_v11 = vld [vmem:[%s785_s1 + $0xa8] sm:$0xff]  }
   0x5   :  { %551 = vmatpush3.bf16.msra.mxu1 %v594_v3  ;;  %530 = vmatprep.subr.bf16.mxu0 %v595_v4  ;;  %v603_v12 = vld [vmem:[%s785_s1 + $0x60] sm:$0xff]   ;;  %v607_v16 = vld [vmem:[%s785_s1 + $0x58] sm:$0xff]   ;;  %v611_v20 = vld [vmem:[%s785_s1 + $0x50] sm:$0xff]  }
   0x6   :  { %552 = vmatprep.subr.bf16.mxu1 %v596_v5  ;;  %v604_v13 = vld [vmem:[%s785_s1 + $0xe0] sm:$0xff]   ;;  %v608_v17 = vld [vmem:[%s785_s1 + $0xd8] sm:$0xff]   ;;  %v612_v21 = vld [vmem:[%s785_s1 + $0xd0] sm:$0xff]  }
   0x7   :  { %v605_v14 = vld [vmem:[%s785_s1 + $0x20] sm:$0xff]   ;;  %v609_v18 = vld [vmem:[%s785_s1 + $0x18] sm:$0xff]   ;;  %v613_v22 = vld [vmem:[%s785_s1 + $0x10] sm:$0xff]  }
   0x8   :  { %531 = vmatpush3.bf16.msra.mxu0 %v597_v6  ;;  %v606_v15 = vld [vmem:[%s785_s1 + $0xa0] sm:$0xff]   ;;  %v610_v19 = vld [vmem:[%s785_s1 + $0x98] sm:$0xff]   ;;  %v614_v23 = vld [vmem:[%s785_s1 + $0x90] sm:$0xff]  }
   0x9   :  { %553 = vmatpush3.bf16.msra.mxu1 %v598_v7  ;;  %532 = vmatprep.subr.bf16.mxu0 %v599_v8  ;;  %v615_v24 = vld [vmem:[%s785_s1 + $0x48] sm:$0xff]   ;;  %v619_v28 = vld [vmem:[%s785_s1 + $0x40] sm:$0xff]   ;;  %v628_v39 = vld [vmem:[%s785_s1 + $0x118] sm:$0xff]  }
   0xa   :  { %554 = vmatprep.subr.bf16.mxu1 %v600_v9  ;;  %v616_v25 = vld [vmem:[%s785_s1 + $0xc8] sm:$0xff]   ;;  %v620_v29 = vld [vmem:[%s785_s1 + $0xc0] sm:$0xff]   ;;  %v629_v40 = vld [vmem:[%s785_s1 + $0x110] sm:$0xff]  }
   0xb   :  { %v617_v26 = vld [vmem:[%s785_s1 + $0x8] sm:$0xff]   ;;  %v621_v30 = vld [vmem:[%s785_s1] sm:$0xff]   ;;  %v625_v43 = vld [vmem:[%s786_s0 + $0x10] ss:$0 sps:$4 sm:$0xff]  }
   0xc   :  { %533 = vmatpush3.bf16.msra.mxu0 %v601_v10  ;;  %v618_v27 = vld [vmem:[%s785_s1 + $0x88] sm:$0xff]   ;;  %v622_v31 = vld [vmem:[%s785_s1 + $0x80] sm:$0xff]  }
   0xd   :  { %555 = vmatpush3.bf16.msra.mxu1 %v602_v11  ;;  %534 = vmatprep.subr.bf16.mxu0 %v603_v12  ;;  %v24_v32 = vld [vmem:[%s786_s0] sm:$0xff]  ;;  %v25_v35 = vld [vmem:[%s786_s0 + $0x8] sm:$0xff] }
   0xe   :  { %556 = vmatprep.subr.bf16.mxu1 %v604_v13  ;;  %v484_v33 = vcombine.low %v24_v32, %v24_v32  ;;  %v485_v34 = vcombine.high %v24_v32, %v24_v32  ;;  %v486_v37 = vcombine.low %v25_v35, %v25_v35  ;;  %v487_v38 = vcombine.high %v25_v35, %v25_v35  ;;  %v630_v41 = vld [vmem:[%s785_s1 + $0x108] sm:$0xff]   ;;  %v631_v42 = vld [vmem:[%s785_s1 + $0x100] sm:$0xff]  }
   0xf   :  { %v526_v56 = vld [vmem:[%s787_s2] ss:$0 sm:$0xff] }
  0x10   :  { %535 = vmatpush3.bf16.msra.mxu0 %v605_v14  ;;  %368 = vmatprep.mubr.bf16.mxu0 %v485_v34  ;;  %v527_v58 = vld [vmem:[%s788_s3] ss:$0 sm:$0xff] }
  0x11   :  { %557 = vmatpush3.bf16.msra.mxu1 %v606_v15  ;;  %536 = vmatprep.subr.bf16.mxu0 %v607_v16 }
  0x12   :  { %558 = vmatprep.subr.bf16.mxu1 %v608_v17  ;;  %408 = vmatprep.mubr.bf16.mxu1 %v487_v38 }
  0x14   :  { %537 = vmatpush3.bf16.msra.mxu0 %v609_v18 }
  0x15   :  { %559 = vmatpush3.bf16.msra.mxu1 %v610_v19  ;;  %538 = vmatprep.subr.bf16.mxu0 %v611_v20 }
  0x16   :  { %560 = vmatprep.subr.bf16.mxu1 %v612_v21 }
  0x18   :  { %539 = vmatpush3.bf16.msra.mxu0 %v613_v22 }
  0x19   :  { %561 = vmatpush3.bf16.msra.mxu1 %v614_v23  ;;  %540 = vmatprep.subr.bf16.mxu0 %v615_v24 }
  0x1a   :  { %562 = vmatprep.subr.bf16.mxu1 %v616_v25 }
  0x1c   :  { %541 = vmatpush3.bf16.msra.mxu0 %v617_v26 }
  0x1d   :  { %563 = vmatpush3.bf16.msra.mxu1 %v618_v27  ;;  %542 = vmatprep.subr.bf16.mxu0 %v619_v28 }
  0x1e   :  { %564 = vmatprep.subr.bf16.mxu1 %v620_v29 }
  0x20   :  { %543 = vmatpush3.bf16.msra.mxu0 %v621_v30 }
  0x21   :  { %565 = vmatpush3.bf16.msra.mxu1 %v622_v31  ;;  %577 = vmatprep.subr.bf16.mxu0 %v632_v36 }
  0x23   :  { %369 = vmatmul.mubr.bf16.vlgmr.msra.gmra.mxu0 %v484_v33 }
  0x24   :  { %409 = vmatmul.mubr.bf16.vlgmr.msra.gmra.mxu1 %v486_v37  ;;  %578 = vmatpush3.bf16.msra.mxu0 %v628_v39 }
  0x25   :  { %579 = vmatprep.subr.bf16.mxu0 %v632_v36  ;;  %585 = vmatprep.mubr.msk.bf16.mxu0 %vm633_vm0, %v632_v36 }
  0x28   :  { %580 = vmatpush3.bf16.msra.mxu0 %v629_v40 }
  0x29   :  { %581 = vmatprep.subr.bf16.mxu0 %v632_v36 }
  0x2c   :  { %582 = vmatpush3.bf16.msra.mxu0 %v630_v41 }
  0x2d   :  { %583 = vmatprep.subr.bf16.mxu0 %v632_v36 }
  0x30   :  { %584 = vmatpush3.bf16.msra.mxu0 %v631_v42 }
  0x33   :  { %586 = vmatmul.mubr.msk.bf16.vlgmr.msra.gmra.mxu0 %vm332_vm1, %v625_v43 }
  0xe3   :  { %v544_v44 = vpop.f32.mrf.mxu0 }
  0xe4   :  { %v566_v45 = vpop.f32.mrf.mxu1 }
  0xe5   :  { %v545_v46 = vpop.f32.mrf.mxu0 }
  0xe6   :  { %v567_v47 = vpop.f32.mrf.mxu1  ;;  %v546_v52 = vadd.f32 %v545_v46, %v544_v44 }
  0xe7   :  { %v547_v48 = vpop.f32.mrf.mxu0  ;;  %v568_v53 = vadd.f32 %v567_v47, %v566_v45 }
  0xe8   :  { %v569_v49 = vpop.f32.mrf.mxu1 }
  0xe9   :  { %v548_v50 = vpop.f32.mrf.mxu0  ;;  %v411_v54 = vadd.f32 %v568_v53, %v546_v52 }
  0xea   :  { %v570_v51 = vpop.f32.mrf.mxu1 }
  0xf3   :  { %v450_v55 = vpop.f32.mrf.mxu0 }
  0xf4   :  { %v451_v57 = vadd.f32 %v450_v55, %v411_v54 }
  0xf5   :  { %v587_v59 = vpop.f32.mrf.mxu0 }
  0xf6   :  { %v469_v60 = vmul.f32 %v526_v56, %v451_v57 }
  0xf7   :  { %v453_v61 = vpop.f32.mrf.mxu0 }
  0xf8   :  { %v477_v62 = vadd.f32 %v527_v58, %v469_v60 }
  0xf9   :  { %v588_v63 = vpop.f32.mrf.mxu0 }
  0xfa   :  { %v478_v0 = vmax.f32 %v477_v62, 0.0 }
  0xfc   :  { %479 = vst [vmem:[%s789_s4] sm:$0xff] %v478_v0 }

// kernel: custom_model_forward.38
= control target key start
LH: loop header
LB: loop body
LE: loop exit
PB: predicated region body
PF: predicated region fallthrough
CT: control target
= control target key end

     0   :  { %s1014_s18 = smov 0   ;;  %s1016_s19 = smov 0   ;;  %s1095_s0 = inlined_call_operand.vmem [shape: bf16[8,1152], index: 0, kind: input, shape index: {}]   ;;  %s1096_s1 = inlined_call_operand.vmem [shape: bf16[1152,128], index: 1, kind: input, shape index: {}]   ;;  %s1097_s2 = inlined_call_operand.vmem [shape: f32[1,128], index: 2, kind: input, shape index: {}]   ;;  %s1098_s3 = inlined_call_operand.vmem [shape: f32[1,128], index: 3, kind: input, shape index: {}]   ;;  %s1099_s4 = inlined_call_operand.vmem [shape: f32[8,128], index: 4, kind: input, shape index: {}]   ;;  %s1100_s5 = inlined_call_operand.vmem [shape: f32[8,128], index: 5, kind: output, shape index: {}]  }
   0x1   :  { %s1018_s20 = smov 0  }
   0x2 LB: > { %s27_s21 = sadd.s32 1, %s975_s19  ;;  %p815_p0 = scmp.ge.s32.totalorder %s979_s20, 1  ;;  %s979_s20 = sphi %s1018_s20, %s15_s20   ;;  %s975_s19 = sphi %s1016_s19, %s1102_s19   ;;  %s971_s18 = sphi %s1014_s18, %s1101_s18  }
   0x3   : > { %p28_p1 = scmp.ge.s32.totalorder %s27_s21, 3  ;;  %p261_p2 = scmp.lt.s32.totalorder %s979_s20, 4 }
   0x5   : > { %s1104_s21 = smov (%p28_p1, %s27_s21), 0  ;;  %p262_p3 = pnand %p815_p0, %p261_p2 }
   0x6   : > { %s316_s22 = smul.u32 (!%p262_p3), 3, %s971_s18  ;;  %p818_p6 = scmp.ne.s32.totalorder (!%p262_p3), %s971_s18, 0 }
   0x7   : > { %265 = sbr.rel (%p262_p3) target bundleno = 274 (0x112), region = 40 }
   0x8   : > { %s326_s23 = smul.u32 (!%p262_p3), 48, %s971_s18  ;;  %p319_p4 = scmp.lt.s32.totalorder (!%p262_p3), %s316_s22, 8 }
   0xa   : > { %p327_p5 = scmp.lt.s32.totalorder (!%p262_p3), %s326_s23, 143 }
   0xc   : > { %s1106_s22 = smov (!%p319_p4, %s316_s22), 8  ;;  %s1108_s23 = smov (!%p327_p5, %s326_s23), 143 }
   0xd   : > { %s816_s24 = sshll.u32 %s1106_s22, 2  ;;  %s817_s28 = sshll.u32 %s1108_s23, 2 }
   0xe   : > { %s1039_s27 = scalar_lea.vmem %s1095_s0, %s816_s24  ;;  %s1044_s6 = scalar_lea.vmem %s1096_s1, %s817_s28 }
   0xf   : > { %359 = sbr.rel (%p818_p6) target bundleno = 22 (0x16), region = 44 }
  0x14   : > { %v981_v0 = vmov 0.0  }
  0x15   : > { %360 = vst [vmem:[#allocation2] sm:$0xff] %v981_v0 }
  0x16 PF: > { %v930_v1 = vld [vmem:[%s1044_s6 + $0x78] sm:$0xff]   ;;  %v982_v2 = vmov 0.0   ;;  %vm983_vm0 = vmmov 0   ;;  %v933_v5 = vld [vmem:[%s1044_s6 + $0x70] sm:$0xff]   ;;  %v936_v8 = vld [vmem:[%s1044_s6 + $0x68] sm:$0xff]   ;;  %p846_p7 = scmp.ne.s32.totalorder %s971_s18, 2 }
  0x17   : > { %883 = vmatprep.subr.bf16.mxu1 %v982_v2  ;;  %v931_v3 = vld [vmem:[%s1044_s6 + $0xb8] sm:$0xff]   ;;  %852 = vmatprep.subr.bf16.mxu0 %v930_v1  ;;  %v934_v6 = vld [vmem:[%s1044_s6 + $0xb0] sm:$0xff]   ;;  %v937_v9 = vld [vmem:[%s1044_s6 + $0xa8] sm:$0xff]  }
  0x18   : > { %v932_v4 = vld [vmem:[%s1044_s6 + $0x38] sm:$0xff]   ;;  %899 = vmatprep.mubr.msk.bf16.mxu1 %vm983_vm0, %v982_v2  ;;  %884 = vmatpush3.bf16.msra.mxu1 %v931_v3  ;;  %v935_v7 = vld [vmem:[%s1044_s6 + $0x30] sm:$0xff]   ;;  %v938_v10 = vld [vmem:[%s1044_s6 + $0x28] sm:$0xff]  }
  0x19   : > { %853 = vmatpush3.bf16.msra.mxu0 %v932_v4  ;;  %885 = vmatprep.subr.bf16.mxu1 %v982_v2  ;;  %v939_v11 = vld [vmem:[%s1044_s6 + $0x60] sm:$0xff]   ;;  %v942_v14 = vld [vmem:[%s1044_s6 + $0x58] sm:$0xff]   ;;  %v945_v17 = vld [vmem:[%s1044_s6 + $0x50] sm:$0xff]  }
  0x1a   : > { %854 = vmatprep.subr.bf16.mxu0 %v933_v5  ;;  %v940_v12 = vld [vmem:[%s1044_s6 + $0xa0] sm:$0xff]   ;;  %v943_v15 = vld [vmem:[%s1044_s6 + $0x98] sm:$0xff]   ;;  %v946_v18 = vld [vmem:[%s1044_s6 + $0x90] sm:$0xff]  }
  0x1b   : > { %v941_v13 = vld [vmem:[%s1044_s6 + $0x20] sm:$0xff]   ;;  %v944_v16 = vld [vmem:[%s1044_s6 + $0x18] sm:$0xff]   ;;  %v947_v19 = vld [vmem:[%s1044_s6 + $0x10] sm:$0xff]  }
  0x1c   : > { %886 = vmatpush3.bf16.msra.mxu1 %v934_v6  ;;  %v948_v20 = vld [vmem:[%s1044_s6 + $0x48] sm:$0xff]   ;;  %v362_v23 = vld [vmem:[%s1039_s27] sm:$0xff] }
  0x1d   : > { %855 = vmatpush3.bf16.msra.mxu0 %v935_v7  ;;  %887 = vmatprep.subr.bf16.mxu1 %v982_v2  ;;  %v949_v21 = vld [vmem:[%s1044_s6 + $0x88] sm:$0xff]   ;;  %v951_v24 = vld [vmem:[%s1044_s6 + $0x40] sm:$0xff]   ;;  %v820_v25 = vcombine.high %v362_v23, %v362_v23  ;;  %v819_v29 = vcombine.low %v362_v23, %v362_v23 }
  0x1e   : > { %856 = vmatprep.subr.bf16.mxu0 %v936_v8  ;;  %v950_v22 = vld [vmem:[%s1044_s6 + $0x8] sm:$0xff]   ;;  %v952_v26 = vld [vmem:[%s1044_s6 + $0x80] sm:$0xff]  }
  0x1f   : > { %599 = vmatprep.mubr.bf16.mxu0 %v820_v25  ;;  %v953_v27 = vld [vmem:[%s1044_s6] sm:$0xff]   ;;  %v956_v28 = vld [vmem:[%s1039_s27 + $0x8] ss:$0 sps:$4 sm:$0xff]  }
  0x20   : > { %888 = vmatpush3.bf16.msra.mxu1 %v937_v9  ;;  %v361_v36 = vld [vmem:[#allocation2] sm:$0xff] }
  0x21   : > { %857 = vmatpush3.bf16.msra.mxu0 %v938_v10  ;;  %889 = vmatprep.subr.bf16.mxu1 %v982_v2 }
  0x22   : > { %858 = vmatprep.subr.bf16.mxu0 %v939_v11 }
  0x24   : > { %890 = vmatpush3.bf16.msra.mxu1 %v940_v12 }
  0x25   : > { %859 = vmatpush3.bf16.msra.mxu0 %v941_v13  ;;  %891 = vmatprep.subr.bf16.mxu1 %v982_v2 }
  0x26   : > { %860 = vmatprep.subr.bf16.mxu0 %v942_v14 }
  0x28   : > { %892 = vmatpush3.bf16.msra.mxu1 %v943_v15 }
  0x29   : > { %861 = vmatpush3.bf16.msra.mxu0 %v944_v16  ;;  %893 = vmatprep.subr.bf16.mxu1 %v982_v2 }
  0x2a   : > { %862 = vmatprep.subr.bf16.mxu0 %v945_v17 }
  0x2c   : > { %894 = vmatpush3.bf16.msra.mxu1 %v946_v18 }
  0x2d   : > { %863 = vmatpush3.bf16.msra.mxu0 %v947_v19  ;;  %895 = vmatprep.subr.bf16.mxu1 %v982_v2 }
  0x2e   : > { %864 = vmatprep.subr.bf16.mxu0 %v948_v20 }
  0x30   : > { %896 = vmatpush3.bf16.msra.mxu1 %v949_v21 }
  0x31   : > { %865 = vmatpush3.bf16.msra.mxu0 %v950_v22  ;;  %897 = vmatprep.subr.bf16.mxu1 %v982_v2 }
  0x32   : > { %866 = vmatprep.subr.bf16.mxu0 %v951_v24 }
  0x34   : > { %898 = vmatpush3.bf16.msra.mxu1 %v952_v26 }
  0x35   : > { %867 = vmatpush3.bf16.msra.mxu0 %v953_v27 }
  0x37   : > { %900 = vmatmul.mubr.bf16.vlgmr.msra.gmra.mxu1 %v956_v28 }
  0x38   : > { %600 = vmatmul.mubr.bf16.vlgmr.msra.gmra.mxu0 %v819_v29 }
  0xf7   : > { %v641_v30 = vpop.f32.mrf.mxu1 }
  0xf8   : > { %v868_v31 = vpop.f32.mrf.mxu0 }
  0xf9   : > { %v901_v32 = vpop.f32.mrf.mxu1 }
  0xfa   : > { %v869_v33 = vpop.f32.mrf.mxu0 }
  0xfb   : > { %v870_v34 = vadd.f32 %v869_v33, %v868_v31  ;;  %v644_v35 = vpop.f32.mrf.mxu1 }
  0xfc   : > { %v871_v37 = vpop.f32.mrf.mxu0 }
  0xfd   : > { %v642_v38 = vadd.f32 %v870_v34, %v641_v30  ;;  %v902_v39 = vpop.f32.mrf.mxu1  ;;  %652 = sbr.rel (%p846_p7) target bundleno = 274 (0x112), region = 48 }
  0xfe   : > { %v872_v40 = vpop.f32.mrf.mxu0 }
  0xff   : > { %v647_v41 = vadd.f32 %v642_v38, %v361_v36 }
 0x101   : > { %648 = vst [vmem:[#allocation2] sm:$0xff] %v647_v41 }
 0x102   : > { %v847_v43 = vld [vmem:[%s1097_s2] ss:$0 sm:$0xff] }
 0x103   : > { %v848_v44 = vld [vmem:[%s1098_s3] ss:$0 sm:$0xff] }
 0x104   : > { %v670_v46 = vld [vmem:[%s1099_s4] sm:$0xff] }
 0x108   : > { %v653_v42 = vld [vmem:[#allocation2] sm:$0xff] }
 0x109   : > { %v661_v45 = vmul.f32 %v847_v43, %v653_v42 }
 0x10b   : > { %v669_v47 = vadd.f32 %v848_v44, %v661_v45 }
 0x10d   : > { %v671_v48 = vadd.f32 %v670_v46, %v669_v47 }
 0x10f   : > { %v672_v49 = vmax.f32 %v671_v48, 0.0 }
 0x111   : > { %673 = vst [vmem:[%s1100_s5] sm:$0xff] %v672_v49 }
 0x112 PF: > { %s15_s20 = sadd.s32 1, %s979_s20   ;;  %s1101_s18 = smov %s975_s19 }
 0x113   : > { %p12_p8 = scmp.ge.s32.totalorder %s15_s20, 5   ;;  %s1102_s19 = smov %s1104_s21 }
 0x115   :  { %14 = sbr.rel (!%p12_p8) target bundleno = 2 (0x2), region = 90 }

// kernel: custom_model_forward.39
= control target key start
LH: loop header
LB: loop body
LE: loop exit
PB: predicated region body
PF: predicated region fallthrough
CT: control target
= control target key end

     0   :  { %s933_s15 = smov 0   ;;  %s935_s16 = smov 0   ;;  %s1011_s0 = inlined_call_operand.vmem [shape: bf16[8,1152], index: 0, kind: input, shape index: {}]   ;;  %s1012_s1 = inlined_call_operand.vmem [shape: bf16[1152,128], index: 1, kind: input, shape index: {}]   ;;  %s1013_s2 = inlined_call_operand.vmem [shape: f32[1,128], index: 2, kind: input, shape index: {}]   ;;  %s1014_s3 = inlined_call_operand.vmem [shape: f32[1,128], index: 3, kind: input, shape index: {}]   ;;  %s1015_s4 = inlined_call_operand.vmem [shape: f32[8,128], index: 4, kind: output, shape index: {}]  }
   0x1   :  { %s937_s17 = smov 0  }
   0x2 LB: > { %s26_s18 = sadd.s32 1, %s899_s16  ;;  %p739_p0 = scmp.ge.s32.totalorder %s903_s17, 1  ;;  %s903_s17 = sphi %s937_s17, %s14_s17   ;;  %s899_s16 = sphi %s935_s16, %s1017_s16   ;;  %s895_s15 = sphi %s933_s15, %s1016_s15  }
   0x3   : > { %p27_p1 = scmp.ge.s32.totalorder %s26_s18, 3  ;;  %p222_p2 = scmp.lt.s32.totalorder %s903_s17, 4 }
   0x5   : > { %s1019_s18 = smov (%p27_p1, %s26_s18), 0  ;;  %p223_p3 = pnand %p739_p0, %p222_p2 }
   0x6   : > { %s268_s19 = smul.u32 (!%p223_p3), 3, %s895_s15  ;;  %p742_p6 = scmp.ne.s32.totalorder (!%p223_p3), %s895_s15, 0 }
   0x7   : > { %226 = sbr.rel (%p223_p3) target bundleno = 272 (0x110), region = 36 }
   0x8   : > { %s278_s20 = smul.u32 (!%p223_p3), 48, %s895_s15  ;;  %p271_p4 = scmp.lt.s32.totalorder (!%p223_p3), %s268_s19, 8 }
   0xa   : > { %p279_p5 = scmp.lt.s32.totalorder (!%p223_p3), %s278_s20, 143 }
   0xc   : > { %s1021_s19 = smov (!%p271_p4, %s268_s19), 8  ;;  %s1023_s20 = smov (!%p279_p5, %s278_s20), 143 }
   0xd   : > { %s740_s21 = sshll.u32 %s1021_s19, 2  ;;  %s741_s25 = sshll.u32 %s1023_s20, 2 }
   0xe   : > { %s958_s24 = scalar_lea.vmem %s1011_s0, %s740_s21  ;;  %s963_s28 = scalar_lea.vmem %s1012_s1, %s741_s25 }
   0xf   : > { %304 = sbr.rel (%p742_p6) target bundleno = 22 (0x16), region = 40 }
  0x14   : > { %v905_v0 = vmov 0.0  }
  0x15   : > { %305 = vst [vmem:[#allocation2] sm:$0xff] %v905_v0 }
  0x16 PF: > { %v854_v1 = vld [vmem:[%s963_s28 + $0x78] sm:$0xff]   ;;  %v906_v2 = vmov 0.0   ;;  %vm907_vm0 = vmmov 0   ;;  %v857_v5 = vld [vmem:[%s963_s28 + $0x70] sm:$0xff]   ;;  %v860_v8 = vld [vmem:[%s963_s28 + $0x68] sm:$0xff]   ;;  %p770_p7 = scmp.ne.s32.totalorder %s895_s15, 2 }
  0x17   : > { %807 = vmatprep.subr.bf16.mxu1 %v906_v2  ;;  %v855_v3 = vld [vmem:[%s963_s28 + $0xb8] sm:$0xff]   ;;  %776 = vmatprep.subr.bf16.mxu0 %v854_v1  ;;  %v858_v6 = vld [vmem:[%s963_s28 + $0xb0] sm:$0xff]   ;;  %v861_v9 = vld [vmem:[%s963_s28 + $0xa8] sm:$0xff]  }
  0x18   : > { %v856_v4 = vld [vmem:[%s963_s28 + $0x38] sm:$0xff]   ;;  %823 = vmatprep.mubr.msk.bf16.mxu1 %vm907_vm0, %v906_v2  ;;  %808 = vmatpush3.bf16.msra.mxu1 %v855_v3  ;;  %v859_v7 = vld [vmem:[%s963_s28 + $0x30] sm:$0xff]   ;;  %v862_v10 = vld [vmem:[%s963_s28 + $0x28] sm:$0xff]  }
  0x19   : > { %777 = vmatpush3.bf16.msra.mxu0 %v856_v4  ;;  %809 = vmatprep.subr.bf16.mxu1 %v906_v2  ;;  %v863_v11 = vld [vmem:[%s963_s28 + $0x60] sm:$0xff]   ;;  %v866_v14 = vld [vmem:[%s963_s28 + $0x58] sm:$0xff]   ;;  %v869_v17 = vld [vmem:[%s963_s28 + $0x50] sm:$0xff]  }
  0x1a   : > { %778 = vmatprep.subr.bf16.mxu0 %v857_v5  ;;  %v864_v12 = vld [vmem:[%s963_s28 + $0xa0] sm:$0xff]   ;;  %v867_v15 = vld [vmem:[%s963_s28 + $0x98] sm:$0xff]   ;;  %v870_v18 = vld [vmem:[%s963_s28 + $0x90] sm:$0xff]  }
  0x1b   : > { %v865_v13 = vld [vmem:[%s963_s28 + $0x20] sm:$0xff]   ;;  %v868_v16 = vld [vmem:[%s963_s28 + $0x18] sm:$0xff]   ;;  %v871_v19 = vld [vmem:[%s963_s28 + $0x10] sm:$0xff]  }
  0x1c   : > { %810 = vmatpush3.bf16.msra.mxu1 %v858_v6  ;;  %v872_v20 = vld [vmem:[%s963_s28 + $0x48] sm:$0xff]   ;;  %v307_v23 = vld [vmem:[%s958_s24] sm:$0xff] }
  0x1d   : > { %779 = vmatpush3.bf16.msra.mxu0 %v859_v7  ;;  %811 = vmatprep.subr.bf16.mxu1 %v906_v2  ;;  %v873_v21 = vld [vmem:[%s963_s28 + $0x88] sm:$0xff]   ;;  %v875_v24 = vld [vmem:[%s963_s28 + $0x40] sm:$0xff]   ;;  %v744_v25 = vcombine.high %v307_v23, %v307_v23  ;;  %v743_v29 = vcombine.low %v307_v23, %v307_v23 }
  0x1e   : > { %780 = vmatprep.subr.bf16.mxu0 %v860_v8  ;;  %v874_v22 = vld [vmem:[%s963_s28 + $0x8] sm:$0xff]   ;;  %v876_v26 = vld [vmem:[%s963_s28 + $0x80] sm:$0xff]  }
  0x1f   : > { %544 = vmatprep.mubr.bf16.mxu0 %v744_v25  ;;  %v877_v27 = vld [vmem:[%s963_s28] sm:$0xff]   ;;  %v880_v28 = vld [vmem:[%s958_s24 + $0x8] ss:$0 sps:$4 sm:$0xff]  }
  0x20   : > { %812 = vmatpush3.bf16.msra.mxu1 %v861_v9  ;;  %v306_v36 = vld [vmem:[#allocation2] sm:$0xff] }
  0x21   : > { %781 = vmatpush3.bf16.msra.mxu0 %v862_v10  ;;  %813 = vmatprep.subr.bf16.mxu1 %v906_v2 }
  0x22   : > { %782 = vmatprep.subr.bf16.mxu0 %v863_v11 }
  0x24   : > { %814 = vmatpush3.bf16.msra.mxu1 %v864_v12 }
  0x25   : > { %783 = vmatpush3.bf16.msra.mxu0 %v865_v13  ;;  %815 = vmatprep.subr.bf16.mxu1 %v906_v2 }
  0x26   : > { %784 = vmatprep.subr.bf16.mxu0 %v866_v14 }
  0x28   : > { %816 = vmatpush3.bf16.msra.mxu1 %v867_v15 }
  0x29   : > { %785 = vmatpush3.bf16.msra.mxu0 %v868_v16  ;;  %817 = vmatprep.subr.bf16.mxu1 %v906_v2 }
  0x2a   : > { %786 = vmatprep.subr.bf16.mxu0 %v869_v17 }
  0x2c   : > { %818 = vmatpush3.bf16.msra.mxu1 %v870_v18 }
  0x2d   : > { %787 = vmatpush3.bf16.msra.mxu0 %v871_v19  ;;  %819 = vmatprep.subr.bf16.mxu1 %v906_v2 }
  0x2e   : > { %788 = vmatprep.subr.bf16.mxu0 %v872_v20 }
  0x30   : > { %820 = vmatpush3.bf16.msra.mxu1 %v873_v21 }
  0x31   : > { %789 = vmatpush3.bf16.msra.mxu0 %v874_v22  ;;  %821 = vmatprep.subr.bf16.mxu1 %v906_v2 }
  0x32   : > { %790 = vmatprep.subr.bf16.mxu0 %v875_v24 }
  0x34   : > { %822 = vmatpush3.bf16.msra.mxu1 %v876_v26 }
  0x35   : > { %791 = vmatpush3.bf16.msra.mxu0 %v877_v27 }
  0x37   : > { %824 = vmatmul.mubr.bf16.vlgmr.msra.gmra.mxu1 %v880_v28 }
  0x38   : > { %545 = vmatmul.mubr.bf16.vlgmr.msra.gmra.mxu0 %v743_v29 }
  0xf7   : > { %v586_v30 = vpop.f32.mrf.mxu1 }
  0xf8   : > { %v792_v31 = vpop.f32.mrf.mxu0 }
  0xf9   : > { %v825_v32 = vpop.f32.mrf.mxu1 }
  0xfa   : > { %v793_v33 = vpop.f32.mrf.mxu0 }
  0xfb   : > { %v794_v34 = vadd.f32 %v793_v33, %v792_v31  ;;  %v589_v35 = vpop.f32.mrf.mxu1 }
  0xfc   : > { %v795_v37 = vpop.f32.mrf.mxu0 }
  0xfd   : > { %v587_v38 = vadd.f32 %v794_v34, %v586_v30  ;;  %v826_v39 = vpop.f32.mrf.mxu1  ;;  %597 = sbr.rel (%p770_p7) target bundleno = 272 (0x110), region = 44 }
  0xfe   : > { %v796_v40 = vpop.f32.mrf.mxu0 }
  0xff   : > { %v592_v41 = vadd.f32 %v587_v38, %v306_v36 }
 0x101   : > { %593 = vst [vmem:[#allocation2] sm:$0xff] %v592_v41 }
 0x102   : > { %v771_v43 = vld [vmem:[%s1013_s2] ss:$0 sm:$0xff] }
 0x103   : > { %v772_v44 = vld [vmem:[%s1014_s3] ss:$0 sm:$0xff] }
 0x108   : > { %v598_v42 = vld [vmem:[#allocation2] sm:$0xff] }
 0x109   : > { %v606_v45 = vmul.f32 %v771_v43, %v598_v42 }
 0x10b   : > { %v614_v46 = vadd.f32 %v772_v44, %v606_v45 }
 0x10d   : > { %v615_v47 = vmax.f32 %v614_v46, 0.0 }
 0x10f   : > { %616 = vst [vmem:[%s1015_s4] sm:$0xff] %v615_v47 }
 0x110 PF: > { %s14_s17 = sadd.s32 1, %s903_s17   ;;  %s1016_s15 = smov %s899_s16 }
 0x111   : > { %p11_p8 = scmp.ge.s32.totalorder %s14_s17, 5   ;;  %s1017_s16 = smov %s1019_s18 }
 0x113   :  { %13 = sbr.rel (!%p11_p8) target bundleno = 2 (0x2), region = 83 }

// kernel: custom_model_forward.41
= control target key start
LH: loop header
LB: loop body
LE: loop exit
PB: predicated region body
PF: predicated region fallthrough
CT: control target
= control target key end

     0   :  { %s3030_s0 = inlined_call_operand.vmem [shape: f32[16,2], index: 0, kind: input, shape index: {}]   ;;  %s3031_s1 = inlined_call_operand.vmem [shape: f32[2,16], index: 1, kind: input, shape index: {}]   ;;  %s3032_s2 = inlined_call_operand.vmem [shape: f32[16,2], index: 2, kind: input, shape index: {}]   ;;  %s3033_s3 = inlined_call_operand.vmem [shape: f32[2,32], index: 3, kind: input, shape index: {}]   ;;  %s3034_s4 = inlined_call_operand.vmem [shape: f32[32,2], index: 4, kind: input, shape index: {}]   ;;  %s3035_s5 = inlined_call_operand.vmem [shape: f32[2,64], index: 5, kind: input, shape index: {}]   ;;  %s3036_s6 = inlined_call_operand.vmem [shape: f32[64,2], index: 6, kind: input, shape index: {}]   ;;  %s3037_s7 = inlined_call_operand.vmem [shape: f32[2,128], index: 7, kind: input, shape index: {}]   ;;  %s3038_s8 = inlined_call_operand.vmem [shape: f32[2,16], index: 8, kind: input, shape index: {}]   ;;  %s3039_s9 = inlined_call_operand.vmem [shape: f32[128,256], index: 9, kind: input, shape index: {}]   ;;  %s3040_s10 = inlined_call_operand.vmem [shape: f32[128,256], index: 10, kind: input, shape index: {}]   ;;  %s3041_s11 = inlined_call_operand.vmem [shape: f32[1,256], index: 11, kind: input, shape index: {}]   ;;  %s3042_s12 = inlined_call_operand.vmem [shape: f32[1,256], index: 12, kind: input, shape index: {}]   ;;  %s3043_s13 = inlined_call_operand.vmem [shape: f32[256,256], index: 13, kind: input, shape index: {}]   ;;  %s3044_s14 = inlined_call_operand.vmem [shape: f32[1,256], index: 14, kind: input, shape index: {}]   ;;  %s3045_s15 = inlined_call_operand.vmem [shape: f32[1,256], index: 15, kind: input, shape index: {}]   ;;  %s3046_s16 = inlined_call_operand.vmem [shape: f32[256,256], index: 16, kind: input, shape index: {}]   ;;  %s3047_s17 = inlined_call_operand.vmem [shape: f32[1,256], index: 17, kind: input, shape index: {}]   ;;  %s3048_s18 = inlined_call_operand.vmem [shape: f32[1,256], index: 18, kind: input, shape index: {}]   ;;  %s3049_s19 = inlined_call_operand.vmem [shape: f32[1,256], index: 19, kind: input, shape index: {}]   ;;  %s3050_s20 = inlined_call_operand.vmem [shape: f32[256,10], index: 20, kind: input, shape index: {}]   ;;  %s3051_s21 = inlined_call_operand.vmem [shape: f32[1,10], index: 21, kind: input, shape index: {}]   ;;  %s3052_s22 = inlined_call_operand.hbm [shape: f32[2,256], index: 22, kind: output, shape index: {0}]   ;;  %s3053_s23 = inlined_call_operand.hbm [shape: f32[2,10], index: 23, kind: output, shape index: {1}]  }
   0x1   :  { %3058 = sst [smem:[#allocation8_spill]] %s3030_s0 }
   0x2   :  { %3059 = sst [smem:[#allocation9_spill]] %s3031_s1 }
   0x3   :  { %3060 = sst [smem:[#allocation10_spill]] %s3032_s2 }
   0x4   :  { %3061 = sst [smem:[#allocation11_spill]] %s3033_s3 }
   0x5   :  { %3062 = sst [smem:[#allocation12_spill]] %s3034_s4 }
   0x6   :  { %3063 = sst [smem:[#allocation13_spill]] %s3035_s5 }
   0x7   :  { %3064 = sst [smem:[#allocation14_spill]] %s3036_s6 }
   0x8   :  { %3065 = sst [smem:[#allocation15_spill]] %s3037_s7 }
   0x9   :  { %29 = vsyncpa [#allocation3], 0  ;;  %s3066_s24 = sld [smem:[#allocation9_spill]]  ;;  %vm85_vm0 = vcmask 1041408   ;;  %vm78_vm1 = vcmask 15360  }
   0xa   :  { %s3067_s1 = sld [smem:[#allocation8_spill]] }
   0xb   :  { %s3068_s7 = sld [smem:[#allocation11_spill]] }
   0xc   :  { %s3069_s3 = sld [smem:[#allocation10_spill]] }
   0xd   :  { %s3070_s25 = sld [smem:[#allocation13_spill]] }
   0xe   :  { %s3071_s26 = sld [smem:[#allocation12_spill]] }
   0xf   :  { %v77_v0 = vld [vmem:[%s3066_s24] sm:$0x3] }
  0x10   :  { %v75_v1 = vld [vmem:[%s3067_s1] sm:$0xff]  ;;  %v76_v2 = vld [vmem:[%s3067_s1 + $0x8] sm:$0xff]  ;;  %1811 = vmatprep.subr.msk.mxu0 %vm85_vm0, %v77_v0 }
  0x11   :  { %1813 = vmatprep.mubr.msk.f32.mxu0 %vm78_vm1, %v75_v1  ;;  %v191_v3 = vld [vmem:[%s3068_s7] sm:$0x3]  ;;  %1812 = vmatpush3.msk.msra.mxu0 %vm85_vm0, %v77_v0 }
  0x12   :  { %v189_v4 = vld [vmem:[%s3069_s3] sm:$0xff]  ;;  %1816 = vmatprep.subr.msk.mxu1 %vm85_vm0, %v191_v3  ;;  %v190_v5 = vld [vmem:[%s3069_s3 + $0x8] sm:$0xff]  ;;  %1814 = vmatmul.mubr.msk.f32.vlgmr.msra.gmra.mxu0 %vm78_vm1, %v76_v2 }
  0x13   :  { %v305_v6 = vld [vmem:[%s3070_s25] sm:$0x3]  ;;  %1817 = vmatpush3.msk.msra.mxu1 %vm85_vm0, %v191_v3 }
  0x14   :  { %v301_v7 = vld [vmem:[%s3071_s26] sm:$0xff] }
  0x15   :  { %30 = vsyncpa [#allocation5], 0  ;;  %1818 = vmatprep.mubr.msk.f32.mxu1 %vm78_vm1, %v189_v4  ;;  %1821 = vmatprep.subr.msk.mxu0 %vm85_vm0, %v305_v6  ;;  %v302_v8 = vld [vmem:[%s3071_s26 + $0x8] sm:$0xff]  ;;  %v303_v9 = vld [vmem:[%s3071_s26 + $0x10] sm:$0xff]  ;;  %s3072_s4 = sld [smem:[#allocation15_spill]]  ;;  %vm166_vm2 = vcmask 130048  }
  0x16   :  { %1819 = vmatmul.mubr.msk.f32.vlgmr.msra.gmra.mxu1 %vm78_vm1, %v190_v5  ;;  %1822 = vmatpush3.msk.msra.mxu0 %vm85_vm0, %v305_v6  ;;  %v304_v10 = vld [vmem:[%s3071_s26 + $0x18] sm:$0xff]  ;;  %s3073_s25 = sld [smem:[#allocation14_spill]]  ;;  %vm278_vm3 = vcmask 261120   ;;  %vm410_vm4 = vcmask 523264   ;;  %v1999_v54 = vmov 0.0   ;;  %vm2000_vm5 = vmmov 0  }
  0x17   :  { %1823 = vmatprep.mubr.msk.f32.mxu0 %vm78_vm1, %v301_v7  ;;  %1843 = vmatprep.subr.mxu0 %v1999_v54 }
  0x18   :  { %1824 = vmatmul.mubr.msk.f32.vlgmr.msra.gmra.mxu0 %vm78_vm1, %v302_v8 }
  0x19   :  { %1826 = vmatprep.mubr.msk.f32.mxu0 %vm78_vm1, %v303_v9 }
  0x1b   :  { %v2173_v11 = vld [vmem:[%s3072_s4] sm:$0x3] }
  0x1c   :  { %1827 = vmatmul.mubr.msk.f32.gmra.mxu0 %vm78_vm1, %v304_v10  ;;  %v455_v12 = vld [vmem:[%s3073_s25] sm:$0xff]  ;;  %v456_v13 = vld [vmem:[%s3073_s25 + $0x8] sm:$0xff]  ;;  %1829 = vmatprep.subr.msk.mxu1 %vm85_vm0, %v2173_v11  ;;  %v457_v14 = vld [vmem:[%s3073_s25 + $0x10] sm:$0xff] }
  0x1d   :  { %1831 = vmatprep.mubr.msk.f32.mxu1 %vm78_vm1, %v455_v12  ;;  %1830 = vmatpush3.msk.msra.mxu1 %vm85_vm0, %v2173_v11  ;;  %v458_v15 = vld [vmem:[%s3073_s25 + $0x18] sm:$0xff]  ;;  %v459_v16 = vld [vmem:[%s3073_s25 + $0x20] sm:$0xff]  ;;  %v460_v17 = vld [vmem:[%s3073_s25 + $0x28] sm:$0xff] }
  0x1e   :  { %1832 = vmatmul.mubr.msk.f32.vlgmr.msra.gmra.mxu1 %vm78_vm1, %v456_v13  ;;  %v461_v27 = vld [vmem:[%s3073_s25 + $0x30] sm:$0xff]  ;;  %v462_v28 = vld [vmem:[%s3073_s25 + $0x38] sm:$0xff]  ;;  %1847 = vmatprep.mubr.msk.f32.mxu0 %vm2000_vm5, %v1999_v54  ;;  %v676_v10 = vld [vmem:[%s3038_s8] sm:$0x3] }
  0x1f   :  { %1834 = vmatprep.mubr.msk.f32.mxu1 %vm78_vm1, %v457_v14 }
  0x22   :  { %1835 = vmatmul.mubr.msk.f32.gmra.mxu1 %vm78_vm1, %v458_v15 }
  0x23   :  { %1837 = vmatprep.mubr.msk.f32.mxu1 %vm78_vm1, %v459_v16 }
  0x26   :  { %1838 = vmatmul.mubr.msk.f32.gmra.mxu1 %vm78_vm1, %v460_v17 }
  0x27   :  { %1840 = vmatprep.mubr.msk.f32.mxu1 %vm78_vm1, %v461_v27 }
  0x2a   :  { %1841 = vmatmul.mubr.msk.f32.gmra.mxu1 %vm78_vm1, %v462_v28 }
  0x2b   :  { %1097 = vmatprep.mubr.f32.mxu1 %v1999_v54 }
  0xd2   :  { %v1815_v18 = vpop.f32.mrf.mxu0 }
  0xd3   :  { %v165_v19 = vmul.f32 0.25, %v1815_v18 }
  0xd4   :  { %v155_v20 = vpop.f32.mrf.mxu0 }
  0xd5   :  { %v164_v22 = vmul.f32 0.25, %v155_v20  ;;  %v170_v23 = vsel %vm166_vm2, %v165_v19, -inf }
  0xd6   :  { %v1820_v21 = vpop.f32.mrf.mxu1  ;;  %171 = vmax.xlane.f32.xlu0 %v170_v23 }
  0xd7   :  { %v277_v24 = vmul.f32 0.17677669, %v1820_v21  ;;  %v167_v25 = vsel %vm166_vm2, %v164_v22, -inf }
  0xd8   :  { %v1825_v38 = vpop.f32.mrf.mxu0  ;;  %v267_v40 = vpop.f32.mrf.mxu1 }
  0xd9   :  { %v282_v26 = vsel %vm278_vm3, %v277_v24, -inf  ;;  %v276_v43 = vmul.f32 0.17677669, %v267_v40  ;;  %v407_v51 = vmul.f32 0.125, %v1825_v38 }
  0xda   :  { %168 = vmax.xlane.f32.xlu0 %v167_v25  ;;  %v2214_v41 = vpop.f32.mrf.mxu0 }
  0xdb   :  { %v279_v48 = vsel %vm278_vm3, %v276_v43, -inf  ;;  %v414_v53 = vsel %vm410_vm4, %v407_v51, -inf  ;;  %v406_v20 = vmul.f32 0.125, %v2214_v41 }
  0xdc   :  { %v1828_v45 = vpop.f32.mrf.mxu0 }
  0xdd   :  { %v409_v47 = vmul.f32 0.125, %v1828_v45  ;;  %v411_v25 = vsel %vm410_vm4, %v406_v20, -inf }
  0xde   :  { %283 = vmax.xlane.f32.xlu0 %v282_v26  ;;  %v1833_v60 = vpop.f32.mrf.mxu1  ;;  %v397_v14 = vpop.f32.mrf.mxu0 }
  0xdf   :  { %v420_v52 = vsel %vm410_vm4, %v409_v47, -inf  ;;  %v408_v16 = vmul.f32 0.125, %v397_v14 }
  0xe0   :  { %v2226_v0 = vpop.f32.mrf.mxu1 }
  0xe1   :  { %v417_v21 = vsel %vm410_vm4, %v408_v16, -inf }
  0xe2   :  { %v1836_v6 = vpop.f32.mrf.mxu1 }
  0xe4   :  { %v2232_v12 = vpop.f32.mrf.mxu1 }
  0xe6   :  { %v1839_v17 = vpop.f32.mrf.mxu1 }
 0x15f   :  { %v172_v29 = vpop.xlane.xlu0 %171 }
 0x160   :  { %v174_v30 = vsub.f32 %v165_v19, %v172_v29 }
 0x162   :  { %v177_v31 = vmul.f32 1.442695, %v174_v30  ;;  %v601_v30 = vmul.f32 0.088388346, %v1839_v17 }
 0x163   :  { %v169_v32 = vpop.xlane.xlu0 %168 }
 0x164   :  { %1891 = vpow2.f32 %v177_v31  ;;  %v173_v33 = vsub.f32 %v164_v22, %v169_v32  ;;  %v577_v22 = vpop.f32.mrf.mxu1  ;;  %v599_v31 = vmul.f32 0.088388346, %v1836_v6  ;;  %v597_v32 = vmul.f32 0.088388346, %v1833_v60 }
 0x166   :  { %v175_v34 = vmul.f32 1.442695, %v173_v33  ;;  %v1842_v26 = vpop.f32.mrf.mxu1 }
 0x167   :  { %v284_v35 = vpop.xlane.xlu0 %283  ;;  %v603_v29 = vmul.f32 0.088388346, %v1842_v26 }
 0x168   :  { %1893 = vpow2.f32 %v175_v34  ;;  %v286_v36 = vsub.f32 %v277_v24, %v284_v35 }
 0x16a   :  { %v289_v37 = vmul.f32 1.442695, %v286_v36 }
 0x16c   :  { %1895 = vpow2.f32 %v289_v37 }
 0x171   :  { %v1892_v39 = vpop.eup %1891 }
 0x172   :  { %v182_v42 = vsel %vm166_vm2, %v1892_v39, 0.0 }
 0x173   :  { %183 = vadd.xlane.f32.xlu1 %v182_v42 }
 0x175   :  { %v1894_v44 = vpop.eup %1893 }
 0x176   :  { %v179_v46 = vsel %vm166_vm2, %v1894_v44, 0.0 }
 0x177   :  { %180 = vadd.xlane.f32.xlu1 %v179_v46 }
 0x179   :  { %v1896_v49 = vpop.eup %1895 }
 0x17a   :  { %v294_v50 = vsel %vm278_vm3, %v1896_v49, 0.0 }
 0x17b   :  { %280 = vmax.xlane.f32.xlu1 %v279_v48  ;;  %295 = vadd.xlane.f32.xlu0 %v294_v50 }
 0x17f   :  { %421 = vmax.xlane.f32.xlu0 %v420_v52 }
 0x183   :  { %415 = vmax.xlane.f32.xlu0 %v414_v53 }
 0x1fc   :  { %v184_v55 = vpop.xlane.xlu1 %183 }
 0x1fd   :  { %1897 = vrcp.f32 %v184_v55 }
 0x200   :  { %v181_v56 = vpop.xlane.xlu1 %180 }
 0x201   :  { %1899 = vrcp.f32 %v181_v56 }
 0x204   :  { %v281_v57 = vpop.xlane.xlu1 %280  ;;  %v296_v58 = vpop.xlane.xlu0 %295 }
 0x205   :  { %v285_v59 = vsub.f32 %v276_v43, %v281_v57  ;;  %1901 = vrcp.f32 %v296_v58  ;;  %v587_v58 = vpop.f32.mrf.mxu1 }
 0x207   :  { %v287_v61 = vmul.f32 1.442695, %v285_v59 }
 0x208   :  { %v422_v62 = vpop.xlane.xlu0 %421 }
 0x209   :  { %1903 = vpow2.f32 %v287_v61  ;;  %v426_v63 = vsub.f32 %v409_v47, %v422_v62  ;;  %v602_v62 = vmul.f32 0.088388346, %v587_v58  ;;  %v1016_v58 = vld [vmem:[%s3040_s10 + $0x78] sm:$0xff] }
 0x20a   :  { %v1898_v1 = vpop.eup %1897 }
 0x20b   :  { %v433_v2 = vmul.f32 1.442695, %v426_v63  ;;  %v188_v3 = vmul.f32 %v1898_v1, %v1892_v39  ;;  %v600_v1 = vmul.f32 0.088388346, %v577_v22 }
 0x20c   :  { %v416_v4 = vpop.xlane.xlu0 %415 }
 0x20d   :  { %1905 = vpow2.f32 %v433_v2  ;;  %v424_v5 = vsub.f32 %v407_v51, %v416_v4  ;;  %1844 = vmatpush3.msra.mxu0 %v188_v3  ;;  %v598_v3 = vmul.f32 0.088388346, %v2232_v12 }
 0x20e   :  { %v1900_v7 = vpop.eup %1899  ;;  %1845 = vmatprep.subr.mxu0 %v1999_v54 }
 0x20f   :  { %v429_v8 = vmul.f32 1.442695, %v424_v5  ;;  %v187_v9 = vmul.f32 %v1900_v7, %v1894_v44  ;;  %v596_v5 = vmul.f32 0.088388346, %v2226_v0 }
 0x211   :  { %1907 = vpow2.f32 %v429_v8  ;;  %1846 = vmatpush3.msra.mxu0 %v187_v9 }
 0x212   :  { %v1902_v13 = vpop.eup %1901  ;;  %1848 = vmatmul.mubr.msk.f32.vlgmr.msra.gmra.mxu0 %vm166_vm2, %v676_v10  ;;  %1850 = vmatprep.subr.mxu0 %v1999_v54 }
 0x213   :  { %v300_v15 = vmul.f32 %v1902_v13, %v1896_v49  ;;  %1854 = vmatprep.mubr.msk.f32.mxu0 %vm2000_vm5, %v1999_v54 }
 0x215   :  { %1851 = vmatpush3.msra.mxu0 %v300_v15 }
 0x216   :  { %v1904_v18 = vpop.eup %1903  ;;  %1852 = vmatprep.subr.mxu0 %v1999_v54 }
 0x217   :  { %v291_v19 = vsel %vm278_vm3, %v1904_v18, 0.0 }
 0x218   :  { %292 = vadd.xlane.f32.xlu1 %v291_v19 }
 0x21a   :  { %v2242_v23 = vpop.eup %1905 }
 0x21b   :  { %v444_v24 = vsel %vm410_vm4, %v2242_v23, 0.0 }
 0x21c   :  { %418 = vmax.xlane.f32.xlu1 %v417_v21  ;;  %445 = vadd.xlane.f32.xlu0 %v444_v24 }
 0x21e   :  { %v2247_v27 = vpop.eup %1907 }
 0x21f   :  { %v438_v28 = vsel %vm410_vm4, %v2247_v27, 0.0 }
 0x220   :  { %412 = vmax.xlane.f32.xlu1 %v411_v25  ;;  %439 = vadd.xlane.f32.xlu0 %v438_v28 }
 0x224   :  { %618 = vmax.xlane.f32.xlu0 %v603_v29 }
 0x228   :  { %614 = vmax.xlane.f32.xlu0 %v601_v30 }
 0x22c   :  { %610 = vmax.xlane.f32.xlu0 %v599_v31 }
 0x230   :  { %606 = vmax.xlane.f32.xlu0 %v597_v32 }
 0x2a1   :  { %v293_v33 = vpop.xlane.xlu1 %292 }
 0x2a2   :  { %1909 = vrcp.f32 %v293_v33 }
 0x2a5   :  { %v419_v34 = vpop.xlane.xlu1 %418  ;;  %v446_v35 = vpop.xlane.xlu0 %445 }
 0x2a6   :  { %v425_v36 = vsub.f32 %v408_v16, %v419_v34 }
 0x2a8   :  { %v431_v37 = vmul.f32 1.442695, %v425_v36 }
 0x2a9   :  { %v413_v38 = vpop.xlane.xlu1 %412  ;;  %v440_v39 = vpop.xlane.xlu0 %439 }
 0x2aa   :  { %1911 = vpow2.f32 %v431_v37  ;;  %v423_v40 = vsub.f32 %v406_v20, %v413_v38 }
 0x2ac   :  { %v427_v41 = vmul.f32 1.442695, %v423_v40  ;;  %v1032_v40 = vld [vmem:[%s3040_s10 + $0xf8] sm:$0xff] }
 0x2ad   :  { %v619_v42 = vpop.xlane.xlu0 %618  ;;  %1033 = vmatprep.subr.mxu1 %v1032_v40  ;;  %v991_v40 = vld [vmem:[%s3039_s9 + $0xb0] sm:$0xff] }
 0x2ae   :  { %1913 = vpow2.f32 %v427_v41  ;;  %v627_v43 = vsub.f32 %v603_v29, %v619_v42  ;;  %v1031_v41 = vld [vmem:[%s3040_s10 + $0xf0] sm:$0xff]  ;;  %v1030_v42 = vld [vmem:[%s3040_s10 + $0xe8] sm:$0xff] }
 0x2af   :  { %v1910_v44 = vpop.eup %1909  ;;  %1034 = vmatpush1.msra.mxu1 %v1031_v41  ;;  %v990_v41 = vld [vmem:[%s3039_s9 + $0xa8] sm:$0xff] }
 0x2b0   :  { %v642_v45 = vmul.f32 1.442695, %v627_v43  ;;  %v299_v46 = vmul.f32 %v1910_v44, %v1904_v18  ;;  %v1029_v43 = vld [vmem:[%s3040_s10 + $0xe0] sm:$0xff]  ;;  %v1028_v44 = vld [vmem:[%s3040_s10 + $0xd8] sm:$0xff]  ;;  %1035 = vmatprep.subr.mxu1 %v1030_v42 }
 0x2b1   :  { %v615_v47 = vpop.xlane.xlu0 %614  ;;  %1036 = vmatpush1.msra.mxu1 %v1029_v43  ;;  %v989_v42 = vld [vmem:[%s3039_s9 + $0xa0] sm:$0xff]  ;;  %v988_v43 = vld [vmem:[%s3039_s9 + $0x98] sm:$0xff] }
 0x2b2   :  { %1915 = vpow2.f32 %v642_v45  ;;  %v625_v48 = vsub.f32 %v601_v30, %v615_v47  ;;  %1853 = vmatpush3.msra.mxu0 %v299_v46  ;;  %v1027_v45 = vld [vmem:[%s3040_s10 + $0xd0] sm:$0xff]  ;;  %v1026_v46 = vld [vmem:[%s3040_s10 + $0xc8] sm:$0xff]  ;;  %1037 = vmatprep.subr.mxu1 %v1028_v44  ;;  %v1025_v47 = vld [vmem:[%s3040_s10 + $0xc0] sm:$0xff] }
 0x2b3   :  { %1857 = vmatprep.subr.mxu0 %v1999_v54  ;;  %1038 = vmatpush1.msra.mxu1 %v1027_v45  ;;  %v987_v44 = vld [vmem:[%s3039_s9 + $0x90] sm:$0xff]  ;;  %v986_v45 = vld [vmem:[%s3039_s9 + $0x88] sm:$0xff] }
 0x2b4   :  { %v638_v49 = vmul.f32 1.442695, %v625_v48  ;;  %v1024_v48 = vld [vmem:[%s3040_s10 + $0xb8] sm:$0xff]  ;;  %1039 = vmatprep.subr.mxu1 %v1026_v46  ;;  %v985_v46 = vld [vmem:[%s3039_s9 + $0x80] sm:$0xff] }
 0x2b5   :  { %v611_v50 = vpop.xlane.xlu0 %610  ;;  %1040 = vmatpush1.msra.mxu1 %v1025_v47  ;;  %v984_v47 = vld [vmem:[%s3039_s9 + $0x78] sm:$0xff] }
 0x2b6   :  { %1917 = vpow2.f32 %v638_v49  ;;  %v623_v51 = vsub.f32 %v599_v31, %v611_v50  ;;  %v1023_v49 = vld [vmem:[%s3040_s10 + $0xb0] sm:$0xff]  ;;  %v1022_v50 = vld [vmem:[%s3040_s10 + $0xa8] sm:$0xff]  ;;  %1041 = vmatprep.subr.mxu1 %v1024_v48 }
 0x2b7   :  { %v1912_v52 = vpop.eup %1911  ;;  %1042 = vmatpush1.msra.mxu1 %v1023_v49  ;;  %v983_v48 = vld [vmem:[%s3039_s9 + $0x70] sm:$0xff]  ;;  %v982_v49 = vld [vmem:[%s3039_s9 + $0x68] sm:$0xff] }
 0x2b8   :  { %v634_v53 = vmul.f32 1.442695, %v623_v51  ;;  %v441_v55 = vsel %vm410_vm4, %v1912_v52, 0.0  ;;  %1043 = vmatprep.subr.mxu1 %v1022_v50  ;;  %v981_v50 = vld [vmem:[%s3039_s9 + $0x60] sm:$0xff] }
 0x2b9   :  { %442 = vadd.xlane.f32.xlu1 %v441_v55  ;;  %v607_v56 = vpop.xlane.xlu0 %606  ;;  %v1019_v55 = vld [vmem:[%s3040_s10 + $0x90] sm:$0xff] }
 0x2ba   :  { %1919 = vpow2.f32 %v634_v53  ;;  %v621_v57 = vsub.f32 %v597_v32, %v607_v56  ;;  %v1020_v53 = vld [vmem:[%s3040_s10 + $0x98] sm:$0xff]  ;;  %v1018_v56 = vld [vmem:[%s3040_s10 + $0x88] sm:$0xff] }
 0x2bb   :  { %v1914_v59 = vpop.eup %1913 }
 0x2bc   :  { %v630_v60 = vmul.f32 1.442695, %v621_v57  ;;  %v435_v61 = vsel %vm410_vm4, %v1914_v59, 0.0  ;;  %v1017_v57 = vld [vmem:[%s3040_s10 + $0x80] sm:$0xff] }
 0x2bd   :  { %436 = vadd.xlane.f32.xlu1 %v435_v61 }
 0x2be   :  { %1921 = vpow2.f32 %v630_v60  ;;  %v1015_v60 = vld [vmem:[%s3040_s10 + $0x70] sm:$0xff] }
 0x2bf   :  { %v2254_v63 = vpop.eup %1915  ;;  %1923 = vrcp.f32 %v446_v35 }
 0x2c0   :  { %658 = vadd.xlane.f32.xlu0 %v2254_v63  ;;  %1925 = vrcp.f32 %v440_v39 }
 0x2c1   :  { %616 = vmax.xlane.f32.xlu1 %v602_v62 }
 0x2c3   :  { %v2257_v2 = vpop.eup %1917 }
 0x2c4   :  { %654 = vadd.xlane.f32.xlu0 %v2257_v2 }
 0x2c5   :  { %612 = vmax.xlane.f32.xlu1 %v600_v1 }
 0x2c7   :  { %v2261_v4 = vpop.eup %1919 }
 0x2c8   :  { %650 = vadd.xlane.f32.xlu0 %v2261_v4 }
 0x2c9   :  { %608 = vmax.xlane.f32.xlu1 %v598_v3 }
 0x2cb   :  { %v2265_v6 = vpop.eup %1921 }
 0x2cc   :  { %646 = vadd.xlane.f32.xlu0 %v2265_v6  ;;  %v1924_v7 = vpop.eup %1923 }
 0x2cd   :  { %604 = vmax.xlane.f32.xlu1 %v596_v5  ;;  %v454_v9 = vmul.f32 %v1924_v7, %v2242_v23  ;;  %v1926_v17 = vpop.eup %1925  ;;  %v1010_v7 = vld [vmem:[%s3040_s10 + $0x48] sm:$0xff] }
 0x2ce   :  { %v452_v24 = vmul.f32 %v1926_v17, %v2247_v27 }
 0x2d2   :  { %v746_v8 = vpop.f32.mrf.mxu0 }
 0x2d3   :  { %1855 = vmatmul.mubr.msk.f32.vlgmr.msra.gmra.mxu0 %vm166_vm2, %v746_v8 }
 0x2d4   :  { %1858 = vmatpush3.msra.mxu0 %v454_v9  ;;  %v1849_v10 = vpop.f32.mrf.mxu0  ;;  %1865 = vmatprep.mubr.msk.f32.mxu0 %vm2000_vm5, %v1999_v54  ;;  %v1009_v9 = vld [vmem:[%s3040_s10 + $0x40] sm:$0xff] }
 0x2d5   :  { %1859 = vmatprep.subr.mxu0 %v1999_v54  ;;  %v1008_v10 = vld [vmem:[%s3040_s10 + $0x38] sm:$0xff] }
 0x342   :  { %v443_v0 = vpop.xlane.xlu1 %442 }
 0x343   :  { %1927 = vrcp.f32 %v443_v0  ;;  %v1007_v0 = vld [vmem:[%s3040_s10 + $0x30] sm:$0xff] }
 0x346   :  { %v437_v12 = vpop.xlane.xlu1 %436 }
 0x347   :  { %1929 = vrcp.f32 %v437_v12 }
 0x349   :  { %v659_v35 = vpop.xlane.xlu0 %658 }
 0x34a   :  { %v617_v13 = vpop.xlane.xlu1 %616 }
 0x34b   :  { %v626_v14 = vsub.f32 %v602_v62, %v617_v13  ;;  %v1014_v62 = vld [vmem:[%s3040_s10 + $0x68] sm:$0xff] }
 0x34c   :  { %v1006_v13 = vld [vmem:[%s3040_s10 + $0x28] sm:$0xff] }
 0x34d   :  { %v640_v15 = vmul.f32 1.442695, %v626_v14  ;;  %v655_v51 = vpop.xlane.xlu0 %654  ;;  %v1005_v14 = vld [vmem:[%s3040_s10 + $0x20] sm:$0xff] }
 0x34e   :  { %v613_v16 = vpop.xlane.xlu1 %612 }
 0x34f   :  { %1931 = vpow2.f32 %v640_v15  ;;  %v624_v18 = vsub.f32 %v600_v1, %v613_v16  ;;  %v1012_v1 = vld [vmem:[%s3040_s10 + $0x58] sm:$0xff]  ;;  %v1003_v16 = vld [vmem:[%s3040_s10 + $0x10] sm:$0xff] }
 0x350   :  { %v1928_v19 = vpop.eup %1927  ;;  %v1004_v15 = vld [vmem:[%s3040_s10 + $0x18] sm:$0xff] }
 0x351   :  { %v636_v20 = vmul.f32 1.442695, %v624_v18  ;;  %v453_v21 = vmul.f32 %v1928_v19, %v1912_v52  ;;  %v1021_v52 = vld [vmem:[%s3040_s10 + $0xa0] sm:$0xff]  ;;  %v1002_v18 = vld [vmem:[%s3040_s10 + $0x8] sm:$0xff] }
 0x352   :  { %v609_v22 = vpop.xlane.xlu1 %608  ;;  %1044 = vmatpush1.msra.mxu1 %v1021_v52  ;;  %v979_v52 = vld [vmem:[%s3039_s9 + $0x50] sm:$0xff] }
 0x353   :  { %1933 = vpow2.f32 %v636_v20  ;;  %v622_v23 = vsub.f32 %v598_v3, %v609_v22  ;;  %1860 = vmatpush3.msra.mxu0 %v453_v21  ;;  %1045 = vmatprep.subr.mxu1 %v1020_v53  ;;  %v1011_v3 = vld [vmem:[%s3040_s10 + $0x50] sm:$0xff]  ;;  %v978_v53 = vld [vmem:[%s3039_s9 + $0x48] sm:$0xff] }
 0x354   :  { %v1930_v25 = vpop.eup %1929  ;;  %1861 = vmatprep.subr.mxu0 %v1999_v54  ;;  %1046 = vmatpush1.msra.mxu1 %v1019_v55  ;;  %v977_v55 = vld [vmem:[%s3039_s9 + $0x40] sm:$0xff] }
 0x355   :  { %v632_v26 = vmul.f32 1.442695, %v622_v23  ;;  %1862 = vmatpush3.msra.mxu0 %v452_v24  ;;  %v451_v28 = vmul.f32 %v1930_v25, %v1914_v59  ;;  %v651_v59 = vpop.xlane.xlu0 %650  ;;  %1047 = vmatprep.subr.mxu1 %v1018_v56  ;;  %v976_v56 = vld [vmem:[%s3039_s9 + $0x38] sm:$0xff] }
 0x356   :  { %v605_v29 = vpop.xlane.xlu1 %604  ;;  %1863 = vmatprep.subr.mxu0 %v1999_v54  ;;  %1048 = vmatpush1.msra.mxu1 %v1017_v57  ;;  %v975_v57 = vld [vmem:[%s3039_s9 + $0x30] sm:$0xff] }
 0x357   :  { %1935 = vpow2.f32 %v632_v26  ;;  %v620_v30 = vsub.f32 %v596_v5, %v605_v29  ;;  %1864 = vmatpush3.msra.mxu0 %v451_v28  ;;  %1049 = vmatprep.subr.mxu1 %v1016_v58  ;;  %v974_v58 = vld [vmem:[%s3039_s9 + $0x28] sm:$0xff] }
 0x358   :  { %1868 = vmatprep.subr.mxu0 %v1999_v54  ;;  %1050 = vmatpush1.msra.mxu1 %v1015_v60  ;;  %v972_v60 = vld [vmem:[%s3039_s9 + $0x18] sm:$0xff] }
 0x359   :  { %v628_v31 = vmul.f32 1.442695, %v620_v30  ;;  %1051 = vmatprep.subr.mxu1 %v1014_v62  ;;  %v647_v8 = vpop.xlane.xlu0 %646  ;;  %v970_v62 = vld [vmem:[%s3039_s9 + $0x8] sm:$0xff] }
 0x35b   :  { %1937 = vpow2.f32 %v628_v31 }
 0x35c   :  { %v2277_v32 = vpop.eup %1931  ;;  %1939 = vrcp.f32 %v659_v35 }
 0x35d   :  { %656 = vadd.xlane.f32.xlu1 %v2277_v32  ;;  %1941 = vrcp.f32 %v655_v51  ;;  %v980_v51 = vld [vmem:[%s3039_s9 + $0x58] sm:$0xff] }
 0x360   :  { %v2280_v27 = vpop.eup %1933 }
 0x361   :  { %652 = vadd.xlane.f32.xlu1 %v2280_v27 }
 0x364   :  { %v2283_v33 = vpop.eup %1935 }
 0x365   :  { %648 = vadd.xlane.f32.xlu1 %v2283_v33 }
 0x368   :  { %v2286_v34 = vpop.eup %1937 }
 0x369   :  { %644 = vadd.xlane.f32.xlu1 %v2286_v34  ;;  %v1940_v36 = vpop.eup %1939 }
 0x36a   :  { %v675_v38 = vmul.f32 %v1940_v36, %v2254_v63  ;;  %v1013_v63 = vld [vmem:[%s3040_s10 + $0x60] sm:$0xff]  ;;  %v1942_v19 = vpop.eup %1941  ;;  %v996_v36 = vld [vmem:[%s3039_s9 + $0xd8] sm:$0xff] }
 0x36b   :  { %1052 = vmatpush1.msra.mxu1 %v1013_v63  ;;  %v673_v23 = vmul.f32 %v1942_v19, %v2257_v2  ;;  %v1001_v63 = vld [vmem:[%s3040_s10] sm:$0xff] }
 0x36c   :  { %1053 = vmatprep.subr.mxu1 %v1012_v1  ;;  %v969_v1 = vld [vmem:[%s3039_s9] sm:$0xff] }
 0x36d   :  { %1054 = vmatpush1.msra.mxu1 %v1011_v3  ;;  %v1240_v3 = vld [vmem:[%s3043_s13 + $0xf8] sm:$0xff]  ;;  %v1225_v19 = vld [vmem:[%s3043_s13 + $0x80] sm:$0xff] }
 0x36e   :  { %1055 = vmatprep.subr.mxu1 %v1010_v7  ;;  %v1238_v7 = vld [vmem:[%s3043_s13 + $0xe8] sm:$0xff] }
 0x36f   :  { %1056 = vmatpush1.msra.mxu1 %v1009_v9  ;;  %v1235_v9 = vld [vmem:[%s3043_s13 + $0xd0] sm:$0xff] }
 0x370   :  { %1057 = vmatprep.subr.mxu1 %v1008_v10  ;;  %v1234_v10 = vld [vmem:[%s3043_s13 + $0xc8] sm:$0xff] }
 0x371   :  { %1058 = vmatpush1.msra.mxu1 %v1007_v0  ;;  %v1233_v0 = vld [vmem:[%s3043_s13 + $0xc0] sm:$0xff] }
 0x372   :  { %1059 = vmatprep.subr.mxu1 %v1006_v13  ;;  %v1231_v13 = vld [vmem:[%s3043_s13 + $0xb0] sm:$0xff] }
 0x373   :  { %1060 = vmatpush1.msra.mxu1 %v1005_v14  ;;  %v1230_v14 = vld [vmem:[%s3043_s13 + $0xa8] sm:$0xff] }
 0x374   :  { %1061 = vmatprep.subr.mxu1 %v1004_v15  ;;  %v1229_v15 = vld [vmem:[%s3043_s13 + $0xa0] sm:$0xff] }
 0x375   :  { %1062 = vmatpush1.msra.mxu1 %v1003_v16  ;;  %v1228_v16 = vld [vmem:[%s3043_s13 + $0x98] sm:$0xff] }
 0x376   :  { %1063 = vmatprep.subr.mxu1 %v1002_v18  ;;  %v1226_v18 = vld [vmem:[%s3043_s13 + $0x88] sm:$0xff] }
 0x377   :  { %1064 = vmatpush1.msra.mxu1 %v1001_v63  ;;  %v1244_v63 = vld [vmem:[%s3043_s13 + $0x118] sm:$0xff] }
 0x378   :  { %1098 = vmatmul.mubr.f32.vlgmr.msra.gmra.mxu1 %v2173_v11  ;;  %1273 = vmatprep.subr.mxu1 %v1240_v3  ;;  %v1236_v11 = vld [vmem:[%s3043_s13 + $0xd8] sm:$0xff]  ;;  %v1242_v3 = vld [vmem:[%s3043_s13 + $0x108] sm:$0xff] }
 0x393   :  { %v819_v37 = vpop.f32.mrf.mxu0 }
 0x394   :  { %1866 = vmatmul.mubr.msk.f32.vlgmr.msra.gmra.mxu0 %vm278_vm3, %v819_v37  ;;  %v995_v37 = vld [vmem:[%s3039_s9 + $0xd0] sm:$0xff] }
 0x395   :  { %1869 = vmatpush3.msra.mxu0 %v675_v38  ;;  %v1856_v39 = vpop.f32.mrf.mxu0  ;;  %1884 = vmatprep.mubr.msk.f32.mxu0 %vm2000_vm5, %v1999_v54  ;;  %v994_v38 = vld [vmem:[%s3039_s9 + $0xc8] sm:$0xff] }
 0x396   :  { %1870 = vmatprep.subr.mxu0 %v1999_v54  ;;  %v993_v39 = vld [vmem:[%s3039_s9 + $0xc0] sm:$0xff] }
 0x3e6   :  { %v657_v61 = vpop.xlane.xlu1 %656 }
 0x3e7   :  { %1943 = vrcp.f32 %v657_v61  ;;  %v971_v61 = vld [vmem:[%s3039_s9 + $0x10] sm:$0xff] }
 0x3e8   :  { %1945 = vrcp.f32 %v651_v59  ;;  %v973_v59 = vld [vmem:[%s3039_s9 + $0x20] sm:$0xff] }
 0x3ea   :  { %v653_v5 = vpop.xlane.xlu1 %652 }
 0x3eb   :  { %1947 = vrcp.f32 %v653_v5  ;;  %v1239_v5 = vld [vmem:[%s3043_s13 + $0xf0] sm:$0xff] }
 0x3ec   :  { %1949 = vrcp.f32 %v647_v8  ;;  %v1237_v8 = vld [vmem:[%s3043_s13 + $0xe0] sm:$0xff]  ;;  %1274 = vmatpush1.msra.mxu1 %v1239_v5 }
 0x3ed   :  { %1275 = vmatprep.subr.mxu1 %v1238_v7  ;;  %v1241_v5 = vld [vmem:[%s3043_s13 + $0x100] sm:$0xff]  ;;  %v1409_v7 = vld [vmem:[%s3046_s16 + $0xf8] sm:$0xff] }
 0x3ee   :  { %v649_v12 = vpop.xlane.xlu1 %648  ;;  %1276 = vmatpush1.msra.mxu1 %v1237_v8  ;;  %v1408_v8 = vld [vmem:[%s3046_s16 + $0xf0] sm:$0xff] }
 0x3ef   :  { %1951 = vrcp.f32 %v649_v12  ;;  %1277 = vmatprep.subr.mxu1 %v1236_v11  ;;  %v1232_v12 = vld [vmem:[%s3043_s13 + $0xb8] sm:$0xff]  ;;  %v1407_v11 = vld [vmem:[%s3046_s16 + $0xe8] sm:$0xff] }
 0x3f0   :  { %1278 = vmatpush1.msra.mxu1 %v1235_v9  ;;  %v1406_v9 = vld [vmem:[%s3046_s16 + $0xe0] sm:$0xff] }
 0x3f1   :  { %1279 = vmatprep.subr.mxu1 %v1234_v10  ;;  %v1405_v10 = vld [vmem:[%s3046_s16 + $0xd8] sm:$0xff] }
 0x3f2   :  { %v645_v17 = vpop.xlane.xlu1 %644  ;;  %1280 = vmatpush1.msra.mxu1 %v1233_v0  ;;  %v1404_v0 = vld [vmem:[%s3046_s16 + $0xd0] sm:$0xff] }
 0x3f3   :  { %1953 = vrcp.f32 %v645_v17  ;;  %1281 = vmatprep.subr.mxu1 %v1232_v12  ;;  %v1227_v17 = vld [vmem:[%s3043_s13 + $0x90] sm:$0xff]  ;;  %v1403_v12 = vld [vmem:[%s3046_s16 + $0xc8] sm:$0xff] }
 0x3f4   :  { %v1944_v20 = vpop.eup %1943  ;;  %1282 = vmatpush1.msra.mxu1 %v1231_v13  ;;  %v1402_v13 = vld [vmem:[%s3046_s16 + $0xc0] sm:$0xff] }
 0x3f5   :  { %v674_v21 = vmul.f32 %v1944_v20, %v2277_v32  ;;  %v1946_v22 = vpop.eup %1945  ;;  %1283 = vmatprep.subr.mxu1 %v1230_v14  ;;  %v1224_v20 = vld [vmem:[%s3043_s13 + $0x78] sm:$0xff] }
 0x3f6   :  { %v671_v28 = vmul.f32 %v1946_v22, %v2261_v4  ;;  %v1000_v4 = vld [vmem:[%s3039_s9 + $0xf8] sm:$0xff]  ;;  %1284 = vmatpush1.msra.mxu1 %v1229_v15  ;;  %v1222_v22 = vld [vmem:[%s3043_s13 + $0x68] sm:$0xff]  ;;  %v1400_v15 = vld [vmem:[%s3046_s16 + $0xb0] sm:$0xff] }
 0x3f7   :  { %1871 = vmatpush3.msra.mxu0 %v674_v21  ;;  %1285 = vmatprep.subr.mxu1 %v1228_v16  ;;  %v1223_v21 = vld [vmem:[%s3043_s13 + $0x70] sm:$0xff]  ;;  %v1401_v14 = vld [vmem:[%s3046_s16 + $0xb8] sm:$0xff]  ;;  %v1399_v16 = vld [vmem:[%s3046_s16 + $0xa8] sm:$0xff] }
 0x3f8   :  { %v1948_v24 = vpop.eup %1947  ;;  %1872 = vmatprep.subr.mxu0 %v1999_v54  ;;  %1286 = vmatpush1.msra.mxu1 %v1227_v17  ;;  %v1398_v17 = vld [vmem:[%s3046_s16 + $0xa0] sm:$0xff] }
 0x3f9   :  { %1873 = vmatpush3.msra.mxu0 %v673_v23  ;;  %v672_v25 = vmul.f32 %v1948_v24, %v2280_v27  ;;  %v1950_v26 = vpop.eup %1949  ;;  %v999_v27 = vld [vmem:[%s3039_s9 + $0xf0] sm:$0xff]  ;;  %1287 = vmatprep.subr.mxu1 %v1226_v18  ;;  %v1221_v23 = vld [vmem:[%s3043_s13 + $0x60] sm:$0xff]  ;;  %v1220_v24 = vld [vmem:[%s3043_s13 + $0x58] sm:$0xff] }
 0x3fa   :  { %1874 = vmatprep.subr.mxu0 %v1999_v54  ;;  %v669_v2 = vmul.f32 %v1950_v26, %v2265_v6  ;;  %v998_v6 = vld [vmem:[%s3039_s9 + $0xe8] sm:$0xff]  ;;  %1288 = vmatpush1.msra.mxu1 %v1225_v19  ;;  %v1397_v18 = vld [vmem:[%s3046_s16 + $0x98] sm:$0xff]  ;;  %v1396_v19 = vld [vmem:[%s3046_s16 + $0x90] sm:$0xff] }
 0x3fb   :  { %1875 = vmatpush3.msra.mxu0 %v672_v25  ;;  %1289 = vmatprep.subr.mxu1 %v1224_v20  ;;  %v1219_v25 = vld [vmem:[%s3043_s13 + $0x50] sm:$0xff]  ;;  %v1218_v26 = vld [vmem:[%s3043_s13 + $0x48] sm:$0xff] }
 0x3fc   :  { %v1952_v29 = vpop.eup %1951  ;;  %1876 = vmatprep.subr.mxu0 %v1999_v54  ;;  %1290 = vmatpush1.msra.mxu1 %v1223_v21  ;;  %v1395_v20 = vld [vmem:[%s3046_s16 + $0x88] sm:$0xff]  ;;  %v1394_v21 = vld [vmem:[%s3046_s16 + $0x80] sm:$0xff] }
 0x3fd   :  { %1877 = vmatpush3.msra.mxu0 %v671_v28  ;;  %v670_v30 = vmul.f32 %v1952_v29, %v2283_v33  ;;  %1291 = vmatprep.subr.mxu1 %v1222_v22  ;;  %v1217_v28 = vld [vmem:[%s3043_s13 + $0x40] sm:$0xff]  ;;  %v1216_v29 = vld [vmem:[%s3043_s13 + $0x38] sm:$0xff] }
 0x3fe   :  { %1878 = vmatprep.subr.mxu0 %v1999_v54  ;;  %1292 = vmatpush1.msra.mxu1 %v1221_v23  ;;  %v1393_v22 = vld [vmem:[%s3046_s16 + $0x78] sm:$0xff]  ;;  %v1392_v23 = vld [vmem:[%s3046_s16 + $0x70] sm:$0xff] }
 0x3ff   :  { %1879 = vmatpush3.msra.mxu0 %v670_v30  ;;  %1293 = vmatprep.subr.mxu1 %v1220_v24  ;;  %v1215_v30 = vld [vmem:[%s3043_s13 + $0x30] sm:$0xff]  ;;  %v1391_v24 = vld [vmem:[%s3046_s16 + $0x68] sm:$0xff] }
 0x400   :  { %v1954_v31 = vpop.eup %1953  ;;  %1880 = vmatprep.subr.mxu0 %v1999_v54  ;;  %1294 = vmatpush1.msra.mxu1 %v1219_v25  ;;  %v1390_v25 = vld [vmem:[%s3046_s16 + $0x60] sm:$0xff] }
 0x401   :  { %1881 = vmatpush3.msra.mxu0 %v669_v2  ;;  %v668_v32 = vmul.f32 %v1954_v31, %v2286_v34  ;;  %v997_v34 = vld [vmem:[%s3039_s9 + $0xe0] sm:$0xff]  ;;  %1295 = vmatprep.subr.mxu1 %v1218_v26  ;;  %v1214_v2 = vld [vmem:[%s3043_s13 + $0x28] sm:$0xff]  ;;  %v1389_v26 = vld [vmem:[%s3046_s16 + $0x58] sm:$0xff] }
 0x402   :  { %1882 = vmatprep.subr.mxu0 %v1999_v54  ;;  %1296 = vmatpush1.msra.mxu1 %v1217_v28  ;;  %v1213_v31 = vld [vmem:[%s3043_s13 + $0x20] sm:$0xff]  ;;  %v1388_v28 = vld [vmem:[%s3046_s16 + $0x50] sm:$0xff] }
 0x403   :  { %1883 = vmatpush3.msra.mxu0 %v668_v32  ;;  %1297 = vmatprep.subr.mxu1 %v1216_v29  ;;  %v1212_v32 = vld [vmem:[%s3043_s13 + $0x18] sm:$0xff]  ;;  %v1387_v29 = vld [vmem:[%s3046_s16 + $0x48] sm:$0xff] }
 0x404   :  { %1104 = vmatprep.subr.mxu0 %v1000_v4  ;;  %1298 = vmatpush1.msra.mxu1 %v1215_v30  ;;  %v1211_v4 = vld [vmem:[%s3043_s13 + $0x10] sm:$0xff]  ;;  %v1386_v30 = vld [vmem:[%s3046_s16 + $0x40] sm:$0xff] }
 0x405   :  { %1299 = vmatprep.subr.mxu1 %v1214_v2  ;;  %v1385_v2 = vld [vmem:[%s3046_s16 + $0x38] sm:$0xff] }
 0x406   :  { %1300 = vmatpush1.msra.mxu1 %v1213_v31  ;;  %v1384_v31 = vld [vmem:[%s3046_s16 + $0x30] sm:$0xff] }
 0x407   :  { %1301 = vmatprep.subr.mxu1 %v1212_v32  ;;  %v1383_v32 = vld [vmem:[%s3046_s16 + $0x28] sm:$0xff] }
 0x408   :  { %1302 = vmatpush1.msra.mxu1 %v1211_v4  ;;  %v1382_v4 = vld [vmem:[%s3046_s16 + $0x20] sm:$0xff] }
 0x454   :  { %v892_v33 = vpop.f32.mrf.mxu0 }
 0x455   :  { %1885 = vmatmul.mubr.msk.f32.vlgmr.msra.gmra.mxu0 %vm410_vm4, %v892_v33  ;;  %v1209_v33 = vld [vmem:[%s3043_s13] sm:$0xff] }
 0x456   :  { %v1867_v35 = vpop.f32.mrf.mxu0  ;;  %1105 = vmatpush1.msra.mxu0 %v999_v27  ;;  %1168 = vmatprep.mubr.f32.mxu0 %v1999_v54  ;;  %v992_v54 = vld [vmem:[%s3039_s9 + $0xb8] sm:$0xff]  ;;  %v1210_v27 = vld [vmem:[%s3043_s13 + $0x8] sm:$0xff] }
 0x457   :  { %1106 = vmatprep.subr.mxu0 %v998_v6  ;;  %v1272_v6 = vld [vmem:[%s3043_s13 + $0x1f8] sm:$0xff]  ;;  %1303 = vmatprep.subr.mxu1 %v1210_v27  ;;  %v1270_v35 = vld [vmem:[%s3043_s13 + $0x1e8] sm:$0xff] }
 0x458   :  { %1107 = vmatpush1.msra.mxu0 %v997_v34  ;;  %v1271_v34 = vld [vmem:[%s3043_s13 + $0x1f0] sm:$0xff]  ;;  %1304 = vmatpush1.msra.mxu1 %v1209_v33  ;;  %v1381_v27 = vld [vmem:[%s3046_s16 + $0x18] sm:$0xff] }
 0x459   :  { %1108 = vmatprep.subr.mxu0 %v996_v36  ;;  %1305 = vmatprep.subr.mxu1 %v1272_v6  ;;  %v1269_v36 = vld [vmem:[%s3043_s13 + $0x1e0] sm:$0xff]  ;;  %v1380_v33 = vld [vmem:[%s3046_s16 + $0x10] sm:$0xff]  ;;  %v1379_v6 = vld [vmem:[%s3046_s16 + $0x8] sm:$0xff] }
 0x45a   :  { %1109 = vmatpush1.msra.mxu0 %v995_v37  ;;  %1306 = vmatpush2.msra.mxu1 %v1271_v34  ;;  %v1268_v37 = vld [vmem:[%s3043_s13 + $0x1d8] sm:$0xff]  ;;  %v1378_v34 = vld [vmem:[%s3046_s16] sm:$0xff] }
 0x45b   :  { %1110 = vmatprep.subr.mxu0 %v994_v38  ;;  %1307 = vmatprep.subr.mxu1 %v1270_v35  ;;  %v1267_v38 = vld [vmem:[%s3043_s13 + $0x1d0] sm:$0xff]  ;;  %v1441_v35 = vld [vmem:[%s3046_s16 + $0x1f8] sm:$0xff] }
 0x45c   :  { %1111 = vmatpush1.msra.mxu0 %v993_v39  ;;  %1308 = vmatpush2.msra.mxu1 %v1269_v36  ;;  %v1266_v39 = vld [vmem:[%s3043_s13 + $0x1c8] sm:$0xff]  ;;  %v1440_v36 = vld [vmem:[%s3046_s16 + $0x1f0] sm:$0xff] }
 0x45d   :  { %1112 = vmatprep.subr.mxu0 %v992_v54  ;;  %1309 = vmatprep.subr.mxu1 %v1268_v37  ;;  %v1265_v54 = vld [vmem:[%s3043_s13 + $0x1c0] sm:$0xff]  ;;  %v1439_v37 = vld [vmem:[%s3046_s16 + $0x1e8] sm:$0xff] }
 0x45e   :  { %1113 = vmatpush1.msra.mxu0 %v991_v40  ;;  %1310 = vmatpush2.msra.mxu1 %v1267_v38  ;;  %v1264_v40 = vld [vmem:[%s3043_s13 + $0x1b8] sm:$0xff]  ;;  %v1438_v38 = vld [vmem:[%s3046_s16 + $0x1e0] sm:$0xff] }
 0x45f   :  { %1114 = vmatprep.subr.mxu0 %v990_v41  ;;  %1311 = vmatprep.subr.mxu1 %v1266_v39  ;;  %v1263_v41 = vld [vmem:[%s3043_s13 + $0x1b0] sm:$0xff]  ;;  %v1437_v39 = vld [vmem:[%s3046_s16 + $0x1d8] sm:$0xff] }
 0x460   :  { %1115 = vmatpush1.msra.mxu0 %v989_v42  ;;  %1312 = vmatpush2.msra.mxu1 %v1265_v54  ;;  %v1262_v42 = vld [vmem:[%s3043_s13 + $0x1a8] sm:$0xff]  ;;  %v1436_v54 = vld [vmem:[%s3046_s16 + $0x1d0] sm:$0xff] }
 0x461   :  { %1116 = vmatprep.subr.mxu0 %v988_v43  ;;  %1313 = vmatprep.subr.mxu1 %v1264_v40  ;;  %v1261_v43 = vld [vmem:[%s3043_s13 + $0x1a0] sm:$0xff]  ;;  %v1435_v40 = vld [vmem:[%s3046_s16 + $0x1c8] sm:$0xff] }
 0x462   :  { %1117 = vmatpush1.msra.mxu0 %v987_v44  ;;  %1314 = vmatpush2.msra.mxu1 %v1263_v41  ;;  %v1260_v44 = vld [vmem:[%s3043_s13 + $0x198] sm:$0xff]  ;;  %v1434_v41 = vld [vmem:[%s3046_s16 + $0x1c0] sm:$0xff] }
 0x463   :  { %1118 = vmatprep.subr.mxu0 %v986_v45  ;;  %1315 = vmatprep.subr.mxu1 %v1262_v42  ;;  %v1259_v45 = vld [vmem:[%s3043_s13 + $0x190] sm:$0xff]  ;;  %v1433_v42 = vld [vmem:[%s3046_s16 + $0x1b8] sm:$0xff] }
 0x464   :  { %1119 = vmatpush1.msra.mxu0 %v985_v46  ;;  %1316 = vmatpush2.msra.mxu1 %v1261_v43  ;;  %v1258_v46 = vld [vmem:[%s3043_s13 + $0x188] sm:$0xff]  ;;  %v1432_v43 = vld [vmem:[%s3046_s16 + $0x1b0] sm:$0xff] }
 0x465   :  { %1120 = vmatprep.subr.mxu0 %v984_v47  ;;  %1317 = vmatprep.subr.mxu1 %v1260_v44  ;;  %v1257_v47 = vld [vmem:[%s3043_s13 + $0x180] sm:$0xff]  ;;  %v1431_v44 = vld [vmem:[%s3046_s16 + $0x1a8] sm:$0xff] }
 0x466   :  { %1121 = vmatpush1.msra.mxu0 %v983_v48  ;;  %1318 = vmatpush2.msra.mxu1 %v1259_v45  ;;  %v1256_v48 = vld [vmem:[%s3043_s13 + $0x178] sm:$0xff]  ;;  %v1430_v45 = vld [vmem:[%s3046_s16 + $0x1a0] sm:$0xff] }
 0x467   :  { %1122 = vmatprep.subr.mxu0 %v982_v49  ;;  %1319 = vmatprep.subr.mxu1 %v1258_v46  ;;  %v1255_v49 = vld [vmem:[%s3043_s13 + $0x170] sm:$0xff]  ;;  %v1429_v46 = vld [vmem:[%s3046_s16 + $0x198] sm:$0xff] }
 0x468   :  { %1123 = vmatpush1.msra.mxu0 %v981_v50  ;;  %1320 = vmatpush2.msra.mxu1 %v1257_v47  ;;  %v1254_v50 = vld [vmem:[%s3043_s13 + $0x168] sm:$0xff]  ;;  %v1428_v47 = vld [vmem:[%s3046_s16 + $0x190] sm:$0xff] }
 0x469   :  { %1124 = vmatprep.subr.mxu0 %v980_v51  ;;  %1321 = vmatprep.subr.mxu1 %v1256_v48  ;;  %v1427_v48 = vld [vmem:[%s3046_s16 + $0x188] sm:$0xff] }
 0x46a   :  { %1125 = vmatpush1.msra.mxu0 %v979_v52  ;;  %1322 = vmatpush2.msra.mxu1 %v1255_v49  ;;  %v1426_v49 = vld [vmem:[%s3046_s16 + $0x180] sm:$0xff] }
 0x46b   :  { %1126 = vmatprep.subr.mxu0 %v978_v53  ;;  %1323 = vmatprep.subr.mxu1 %v1254_v50  ;;  %v1253_v53 = vld [vmem:[%s3043_s13 + $0x160] sm:$0xff]  ;;  %v1425_v50 = vld [vmem:[%s3046_s16 + $0x178] sm:$0xff] }
 0x46c   :  { %1127 = vmatpush1.msra.mxu0 %v977_v55  ;;  %1324 = vmatpush2.msra.mxu1 %v1253_v53  ;;  %v1252_v55 = vld [vmem:[%s3043_s13 + $0x158] sm:$0xff]  ;;  %v1422_v53 = vld [vmem:[%s3046_s16 + $0x160] sm:$0xff] }
 0x46d   :  { %1128 = vmatprep.subr.mxu0 %v976_v56  ;;  %1325 = vmatprep.subr.mxu1 %v1252_v55  ;;  %v1251_v56 = vld [vmem:[%s3043_s13 + $0x150] sm:$0xff]  ;;  %v1421_v55 = vld [vmem:[%s3046_s16 + $0x158] sm:$0xff] }
 0x46e   :  { %1129 = vmatpush1.msra.mxu0 %v975_v57  ;;  %1326 = vmatpush2.msra.mxu1 %v1251_v56  ;;  %v1250_v57 = vld [vmem:[%s3043_s13 + $0x148] sm:$0xff]  ;;  %v1177_v56 = vlaneseq }
 0x46f   :  { %1130 = vmatprep.subr.mxu0 %v974_v58  ;;  %1327 = vmatprep.subr.mxu1 %v1250_v57  ;;  %v1249_v58 = vld [vmem:[%s3043_s13 + $0x140] sm:$0xff] }
 0x470   :  { %1131 = vmatpush1.msra.mxu0 %v973_v59  ;;  %1328 = vmatpush2.msra.mxu1 %v1249_v58  ;;  %v1248_v59 = vld [vmem:[%s3043_s13 + $0x138] sm:$0xff]  ;;  %v1178_v57 = vshrl.u32 %v1177_v56, 7 }
 0x471   :  { %1132 = vmatprep.subr.mxu0 %v972_v60  ;;  %1329 = vmatprep.subr.mxu1 %v1248_v59  ;;  %v1247_v60 = vld [vmem:[%s3043_s13 + $0x130] sm:$0xff]  ;;  %v1175_v59 = vld [vmem:[%s3041_s11] sm:$0x3] }
 0x472   :  { %1133 = vmatpush1.msra.mxu0 %v971_v61  ;;  %1330 = vmatpush2.msra.mxu1 %v1247_v60  ;;  %v1246_v61 = vld [vmem:[%s3043_s13 + $0x128] sm:$0xff]  ;;  %v2853_v58 = vsub.s32 0, %v1178_v57  ;;  %v2858_v60 = vsub.s32 1, %v1178_v57 }
 0x473   :  { %1134 = vmatprep.subr.mxu0 %v970_v62  ;;  %v1245_v62 = vld [vmem:[%s3043_s13 + $0x120] sm:$0xff]  ;;  %1331 = vmatprep.subr.mxu1 %v1246_v61  ;;  %v1099_v61 = vpop.f32.mrf.mxu1 }
 0x474   :  { %1135 = vmatpush1.msra.mxu0 %v969_v1  ;;  %v1243_v1 = vld [vmem:[%s3043_s13 + $0x110] sm:$0xff]  ;;  %1332 = vmatpush2.msra.mxu1 %v1245_v62  ;;  %v1189_v62 = vld [vmem:[%s3042_s12] sm:$0x3] }
 0x475   :  { %1333 = vmatprep.subr.mxu1 %v1244_v63  ;;  %1454 = vmatprep.subr.mxu0 %v1409_v7  ;;  %v1180_v63 = vrot.slane %v1175_v59, %v2853_v58  ;;  %v1184_v7 = vrot.slane %v1175_v59, %v2858_v60 }
 0x476   :  { %1334 = vmatpush2.msra.mxu1 %v1243_v1 }
 0x477   :  { %1335 = vmatprep.subr.mxu1 %v1242_v3 }
 0x478   :  { %1336 = vmatpush2.msra.mxu1 %v1241_v5  ;;  %v1194_v5 = vrot.slane %v1189_v62, %v2853_v58 }
 0x515   :  { %v965_v51 = vpop.f32.mrf.mxu0 }
 0x516   :  { %1169 = vmatmul.mubr.f32.vlgmr.msra.gmra.mxu0 %v965_v51  ;;  %v1424_v51 = vld [vmem:[%s3046_s16 + $0x170] sm:$0xff] }
 0x517   :  { %v1886_v52 = vpop.f32.mrf.mxu0  ;;  %1455 = vmatpush1.msra.mxu0 %v1408_v8  ;;  %v1101_v8 = vpop.f32.mrf.mxu1 }
 0x518   :  { %1456 = vmatprep.subr.mxu0 %v1407_v11  ;;  %v1423_v52 = vld [vmem:[%s3046_s16 + $0x168] sm:$0xff] }
 0x519   :  { %1457 = vmatpush1.msra.mxu0 %v1406_v9 }
 0x51a   :  { %1458 = vmatprep.subr.mxu0 %v1405_v10 }
 0x51b   :  { %1459 = vmatpush1.msra.mxu0 %v1404_v0  ;;  %v1198_v0 = vrot.slane %v1189_v62, %v2858_v60 }
 0x51c   :  { %1460 = vmatprep.subr.mxu0 %v1403_v12 }
 0x51d   :  { %1461 = vmatpush1.msra.mxu0 %v1402_v13 }
 0x51e   :  { %1462 = vmatprep.subr.mxu0 %v1401_v14 }
 0x51f   :  { %1463 = vmatpush1.msra.mxu0 %v1400_v15 }
 0x520   :  { %1464 = vmatprep.subr.mxu0 %v1399_v16 }
 0x521   :  { %1465 = vmatpush1.msra.mxu0 %v1398_v17 }
 0x522   :  { %1466 = vmatprep.subr.mxu0 %v1397_v18 }
 0x523   :  { %1467 = vmatpush1.msra.mxu0 %v1396_v19  ;;  %v1420_v19 = vld [vmem:[%s3046_s16 + $0x150] sm:$0xff] }
 0x524   :  { %1468 = vmatprep.subr.mxu0 %v1395_v20  ;;  %v1419_v20 = vld [vmem:[%s3046_s16 + $0x148] sm:$0xff] }
 0x525   :  { %1469 = vmatpush1.msra.mxu0 %v1394_v21  ;;  %v1418_v21 = vld [vmem:[%s3046_s16 + $0x140] sm:$0xff] }
 0x526   :  { %1470 = vmatprep.subr.mxu0 %v1393_v22  ;;  %v1417_v22 = vld [vmem:[%s3046_s16 + $0x138] sm:$0xff] }
 0x527   :  { %1471 = vmatpush1.msra.mxu0 %v1392_v23  ;;  %v1416_v23 = vld [vmem:[%s3046_s16 + $0x130] sm:$0xff] }
 0x528   :  { %1472 = vmatprep.subr.mxu0 %v1391_v24  ;;  %v1415_v24 = vld [vmem:[%s3046_s16 + $0x128] sm:$0xff] }
 0x529   :  { %1473 = vmatpush1.msra.mxu0 %v1390_v25  ;;  %v1414_v25 = vld [vmem:[%s3046_s16 + $0x120] sm:$0xff] }
 0x52a   :  { %1474 = vmatprep.subr.mxu0 %v1389_v26  ;;  %v1413_v26 = vld [vmem:[%s3046_s16 + $0x118] sm:$0xff] }
 0x52b   :  { %1475 = vmatpush1.msra.mxu0 %v1388_v28  ;;  %v1412_v28 = vld [vmem:[%s3046_s16 + $0x110] sm:$0xff] }
 0x52c   :  { %1476 = vmatprep.subr.mxu0 %v1387_v29  ;;  %v1411_v29 = vld [vmem:[%s3046_s16 + $0x108] sm:$0xff] }
 0x52d   :  { %1477 = vmatpush1.msra.mxu0 %v1386_v30  ;;  %v1410_v30 = vld [vmem:[%s3046_s16 + $0x100] sm:$0xff] }
 0x52e   :  { %1478 = vmatprep.subr.mxu0 %v1385_v2  ;;  %v1602_v2 = vld [vmem:[%s3050_s20 + $0xf8] sm:$0xff] }
 0x52f   :  { %1479 = vmatpush1.msra.mxu0 %v1384_v31  ;;  %v1586_v31 = vld [vmem:[%s3050_s20 + $0x78] sm:$0xff]  ;;  %1776 = vmatprep.subr.mxu1 %v1602_v2 }
 0x530   :  { %1480 = vmatprep.subr.mxu0 %v1383_v32  ;;  %v1601_v32 = vld [vmem:[%s3050_s20 + $0xf0] sm:$0xff] }
 0x531   :  { %1481 = vmatpush1.msra.mxu0 %v1382_v4  ;;  %v1585_v4 = vld [vmem:[%s3050_s20 + $0x70] sm:$0xff] }
 0x532   :  { %1482 = vmatprep.subr.mxu0 %v1381_v27  ;;  %v1600_v27 = vld [vmem:[%s3050_s20 + $0xe8] sm:$0xff] }
 0x533   :  { %1483 = vmatpush1.msra.mxu0 %v1380_v33  ;;  %v1584_v33 = vld [vmem:[%s3050_s20 + $0x68] sm:$0xff] }
 0x534   :  { %1484 = vmatprep.subr.mxu0 %v1379_v6  ;;  %v1599_v6 = vld [vmem:[%s3050_s20 + $0xe0] sm:$0xff] }
 0x535   :  { %1485 = vmatpush1.msra.mxu0 %v1378_v34  ;;  %v1583_v34 = vld [vmem:[%s3050_s20 + $0x60] sm:$0xff] }
 0x536   :  { %1486 = vmatprep.subr.mxu0 %v1441_v35  ;;  %v1598_v35 = vld [vmem:[%s3050_s20 + $0xd8] sm:$0xff] }
 0x537   :  { %1487 = vmatpush2.msra.mxu0 %v1440_v36  ;;  %v1582_v36 = vld [vmem:[%s3050_s20 + $0x58] sm:$0xff] }
 0x538   :  { %1488 = vmatprep.subr.mxu0 %v1439_v37  ;;  %v1597_v37 = vld [vmem:[%s3050_s20 + $0xd0] sm:$0xff] }
 0x539   :  { %1489 = vmatpush2.msra.mxu0 %v1438_v38  ;;  %v1581_v38 = vld [vmem:[%s3050_s20 + $0x50] sm:$0xff] }
 0x53a   :  { %1490 = vmatprep.subr.mxu0 %v1437_v39  ;;  %v1596_v39 = vld [vmem:[%s3050_s20 + $0xc8] sm:$0xff] }
 0x53b   :  { %1491 = vmatpush2.msra.mxu0 %v1436_v54  ;;  %v1580_v54 = vld [vmem:[%s3050_s20 + $0x48] sm:$0xff] }
 0x53c   :  { %1492 = vmatprep.subr.mxu0 %v1435_v40  ;;  %v1595_v40 = vld [vmem:[%s3050_s20 + $0xc0] sm:$0xff] }
 0x53d   :  { %1493 = vmatpush2.msra.mxu0 %v1434_v41  ;;  %v1579_v41 = vld [vmem:[%s3050_s20 + $0x40] sm:$0xff] }
 0x53e   :  { %1494 = vmatprep.subr.mxu0 %v1433_v42  ;;  %v1594_v42 = vld [vmem:[%s3050_s20 + $0xb8] sm:$0xff] }
 0x53f   :  { %1495 = vmatpush2.msra.mxu0 %v1432_v43  ;;  %v1578_v43 = vld [vmem:[%s3050_s20 + $0x38] sm:$0xff] }
 0x540   :  { %1496 = vmatprep.subr.mxu0 %v1431_v44  ;;  %v1593_v44 = vld [vmem:[%s3050_s20 + $0xb0] sm:$0xff] }
 0x541   :  { %1497 = vmatpush2.msra.mxu0 %v1430_v45  ;;  %v1344_v45 = vld [vmem:[%s3044_s14] sm:$0x3] }
 0x542   :  { %1498 = vmatprep.subr.mxu0 %v1429_v46  ;;  %v1358_v46 = vld [vmem:[%s3045_s15] sm:$0x3] }
 0x543   :  { %1499 = vmatpush2.msra.mxu0 %v1428_v47  ;;  %v1349_v47 = vrot.slane %v1344_v45, %v2853_v58 }
 0x544   :  { %1500 = vmatprep.subr.mxu0 %v1427_v48  ;;  %v1363_v48 = vrot.slane %v1358_v46, %v2853_v58 }
 0x545   :  { %1501 = vmatpush2.msra.mxu0 %v1426_v49  ;;  %v1353_v49 = vrot.slane %v1344_v45, %v2858_v60 }
 0x546   :  { %1502 = vmatprep.subr.mxu0 %v1425_v50 }
 0x547   :  { %1503 = vmatpush2.msra.mxu0 %v1424_v51 }
 0x548   :  { %1504 = vmatprep.subr.mxu0 %v1423_v52  ;;  %v1367_v52 = vrot.slane %v1358_v46, %v2858_v60 }
 0x549   :  { %1505 = vmatpush2.msra.mxu0 %v1422_v53 }
 0x54a   :  { %1506 = vmatprep.subr.mxu0 %v1421_v55 }
 0x54b   :  { %1507 = vmatpush2.msra.mxu0 %v1420_v19  ;;  %v1551_v19 = vld [vmem:[%s3049_s19] sm:$0x3] }
 0x54c   :  { %1508 = vmatprep.subr.mxu0 %v1419_v20 }
 0x54d   :  { %1509 = vmatpush2.msra.mxu0 %v1418_v21 }
 0x54e   :  { %1510 = vmatprep.subr.mxu0 %v1417_v22 }
 0x54f   :  { %1511 = vmatpush2.msra.mxu0 %v1416_v23 }
 0x550   :  { %1512 = vmatprep.subr.mxu0 %v1415_v24  ;;  %v1556_v24 = vrot.slane %v1551_v19, %v2853_v58 }
 0x551   :  { %1513 = vmatpush2.msra.mxu0 %v1414_v25 }
 0x552   :  { %1514 = vmatprep.subr.mxu0 %v1413_v26 }
 0x553   :  { %1515 = vmatpush2.msra.mxu0 %v1412_v28 }
 0x554   :  { %1516 = vmatprep.subr.mxu0 %v1411_v29 }
 0x555   :  { %1517 = vmatpush2.msra.mxu0 %v1410_v30  ;;  %v1560_v30 = vrot.slane %v1551_v19, %v2858_v60 }
 0x5d6   :  { %v1170_v1 = vpop.f32.mrf.mxu0 }
 0x5d7   :  { %v1171_v3 = vadd.f32 %v1170_v1, %v1099_v61  ;;  %v1577_v1 = vld [vmem:[%s3050_s20 + $0x30] sm:$0xff] }
 0x5d8   :  { %v1172_v11 = vpop.f32.mrf.mxu0 }
 0x5d9   :  { %v1187_v9 = vmul.f32 %v1180_v63, %v1171_v3  ;;  %v1173_v10 = vadd.f32 %v1172_v11, %v1101_v8  ;;  %v1592_v3 = vld [vmem:[%s3050_s20 + $0xa8] sm:$0xff]  ;;  %v1575_v8 = vld [vmem:[%s3050_s20 + $0x20] sm:$0xff]  ;;  %v1590_v11 = vld [vmem:[%s3050_s20 + $0x98] sm:$0xff] }
 0x5db   :  { %v1201_v12 = vadd.f32 %v1194_v5, %v1187_v9  ;;  %v1188_v13 = vmul.f32 %v1184_v7, %v1173_v10  ;;  %v1576_v5 = vld [vmem:[%s3050_s20 + $0x28] sm:$0xff]  ;;  %v1591_v7 = vld [vmem:[%s3050_s20 + $0xa0] sm:$0xff]  ;;  %v1574_v9 = vld [vmem:[%s3050_s20 + $0x18] sm:$0xff] }
 0x5dc   :  { %v1589_v10 = vld [vmem:[%s3050_s20 + $0x90] sm:$0xff] }
 0x5dd   :  { %v1202_v14 = vadd.f32 %v1198_v0, %v1188_v13  ;;  %v1205_v15 = vmul.f32 0.01, %v1201_v12  ;;  %vm1203_vm7 = vcmp.gt.f32.partialorder %v1201_v12, 0.0  ;;  %v1573_v0 = vld [vmem:[%s3050_s20 + $0x10] sm:$0xff]  ;;  %v1572_v13 = vld [vmem:[%s3050_s20 + $0x8] sm:$0xff] }
 0x5df   :  { %vm1204_vm6 = vcmp.gt.f32.partialorder %v1202_v14, 0.0  ;;  %v1206_v16 = vmul.f32 0.01, %v1202_v14  ;;  %v1207_v18 = vsel %vm1203_vm7, %v1201_v12, %v1205_v15  ;;  %v1588_v12 = vld [vmem:[%s3050_s20 + $0x88] sm:$0xff]  ;;  %v1571_v15 = vld [vmem:[%s3050_s20] sm:$0xff] }
 0x5e1   :  { %v1208_v17 = vsel %vm1204_vm6, %v1202_v14, %v1206_v16  ;;  %v1587_v14 = vld [vmem:[%s3050_s20 + $0x80] sm:$0xff] }
 0x5e2   :  { %1337 = vmatprep.mubr.f32.mxu1 %v1208_v17  ;;  %v1442_v16 = vld [vmem:[%s3047_s17] sm:$0x3]  ;;  %s2001_s17 = smov [#allocation2]  }
 0x5e3   :  { %1338 = vmatmul.mubr.f32.vlgmr.msra.gmra.mxu1 %v1207_v18  ;;  %v1537_v17 = vld [vmem:[%s3048_s18] sm:$0x3]  ;;  %v1447_v18 = vrot.slane %v1442_v16, %v2853_v58  ;;  %v1451_v21 = vrot.slane %v1442_v16, %v2858_v60  ;;  %s1688_s18 = sshll.u32 %s2001_s17, 4  ;;  %s1689_s18 = int_to_ptr.vmem [resolvable:$true] %s1688_s18 }
 0x5e4   :  { %1777 = vmatpush3.msra.mxu1 %v1586_v31  ;;  %v1542_v20 = vrot.slane %v1537_v17, %v2853_v58  ;;  %v1546_v25 = vrot.slane %v1537_v17, %v2858_v60  ;;  %s1955_s19 = scalar_lea.vmem %s1689_s18, 64  ;;  %p1960_p1 = scmp.lt.s32.totalorder %s1689_s18, %s1689_s18 }
 0x5e5   :  { %1778 = vmatprep.subr.mxu1 %v1601_v32  ;;  %p1956_p0 = scmp.ne.s32.totalorder %s1689_s18, %s1955_s19  ;;  %p1961_p2 = scmp.lt.s32.totalorder %s1955_s19, %s1955_s19 }
 0x5e6   :  { %1779 = vmatpush3.msra.mxu1 %v1585_v4 }
 0x5e7   :  { %1780 = vmatprep.subr.mxu1 %v1600_v27  ;;  %p1962_p3 = por %p1961_p2, %p1960_p1 }
 0x5e8   :  { %1781 = vmatpush3.msra.mxu1 %v1584_v33 }
 0x5e9   :  { %1782 = vmatprep.subr.mxu1 %v1599_v6  ;;  %p1963_p4 = pnand %p1962_p3, %p1956_p0 }
 0x5ea   :  { %1783 = vmatpush3.msra.mxu1 %v1583_v34 }
 0x5eb   :  { %1784 = vmatprep.subr.mxu1 %v1598_v35 }
 0x5ec   :  { %1785 = vmatpush3.msra.mxu1 %v1582_v36 }
 0x5ed   :  { %1786 = vmatprep.subr.mxu1 %v1597_v37 }
 0x5ee   :  { %1787 = vmatpush3.msra.mxu1 %v1581_v38 }
 0x5ef   :  { %1788 = vmatprep.subr.mxu1 %v1596_v39 }
 0x5f0   :  { %1789 = vmatpush3.msra.mxu1 %v1580_v54 }
 0x5f1   :  { %1790 = vmatprep.subr.mxu1 %v1595_v40 }
 0x5f2   :  { %1791 = vmatpush3.msra.mxu1 %v1579_v41 }
 0x5f3   :  { %1792 = vmatprep.subr.mxu1 %v1594_v42 }
 0x5f4   :  { %1793 = vmatpush3.msra.mxu1 %v1578_v43 }
 0x5f5   :  { %1794 = vmatprep.subr.mxu1 %v1593_v44 }
 0x5f6   :  { %1795 = vmatpush3.msra.mxu1 %v1577_v1 }
 0x5f7   :  { %1796 = vmatprep.subr.mxu1 %v1592_v3 }
 0x5f8   :  { %1797 = vmatpush3.msra.mxu1 %v1576_v5 }
 0x5f9   :  { %1798 = vmatprep.subr.mxu1 %v1591_v7 }
 0x5fa   :  { %1799 = vmatpush3.msra.mxu1 %v1575_v8 }
 0x5fb   :  { %1800 = vmatprep.subr.mxu1 %v1590_v11 }
 0x5fc   :  { %1801 = vmatpush3.msra.mxu1 %v1574_v9 }
 0x5fd   :  { %1802 = vmatprep.subr.mxu1 %v1589_v10 }
 0x5fe   :  { %1803 = vmatpush3.msra.mxu1 %v1573_v0 }
 0x5ff   :  { %1804 = vmatprep.subr.mxu1 %v1588_v12 }
 0x600   :  { %1805 = vmatpush3.msra.mxu1 %v1572_v13 }
 0x601   :  { %1806 = vmatprep.subr.mxu1 %v1587_v14 }
 0x602   :  { %1807 = vmatpush3.msra.mxu1 %v1571_v15 }
 0x6a3   :  { %v1339_v50 = vpop.f32.mrf.mxu1 }
 0x6a4   :  { %v1356_v51 = vmul.f32 %v1349_v47, %v1339_v50 }
 0x6a5   :  { %v1341_v53 = vpop.f32.mrf.mxu1 }
 0x6a6   :  { %v1370_v55 = vadd.f32 %v1363_v48, %v1356_v51  ;;  %v1357_v56 = vmul.f32 %v1353_v49, %v1341_v53 }
 0x6a8   :  { %v1371_v57 = vadd.f32 %v1367_v52, %v1357_v56  ;;  %v1374_v59 = vmul.f32 0.01, %v1370_v55  ;;  %vm1372_vm9 = vcmp.gt.f32.partialorder %v1370_v55, 0.0 }
 0x6aa   :  { %vm1373_vm8 = vcmp.gt.f32.partialorder %v1371_v57, 0.0  ;;  %v1375_v61 = vmul.f32 0.01, %v1371_v57  ;;  %v1376_v63 = vsel %vm1372_vm9, %v1370_v55, %v1374_v59 }
 0x6ac   :  { %v1377_v62 = vsel %vm1373_vm8, %v1371_v57, %v1375_v61 }
 0x6ad   :  { %1518 = vmatprep.mubr.f32.mxu0 %v1377_v62 }
 0x6ae   :  { %1519 = vmatmul.mubr.f32.vlgmr.msra.gmra.mxu0 %v1376_v63 }
 0x76e   :  { %v1520_v22 = vpop.f32.mrf.mxu0 }
 0x76f   :  { %v1521_v23 = vadd.f32 %v1520_v22, %v1447_v18 }
 0x770   :  { %v1522_v26 = vpop.f32.mrf.mxu0 }
 0x771   :  { %v1549_v28 = vmul.f32 %v1542_v20, %v1521_v23  ;;  %v1523_v29 = vadd.f32 %v1522_v26, %v1451_v21 }
 0x773   :  { %v1563_v2 = vadd.f32 %v1556_v24, %v1549_v28  ;;  %v1550_v31 = vmul.f32 %v1546_v25, %v1523_v29  ;;  %v1527_v32 = vcombine.low %v1521_v23, %v1523_v29 }
 0x775   :  { %v1564_v4 = vadd.f32 %v1560_v30, %v1550_v31  ;;  %1734 = vst.sshfl [vmem:[#allocation2] sm:$0x33 pattern:$0x76325410] %v1527_v32  ;;  %v1567_v27 = vmul.f32 0.01, %v1563_v2 }
 0x776   :  { %vm1565_vm11 = vcmp.gt.f32.partialorder %v1563_v2, 0.0 }
 0x777   :  { %vm1566_vm10 = vcmp.gt.f32.partialorder %v1564_v4, 0.0  ;;  %v1568_v33 = vmul.f32 0.01, %v1564_v4  ;;  %v1569_v34 = vsel %vm1565_vm11, %v1563_v2, %v1567_v27 }
 0x779   :  { %v1570_v6 = vsel %vm1566_vm10, %v1564_v4, %v1568_v33 }
 0x77a   :  { %1674 = vmatprep.mubr.f32.mxu1 %v1570_v6 }
 0x77b   :  { %1675 = vmatmul.mubr.f32.vlgmr.msra.gmra.mxu1 %v1569_v34 }
 0x77c   :  { %1966 = shalt.err (!%p1963_p4)
}
 0x77d   :  { %1691 = dma.vmem_to_hbm [thread:$0]  %s1689_s18, 64, %s3052_s22, [#allocation3]   ;;  %v1735_v60 = vld [vmem:[%s3051_s21] ss:$0 sm:$0xff]  ;;  %vm1680_vm12 = vcmask 74752  }
 0x77e   :  { %s2002_s6 = smov [#allocation4]  }
 0x77f   :  { %s1698_s16 = sshll.u32 %s2002_s6, 4  ;;  %s1699_s16 = int_to_ptr.vmem [resolvable:$true] %s1698_s16 }
 0x780   :  { %s1975_s27 = scalar_lea.vmem %s1699_s16, 32  ;;  %p1980_p6 = scmp.lt.s32.totalorder %s1699_s16, %s1699_s16 }
 0x781   :  { %p1976_p5 = scmp.ne.s32.totalorder %s1699_s16, %s1975_s27  ;;  %p1981_p7 = scmp.lt.s32.totalorder %s1975_s27, %s1975_s27 }
 0x783   :  { %p1982_p8 = por %p1981_p7, %p1980_p6 }
 0x785   :  { %p1983_p9 = pnand %p1982_p8, %p1976_p5 }
 0x83b   :  { %v1808_v58 = vpop.f32.mrf.mxu1 }
 0x83d   :  { %v1809_v35 = vpop.f32.mrf.mxu1 }
 0x83e   :  { %v1810_v36 = vadd.f32 %v1809_v35, %v1808_v58 }
 0x840   :  { %v1677_v37 = vadd.f32 %v1810_v36, %v1735_v60 }
 0x842   :  { %1681 = vst.msk [vmem:[#allocation4] sm:$0x3] %vm1680_vm12, %v1677_v37 }
 0x843   :  { %1986 = shalt.err (!%p1983_p9)
}
 0x844   :  { %1701 = dma.vmem_to_hbm [thread:$0]  %s1699_s16, 32, %s3053_s23, [#allocation5]  }
 0x845   :  { %1995 = dma.done.wait [#allocation3], 64  }
 0x846   :  { %1996 = vsyncadd [#allocation3], 4294967232 }
 0x847   :  { %1997 = dma.done.wait [#allocation5], 32  }
 0x848   :  { %1998 = vsyncadd [#allocation5], 4294967264 }
 0x849   :  { %1708 = vsyncpa [#allocation3], 1 }
 0x84a   :  { %1709 = vsyncpa [#allocation5], 1 }

</bundles_post_ra>
